<compile_context>
chip_gen: v6e
topology: v6e:2x2x1
jax: 0.10.0
libtpu: 0.0.40
codegen_flags: <defaults>
</compile_context>

<pallas_src>
import functools

import jax
import jax.numpy as jnp
from jax.experimental import pallas as pl
from jax.experimental.pallas import tpu as pltpu


# ----------------------------------------------------------------------------
# Constants / small helpers
# ----------------------------------------------------------------------------
FEAT_DIM = 64 * 13 * 13      # 10816 flattened feature dim (forces 64x64 input)
HEAD_PAD = 128               # lane-dense hidden / output width of the head
CONV_N_PAD = 128             # lane-dense conv output channel padding
HEAD_K_CHUNKS = 2            # fc1 contraction split (finer W1 DMA pipelining)


def _round_up(x, m):
    return ((x + m - 1) // m) * m


FEAT_PAD = _round_up(FEAT_DIM, 128 * HEAD_K_CHUNKS)   # 11008 (chunks of 5504)


def _bn_fold(bn, eps=1e-5):
    scale = bn["gamma"] / jnp.sqrt(bn["var"] + eps)
    shift = bn["beta"] - bn["mean"] * scale
    return scale, shift


# ----------------------------------------------------------------------------
# Pallas kernel 1: fused GEMM + folded bias/BN shift + activation (conv layers)
#   Y = act(X @ W + shift), X/W bf16, f32 MXU accumulation, bf16 lane-dense out.
# ----------------------------------------------------------------------------
def _gemm_shift_act_kernel(act, x_ref, w_ref, s_ref, o_ref):
    y = jnp.dot(x_ref[...], w_ref[...], preferred_element_type=jnp.float32)
    y = y + s_ref[...]
    if act == "relu":
        y = jnp.maximum(y, 0.0)
    elif act == "sigmoid":
        y = pl.reciprocal(1.0 + jnp.exp(-y), approx=True)
    o_ref[...] = y.astype(o_ref.dtype)


def gemm_shift_act(x, w, shift, *, act="none", bm=1024):
    """x:(M,K) bf16, w:(K,N) bf16, shift:(1,N) f32 -> act(x@w+shift):(M,N) bf16.

    M is zero-padded up to a multiple of bm (bm is a multiple of 16 so bf16
    LHS blocks are sublane-aligned); the pad rows are sliced off again.
    """
    assert bm % 16 == 0, "row tile must be a multiple of 16 for bf16 packing"
    M, K = x.shape
    N = w.shape[1]
    Mp = _round_up(M, bm)
    if Mp != M:
        x = jnp.pad(x, ((0, Mp - M), (0, 0)))
    out = pl.pallas_call(
        functools.partial(_gemm_shift_act_kernel, act),
        out_shape=jax.ShapeDtypeStruct((Mp, N), jnp.bfloat16),
        grid_spec=pltpu.PrefetchScalarGridSpec(
            num_scalar_prefetch=0,
            grid=(Mp // bm,),
            in_specs=[
                pl.BlockSpec((bm, K), lambda i: (i, 0)),
                pl.BlockSpec((K, N), lambda i: (0, 0)),
                pl.BlockSpec((1, N), lambda i: (0, 0)),
            ],
            out_specs=pl.BlockSpec((bm, N), lambda i: (i, 0)),
        ),
        compiler_params=pltpu.CompilerParams(
            dimension_semantics=("parallel",),
        ),
    )(x, w, shift)
    return out[:M] if Mp != M else out


# ----------------------------------------------------------------------------
# Pallas kernel 2: fused classifier head (class classifier + domain classifiers)
#   grid = (H, KC): one "head" per H step; fc1's 10816-dim contraction is split
#   into KC chunks (f32 accumulator in VMEM, k axis "arbitrary").  Per head:
#     h = relu(feat @ W1 + s1)        (bias + BN folded into W1/s1, bf16 W1)
#     h = relu(h @ W2 + s2)           (identity W2 for domain heads, bf16)
#     o = sigmoid(h @ W3 + s3)        (real output lives in lane 0)
# ----------------------------------------------------------------------------
def _head_kernel(feat_ref, w1_ref, s1_ref, w2_ref, s2_ref, w3_ref, s3_ref,
                 o_ref, acc_ref):
    k = pl.program_id(1)

    @pl.when(k == 0)
    def _():
        acc_ref[...] = jnp.zeros_like(acc_ref)

    acc_ref[...] += jnp.dot(feat_ref[...], w1_ref[0],
                            preferred_element_type=jnp.float32)

    @pl.when(k == pl.num_programs(1) - 1)
    def _():
        h = jnp.maximum(acc_ref[...] + s1_ref[0], 0.0)
        h = jnp.dot(h.astype(jnp.bfloat16), w2_ref[0],
                    preferred_element_type=jnp.float32)
        h = jnp.maximum(h + s2_ref[0], 0.0)
        h = jnp.dot(h.astype(jnp.bfloat16), w3_ref[0],
                    preferred_element_type=jnp.float32) + s3_ref[0]
        o_ref[0] = pl.reciprocal(1.0 + jnp.exp(-h), approx=True)


def fused_head(feat_pad, w1s, s1s, w2s, s2s, w3s, s3s):
    H, Dp, P = w1s.shape
    B = feat_pad.shape[0]
    assert Dp % (128 * HEAD_K_CHUNKS) == 0
    dk = Dp // HEAD_K_CHUNKS
    return pl.pallas_call(
        _head_kernel,
        out_shape=jax.ShapeDtypeStruct((H, B, P), jnp.float32),
        grid_spec=pltpu.PrefetchScalarGridSpec(
            num_scalar_prefetch=0,
            grid=(H, HEAD_K_CHUNKS),
            in_specs=[
                pl.BlockSpec((B, dk), lambda h, k: (0, k)),
                pl.BlockSpec((1, dk, P), lambda h, k: (h, k, 0)),
                pl.BlockSpec((1, 1, P), lambda h, k: (h, 0, 0)),
                pl.BlockSpec((1, P, P), lambda h, k: (h, 0, 0)),
                pl.BlockSpec((1, 1, P), lambda h, k: (h, 0, 0)),
                pl.BlockSpec((1, P, P), lambda h, k: (h, 0, 0)),
                pl.BlockSpec((1, 1, P), lambda h, k: (h, 0, 0)),
            ],
            out_specs=pl.BlockSpec((1, B, P), lambda h, k: (h, 0, 0)),
            scratch_shapes=[pltpu.VMEM((B, P), jnp.float32)],
        ),
        compiler_params=pltpu.CompilerParams(
            dimension_semantics=("parallel", "arbitrary"),
        ),
    )(feat_pad, w1s, s1s, w2s, s2s, w3s, s3s)


# ----------------------------------------------------------------------------
# Plain-JAX glue: im2col, 2x2 max-pool
# ----------------------------------------------------------------------------
# TODO(synk): fuse ReLU + 2x2 maxpool (and ideally the 25-tap im2col of the
# next layer) into the conv GEMM epilogue to remove the remaining activation
# HBM round-trips; also restructure conv1 so its contraction dim is >= 128
# (K=25 wastes lanes).  Kept as XLA glue here for lowering robustness.
def im2col(x, kh, kw):
    """x: (B,H,W,C) NHWC -> patches (B*Ho*Wo, kh*kw*C), valid padding, stride 1."""
    B, H, W, C = x.shape
    Ho, Wo = H - kh + 1, W - kw + 1
    patches = [x[:, dy:dy + Ho, dx:dx + Wo, :] for dy in range(kh) for dx in range(kw)]
    p = jnp.stack(patches, axis=3)                 # (B, Ho, Wo, kh*kw, C)
    return p.reshape(B * Ho * Wo, kh * kw * C), (Ho, Wo)


def maxpool2(x):
    B, H, W, C = x.shape
    return jnp.max(x.reshape(B, H // 2, 2, W // 2, 2, C), axis=(2, 4))


# ----------------------------------------------------------------------------
# One-time parameter packing (OUTSIDE the per-call jit): fold conv bias + BN,
# zero-pad to lane-dense widths, stack the class + domain heads, cast to bf16.
# ----------------------------------------------------------------------------
def _conv_fold(w, b, bn):
    """Fold inference BN + bias into conv weights; pad Cout to 128 (lane-dense)."""
    sc, sh = _bn_fold(bn)
    cout = w.shape[-1]
    wk = jnp.pad(w.reshape(-1, cout) * sc[None, :],
                 ((0, 0), (0, CONV_N_PAD - cout))).astype(jnp.bfloat16)
    bs = jnp.pad(b * sc + sh, (0, CONV_N_PAD - cout)).reshape(1, CONV_N_PAD)
    return wk, bs.astype(jnp.float32)


def _stack_heads(params, n_domain):
    """Stack class + domain classifiers into one (1+n_domain)-head weight set."""
    P = HEAD_PAD

    def pad_w1(w):   # (FEAT_DIM, n) -> (FEAT_PAD, P)
        return jnp.pad(w, ((0, FEAT_PAD - w.shape[0]), (0, P - w.shape[1])))

    def pad_vec(v):  # (n,) -> (P,)
        return jnp.pad(v, (0, P - v.shape[0]))

    def pad_sq(w):   # (a, b) -> (P, P)
        return jnp.pad(w, ((0, P - w.shape[0]), (0, P - w.shape[1])))

    w1l, s1l, w2l, s2l, w3l, s3l = [], [], [], [], [], []

    # head 0: class classifier (fc1+bn1+relu, fc2+bn2+relu, fc3+sigmoid)
    sc1, sh1 = _bn_fold(params["c_bn1"])
    w1l.append(pad_w1(params["c_fc1_w"] * sc1[None, :]))
    s1l.append(pad_vec(params["c_fc1_b"] * sc1 + sh1))
    sc2, sh2 = _bn_fold(params["c_bn2"])
    w2l.append(pad_sq(params["c_fc2_w"] * sc2[None, :]))
    s2l.append(pad_vec(params["c_fc2_b"] * sc2 + sh2))
    w3l.append(pad_sq(params["c_fc3_w"]))
    s3l.append(pad_vec(params["c_fc3_b"]))

    # heads 1..n_domain: adversarial blocks (fc1+bn+relu, fc2+sigmoid)
    eye = jnp.eye(P, dtype=jnp.float32)       # identity "fc2" stage
    zer = jnp.zeros((P,), jnp.float32)
    for i in range(n_domain):
        dp = params["domains"][i]
        sc, sh = _bn_fold(dp["bn1"])
        w1l.append(pad_w1(dp["fc1_w"] * sc[None, :]))
        s1l.append(pad_vec(dp["fc1_b"] * sc + sh))
        w2l.append(eye)
        s2l.append(zer)
        w3l.append(pad_sq(dp["fc2_w"]))
        s3l.append(pad_vec(dp["fc2_b"]))

    w1s = jnp.stack(w1l).astype(jnp.bfloat16)                 # (H, 11008, 128)
    s1s = jnp.stack(s1l).reshape(-1, 1, P).astype(jnp.float32)
    w2s = jnp.stack(w2l).astype(jnp.bfloat16)                 # (H, 128, 128)
    s2s = jnp.stack(s2l).reshape(-1, 1, P).astype(jnp.float32)
    w3s = jnp.stack(w3l).astype(jnp.bfloat16)                 # (H, 128, 128)
    s3s = jnp.stack(s3l).reshape(-1, 1, P).astype(jnp.float32)
    return w1s, s1s, w2s, s2s, w3s, s3s


def pack_params(params, n_domain):
    """Run ONCE (e.g. at model-load time).  The per-call jitted forward only
    consumes these already-folded / padded / bf16 device arrays."""
    wk1, bs1 = _conv_fold(params["w1"], params["b1"], params["bn1"])
    wk2, bs2 = _conv_fold(params["w2"], params["b2"], params["bn2"])
    w1s, s1s, w2s, s2s, w3s, s3s = _stack_heads(params, n_domain)
    return dict(wk1=wk1, bs1=bs1, wk2=wk2, bs2=bs2,
                w1s=w1s, s1s=s1s, w2s=w2s, s2s=s2s, w3s=w3s, s3s=s3s)


# ----------------------------------------------------------------------------
# Deterministic synthetic parameter init (shapes from the PyTorch __init__)
# ----------------------------------------------------------------------------
def init_params(key, n_domain, input_channel):
    keys = iter(jax.random.split(key, 64))

    def nrm(shape, s=0.05):
        return s * jax.random.normal(next(keys), shape, jnp.float32)

    def bn(n):
        return dict(
            gamma=1.0 + 0.1 * jax.random.normal(next(keys), (n,), jnp.float32),
            beta=0.1 * jax.random.normal(next(keys), (n,), jnp.float32),
            mean=0.1 * jax.random.normal(next(keys), (n,), jnp.float32),
            var=1.0 + 0.5 * jax.random.uniform(next(keys), (n,), jnp.float32),
        )

    p = {
        "w1": nrm((5, 5, input_channel, 32)), "b1": nrm((32,)), "bn1": bn(32),
        "w2": nrm((5, 5, 32, 64)), "b2": nrm((64,)), "bn2": bn(64),
        "c_fc1_w": nrm((FEAT_DIM, 100)), "c_fc1_b": nrm((100,)), "c_bn1": bn(100),
        "c_fc2_w": nrm((100, 100)), "c_fc2_b": nrm((100,)), "c_bn2": bn(100),
        "c_fc3_w": nrm((100, 1)), "c_fc3_b": nrm((1,)),
        "domains": [],
    }
    for _ in range(n_domain):
        p["domains"].append(dict(
            fc1_w=nrm((FEAT_DIM, 100)), fc1_b=nrm((100,)), bn1=bn(100),
            fc2_w=nrm((100, 1)), fc2_b=nrm((1,)),
        ))
    return p


# ----------------------------------------------------------------------------
# Forward pass (matches DANN_ADNI_AUC.forward, inference mode)
# ----------------------------------------------------------------------------
@functools.partial(jax.jit, static_argnames=("n_domain",))
def dann_forward(packed, input_data_nchw, alpha, *, n_domain):
    del alpha  # ReverseLayerF: identity in the forward pass (gradient-only op)
    B = input_data_nchw.shape[0]
    x = jnp.transpose(input_data_nchw, (0, 2, 3, 1)).astype(jnp.bfloat16)  # NHWC

    # --- feature block 1: conv(5x5, Cin->32) + BN + [pool] + ReLU ------------
    cols1, (ho1, wo1) = im2col(x, 5, 5)                        # (B*3600, 25*Cin)
    y = gemm_shift_act(cols1, packed["wk1"], packed["bs1"], act="relu", bm=1600)
    y = maxpool2(y[:, :32].reshape(B, ho1, wo1, 32))           # (B, 30, 30, 32)

    # --- feature block 2: conv(5x5, 32->64) + BN + drop(eval=id) + [pool] + ReLU
    cols2, (ho2, wo2) = im2col(y, 5, 5)                        # (B*676, 800) bf16
    z = gemm_shift_act(cols2, packed["wk2"], packed["bs2"], act="relu", bm=704)
    z = maxpool2(z[:, :64].reshape(B, ho2, wo2, 64))           # (B, 13, 13, 64)

    # flatten in NHWC order (equals PyTorch's NCHW flatten up to a fixed row
    # permutation of fc1's weights; the synthetic params / reference use the
    # same order -- real PyTorch weights would need that permutation applied
    # in pack_params).
    feature = z.reshape(B, -1)                                 # (B, 10816) bf16
    feat_pad = jnp.pad(feature, ((0, 0), (0, FEAT_PAD - feature.shape[1])))

    # --- fused classifier head: class classifier + all domain classifiers ---
    out = fused_head(feat_pad, packed["w1s"], packed["s1s"], packed["w2s"],
                     packed["s2s"], packed["w3s"], packed["s3s"])  # (H, B, 128)
    class_output = out[0, :, 0:1]
    domain_output = [out[1 + i, :, 0:1] for i in range(n_domain)]
    return class_output, domain_output


# ----------------------------------------------------------------------------
# Plain-JAX f32 reference of the same forward (for a numerical sanity check)
# ----------------------------------------------------------------------------
def dann_forward_ref(params, input_data_nchw, n_domain):
    B = input_data_nchw.shape[0]
    x = jnp.transpose(input_data_nchw, (0, 2, 3, 1)).astype(jnp.float32)

    def fc(v, w, b, bn=None, act="none"):
        y = v @ w + b
        if bn is not None:
            s, t = _bn_fold(bn)
            y = y * s + t
        if act == "relu":
            y = jnp.maximum(y, 0.0)
        elif act == "sigmoid":
            y = jax.nn.sigmoid(y)
        return y

    cols1, (ho1, wo1) = im2col(x, 5, 5)
    y = fc(cols1, params["w1"].reshape(-1, 32), params["b1"], params["bn1"], "relu")
    y = maxpool2(y.reshape(B, ho1, wo1, 32))
    cols2, (ho2, wo2) = im2col(y, 5, 5)
    z = fc(cols2, params["w2"].reshape(-1, 64), params["b2"], params["bn2"], "relu")
    z = maxpool2(z.reshape(B, ho2, wo2, 64))
    feature = z.reshape(B, -1)
    h = fc(feature, params["c_fc1_w"], params["c_fc1_b"], params["c_bn1"], "relu")
    h = fc(h, params["c_fc2_w"], params["c_fc2_b"], params["c_bn2"], "relu")
    c = fc(h, params["c_fc3_w"], params["c_fc3_b"], None, "sigmoid")
    d_outs = []
    for i in range(n_domain):
        dp = params["domains"][i]
        dh = fc(feature, dp["fc1_w"], dp["fc1_b"], dp["bn1"], "relu")
        d_outs.append(fc(dh, dp["fc2_w"], dp["fc2_b"], None, "sigmoid"))
    return c, d_outs


# ----------------------------------------------------------------------------
if __name__ == "__main__":
    n_domain = 3
    input_channel = 1
    batch = 4
    # 64x64 spatial size is implied by the 64*13*13 flattened feature dim.
    key = jax.random.PRNGKey(0)
    k_par, k_in = jax.random.split(key)
    params = init_params(k_par, n_domain, input_channel)
    input_data = jax.random.normal(k_in, (batch, input_channel, 64, 64), jnp.float32)
    alpha = jnp.float32(0.5)

    # One-time weight packing (outside the per-call jit).
    packed = pack_params(params, n_domain)
    packed = jax.tree_util.tree_map(jax.block_until_ready, packed)

    class_out, domain_out = dann_forward(packed, input_data, alpha, n_domain=n_domain)
    class_out = jax.block_until_ready(class_out)
    domain_out = [jax.block_until_ready(d) for d in domain_out]

    assert class_out.shape == (batch, 1)
    assert len(domain_out) == n_domain and all(d.shape == (batch, 1) for d in domain_out)
    assert bool(jnp.all(jnp.isfinite(class_out)))

    # numerical sanity check against the plain-JAX f32 reference (bf16 tolerance)
    ref_c, ref_d = dann_forward_ref(params, input_data, n_domain)
    assert bool(jnp.allclose(class_out, ref_c, atol=4e-2)), (
        "class max abs err", float(jnp.max(jnp.abs(class_out - ref_c))))
    for d_out, rd in zip(domain_out, ref_d):
        assert bool(jnp.allclose(d_out, rd, atol=4e-2)), (
            "domain max abs err", float(jnp.max(jnp.abs(d_out - rd))))

    print("KERNEL_OK")
</pallas_src>

<mosaic_0001>
module attributes {stable_mosaic.version = 11 : i64} {
  func.func @_gemm_shift_act_kernel(%arg0: i32, %arg1: memref<1600x25xbf16, #tpu.memory_space<vmem>>, %arg2: memref<25x128xbf16, #tpu.memory_space<vmem>>, %arg3: memref<1x128xf32, #tpu.memory_space<vmem>>, %arg4: memref<1600x128xbf16, #tpu.memory_space<vmem>>) attributes {dimension_semantics = [#tpu.dimension_semantics<parallel>], iteration_bounds = array<i64: 9>, scalar_prefetch = 0 : i64, scratch_operands = 0 : i64, tpu.core_type = #tpu.core_type<tc>, window_params = [{transform_indices = @transform_0, window_bounds = array<i64: 1600, 25>}, {pipeline_mode = #tpu.pipeline_mode<synchronous>, transform_indices = @transform_1, window_bounds = array<i64: 25, 128>}, {pipeline_mode = #tpu.pipeline_mode<synchronous>, transform_indices = @transform_2, window_bounds = array<i64: 1, 128>}, {transform_indices = @transform_3, window_bounds = array<i64: 1600, 128>}]} {
    %c0 = arith.constant 0 : index
    %c0_0 = arith.constant 0 : index
    %0 = vector.load %arg1[%c0, %c0_0] : memref<1600x25xbf16, #tpu.memory_space<vmem>>, vector<1600x25xbf16>
    %c0_1 = arith.constant 0 : index
    %c0_2 = arith.constant 0 : index
    %1 = vector.load %arg2[%c0_1, %c0_2] : memref<25x128xbf16, #tpu.memory_space<vmem>>, vector<25x128xbf16>
    %cst = arith.constant dense<0.000000e+00> : vector<1600x128xf32>
    %2 = tpu.matmul %0, %1, %cst {dimension_numbers = #tpu.dot_dimension_numbers<[1], [0], [0], [1], [0, 0, 1, 1], [], []>} : vector<1600x25xbf16>, vector<25x128xbf16>, vector<1600x128xf32> -> vector<1600x128xf32>
    %c0_3 = arith.constant 0 : index
    %c0_4 = arith.constant 0 : index
    %3 = vector.load %arg3[%c0_3, %c0_4] : memref<1x128xf32, #tpu.memory_space<vmem>>, vector<1x128xf32>
    %4 = vector.broadcast %3 : vector<1x128xf32> to vector<1600x128xf32>
    %5 = arith.addf %2, %4 : vector<1600x128xf32>
    %cst_5 = arith.constant 0.000000e+00 : f32
    %6 = vector.broadcast %cst_5 : f32 to vector<1600x128xf32>
    %7 = arith.maximumf %5, %6 : vector<1600x128xf32>
    %8 = arith.truncf %7 : vector<1600x128xf32> to vector<1600x128xbf16>
    %c0_6 = arith.constant 0 : index
    %c0_7 = arith.constant 0 : index
    %9 = vector.load %arg4[%c0_6, %c0_7] : memref<1600x128xbf16, #tpu.memory_space<vmem>>, vector<1600x128xbf16>
    tpu.vector_store %arg4[%c0_6, %c0_7], %8 {strides = array<i32>} : memref<1600x128xbf16, #tpu.memory_space<vmem>>, vector<1600x128xbf16>,
    return
  }
  func.func @transform_0(%arg0: i32) -> (i32, i32) {
    %c0_i32 = arith.constant 0 : i32
    %c0_i32_0 = arith.constant 0 : i32
    return %arg0, %c0_i32 : i32, i32
  }
  func.func @transform_1(%arg0: i32) -> (i32, i32) {
    %c0_i32 = arith.constant 0 : i32
    %c0_i32_0 = arith.constant 0 : i32
    %c0_i32_1 = arith.constant 0 : i32
    return %c0_i32, %c0_i32_0 : i32, i32
  }
  func.func @transform_2(%arg0: i32) -> (i32, i32) {
    %c0_i32 = arith.constant 0 : i32
    %c0_i32_0 = arith.constant 0 : i32
    %c0_i32_1 = arith.constant 0 : i32
    return %c0_i32, %c0_i32_0 : i32, i32
  }
  func.func @transform_3(%arg0: i32) -> (i32, i32) {
    %c0_i32 = arith.constant 0 : i32
    %c0_i32_0 = arith.constant 0 : i32
    return %arg0, %c0_i32 : i32, i32
  }
}

module attributes {stable_mosaic.version = 11 : i64} {
  func.func @_gemm_shift_act_kernel(%arg0: i32, %arg1: memref<704x800xbf16, #tpu.memory_space<vmem>>, %arg2: memref<800x128xbf16, #tpu.memory_space<vmem>>, %arg3: memref<1x128xf32, #tpu.memory_space<vmem>>, %arg4: memref<704x128xbf16, #tpu.memory_space<vmem>>) attributes {dimension_semantics = [#tpu.dimension_semantics<parallel>], iteration_bounds = array<i64: 4>, scalar_prefetch = 0 : i64, scratch_operands = 0 : i64, tpu.core_type = #tpu.core_type<tc>, window_params = [{transform_indices = @transform_0, window_bounds = array<i64: 704, 800>}, {pipeline_mode = #tpu.pipeline_mode<synchronous>, transform_indices = @transform_1, window_bounds = array<i64: 800, 128>}, {pipeline_mode = #tpu.pipeline_mode<synchronous>, transform_indices = @transform_2, window_bounds = array<i64: 1, 128>}, {transform_indices = @transform_3, window_bounds = array<i64: 704, 128>}]} {
    %c0 = arith.constant 0 : index
    %c0_0 = arith.constant 0 : index
    %0 = vector.load %arg1[%c0, %c0_0] : memref<704x800xbf16, #tpu.memory_space<vmem>>, vector<704x800xbf16>
    %c0_1 = arith.constant 0 : index
    %c0_2 = arith.constant 0 : index
    %1 = vector.load %arg2[%c0_1, %c0_2] : memref<800x128xbf16, #tpu.memory_space<vmem>>, vector<800x128xbf16>
    %cst = arith.constant dense<0.000000e+00> : vector<704x128xf32>
    %2 = tpu.matmul %0, %1, %cst {dimension_numbers = #tpu.dot_dimension_numbers<[1], [0], [0], [1], [0, 0, 1, 1], [], []>} : vector<704x800xbf16>, vector<800x128xbf16>, vector<704x128xf32> -> vector<704x128xf32>
    %c0_3 = arith.constant 0 : index
    %c0_4 = arith.constant 0 : index
    %3 = vector.load %arg3[%c0_3, %c0_4] : memref<1x128xf32, #tpu.memory_space<vmem>>, vector<1x128xf32>
    %4 = vector.broadcast %3 : vector<1x128xf32> to vector<704x128xf32>
    %5 = arith.addf %2, %4 : vector<704x128xf32>
    %cst_5 = arith.constant 0.000000e+00 : f32
    %6 = vector.broadcast %cst_5 : f32 to vector<704x128xf32>
    %7 = arith.maximumf %5, %6 : vector<704x128xf32>
    %8 = arith.truncf %7 : vector<704x128xf32> to vector<704x128xbf16>
    %c0_6 = arith.constant 0 : index
    %c0_7 = arith.constant 0 : index
    %9 = vector.load %arg4[%c0_6, %c0_7] : memref<704x128xbf16, #tpu.memory_space<vmem>>, vector<704x128xbf16>
    tpu.vector_store %arg4[%c0_6, %c0_7], %8 {strides = array<i32>} : memref<704x128xbf16, #tpu.memory_space<vmem>>, vector<704x128xbf16>,
    return
  }
  func.func @transform_0(%arg0: i32) -> (i32, i32) {
    %c0_i32 = arith.constant 0 : i32
    %c0_i32_0 = arith.constant 0 : i32
    return %arg0, %c0_i32 : i32, i32
  }
  func.func @transform_1(%arg0: i32) -> (i32, i32) {
    %c0_i32 = arith.constant 0 : i32
    %c0_i32_0 = arith.constant 0 : i32
    %c0_i32_1 = arith.constant 0 : i32
    return %c0_i32, %c0_i32_0 : i32, i32
  }
  func.func @transform_2(%arg0: i32) -> (i32, i32) {
    %c0_i32 = arith.constant 0 : i32
    %c0_i32_0 = arith.constant 0 : i32
    %c0_i32_1 = arith.constant 0 : i32
    return %c0_i32, %c0_i32_0 : i32, i32
  }
  func.func @transform_3(%arg0: i32) -> (i32, i32) {
    %c0_i32 = arith.constant 0 : i32
    %c0_i32_0 = arith.constant 0 : i32
    return %arg0, %c0_i32 : i32, i32
  }
}

module attributes {stable_mosaic.version = 11 : i64} {
  func.func @_head_kernel(%arg0: i32, %arg1: i32, %arg2: memref<4x5504xbf16, #tpu.memory_space<vmem>>, %arg3: memref<1x5504x128xbf16, #tpu.memory_space<vmem>>, %arg4: memref<1x1x128xf32, #tpu.memory_space<vmem>>, %arg5: memref<1x128x128xbf16, #tpu.memory_space<vmem>>, %arg6: memref<1x1x128xf32, #tpu.memory_space<vmem>>, %arg7: memref<1x128x128xbf16, #tpu.memory_space<vmem>>, %arg8: memref<1x1x128xf32, #tpu.memory_space<vmem>>, %arg9: memref<1x4x128xf32, #tpu.memory_space<vmem>>, %arg10: memref<4x128xf32, #tpu.memory_space<vmem>>) attributes {dimension_semantics = [#tpu.dimension_semantics<parallel>, #tpu.dimension_semantics<arbitrary>], iteration_bounds = array<i64: 4, 2>, scalar_prefetch = 0 : i64, scratch_operands = 1 : i64, tpu.core_type = #tpu.core_type<tc>, window_params = [{transform_indices = @transform_0, window_bounds = array<i64: 4, 5504>}, {transform_indices = @transform_1, window_bounds = array<i64: 1, 5504, 128>}, {transform_indices = @transform_2, window_bounds = array<i64: 1, 1, 128>}, {transform_indices = @transform_3, window_bounds = array<i64: 1, 128, 128>}, {transform_indices = @transform_4, window_bounds = array<i64: 1, 1, 128>}, {transform_indices = @transform_5, window_bounds = array<i64: 1, 128, 128>}, {transform_indices = @transform_6, window_bounds = array<i64: 1, 1, 128>}, {transform_indices = @transform_7, window_bounds = array<i64: 1, 4, 128>}]} {
    %c0_i32 = arith.constant 0 : i32
    %0 = arith.cmpi eq, %arg1, %c0_i32 : i32
    %1 = arith.extui %0 : i1 to i32
    %c0_i32_0 = arith.constant 0 : i32
    %2 = arith.cmpi ne, %1, %c0_i32_0 : i32
    scf.if %2 {
      %cst_10 = arith.constant 0.000000e+00 : f32
      %13 = vector.broadcast %cst_10 : f32 to vector<4x128xf32>
      %c0_11 = arith.constant 0 : index
      %c0_12 = arith.constant 0 : index
      %14 = vector.load %arg10[%c0_11, %c0_12] : memref<4x128xf32, #tpu.memory_space<vmem>>, vector<4x128xf32>
      tpu.vector_store %arg10[%c0_11, %c0_12], %13 {strides = array<i32>} : memref<4x128xf32, #tpu.memory_space<vmem>>, vector<4x128xf32>,
    } else {
    }
    %c0 = arith.constant 0 : index
    %c0_1 = arith.constant 0 : index
    %3 = vector.load %arg10[%c0, %c0_1] : memref<4x128xf32, #tpu.memory_space<vmem>>, vector<4x128xf32>
    %c0_2 = arith.constant 0 : index
    %c0_3 = arith.constant 0 : index
    %4 = vector.load %arg2[%c0_2, %c0_3] : memref<4x5504xbf16, #tpu.memory_space<vmem>>, vector<4x5504xbf16>
    %c0_4 = arith.constant 0 : index
    %c0_5 = arith.constant 0 : index
    %c0_6 = arith.constant 0 : index
    %5 = vector.load %arg3[%c0_4, %c0_5, %c0_6] : memref<1x5504x128xbf16, #tpu.memory_space<vmem>>, vector<1x5504x128xbf16>
    %6 = vector.shape_cast %5 : vector<1x5504x128xbf16> to vector<5504x128xbf16>
    %cst = arith.constant dense<0.000000e+00> : vector<4x128xf32>
    %7 = tpu.matmul %4, %6, %cst {dimension_numbers = #tpu.dot_dimension_numbers<[1], [0], [0], [1], [0, 0, 1, 1], [], []>} : vector<4x5504xbf16>, vector<5504x128xbf16>, vector<4x128xf32> -> vector<4x128xf32>
    %8 = arith.addf %3, %7 : vector<4x128xf32>
    %c0_7 = arith.constant 0 : index
    %c0_8 = arith.constant 0 : index
    %9 = vector.load %arg10[%c0_7, %c0_8] : memref<4x128xf32, #tpu.memory_space<vmem>>, vector<4x128xf32>
    tpu.vector_store %arg10[%c0_7, %c0_8], %8 {strides = array<i32>} : memref<4x128xf32, #tpu.memory_space<vmem>>, vector<4x128xf32>,
    %c1_i32 = arith.constant 1 : i32
    %10 = arith.cmpi eq, %arg1, %c1_i32 : i32
    %11 = arith.extui %10 : i1 to i32
    %c0_i32_9 = arith.constant 0 : i32
    %12 = arith.cmpi ne, %11, %c0_i32_9 : i32
    scf.if %12 {
      %c0_10 = arith.constant 0 : index
      %c0_11 = arith.constant 0 : index
      %13 = vector.load %arg10[%c0_10, %c0_11] : memref<4x128xf32, #tpu.memory_space<vmem>>, vector<4x128xf32>
      %c0_12 = arith.constant 0 : index
      %c0_13 = arith.constant 0 : index
      %c0_14 = arith.constant 0 : index
      %14 = vector.load %arg4[%c0_12, %c0_13, %c0_14] : memref<1x1x128xf32, #tpu.memory_space<vmem>>, vector<1x1x128xf32>
      %15 = vector.shape_cast %14 : vector<1x1x128xf32> to vector<1x128xf32>
      %16 = vector.broadcast %15 : vector<1x128xf32> to vector<4x128xf32>
      %17 = arith.addf %13, %16 : vector<4x128xf32>
      %cst_15 = arith.constant 0.000000e+00 : f32
      %18 = vector.broadcast %cst_15 : f32 to vector<4x128xf32>
      %19 = arith.maximumf %17, %18 : vector<4x128xf32>
      %20 = arith.truncf %19 : vector<4x128xf32> to vector<4x128xbf16>
      %c0_16 = arith.constant 0 : index
      %c0_17 = arith.constant 0 : index
      %c0_18 = arith.constant 0 : index
      %21 = vector.load %arg5[%c0_16, %c0_17, %c0_18] : memref<1x128x128xbf16, #tpu.memory_space<vmem>>, vector<1x128x128xbf16>
      %22 = vector.shape_cast %21 : vector<1x128x128xbf16> to vector<128x128xbf16>
      %cst_19 = arith.constant dense<0.000000e+00> : vector<4x128xf32>
      %23 = tpu.matmul %20, %22, %cst_19 {dimension_numbers = #tpu.dot_dimension_numbers<[1], [0], [0], [1], [0, 0, 1, 1], [], []>} : vector<4x128xbf16>, vector<128x128xbf16>, vector<4x128xf32> -> vector<4x128xf32>
      %c0_20 = arith.constant 0 : index
      %c0_21 = arith.constant 0 : index
      %c0_22 = arith.constant 0 : index
      %24 = vector.load %arg6[%c0_20, %c0_21, %c0_22] : memref<1x1x128xf32, #tpu.memory_space<vmem>>, vector<1x1x128xf32>
      %25 = vector.shape_cast %24 : vector<1x1x128xf32> to vector<1x128xf32>
      %26 = vector.broadcast %25 : vector<1x128xf32> to vector<4x128xf32>
      %27 = arith.addf %23, %26 : vector<4x128xf32>
      %cst_23 = arith.constant 0.000000e+00 : f32
      %28 = vector.broadcast %cst_23 : f32 to vector<4x128xf32>
      %29 = arith.maximumf %27, %28 : vector<4x128xf32>
      %30 = arith.truncf %29 : vector<4x128xf32> to vector<4x128xbf16>
      %c0_24 = arith.constant 0 : index
      %c0_25 = arith.constant 0 : index
      %c0_26 = arith.constant 0 : index
      %31 = vector.load %arg7[%c0_24, %c0_25, %c0_26] : memref<1x128x128xbf16, #tpu.memory_space<vmem>>, vector<1x128x128xbf16>
      %32 = vector.shape_cast %31 : vector<1x128x128xbf16> to vector<128x128xbf16>
      %cst_27 = arith.constant dense<0.000000e+00> : vector<4x128xf32>
      %33 = tpu.matmul %30, %32, %cst_27 {dimension_numbers = #tpu.dot_dimension_numbers<[1], [0], [0], [1], [0, 0, 1, 1], [], []>} : vector<4x128xbf16>, vector<128x128xbf16>, vector<4x128xf32> -> vector<4x128xf32>
      %c0_28 = arith.constant 0 : index
      %c0_29 = arith.constant 0 : index
      %c0_30 = arith.constant 0 : index
      %34 = vector.load %arg8[%c0_28, %c0_29, %c0_30] : memref<1x1x128xf32, #tpu.memory_space<vmem>>, vector<1x1x128xf32>
      %35 = vector.shape_cast %34 : vector<1x1x128xf32> to vector<1x128xf32>
      %36 = vector.broadcast %35 : vector<1x128xf32> to vector<4x128xf32>
      %37 = arith.addf %33, %36 : vector<4x128xf32>
      %cst_31 = arith.constant 0.000000e+00 : f32
      %38 = vector.broadcast %cst_31 : f32 to vector<4x128xf32>
      %39 = arith.subf %38, %37 : vector<4x128xf32>
      %40 = math.exp %39 : vector<4x128xf32>
      %cst_32 = arith.constant 1.000000e+00 : f32
      %41 = vector.broadcast %cst_32 : f32 to vector<4x128xf32>
      %42 = arith.addf %41, %40 : vector<4x128xf32>
      %43 = tpu.reciprocal %42 {approx = true} : vector<4x128xf32> -> vector<4x128xf32>
      %c0_33 = arith.constant 0 : index
      %c0_34 = arith.constant 0 : index
      %c0_35 = arith.constant 0 : index
      %44 = vector.load %arg9[%c0_33, %c0_34, %c0_35] : memref<1x4x128xf32, #tpu.memory_space<vmem>>, vector<1x4x128xf32>
      %45 = vector.shape_cast %44 : vector<1x4x128xf32> to vector<4x128xf32>
      %46 = vector.shape_cast %43 : vector<4x128xf32> to vector<1x4x128xf32>
      tpu.vector_store %arg9[%c0_33, %c0_34, %c0_35], %46 {strides = array<i32>} : memref<1x4x128xf32, #tpu.memory_space<vmem>>, vector<1x4x128xf32>,
    } else {
    }
    return
  }
  func.func @transform_0(%arg0: i32, %arg1: i32) -> (i32, i32) {
    %c0_i32 = arith.constant 0 : i32
    %c0_i32_0 = arith.constant 0 : i32
    return %c0_i32, %arg1 : i32, i32
  }
  func.func @transform_1(%arg0: i32, %arg1: i32) -> (i32, i32, i32) {
    %c0_i32 = arith.constant 0 : i32
    %c0_i32_0 = arith.constant 0 : i32
    return %arg0, %arg1, %c0_i32 : i32, i32, i32
  }
  func.func @transform_2(%arg0: i32, %arg1: i32) -> (i32, i32, i32) {
    %c0_i32 = arith.constant 0 : i32
    %c0_i32_0 = arith.constant 0 : i32
    %c0_i32_1 = arith.constant 0 : i32
    return %arg0, %c0_i32, %c0_i32_0 : i32, i32, i32
  }
  func.func @transform_3(%arg0: i32, %arg1: i32) -> (i32, i32, i32) {
    %c0_i32 = arith.constant 0 : i32
    %c0_i32_0 = arith.constant 0 : i32
    %c0_i32_1 = arith.constant 0 : i32
    return %arg0, %c0_i32, %c0_i32_0 : i32, i32, i32
  }
  func.func @transform_4(%arg0: i32, %arg1: i32) -> (i32, i32, i32) {
    %c0_i32 = arith.constant 0 : i32
    %c0_i32_0 = arith.constant 0 : i32
    %c0_i32_1 = arith.constant 0 : i32
    return %arg0, %c0_i32, %c0_i32_0 : i32, i32, i32
  }
  func.func @transform_5(%arg0: i32, %arg1: i32) -> (i32, i32, i32) {
    %c0_i32 = arith.constant 0 : i32
    %c0_i32_0 = arith.constant 0 : i32
    %c0_i32_1 = arith.constant 0 : i32
    return %arg0, %c0_i32, %c0_i32_0 : i32, i32, i32
  }
  func.func @transform_6(%arg0: i32, %arg1: i32) -> (i32, i32, i32) {
    %c0_i32 = arith.constant 0 : i32
    %c0_i32_0 = arith.constant 0 : i32
    %c0_i32_1 = arith.constant 0 : i32
    return %arg0, %c0_i32, %c0_i32_0 : i32, i32, i32
  }
  func.func @transform_7(%arg0: i32, %arg1: i32) -> (i32, i32, i32) {
    %c0_i32 = arith.constant 0 : i32
    %c0_i32_0 = arith.constant 0 : i32
    %c0_i32_1 = arith.constant 0 : i32
    return %arg0, %c0_i32, %c0_i32_0 : i32, i32, i32
  }
}

</mosaic_0001>

<bundles_post_ra>
// kernel: dann_forward.3
= control target key start
LH: loop header
LB: loop body
LE: loop exit
PB: predicated region body
PF: predicated region fallthrough
CT: control target
= control target key end

     0   :  { %8 = vsyncpa [#allocation3], 0  ;;  %s5677_s0 = inlined_call_operand.vmem [shape: bf16[14400,25], index: 0, kind: input, shape index: {}]   ;;  %s5678_s1 = inlined_call_operand.hbm [shape: bf16[25,128], index: 1, kind: input, shape index: {}]   ;;  %s5679_s2 = inlined_call_operand.hbm [shape: f32[1,128], index: 2, kind: input, shape index: {}]   ;;  %s5680_s3 = inlined_call_operand.vmem [shape: bf16[14400,128], index: 3, kind: output, shape index: {}]  }
   0x1   :  { %9 = vsyncpa [#allocation5], 0  ;;  %s5097_s12 = smov 0  }
   0x2 LB: > { %s3344_s13 = sadd.s32 4294967295, %s5070_s12   ;;  %p3346_p0 = scmp.ge.s32.totalorder %s5070_s12, 1  ;;  %s5070_s12 = sphi %s5097_s12, %s15_s12  }
   0x3   : > { %p114_p1 = scmp.lt.s32.totalorder %s5070_s12, 10  ;;  %s5072_s14 = smov [#allocation2]  }
   0x4   : > { %s126_s15 = sshll.u32 %s5072_s14, 4  ;;  %p5111_p3 = scmp.eq.s32.totalorder %s3344_s13, 0  ;;  %s127_s15 = int_to_ptr.vmem [resolvable:$true] %s126_s15 }
   0x5   : > { %p5105_p2 = pnand %p3346_p0, %p114_p1  ;;  %s5073_s18 = smov [#allocation4]  }
   0x6   : > { %s140_s19 = sshll.u32 %s5073_s18, 4  ;;  %s5015_s21 = scalar_lea.vmem %s127_s15, 256  ;;  %s141_s19 = int_to_ptr.vmem [resolvable:$true] %s140_s19 }
   0x7   : > { %p4877_p4 = pneg %p5105_p2  ;;  %p5016_p7 = scmp.ne.s32.totalorder %s127_s15, %s5015_s21 }
   0x8   : > { %p5023_p10 = scmp.lt.s32.totalorder %s127_s15, %s127_s15  ;;  %p5024_p11 = scmp.lt.s32.totalorder %s5015_s21, %s5015_s21 }
   0x9   : > { %p5119_p5 = pnand %p5111_p3, %p4877_p4 }
   0xa   : > { %p5025_p12 = por %p5024_p11, %p5023_p10 }
   0xb   : > { %p5006_p6 = pneg %p5119_p5 }
   0xd   : > { %p5018_p8 = pnand %p5016_p7, %p5006_p6 }
   0xf   : > { %p5019_p9 = pneg %p5018_p8 }
  0x11   : > { %p5026_p13 = pnand %p5025_p12, %p5019_p9 }
  0x13   : > { %5029 = shalt.err (!%p5026_p13)
}
  0x14   : > { %s5074_s22 = smov 64   ;;  %s5075_s23 = smov 4  }
  0x15   : > { %4880 = dma.hbm_to_vmem [thread:$0]  (!%p5119_p5), %s5678_s1, 256, %s127_s15, [#allocation3], %s5074_s22, %s5074_s22, %s5075_s23  }
  0x16   : > { %s5041_s26 = scalar_lea.vmem %s141_s19, 16  ;;  %s5048_s27 = scalar_lea.vmem %s141_s19, 32 }
  0x17   : > { %p5042_p0 = scmp.ne.s32.totalorder %s141_s19, %s5041_s26  ;;  %p5049_p7 = scmp.lt.s32.totalorder %s141_s19, %s141_s19 }
  0x18   : > { %p5050_p8 = scmp.lt.s32.totalorder %s5048_s27, %s5041_s26 }
  0x19   : > { %p5044_p1 = pnand %p5042_p0, %p5006_p6 }
  0x1a   : > { %p5051_p9 = por %p5050_p8, %p5049_p7 }
  0x1b   : > { %p5045_p4 = pneg %p5044_p1 }
  0x1d   : > { %p5052_p10 = pnand %p5051_p9, %p5045_p4 }
  0x1f   : > { %5055 = shalt.err (!%p5052_p10)
}
  0x20   : > { %4883 = dma.hbm_to_vmem [thread:$0]  (!%p5119_p5), %s5679_s2, 16, %s141_s19, [#allocation5]  }
  0x21   : > { %162 = sbr.rel (%p5105_p2) target bundleno = 452 (0x1c4), region = 32 }
  0x26   : > { %5061 = dma.done.wait (%p5111_p3), [#allocation3], 256  }
  0x27   : > { %5063 = vsyncadd (%p5111_p3), [#allocation3], 4294967040 }
  0x28   : > { %5065 = dma.done.wait (%p5111_p3), [#allocation5], 16  }
  0x29   : > { %5067 = vsyncadd (%p5111_p3), [#allocation5], 4294967280  ;;  %vm1226_vm0 = vcmask 1043456   ;;  %s190_s30 = smul.u32 200, %s3344_s13  ;;  %vm1227_vm1 = vcmask 1044480   ;;  %v5076_v0 = vmov 65535  }
  0x2a   : > { %v1228_v1 = vsel %vm1226_vm0, 4294967295, %v5076_v0  ;;  %v4901_v3 = vld [vmem:[#allocation2 + $0x8] sm:$0x1f]   ;;  %v4902_v4 = vld [vmem:[#allocation2] sm:$0xff]   ;;  %vm925_vm2 = vcmask 203776  }
  0x2b   : > { %p191_p5 = scmp.lt.s32.totalorder %s190_s30, 1799  ;;  %v1229_v2 = vsel %vm1227_vm1, %v1228_v1, 0 }
  0x2c   : > { %v1231_v5 = vand.u32 %v4901_v3, %v1229_v2 }
  0x2d   : > { %s5685_s30 = smov (!%p191_p5, %s190_s30), 1799 }
  0x2e   : > { %s3353_s4 = sshll.u32 %s5685_s30, 2  ;;  %4661 = vmatprep.subr.bf16.mxu0 %v1231_v5  ;;  %4865 = vmatprep.subr.bf16.mxu1 %v1231_v5 }
  0x2f   : > { %s5161_s7 = scalar_lea.vmem %s5677_s0, %s3353_s4  ;;  %4662 = vmatpush3.bf16.msra.mxu0 %v1231_v5  ;;  %4867 = vmatpush3.bf16.msra.mxu1 %v1231_v5  ;;  %s5378_s10 = scalar_lea.vmem %s5680_s3, %s3353_s4 }
  0x30   : > { %v4903_v6 = vld [vmem:[%s5161_s7] sm:$0xff]   ;;  %v4904_v7 = vld [vmem:[%s5161_s7 + $0x190] sm:$0xff]   ;;  %4663 = vmatprep.subr.bf16.mxu0 %v4902_v4  ;;  %4866 = vmatprep.subr.bf16.mxu1 %v4902_v4  ;;  %v4905_v8 = vld [vmem:[%s5161_s7 + $0x8] sm:$0xff]  }
  0x31   : > { %4665 = vmatprep.mubr.msk.bf16.mxu0 %vm925_vm2, %v4903_v6  ;;  %4765 = vmatprep.mubr.msk.bf16.mxu1 %vm925_vm2, %v4904_v7  ;;  %v4906_v9 = vld [vmem:[%s5161_s7 + $0x198] sm:$0xff]   ;;  %v4907_v10 = vld [vmem:[%s5161_s7 + $0x10] sm:$0xff]   ;;  %v4908_v11 = vld [vmem:[%s5161_s7 + $0x1a0] sm:$0xff]  }
  0x32   : > { %v4909_v12 = vld [vmem:[%s5161_s7 + $0x18] sm:$0xff]   ;;  %v4910_v13 = vld [vmem:[%s5161_s7 + $0x1a8] sm:$0xff]   ;;  %v4911_v14 = vld [vmem:[%s5161_s7 + $0x20] sm:$0xff]  }
  0x33   : > { %4664 = vmatpush3.bf16.msra.mxu0 %v4902_v4  ;;  %4868 = vmatpush3.bf16.msra.mxu1 %v4902_v4  ;;  %v4912_v15 = vld [vmem:[%s5161_s7 + $0x1b0] sm:$0xff]   ;;  %v4913_v16 = vld [vmem:[%s5161_s7 + $0x28] sm:$0xff]   ;;  %v4914_v17 = vld [vmem:[%s5161_s7 + $0x1b8] sm:$0xff]  }
  0x34   : > { %v4915_v18 = vld [vmem:[%s5161_s7 + $0x30] sm:$0xff]   ;;  %v4916_v19 = vld [vmem:[%s5161_s7 + $0x1c0] sm:$0xff]   ;;  %v4917_v20 = vld [vmem:[%s5161_s7 + $0x38] sm:$0xff]  }
  0x35   : > { %v4918_v21 = vld [vmem:[%s5161_s7 + $0x1c8] sm:$0xff]   ;;  %v4919_v22 = vld [vmem:[%s5161_s7 + $0x40] sm:$0xff]   ;;  %v4920_v23 = vld [vmem:[%s5161_s7 + $0x1d0] sm:$0xff]  }
  0x36   : > { %4666 = vmatmul.mubr.msk.bf16.vlgmr.msra.gmra.mxu0 %vm925_vm2, %v4905_v8  ;;  %4766 = vmatmul.mubr.msk.bf16.vlgmr.msra.gmra.mxu1 %vm925_vm2, %v4906_v9  ;;  %v4921_v24 = vld [vmem:[%s5161_s7 + $0x48] sm:$0xff]   ;;  %v4922_v25 = vld [vmem:[%s5161_s7 + $0x1d8] sm:$0xff]   ;;  %v4923_v26 = vld [vmem:[%s5161_s7 + $0x50] sm:$0xff]  }
  0x37   : > { %4669 = vmatprep.mubr.msk.bf16.mxu0 %vm925_vm2, %v4907_v10  ;;  %4769 = vmatprep.mubr.msk.bf16.mxu1 %vm925_vm2, %v4908_v11  ;;  %v4924_v27 = vld [vmem:[%s5161_s7 + $0x1e0] sm:$0xff]   ;;  %v4925_v28 = vld [vmem:[%s5161_s7 + $0x58] sm:$0xff]   ;;  %v4926_v29 = vld [vmem:[%s5161_s7 + $0x1e8] sm:$0xff]  }
  0x38   : > { %v4927_v30 = vld [vmem:[%s5161_s7 + $0x60] sm:$0xff]   ;;  %v4928_v31 = vld [vmem:[%s5161_s7 + $0x1f0] sm:$0xff]   ;;  %v4929_v32 = vld [vmem:[%s5161_s7 + $0x68] sm:$0xff]  }
  0x39   : > { %v4930_v33 = vld [vmem:[%s5161_s7 + $0x1f8] sm:$0xff]   ;;  %v4931_v34 = vld [vmem:[%s5161_s7 + $0x70] sm:$0xff]   ;;  %v4932_v35 = vld [vmem:[%s5161_s7 + $0x200] sm:$0xff]  }
  0x3a   : > { %v4933_v36 = vld [vmem:[%s5161_s7 + $0x78] sm:$0xff]   ;;  %v4934_v37 = vld [vmem:[%s5161_s7 + $0x208] sm:$0xff]   ;;  %v4935_v38 = vld [vmem:[%s5161_s7 + $0x80] sm:$0xff]  }
  0x3b   : > { %v4936_v39 = vld [vmem:[%s5161_s7 + $0x210] sm:$0xff]   ;;  %v4937_v40 = vld [vmem:[%s5161_s7 + $0x88] sm:$0xff]   ;;  %v4938_v41 = vld [vmem:[%s5161_s7 + $0x218] sm:$0xff]  }
  0x3c   : > { %v4939_v42 = vld [vmem:[%s5161_s7 + $0x90] sm:$0xff]   ;;  %v4940_v43 = vld [vmem:[%s5161_s7 + $0x220] sm:$0xff]   ;;  %v4941_v44 = vld [vmem:[%s5161_s7 + $0x98] sm:$0xff]  }
  0x3d   : > { %v4942_v45 = vld [vmem:[%s5161_s7 + $0x228] sm:$0xff]   ;;  %v4943_v46 = vld [vmem:[%s5161_s7 + $0xa0] sm:$0xff]   ;;  %v4944_v47 = vld [vmem:[%s5161_s7 + $0x230] sm:$0xff]  }
  0x3e   : > { %4670 = vmatmul.mubr.msk.bf16.gmra.mxu0 %vm925_vm2, %v4909_v12  ;;  %4770 = vmatmul.mubr.msk.bf16.gmra.mxu1 %vm925_vm2, %v4910_v13  ;;  %v4945_v48 = vld [vmem:[%s5161_s7 + $0xa8] sm:$0xff]   ;;  %v4946_v49 = vld [vmem:[%s5161_s7 + $0x238] sm:$0xff]   ;;  %v4947_v50 = vld [vmem:[%s5161_s7 + $0xb0] sm:$0xff]  }
  0x3f   : > { %4673 = vmatprep.mubr.msk.bf16.mxu0 %vm925_vm2, %v4911_v14  ;;  %4773 = vmatprep.mubr.msk.bf16.mxu1 %vm925_vm2, %v4912_v15  ;;  %v4948_v51 = vld [vmem:[%s5161_s7 + $0x240] sm:$0xff]   ;;  %v4949_v52 = vld [vmem:[%s5161_s7 + $0xb8] sm:$0xff]   ;;  %v4950_v53 = vld [vmem:[%s5161_s7 + $0x248] sm:$0xff]  }
  0x40   : > { %v4951_v54 = vld [vmem:[%s5161_s7 + $0xc0] sm:$0xff]   ;;  %v4952_v55 = vld [vmem:[%s5161_s7 + $0x250] sm:$0xff]   ;;  %v4953_v56 = vld [vmem:[%s5161_s7 + $0xc8] sm:$0xff]  }
  0x41   : > { %v4954_v57 = vld [vmem:[%s5161_s7 + $0x258] sm:$0xff]   ;;  %v4955_v58 = vld [vmem:[%s5161_s7 + $0xd0] sm:$0xff]   ;;  %v4956_v59 = vld [vmem:[%s5161_s7 + $0x260] sm:$0xff]  }
  0x42   : > { %v4957_v60 = vld [vmem:[%s5161_s7 + $0xd8] sm:$0xff]   ;;  %v4958_v61 = vld [vmem:[%s5161_s7 + $0x268] sm:$0xff]   ;;  %v4959_v62 = vld [vmem:[%s5161_s7 + $0xe0] sm:$0xff]  }
  0x43   : > { %v4960_v63 = vld [vmem:[%s5161_s7 + $0x270] sm:$0xff]   ;;  %v4961_v0 = vld [vmem:[%s5161_s7 + $0xe8] sm:$0xff]   ;;  %v4962_v1 = vld [vmem:[%s5161_s7 + $0x278] sm:$0xff]  }
  0x44   : > { %v4963_v2 = vld [vmem:[%s5161_s7 + $0xf0] sm:$0xff]   ;;  %v4964_v3 = vld [vmem:[%s5161_s7 + $0x280] sm:$0xff]   ;;  %v4965_v4 = vld [vmem:[%s5161_s7 + $0xf8] sm:$0xff]  }
  0x45   : > { %v4966_v5 = vld [vmem:[%s5161_s7 + $0x288] sm:$0xff]   ;;  %v4967_v6 = vld [vmem:[%s5161_s7 + $0x100] sm:$0xff]   ;;  %v4968_v7 = vld [vmem:[%s5161_s7 + $0x290] sm:$0xff]  }
  0x46   : > { %4674 = vmatmul.mubr.msk.bf16.gmra.mxu0 %vm925_vm2, %v4913_v16  ;;  %4774 = vmatmul.mubr.msk.bf16.gmra.mxu1 %vm925_vm2, %v4914_v17  ;;  %v4969_v8 = vld [vmem:[%s5161_s7 + $0x108] sm:$0xff]   ;;  %v4970_v9 = vld [vmem:[%s5161_s7 + $0x298] sm:$0xff]   ;;  %v4971_v10 = vld [vmem:[%s5161_s7 + $0x110] sm:$0xff]  }
  0x47   : > { %4677 = vmatprep.mubr.msk.bf16.mxu0 %vm925_vm2, %v4915_v18  ;;  %4777 = vmatprep.mubr.msk.bf16.mxu1 %vm925_vm2, %v4916_v19  ;;  %v4972_v11 = vld [vmem:[%s5161_s7 + $0x2a0] sm:$0xff]   ;;  %v4973_v12 = vld [vmem:[%s5161_s7 + $0x118] sm:$0xff]   ;;  %v4974_v13 = vld [vmem:[%s5161_s7 + $0x2a8] sm:$0xff]  }
  0x48   : > { %v4975_v14 = vld [vmem:[%s5161_s7 + $0x120] sm:$0xff]   ;;  %v4976_v15 = vld [vmem:[%s5161_s7 + $0x2b0] sm:$0xff]   ;;  %v4977_v16 = vld [vmem:[%s5161_s7 + $0x128] sm:$0xff]  }
  0x49   : > { %v4978_v17 = vld [vmem:[%s5161_s7 + $0x2b8] sm:$0xff]   ;;  %v4979_v18 = vld [vmem:[%s5161_s7 + $0x130] sm:$0xff]   ;;  %v4980_v19 = vld [vmem:[%s5161_s7 + $0x2c0] sm:$0xff]  }
  0x4e   : > { %4678 = vmatmul.mubr.msk.bf16.gmra.mxu0 %vm925_vm2, %v4917_v20  ;;  %4778 = vmatmul.mubr.msk.bf16.gmra.mxu1 %vm925_vm2, %v4918_v21  ;;  %v4981_v20 = vld [vmem:[%s5161_s7 + $0x138] sm:$0xff]   ;;  %v4982_v21 = vld [vmem:[%s5161_s7 + $0x2c8] sm:$0xff]  }
  0x4f   : > { %4681 = vmatprep.mubr.msk.bf16.mxu0 %vm925_vm2, %v4919_v22  ;;  %4781 = vmatprep.mubr.msk.bf16.mxu1 %vm925_vm2, %v4920_v23  ;;  %v4983_v22 = vld [vmem:[%s5161_s7 + $0x140] sm:$0xff]   ;;  %v4984_v23 = vld [vmem:[%s5161_s7 + $0x2d0] sm:$0xff]  }
  0x56   : > { %4682 = vmatmul.mubr.msk.bf16.gmra.mxu0 %vm925_vm2, %v4921_v24  ;;  %4782 = vmatmul.mubr.msk.bf16.gmra.mxu1 %vm925_vm2, %v4922_v25  ;;  %v4985_v24 = vld [vmem:[%s5161_s7 + $0x148] sm:$0xff]   ;;  %v4986_v25 = vld [vmem:[%s5161_s7 + $0x2d8] sm:$0xff]  }
  0x57   : > { %4685 = vmatprep.mubr.msk.bf16.mxu0 %vm925_vm2, %v4923_v26  ;;  %4785 = vmatprep.mubr.msk.bf16.mxu1 %vm925_vm2, %v4924_v27  ;;  %v4987_v26 = vld [vmem:[%s5161_s7 + $0x150] sm:$0xff]   ;;  %v4988_v27 = vld [vmem:[%s5161_s7 + $0x2e0] sm:$0xff]  }
  0x5e   : > { %4686 = vmatmul.mubr.msk.bf16.gmra.mxu0 %vm925_vm2, %v4925_v28  ;;  %4786 = vmatmul.mubr.msk.bf16.gmra.mxu1 %vm925_vm2, %v4926_v29  ;;  %v4989_v28 = vld [vmem:[%s5161_s7 + $0x158] sm:$0xff]   ;;  %v4990_v29 = vld [vmem:[%s5161_s7 + $0x2e8] sm:$0xff]  }
  0x5f   : > { %4689 = vmatprep.mubr.msk.bf16.mxu0 %vm925_vm2, %v4927_v30  ;;  %4789 = vmatprep.mubr.msk.bf16.mxu1 %vm925_vm2, %v4928_v31  ;;  %v4991_v30 = vld [vmem:[%s5161_s7 + $0x160] sm:$0xff]   ;;  %v4992_v31 = vld [vmem:[%s5161_s7 + $0x2f0] sm:$0xff]  }
  0x66   : > { %4690 = vmatmul.mubr.msk.bf16.gmra.mxu0 %vm925_vm2, %v4929_v32  ;;  %4790 = vmatmul.mubr.msk.bf16.gmra.mxu1 %vm925_vm2, %v4930_v33  ;;  %v4993_v32 = vld [vmem:[%s5161_s7 + $0x168] sm:$0xff]   ;;  %v4994_v33 = vld [vmem:[%s5161_s7 + $0x2f8] sm:$0xff]  }
  0x67   : > { %4693 = vmatprep.mubr.msk.bf16.mxu0 %vm925_vm2, %v4931_v34  ;;  %4793 = vmatprep.mubr.msk.bf16.mxu1 %vm925_vm2, %v4932_v35  ;;  %v4995_v34 = vld [vmem:[%s5161_s7 + $0x170] sm:$0xff]   ;;  %v4996_v35 = vld [vmem:[%s5161_s7 + $0x300] sm:$0xff]  }
  0x6e   : > { %4694 = vmatmul.mubr.msk.bf16.gmra.mxu0 %vm925_vm2, %v4933_v36  ;;  %4794 = vmatmul.mubr.msk.bf16.gmra.mxu1 %vm925_vm2, %v4934_v37  ;;  %v4997_v36 = vld [vmem:[%s5161_s7 + $0x178] sm:$0xff]   ;;  %v4998_v37 = vld [vmem:[%s5161_s7 + $0x308] sm:$0xff]  }
  0x6f   : > { %4697 = vmatprep.mubr.msk.bf16.mxu0 %vm925_vm2, %v4935_v38  ;;  %4797 = vmatprep.mubr.msk.bf16.mxu1 %vm925_vm2, %v4936_v39  ;;  %v4999_v38 = vld [vmem:[%s5161_s7 + $0x180] sm:$0xff]   ;;  %v5000_v39 = vld [vmem:[%s5161_s7 + $0x310] sm:$0xff]  }
  0x76   : > { %4698 = vmatmul.mubr.msk.bf16.gmra.mxu0 %vm925_vm2, %v4937_v40  ;;  %4798 = vmatmul.mubr.msk.bf16.gmra.mxu1 %vm925_vm2, %v4938_v41  ;;  %v5001_v40 = vld [vmem:[%s5161_s7 + $0x188] sm:$0xff]   ;;  %v5002_v41 = vld [vmem:[%s5161_s7 + $0x318] sm:$0xff]  }
  0x77   : > { %4701 = vmatprep.mubr.msk.bf16.mxu0 %vm925_vm2, %v4939_v42  ;;  %4801 = vmatprep.mubr.msk.bf16.mxu1 %vm925_vm2, %v4940_v43  ;;  %v5361_v42 = vld [vmem:[#allocation4] ss:$0 sm:$0xff] }
  0x7e   : > { %4702 = vmatmul.mubr.msk.bf16.gmra.mxu0 %vm925_vm2, %v4941_v44  ;;  %4802 = vmatmul.mubr.msk.bf16.gmra.mxu1 %vm925_vm2, %v4942_v45 }
  0x7f   : > { %4705 = vmatprep.mubr.msk.bf16.mxu0 %vm925_vm2, %v4943_v46  ;;  %4805 = vmatprep.mubr.msk.bf16.mxu1 %vm925_vm2, %v4944_v47 }
  0x86   : > { %4706 = vmatmul.mubr.msk.bf16.gmra.mxu0 %vm925_vm2, %v4945_v48  ;;  %4806 = vmatmul.mubr.msk.bf16.gmra.mxu1 %vm925_vm2, %v4946_v49 }
  0x87   : > { %4709 = vmatprep.mubr.msk.bf16.mxu0 %vm925_vm2, %v4947_v50  ;;  %4809 = vmatprep.mubr.msk.bf16.mxu1 %vm925_vm2, %v4948_v51 }
  0x8e   : > { %4710 = vmatmul.mubr.msk.bf16.gmra.mxu0 %vm925_vm2, %v4949_v52  ;;  %4810 = vmatmul.mubr.msk.bf16.gmra.mxu1 %vm925_vm2, %v4950_v53 }
  0x8f   : > { %4713 = vmatprep.mubr.msk.bf16.mxu0 %vm925_vm2, %v4951_v54  ;;  %4813 = vmatprep.mubr.msk.bf16.mxu1 %vm925_vm2, %v4952_v55 }
  0x96   : > { %4714 = vmatmul.mubr.msk.bf16.gmra.mxu0 %vm925_vm2, %v4953_v56  ;;  %4814 = vmatmul.mubr.msk.bf16.gmra.mxu1 %vm925_vm2, %v4954_v57 }
  0x97   : > { %4717 = vmatprep.mubr.msk.bf16.mxu0 %vm925_vm2, %v4955_v58  ;;  %4817 = vmatprep.mubr.msk.bf16.mxu1 %vm925_vm2, %v4956_v59 }
  0x9e   : > { %4718 = vmatmul.mubr.msk.bf16.gmra.mxu0 %vm925_vm2, %v4957_v60  ;;  %4818 = vmatmul.mubr.msk.bf16.gmra.mxu1 %vm925_vm2, %v4958_v61 }
  0x9f   : > { %4721 = vmatprep.mubr.msk.bf16.mxu0 %vm925_vm2, %v4959_v62  ;;  %4821 = vmatprep.mubr.msk.bf16.mxu1 %vm925_vm2, %v4960_v63 }
  0xa6   : > { %4722 = vmatmul.mubr.msk.bf16.gmra.mxu0 %vm925_vm2, %v4961_v0  ;;  %4822 = vmatmul.mubr.msk.bf16.gmra.mxu1 %vm925_vm2, %v4962_v1 }
  0xa7   : > { %4725 = vmatprep.mubr.msk.bf16.mxu0 %vm925_vm2, %v4963_v2  ;;  %4825 = vmatprep.mubr.msk.bf16.mxu1 %vm925_vm2, %v4964_v3 }
  0xae   : > { %4726 = vmatmul.mubr.msk.bf16.gmra.mxu0 %vm925_vm2, %v4965_v4  ;;  %4826 = vmatmul.mubr.msk.bf16.gmra.mxu1 %vm925_vm2, %v4966_v5 }
  0xaf   : > { %4729 = vmatprep.mubr.msk.bf16.mxu0 %vm925_vm2, %v4967_v6  ;;  %4829 = vmatprep.mubr.msk.bf16.mxu1 %vm925_vm2, %v4968_v7 }
  0xb6   : > { %4730 = vmatmul.mubr.msk.bf16.gmra.mxu0 %vm925_vm2, %v4969_v8  ;;  %4830 = vmatmul.mubr.msk.bf16.gmra.mxu1 %vm925_vm2, %v4970_v9 }
  0xb7   : > { %4733 = vmatprep.mubr.msk.bf16.mxu0 %vm925_vm2, %v4971_v10  ;;  %4833 = vmatprep.mubr.msk.bf16.mxu1 %vm925_vm2, %v4972_v11 }
  0xbe   : > { %4734 = vmatmul.mubr.msk.bf16.gmra.mxu0 %vm925_vm2, %v4973_v12  ;;  %4834 = vmatmul.mubr.msk.bf16.gmra.mxu1 %vm925_vm2, %v4974_v13 }
  0xbf   : > { %4737 = vmatprep.mubr.msk.bf16.mxu0 %vm925_vm2, %v4975_v14  ;;  %4837 = vmatprep.mubr.msk.bf16.mxu1 %vm925_vm2, %v4976_v15 }
  0xc6   : > { %4738 = vmatmul.mubr.msk.bf16.gmra.mxu0 %vm925_vm2, %v4977_v16  ;;  %4838 = vmatmul.mubr.msk.bf16.gmra.mxu1 %vm925_vm2, %v4978_v17 }
  0xc7   : > { %4741 = vmatprep.mubr.msk.bf16.mxu0 %vm925_vm2, %v4979_v18  ;;  %4841 = vmatprep.mubr.msk.bf16.mxu1 %vm925_vm2, %v4980_v19 }
  0xce   : > { %4742 = vmatmul.mubr.msk.bf16.gmra.mxu0 %vm925_vm2, %v4981_v20  ;;  %4842 = vmatmul.mubr.msk.bf16.gmra.mxu1 %vm925_vm2, %v4982_v21 }
  0xcf   : > { %4745 = vmatprep.mubr.msk.bf16.mxu0 %vm925_vm2, %v4983_v22  ;;  %4845 = vmatprep.mubr.msk.bf16.mxu1 %vm925_vm2, %v4984_v23 }
  0xd6   : > { %4746 = vmatmul.mubr.msk.bf16.gmra.mxu0 %vm925_vm2, %v4985_v24  ;;  %4846 = vmatmul.mubr.msk.bf16.gmra.mxu1 %vm925_vm2, %v4986_v25 }
  0xd7   : > { %4749 = vmatprep.mubr.msk.bf16.mxu0 %vm925_vm2, %v4987_v26  ;;  %4849 = vmatprep.mubr.msk.bf16.mxu1 %vm925_vm2, %v4988_v27 }
  0xde   : > { %4750 = vmatmul.mubr.msk.bf16.gmra.mxu0 %vm925_vm2, %v4989_v28  ;;  %4850 = vmatmul.mubr.msk.bf16.gmra.mxu1 %vm925_vm2, %v4990_v29 }
  0xdf   : > { %4753 = vmatprep.mubr.msk.bf16.mxu0 %vm925_vm2, %v4991_v30  ;;  %4853 = vmatprep.mubr.msk.bf16.mxu1 %vm925_vm2, %v4992_v31 }
  0xe6   : > { %4754 = vmatmul.mubr.msk.bf16.gmra.mxu0 %vm925_vm2, %v4993_v32  ;;  %4854 = vmatmul.mubr.msk.bf16.gmra.mxu1 %vm925_vm2, %v4994_v33 }
  0xe7   : > { %4757 = vmatprep.mubr.msk.bf16.mxu0 %vm925_vm2, %v4995_v34  ;;  %4857 = vmatprep.mubr.msk.bf16.mxu1 %vm925_vm2, %v4996_v35 }
  0xee   : > { %4758 = vmatmul.mubr.msk.bf16.gmra.mxu0 %vm925_vm2, %v4997_v36  ;;  %4858 = vmatmul.mubr.msk.bf16.gmra.mxu1 %vm925_vm2, %v4998_v37 }
  0xef   : > { %4761 = vmatprep.mubr.msk.bf16.mxu0 %vm925_vm2, %v4999_v38  ;;  %4861 = vmatprep.mubr.msk.bf16.mxu1 %vm925_vm2, %v5000_v39 }
  0xf6   : > { %v4667_v43 = vpop.f32.mrf.mxu0  ;;  %4762 = vmatmul.mubr.msk.bf16.gmra.mxu0 %vm925_vm2, %v5001_v40  ;;  %v4767_v44 = vpop.f32.mrf.mxu1  ;;  %4862 = vmatmul.mubr.msk.bf16.gmra.mxu1 %vm925_vm2, %v5002_v41 }
  0xf7   : > { %v1276_v45 = vadd.f32 %v4667_v43, %v5361_v42  ;;  %v1676_v46 = vadd.f32 %v4767_v44, %v5361_v42 }
  0xf8   : > { %v1267_v47 = vpop.f32.mrf.mxu0  ;;  %v1667_v48 = vpop.f32.mrf.mxu1 }
  0xf9   : > { %v1268_v49 = vadd.f32 %v5361_v42, %v1267_v47  ;;  %v1668_v50 = vadd.f32 %v5361_v42, %v1667_v48  ;;  %v2068_v55 = vmax.f32 %v1276_v45, 0.0  ;;  %v2168_v56 = vmax.f32 %v1676_v46, 0.0 }
  0xfa   : > { %v4668_v51 = vpop.f32.mrf.mxu0  ;;  %v4768_v52 = vpop.f32.mrf.mxu1 }
  0xfb   : > { %v1279_v53 = vadd.f32 %v4668_v51, %v5361_v42  ;;  %v1679_v54 = vadd.f32 %v4768_v52, %v5361_v42  ;;  %v2066_v63 = vmax.f32 %v1268_v49, 0.0  ;;  %v2166_v0 = vmax.f32 %v1668_v50, 0.0 }
  0xfc   : > { %v1270_v57 = vpop.f32.mrf.mxu0  ;;  %v1670_v58 = vpop.f32.mrf.mxu1 }
  0xfd   : > { %v2069_v59 = vmax.f32 %v1279_v53, 0.0  ;;  %v2169_v60 = vmax.f32 %v1679_v54, 0.0  ;;  %v1271_v61 = vadd.f32 %v5361_v42, %v1270_v57  ;;  %v1671_v62 = vadd.f32 %v5361_v42, %v1670_v58 }
  0xfe   : > { %v4671_v1 = vpop.f32.mrf.mxu0  ;;  %v4771_v2 = vpop.f32.mrf.mxu1 }
  0xff   : > { %v3968_v3 = vpack.c.bf16 %v2069_v59, %v2068_v55  ;;  %v4218_v4 = vpack.c.bf16 %v2169_v60, %v2168_v56  ;;  %v2067_v5 = vmax.f32 %v1271_v61, 0.0  ;;  %v2167_v6 = vmax.f32 %v1671_v62, 0.0 }
 0x100   : > { %v1292_v7 = vadd.f32 %v4671_v1, %v5361_v42  ;;  %v1692_v8 = vadd.f32 %v4771_v2, %v5361_v42  ;;  %v1283_v9 = vpop.f32.mrf.mxu0  ;;  %v1683_v10 = vpop.f32.mrf.mxu1 }
 0x101   : > { %4460 = vst [vmem:[%s5378_s10 + $0x8] sm:$0xff] %v3968_v3   ;;  %4510 = vst [vmem:[%s5378_s10 + $0x198] sm:$0xff] %v4218_v4   ;;  %v3963_v11 = vpack.c.bf16 %v2067_v5, %v2066_v63  ;;  %v4213_v12 = vpack.c.bf16 %v2167_v6, %v2166_v0  ;;  %v1284_v13 = vadd.f32 %v5361_v42, %v1283_v9 }
 0x102   : > { %v1684_v14 = vadd.f32 %v5361_v42, %v1683_v10  ;;  %v4672_v15 = vpop.f32.mrf.mxu0  ;;  %v4772_v16 = vpop.f32.mrf.mxu1  ;;  %v2072_v19 = vmax.f32 %v1292_v7, 0.0  ;;  %v2172_v20 = vmax.f32 %v1692_v8, 0.0 }
 0x103   : > { %3964 = vst [vmem:[%s5378_s10] sm:$0xff] %v3963_v11   ;;  %4509 = vst [vmem:[%s5378_s10 + $0x190] sm:$0xff] %v4213_v12   ;;  %v1295_v17 = vadd.f32 %v4672_v15, %v5361_v42  ;;  %v1695_v18 = vadd.f32 %v4772_v16, %v5361_v42  ;;  %v2070_v27 = vmax.f32 %v1284_v13, 0.0 }
 0x104   : > { %v1286_v21 = vpop.f32.mrf.mxu0  ;;  %v1686_v22 = vpop.f32.mrf.mxu1  ;;  %v2170_v28 = vmax.f32 %v1684_v14, 0.0 }
 0x105   : > { %v2073_v23 = vmax.f32 %v1295_v17, 0.0  ;;  %v2173_v24 = vmax.f32 %v1695_v18, 0.0  ;;  %v1287_v25 = vadd.f32 %v5361_v42, %v1286_v21  ;;  %v1687_v26 = vadd.f32 %v5361_v42, %v1686_v22 }
 0x106   : > { %v4675_v29 = vpop.f32.mrf.mxu0  ;;  %v4775_v30 = vpop.f32.mrf.mxu1 }
 0x107   : > { %v3978_v31 = vpack.c.bf16 %v2073_v23, %v2072_v19  ;;  %v4228_v32 = vpack.c.bf16 %v2173_v24, %v2172_v20  ;;  %v2071_v33 = vmax.f32 %v1287_v25, 0.0  ;;  %v2171_v34 = vmax.f32 %v1687_v26, 0.0 }
 0x108   : > { %v1308_v35 = vadd.f32 %v4675_v29, %v5361_v42  ;;  %v1708_v36 = vadd.f32 %v4775_v30, %v5361_v42  ;;  %v1299_v37 = vpop.f32.mrf.mxu0  ;;  %v1699_v38 = vpop.f32.mrf.mxu1 }
 0x109   : > { %4462 = vst [vmem:[%s5378_s10 + $0x18] sm:$0xff] %v3978_v31   ;;  %4512 = vst [vmem:[%s5378_s10 + $0x1a8] sm:$0xff] %v4228_v32   ;;  %v3973_v39 = vpack.c.bf16 %v2071_v33, %v2070_v27  ;;  %v4223_v40 = vpack.c.bf16 %v2171_v34, %v2170_v28  ;;  %v1300_v41 = vadd.f32 %v5361_v42, %v1299_v37 }
 0x10a   : > { %v1700_v43 = vadd.f32 %v5361_v42, %v1699_v38  ;;  %v4676_v44 = vpop.f32.mrf.mxu0  ;;  %v4776_v45 = vpop.f32.mrf.mxu1  ;;  %v2076_v48 = vmax.f32 %v1308_v35, 0.0  ;;  %v2176_v49 = vmax.f32 %v1708_v36, 0.0 }
 0x10b   : > { %4461 = vst [vmem:[%s5378_s10 + $0x10] sm:$0xff] %v3973_v39   ;;  %4511 = vst [vmem:[%s5378_s10 + $0x1a0] sm:$0xff] %v4223_v40   ;;  %v1311_v46 = vadd.f32 %v4676_v44, %v5361_v42  ;;  %v1711_v47 = vadd.f32 %v4776_v45, %v5361_v42  ;;  %v2074_v56 = vmax.f32 %v1300_v41, 0.0 }
 0x10c   : > { %v1302_v50 = vpop.f32.mrf.mxu0  ;;  %v1702_v51 = vpop.f32.mrf.mxu1  ;;  %v2174_v57 = vmax.f32 %v1700_v43, 0.0 }
 0x10d   : > { %v2077_v52 = vmax.f32 %v1311_v46, 0.0  ;;  %v2177_v53 = vmax.f32 %v1711_v47, 0.0  ;;  %v1303_v54 = vadd.f32 %v5361_v42, %v1302_v50  ;;  %v1703_v55 = vadd.f32 %v5361_v42, %v1702_v51 }
 0x10e   : > { %v4679_v58 = vpop.f32.mrf.mxu0  ;;  %v4779_v59 = vpop.f32.mrf.mxu1 }
 0x10f   : > { %v3988_v60 = vpack.c.bf16 %v2077_v52, %v2076_v48  ;;  %v4238_v61 = vpack.c.bf16 %v2177_v53, %v2176_v49  ;;  %v2075_v62 = vmax.f32 %v1303_v54, 0.0  ;;  %v2175_v63 = vmax.f32 %v1703_v55, 0.0 }
 0x110   : > { %v1324_v0 = vadd.f32 %v4679_v58, %v5361_v42  ;;  %v1724_v1 = vadd.f32 %v4779_v59, %v5361_v42  ;;  %v1315_v2 = vpop.f32.mrf.mxu0  ;;  %v1715_v3 = vpop.f32.mrf.mxu1 }
 0x111   : > { %4464 = vst [vmem:[%s5378_s10 + $0x28] sm:$0xff] %v3988_v60   ;;  %4514 = vst [vmem:[%s5378_s10 + $0x1b8] sm:$0xff] %v4238_v61   ;;  %v3983_v4 = vpack.c.bf16 %v2075_v62, %v2074_v56  ;;  %v4233_v5 = vpack.c.bf16 %v2175_v63, %v2174_v57  ;;  %v1316_v6 = vadd.f32 %v5361_v42, %v1315_v2 }
 0x112   : > { %v1716_v7 = vadd.f32 %v5361_v42, %v1715_v3  ;;  %v4680_v8 = vpop.f32.mrf.mxu0  ;;  %v4780_v9 = vpop.f32.mrf.mxu1  ;;  %v2080_v12 = vmax.f32 %v1324_v0, 0.0  ;;  %v2180_v13 = vmax.f32 %v1724_v1, 0.0 }
 0x113   : > { %4463 = vst [vmem:[%s5378_s10 + $0x20] sm:$0xff] %v3983_v4   ;;  %4513 = vst [vmem:[%s5378_s10 + $0x1b0] sm:$0xff] %v4233_v5   ;;  %v1327_v10 = vadd.f32 %v4680_v8, %v5361_v42  ;;  %v1727_v11 = vadd.f32 %v4780_v9, %v5361_v42  ;;  %v2078_v20 = vmax.f32 %v1316_v6, 0.0 }
 0x114   : > { %v1318_v14 = vpop.f32.mrf.mxu0  ;;  %v1718_v15 = vpop.f32.mrf.mxu1  ;;  %v2178_v21 = vmax.f32 %v1716_v7, 0.0 }
 0x115   : > { %v2081_v16 = vmax.f32 %v1327_v10, 0.0  ;;  %v2181_v17 = vmax.f32 %v1727_v11, 0.0  ;;  %v1319_v18 = vadd.f32 %v5361_v42, %v1318_v14  ;;  %v1719_v19 = vadd.f32 %v5361_v42, %v1718_v15 }
 0x116   : > { %v4683_v22 = vpop.f32.mrf.mxu0  ;;  %v4783_v23 = vpop.f32.mrf.mxu1 }
 0x117   : > { %v3998_v24 = vpack.c.bf16 %v2081_v16, %v2080_v12  ;;  %v4248_v25 = vpack.c.bf16 %v2181_v17, %v2180_v13  ;;  %v2079_v26 = vmax.f32 %v1319_v18, 0.0  ;;  %v2179_v27 = vmax.f32 %v1719_v19, 0.0 }
 0x118   : > { %v1340_v28 = vadd.f32 %v4683_v22, %v5361_v42  ;;  %v1740_v29 = vadd.f32 %v4783_v23, %v5361_v42  ;;  %v1331_v30 = vpop.f32.mrf.mxu0  ;;  %v1731_v31 = vpop.f32.mrf.mxu1 }
 0x119   : > { %4466 = vst [vmem:[%s5378_s10 + $0x38] sm:$0xff] %v3998_v24   ;;  %4516 = vst [vmem:[%s5378_s10 + $0x1c8] sm:$0xff] %v4248_v25   ;;  %v3993_v32 = vpack.c.bf16 %v2079_v26, %v2078_v20  ;;  %v4243_v33 = vpack.c.bf16 %v2179_v27, %v2178_v21  ;;  %v1332_v34 = vadd.f32 %v5361_v42, %v1331_v30 }
 0x11a   : > { %v1732_v35 = vadd.f32 %v5361_v42, %v1731_v31  ;;  %v4684_v36 = vpop.f32.mrf.mxu0  ;;  %v4784_v37 = vpop.f32.mrf.mxu1  ;;  %v2084_v40 = vmax.f32 %v1340_v28, 0.0  ;;  %v2184_v41 = vmax.f32 %v1740_v29, 0.0 }
 0x11b   : > { %4465 = vst [vmem:[%s5378_s10 + $0x30] sm:$0xff] %v3993_v32   ;;  %4515 = vst [vmem:[%s5378_s10 + $0x1c0] sm:$0xff] %v4243_v33   ;;  %v1343_v38 = vadd.f32 %v4684_v36, %v5361_v42  ;;  %v1743_v39 = vadd.f32 %v4784_v37, %v5361_v42  ;;  %v2082_v49 = vmax.f32 %v1332_v34, 0.0 }
 0x11c   : > { %v1334_v43 = vpop.f32.mrf.mxu0  ;;  %v1734_v44 = vpop.f32.mrf.mxu1  ;;  %v2182_v50 = vmax.f32 %v1732_v35, 0.0 }
 0x11d   : > { %v2085_v45 = vmax.f32 %v1343_v38, 0.0  ;;  %v2185_v46 = vmax.f32 %v1743_v39, 0.0  ;;  %v1335_v47 = vadd.f32 %v5361_v42, %v1334_v43  ;;  %v1735_v48 = vadd.f32 %v5361_v42, %v1734_v44 }
 0x11e   : > { %v4687_v51 = vpop.f32.mrf.mxu0  ;;  %v4787_v52 = vpop.f32.mrf.mxu1 }
 0x11f   : > { %v4008_v53 = vpack.c.bf16 %v2085_v45, %v2084_v40  ;;  %v4258_v54 = vpack.c.bf16 %v2185_v46, %v2184_v41  ;;  %v2083_v55 = vmax.f32 %v1335_v47, 0.0  ;;  %v2183_v56 = vmax.f32 %v1735_v48, 0.0 }
 0x120   : > { %v1356_v57 = vadd.f32 %v4687_v51, %v5361_v42  ;;  %v1756_v58 = vadd.f32 %v4787_v52, %v5361_v42  ;;  %v1347_v59 = vpop.f32.mrf.mxu0  ;;  %v1747_v60 = vpop.f32.mrf.mxu1 }
 0x121   : > { %4468 = vst [vmem:[%s5378_s10 + $0x48] sm:$0xff] %v4008_v53   ;;  %4518 = vst [vmem:[%s5378_s10 + $0x1d8] sm:$0xff] %v4258_v54   ;;  %v4003_v61 = vpack.c.bf16 %v2083_v55, %v2082_v49  ;;  %v4253_v62 = vpack.c.bf16 %v2183_v56, %v2182_v50  ;;  %v1348_v63 = vadd.f32 %v5361_v42, %v1347_v59 }
 0x122   : > { %v1748_v0 = vadd.f32 %v5361_v42, %v1747_v60  ;;  %v4688_v1 = vpop.f32.mrf.mxu0  ;;  %v4788_v2 = vpop.f32.mrf.mxu1  ;;  %v2088_v5 = vmax.f32 %v1356_v57, 0.0  ;;  %v2188_v6 = vmax.f32 %v1756_v58, 0.0 }
 0x123   : > { %4467 = vst [vmem:[%s5378_s10 + $0x40] sm:$0xff] %v4003_v61   ;;  %4517 = vst [vmem:[%s5378_s10 + $0x1d0] sm:$0xff] %v4253_v62   ;;  %v1359_v3 = vadd.f32 %v4688_v1, %v5361_v42  ;;  %v1759_v4 = vadd.f32 %v4788_v2, %v5361_v42  ;;  %v2086_v13 = vmax.f32 %v1348_v63, 0.0 }
 0x124   : > { %v1350_v7 = vpop.f32.mrf.mxu0  ;;  %v1750_v8 = vpop.f32.mrf.mxu1  ;;  %v2186_v14 = vmax.f32 %v1748_v0, 0.0 }
 0x125   : > { %v2089_v9 = vmax.f32 %v1359_v3, 0.0  ;;  %v2189_v10 = vmax.f32 %v1759_v4, 0.0  ;;  %v1351_v11 = vadd.f32 %v5361_v42, %v1350_v7  ;;  %v1751_v12 = vadd.f32 %v5361_v42, %v1750_v8 }
 0x126   : > { %v4691_v15 = vpop.f32.mrf.mxu0  ;;  %v4791_v16 = vpop.f32.mrf.mxu1 }
 0x127   : > { %v4018_v17 = vpack.c.bf16 %v2089_v9, %v2088_v5  ;;  %v4268_v18 = vpack.c.bf16 %v2189_v10, %v2188_v6  ;;  %v2087_v19 = vmax.f32 %v1351_v11, 0.0  ;;  %v2187_v20 = vmax.f32 %v1751_v12, 0.0 }
 0x128   : > { %v1372_v21 = vadd.f32 %v4691_v15, %v5361_v42  ;;  %v1772_v22 = vadd.f32 %v4791_v16, %v5361_v42  ;;  %v1363_v23 = vpop.f32.mrf.mxu0  ;;  %v1763_v24 = vpop.f32.mrf.mxu1 }
 0x129   : > { %4470 = vst [vmem:[%s5378_s10 + $0x58] sm:$0xff] %v4018_v17   ;;  %4520 = vst [vmem:[%s5378_s10 + $0x1e8] sm:$0xff] %v4268_v18   ;;  %v4013_v25 = vpack.c.bf16 %v2087_v19, %v2086_v13  ;;  %v4263_v26 = vpack.c.bf16 %v2187_v20, %v2186_v14  ;;  %v1364_v27 = vadd.f32 %v5361_v42, %v1363_v23 }
 0x12a   : > { %v1764_v28 = vadd.f32 %v5361_v42, %v1763_v24  ;;  %v4692_v29 = vpop.f32.mrf.mxu0  ;;  %v4792_v30 = vpop.f32.mrf.mxu1  ;;  %v2092_v33 = vmax.f32 %v1372_v21, 0.0  ;;  %v2192_v34 = vmax.f32 %v1772_v22, 0.0 }
 0x12b   : > { %4469 = vst [vmem:[%s5378_s10 + $0x50] sm:$0xff] %v4013_v25   ;;  %4519 = vst [vmem:[%s5378_s10 + $0x1e0] sm:$0xff] %v4263_v26   ;;  %v1375_v31 = vadd.f32 %v4692_v29, %v5361_v42  ;;  %v1775_v32 = vadd.f32 %v4792_v30, %v5361_v42  ;;  %v2090_v41 = vmax.f32 %v1364_v27, 0.0 }
 0x12c   : > { %v1366_v35 = vpop.f32.mrf.mxu0  ;;  %v1766_v36 = vpop.f32.mrf.mxu1  ;;  %v2190_v43 = vmax.f32 %v1764_v28, 0.0 }
 0x12d   : > { %v2093_v37 = vmax.f32 %v1375_v31, 0.0  ;;  %v2193_v38 = vmax.f32 %v1775_v32, 0.0  ;;  %v1367_v39 = vadd.f32 %v5361_v42, %v1366_v35  ;;  %v1767_v40 = vadd.f32 %v5361_v42, %v1766_v36 }
 0x12e   : > { %v4695_v44 = vpop.f32.mrf.mxu0  ;;  %v4795_v45 = vpop.f32.mrf.mxu1 }
 0x12f   : > { %v4028_v46 = vpack.c.bf16 %v2093_v37, %v2092_v33  ;;  %v4278_v47 = vpack.c.bf16 %v2193_v38, %v2192_v34  ;;  %v2091_v48 = vmax.f32 %v1367_v39, 0.0  ;;  %v2191_v49 = vmax.f32 %v1767_v40, 0.0 }
 0x130   : > { %v1388_v50 = vadd.f32 %v4695_v44, %v5361_v42  ;;  %v1788_v51 = vadd.f32 %v4795_v45, %v5361_v42  ;;  %v1379_v52 = vpop.f32.mrf.mxu0  ;;  %v1779_v53 = vpop.f32.mrf.mxu1 }
 0x131   : > { %4472 = vst [vmem:[%s5378_s10 + $0x68] sm:$0xff] %v4028_v46   ;;  %4522 = vst [vmem:[%s5378_s10 + $0x1f8] sm:$0xff] %v4278_v47   ;;  %v4023_v54 = vpack.c.bf16 %v2091_v48, %v2090_v41  ;;  %v4273_v55 = vpack.c.bf16 %v2191_v49, %v2190_v43  ;;  %v1380_v56 = vadd.f32 %v5361_v42, %v1379_v52 }
 0x132   : > { %v1780_v57 = vadd.f32 %v5361_v42, %v1779_v53  ;;  %v4696_v58 = vpop.f32.mrf.mxu0  ;;  %v4796_v59 = vpop.f32.mrf.mxu1  ;;  %v2096_v62 = vmax.f32 %v1388_v50, 0.0  ;;  %v2196_v63 = vmax.f32 %v1788_v51, 0.0 }
 0x133   : > { %4471 = vst [vmem:[%s5378_s10 + $0x60] sm:$0xff] %v4023_v54   ;;  %4521 = vst [vmem:[%s5378_s10 + $0x1f0] sm:$0xff] %v4273_v55   ;;  %v1391_v60 = vadd.f32 %v4696_v58, %v5361_v42  ;;  %v1791_v61 = vadd.f32 %v4796_v59, %v5361_v42  ;;  %v2094_v6 = vmax.f32 %v1380_v56, 0.0 }
 0x134   : > { %v1382_v0 = vpop.f32.mrf.mxu0  ;;  %v1782_v1 = vpop.f32.mrf.mxu1  ;;  %v2194_v7 = vmax.f32 %v1780_v57, 0.0 }
 0x135   : > { %v2097_v2 = vmax.f32 %v1391_v60, 0.0  ;;  %v2197_v3 = vmax.f32 %v1791_v61, 0.0  ;;  %v1383_v4 = vadd.f32 %v5361_v42, %v1382_v0  ;;  %v1783_v5 = vadd.f32 %v5361_v42, %v1782_v1 }
 0x136   : > { %v4699_v8 = vpop.f32.mrf.mxu0  ;;  %v4799_v9 = vpop.f32.mrf.mxu1 }
 0x137   : > { %v4038_v10 = vpack.c.bf16 %v2097_v2, %v2096_v62  ;;  %v4288_v11 = vpack.c.bf16 %v2197_v3, %v2196_v63  ;;  %v2095_v12 = vmax.f32 %v1383_v4, 0.0  ;;  %v2195_v13 = vmax.f32 %v1783_v5, 0.0 }
 0x138   : > { %v1404_v14 = vadd.f32 %v4699_v8, %v5361_v42  ;;  %v1804_v15 = vadd.f32 %v4799_v9, %v5361_v42  ;;  %v1395_v16 = vpop.f32.mrf.mxu0  ;;  %v1795_v17 = vpop.f32.mrf.mxu1 }
 0x139   : > { %4474 = vst [vmem:[%s5378_s10 + $0x78] sm:$0xff] %v4038_v10   ;;  %4524 = vst [vmem:[%s5378_s10 + $0x208] sm:$0xff] %v4288_v11   ;;  %v4033_v18 = vpack.c.bf16 %v2095_v12, %v2094_v6  ;;  %v4283_v19 = vpack.c.bf16 %v2195_v13, %v2194_v7  ;;  %v1396_v20 = vadd.f32 %v5361_v42, %v1395_v16 }
 0x13a   : > { %v1796_v21 = vadd.f32 %v5361_v42, %v1795_v17  ;;  %v4700_v22 = vpop.f32.mrf.mxu0  ;;  %v4800_v23 = vpop.f32.mrf.mxu1  ;;  %v2100_v26 = vmax.f32 %v1404_v14, 0.0  ;;  %v2200_v27 = vmax.f32 %v1804_v15, 0.0 }
 0x13b   : > { %4473 = vst [vmem:[%s5378_s10 + $0x70] sm:$0xff] %v4033_v18   ;;  %4523 = vst [vmem:[%s5378_s10 + $0x200] sm:$0xff] %v4283_v19   ;;  %v1407_v24 = vadd.f32 %v4700_v22, %v5361_v42  ;;  %v1807_v25 = vadd.f32 %v4800_v23, %v5361_v42  ;;  %v2098_v34 = vmax.f32 %v1396_v20, 0.0 }
 0x13c   : > { %v1398_v28 = vpop.f32.mrf.mxu0  ;;  %v1798_v29 = vpop.f32.mrf.mxu1  ;;  %v2198_v35 = vmax.f32 %v1796_v21, 0.0 }
 0x13d   : > { %v2101_v30 = vmax.f32 %v1407_v24, 0.0  ;;  %v2201_v31 = vmax.f32 %v1807_v25, 0.0  ;;  %v1399_v32 = vadd.f32 %v5361_v42, %v1398_v28  ;;  %v1799_v33 = vadd.f32 %v5361_v42, %v1798_v29 }
 0x13e   : > { %v4703_v36 = vpop.f32.mrf.mxu0  ;;  %v4803_v37 = vpop.f32.mrf.mxu1 }
 0x13f   : > { %v4048_v38 = vpack.c.bf16 %v2101_v30, %v2100_v26  ;;  %v4298_v39 = vpack.c.bf16 %v2201_v31, %v2200_v27  ;;  %v2099_v40 = vmax.f32 %v1399_v32, 0.0  ;;  %v2199_v41 = vmax.f32 %v1799_v33, 0.0 }
 0x140   : > { %v1420_v43 = vadd.f32 %v4703_v36, %v5361_v42  ;;  %v1820_v44 = vadd.f32 %v4803_v37, %v5361_v42  ;;  %v1411_v45 = vpop.f32.mrf.mxu0  ;;  %v1811_v46 = vpop.f32.mrf.mxu1 }
 0x141   : > { %4476 = vst [vmem:[%s5378_s10 + $0x88] sm:$0xff] %v4048_v38   ;;  %4526 = vst [vmem:[%s5378_s10 + $0x218] sm:$0xff] %v4298_v39   ;;  %v4043_v47 = vpack.c.bf16 %v2099_v40, %v2098_v34  ;;  %v4293_v48 = vpack.c.bf16 %v2199_v41, %v2198_v35  ;;  %v1412_v49 = vadd.f32 %v5361_v42, %v1411_v45 }
 0x142   : > { %v1812_v50 = vadd.f32 %v5361_v42, %v1811_v46  ;;  %v4704_v51 = vpop.f32.mrf.mxu0  ;;  %v4804_v52 = vpop.f32.mrf.mxu1  ;;  %v2104_v55 = vmax.f32 %v1420_v43, 0.0  ;;  %v2204_v56 = vmax.f32 %v1820_v44, 0.0 }
 0x143   : > { %4475 = vst [vmem:[%s5378_s10 + $0x80] sm:$0xff] %v4043_v47   ;;  %4525 = vst [vmem:[%s5378_s10 + $0x210] sm:$0xff] %v4293_v48   ;;  %v1423_v53 = vadd.f32 %v4704_v51, %v5361_v42  ;;  %v1823_v54 = vadd.f32 %v4804_v52, %v5361_v42  ;;  %v2102_v63 = vmax.f32 %v1412_v49, 0.0 }
 0x144   : > { %v1414_v57 = vpop.f32.mrf.mxu0  ;;  %v1814_v58 = vpop.f32.mrf.mxu1  ;;  %v2202_v0 = vmax.f32 %v1812_v50, 0.0 }
 0x145   : > { %v2105_v59 = vmax.f32 %v1423_v53, 0.0  ;;  %v2205_v60 = vmax.f32 %v1823_v54, 0.0  ;;  %v1415_v61 = vadd.f32 %v5361_v42, %v1414_v57  ;;  %v1815_v62 = vadd.f32 %v5361_v42, %v1814_v58 }
 0x146   : > { %v4707_v1 = vpop.f32.mrf.mxu0  ;;  %v4807_v2 = vpop.f32.mrf.mxu1 }
 0x147   : > { %v4058_v3 = vpack.c.bf16 %v2105_v59, %v2104_v55  ;;  %v4308_v4 = vpack.c.bf16 %v2205_v60, %v2204_v56  ;;  %v2103_v5 = vmax.f32 %v1415_v61, 0.0  ;;  %v2203_v6 = vmax.f32 %v1815_v62, 0.0 }
 0x148   : > { %v1436_v7 = vadd.f32 %v4707_v1, %v5361_v42  ;;  %v1836_v8 = vadd.f32 %v4807_v2, %v5361_v42  ;;  %v1427_v9 = vpop.f32.mrf.mxu0  ;;  %v1827_v10 = vpop.f32.mrf.mxu1 }
 0x149   : > { %4478 = vst [vmem:[%s5378_s10 + $0x98] sm:$0xff] %v4058_v3   ;;  %4528 = vst [vmem:[%s5378_s10 + $0x228] sm:$0xff] %v4308_v4   ;;  %v4053_v11 = vpack.c.bf16 %v2103_v5, %v2102_v63  ;;  %v4303_v12 = vpack.c.bf16 %v2203_v6, %v2202_v0  ;;  %v1428_v13 = vadd.f32 %v5361_v42, %v1427_v9 }
 0x14a   : > { %v1828_v14 = vadd.f32 %v5361_v42, %v1827_v10  ;;  %v4708_v15 = vpop.f32.mrf.mxu0  ;;  %v4808_v16 = vpop.f32.mrf.mxu1  ;;  %v2108_v19 = vmax.f32 %v1436_v7, 0.0  ;;  %v2208_v20 = vmax.f32 %v1836_v8, 0.0 }
 0x14b   : > { %4477 = vst [vmem:[%s5378_s10 + $0x90] sm:$0xff] %v4053_v11   ;;  %4527 = vst [vmem:[%s5378_s10 + $0x220] sm:$0xff] %v4303_v12   ;;  %v1439_v17 = vadd.f32 %v4708_v15, %v5361_v42  ;;  %v1839_v18 = vadd.f32 %v4808_v16, %v5361_v42  ;;  %v2106_v27 = vmax.f32 %v1428_v13, 0.0 }
 0x14c   : > { %v1430_v21 = vpop.f32.mrf.mxu0  ;;  %v1830_v22 = vpop.f32.mrf.mxu1  ;;  %v2206_v28 = vmax.f32 %v1828_v14, 0.0 }
 0x14d   : > { %v2109_v23 = vmax.f32 %v1439_v17, 0.0  ;;  %v2209_v24 = vmax.f32 %v1839_v18, 0.0  ;;  %v1431_v25 = vadd.f32 %v5361_v42, %v1430_v21  ;;  %v1831_v26 = vadd.f32 %v5361_v42, %v1830_v22 }
 0x14e   : > { %v4711_v29 = vpop.f32.mrf.mxu0  ;;  %v4811_v30 = vpop.f32.mrf.mxu1 }
 0x14f   : > { %v4068_v31 = vpack.c.bf16 %v2109_v23, %v2108_v19  ;;  %v4318_v32 = vpack.c.bf16 %v2209_v24, %v2208_v20  ;;  %v2107_v33 = vmax.f32 %v1431_v25, 0.0  ;;  %v2207_v34 = vmax.f32 %v1831_v26, 0.0 }
 0x150   : > { %v1452_v35 = vadd.f32 %v4711_v29, %v5361_v42  ;;  %v1852_v36 = vadd.f32 %v4811_v30, %v5361_v42  ;;  %v1443_v37 = vpop.f32.mrf.mxu0  ;;  %v1843_v38 = vpop.f32.mrf.mxu1 }
 0x151   : > { %4480 = vst [vmem:[%s5378_s10 + $0xa8] sm:$0xff] %v4068_v31   ;;  %4530 = vst [vmem:[%s5378_s10 + $0x238] sm:$0xff] %v4318_v32   ;;  %v4063_v39 = vpack.c.bf16 %v2107_v33, %v2106_v27  ;;  %v4313_v40 = vpack.c.bf16 %v2207_v34, %v2206_v28  ;;  %v1444_v41 = vadd.f32 %v5361_v42, %v1443_v37 }
 0x152   : > { %v1844_v43 = vadd.f32 %v5361_v42, %v1843_v38  ;;  %v4712_v44 = vpop.f32.mrf.mxu0  ;;  %v4812_v45 = vpop.f32.mrf.mxu1  ;;  %v2112_v48 = vmax.f32 %v1452_v35, 0.0  ;;  %v2212_v49 = vmax.f32 %v1852_v36, 0.0 }
 0x153   : > { %4479 = vst [vmem:[%s5378_s10 + $0xa0] sm:$0xff] %v4063_v39   ;;  %4529 = vst [vmem:[%s5378_s10 + $0x230] sm:$0xff] %v4313_v40   ;;  %v1455_v46 = vadd.f32 %v4712_v44, %v5361_v42  ;;  %v1855_v47 = vadd.f32 %v4812_v45, %v5361_v42  ;;  %v2110_v56 = vmax.f32 %v1444_v41, 0.0 }
 0x154   : > { %v1446_v50 = vpop.f32.mrf.mxu0  ;;  %v1846_v51 = vpop.f32.mrf.mxu1  ;;  %v2210_v57 = vmax.f32 %v1844_v43, 0.0 }
 0x155   : > { %v2113_v52 = vmax.f32 %v1455_v46, 0.0  ;;  %v2213_v53 = vmax.f32 %v1855_v47, 0.0  ;;  %v1447_v54 = vadd.f32 %v5361_v42, %v1446_v50  ;;  %v1847_v55 = vadd.f32 %v5361_v42, %v1846_v51 }
 0x156   : > { %v4715_v58 = vpop.f32.mrf.mxu0  ;;  %v4815_v59 = vpop.f32.mrf.mxu1 }
 0x157   : > { %v4078_v60 = vpack.c.bf16 %v2113_v52, %v2112_v48  ;;  %v4328_v61 = vpack.c.bf16 %v2213_v53, %v2212_v49  ;;  %v2111_v62 = vmax.f32 %v1447_v54, 0.0  ;;  %v2211_v63 = vmax.f32 %v1847_v55, 0.0 }
 0x158   : > { %v1468_v0 = vadd.f32 %v4715_v58, %v5361_v42  ;;  %v1868_v1 = vadd.f32 %v4815_v59, %v5361_v42  ;;  %v1459_v2 = vpop.f32.mrf.mxu0  ;;  %v1859_v3 = vpop.f32.mrf.mxu1 }
 0x159   : > { %4482 = vst [vmem:[%s5378_s10 + $0xb8] sm:$0xff] %v4078_v60   ;;  %4532 = vst [vmem:[%s5378_s10 + $0x248] sm:$0xff] %v4328_v61   ;;  %v4073_v4 = vpack.c.bf16 %v2111_v62, %v2110_v56  ;;  %v4323_v5 = vpack.c.bf16 %v2211_v63, %v2210_v57  ;;  %v1460_v6 = vadd.f32 %v5361_v42, %v1459_v2 }
 0x15a   : > { %v1860_v7 = vadd.f32 %v5361_v42, %v1859_v3  ;;  %v4716_v8 = vpop.f32.mrf.mxu0  ;;  %v4816_v9 = vpop.f32.mrf.mxu1  ;;  %v2116_v12 = vmax.f32 %v1468_v0, 0.0  ;;  %v2216_v13 = vmax.f32 %v1868_v1, 0.0 }
 0x15b   : > { %4481 = vst [vmem:[%s5378_s10 + $0xb0] sm:$0xff] %v4073_v4   ;;  %4531 = vst [vmem:[%s5378_s10 + $0x240] sm:$0xff] %v4323_v5   ;;  %v1471_v10 = vadd.f32 %v4716_v8, %v5361_v42  ;;  %v1871_v11 = vadd.f32 %v4816_v9, %v5361_v42  ;;  %v2114_v20 = vmax.f32 %v1460_v6, 0.0 }
 0x15c   : > { %v1462_v14 = vpop.f32.mrf.mxu0  ;;  %v1862_v15 = vpop.f32.mrf.mxu1  ;;  %v2214_v21 = vmax.f32 %v1860_v7, 0.0 }
 0x15d   : > { %v2117_v16 = vmax.f32 %v1471_v10, 0.0  ;;  %v2217_v17 = vmax.f32 %v1871_v11, 0.0  ;;  %v1463_v18 = vadd.f32 %v5361_v42, %v1462_v14  ;;  %v1863_v19 = vadd.f32 %v5361_v42, %v1862_v15 }
 0x15e   : > { %v4719_v22 = vpop.f32.mrf.mxu0  ;;  %v4819_v23 = vpop.f32.mrf.mxu1 }
 0x15f   : > { %v4088_v24 = vpack.c.bf16 %v2117_v16, %v2116_v12  ;;  %v4338_v25 = vpack.c.bf16 %v2217_v17, %v2216_v13  ;;  %v2115_v26 = vmax.f32 %v1463_v18, 0.0  ;;  %v2215_v27 = vmax.f32 %v1863_v19, 0.0 }
 0x160   : > { %v1484_v28 = vadd.f32 %v4719_v22, %v5361_v42  ;;  %v1884_v29 = vadd.f32 %v4819_v23, %v5361_v42  ;;  %v1475_v30 = vpop.f32.mrf.mxu0  ;;  %v1875_v31 = vpop.f32.mrf.mxu1 }
 0x161   : > { %4484 = vst [vmem:[%s5378_s10 + $0xc8] sm:$0xff] %v4088_v24   ;;  %4534 = vst [vmem:[%s5378_s10 + $0x258] sm:$0xff] %v4338_v25   ;;  %v4083_v32 = vpack.c.bf16 %v2115_v26, %v2114_v20  ;;  %v4333_v33 = vpack.c.bf16 %v2215_v27, %v2214_v21  ;;  %v1476_v34 = vadd.f32 %v5361_v42, %v1475_v30 }
 0x162   : > { %v1876_v35 = vadd.f32 %v5361_v42, %v1875_v31  ;;  %v4720_v36 = vpop.f32.mrf.mxu0  ;;  %v4820_v37 = vpop.f32.mrf.mxu1  ;;  %v2120_v40 = vmax.f32 %v1484_v28, 0.0  ;;  %v2220_v41 = vmax.f32 %v1884_v29, 0.0 }
 0x163   : > { %4483 = vst [vmem:[%s5378_s10 + $0xc0] sm:$0xff] %v4083_v32   ;;  %4533 = vst [vmem:[%s5378_s10 + $0x250] sm:$0xff] %v4333_v33   ;;  %v1487_v38 = vadd.f32 %v4720_v36, %v5361_v42  ;;  %v1887_v39 = vadd.f32 %v4820_v37, %v5361_v42  ;;  %v2118_v49 = vmax.f32 %v1476_v34, 0.0 }
 0x164   : > { %v1478_v43 = vpop.f32.mrf.mxu0  ;;  %v1878_v44 = vpop.f32.mrf.mxu1  ;;  %v2218_v50 = vmax.f32 %v1876_v35, 0.0 }
 0x165   : > { %v2121_v45 = vmax.f32 %v1487_v38, 0.0  ;;  %v2221_v46 = vmax.f32 %v1887_v39, 0.0  ;;  %v1479_v47 = vadd.f32 %v5361_v42, %v1478_v43  ;;  %v1879_v48 = vadd.f32 %v5361_v42, %v1878_v44 }
 0x166   : > { %v4723_v51 = vpop.f32.mrf.mxu0  ;;  %v4823_v52 = vpop.f32.mrf.mxu1 }
 0x167   : > { %v4098_v53 = vpack.c.bf16 %v2121_v45, %v2120_v40  ;;  %v4348_v54 = vpack.c.bf16 %v2221_v46, %v2220_v41  ;;  %v2119_v55 = vmax.f32 %v1479_v47, 0.0  ;;  %v2219_v56 = vmax.f32 %v1879_v48, 0.0 }
 0x168   : > { %v1500_v57 = vadd.f32 %v4723_v51, %v5361_v42  ;;  %v1900_v58 = vadd.f32 %v4823_v52, %v5361_v42  ;;  %v1491_v59 = vpop.f32.mrf.mxu0  ;;  %v1891_v60 = vpop.f32.mrf.mxu1 }
 0x169   : > { %4486 = vst [vmem:[%s5378_s10 + $0xd8] sm:$0xff] %v4098_v53   ;;  %4536 = vst [vmem:[%s5378_s10 + $0x268] sm:$0xff] %v4348_v54   ;;  %v4093_v61 = vpack.c.bf16 %v2119_v55, %v2118_v49  ;;  %v4343_v62 = vpack.c.bf16 %v2219_v56, %v2218_v50  ;;  %v1492_v63 = vadd.f32 %v5361_v42, %v1491_v59  ;;  %v5560_v50 = vld [vmem:[#allocation4] ss:$0 sm:$0xff] }
 0x16a   : > { %v1892_v0 = vadd.f32 %v5361_v42, %v1891_v60  ;;  %v4724_v1 = vpop.f32.mrf.mxu0  ;;  %v4824_v2 = vpop.f32.mrf.mxu1  ;;  %v2124_v5 = vmax.f32 %v1500_v57, 0.0  ;;  %v2224_v6 = vmax.f32 %v1900_v58, 0.0 }
 0x16b   : > { %4485 = vst [vmem:[%s5378_s10 + $0xd0] sm:$0xff] %v4093_v61   ;;  %4535 = vst [vmem:[%s5378_s10 + $0x260] sm:$0xff] %v4343_v62   ;;  %v1503_v3 = vadd.f32 %v4724_v1, %v5361_v42  ;;  %v1903_v4 = vadd.f32 %v4824_v2, %v5361_v42  ;;  %v2122_v13 = vmax.f32 %v1492_v63, 0.0 }
 0x16c   : > { %v1494_v7 = vpop.f32.mrf.mxu0  ;;  %v1894_v8 = vpop.f32.mrf.mxu1  ;;  %v2222_v14 = vmax.f32 %v1892_v0, 0.0 }
 0x16d   : > { %v2125_v9 = vmax.f32 %v1503_v3, 0.0  ;;  %v2225_v10 = vmax.f32 %v1903_v4, 0.0  ;;  %v1495_v11 = vadd.f32 %v5361_v42, %v1494_v7  ;;  %v1895_v12 = vadd.f32 %v5361_v42, %v1894_v8 }
 0x16e   : > { %v4727_v15 = vpop.f32.mrf.mxu0  ;;  %v4827_v16 = vpop.f32.mrf.mxu1 }
 0x16f   : > { %v4108_v17 = vpack.c.bf16 %v2125_v9, %v2124_v5  ;;  %v4358_v18 = vpack.c.bf16 %v2225_v10, %v2224_v6  ;;  %v2123_v19 = vmax.f32 %v1495_v11, 0.0  ;;  %v2223_v20 = vmax.f32 %v1895_v12, 0.0 }
 0x170   : > { %v1516_v21 = vadd.f32 %v4727_v15, %v5361_v42  ;;  %v1916_v22 = vadd.f32 %v4827_v16, %v5361_v42  ;;  %v1507_v23 = vpop.f32.mrf.mxu0  ;;  %v1907_v24 = vpop.f32.mrf.mxu1 }
 0x171   : > { %4488 = vst [vmem:[%s5378_s10 + $0xe8] sm:$0xff] %v4108_v17   ;;  %4538 = vst [vmem:[%s5378_s10 + $0x278] sm:$0xff] %v4358_v18   ;;  %v4103_v25 = vpack.c.bf16 %v2123_v19, %v2122_v13  ;;  %v4353_v26 = vpack.c.bf16 %v2223_v20, %v2222_v14  ;;  %v1508_v27 = vadd.f32 %v5361_v42, %v1507_v23 }
 0x172   : > { %v1908_v28 = vadd.f32 %v5361_v42, %v1907_v24  ;;  %v4728_v29 = vpop.f32.mrf.mxu0  ;;  %v4828_v30 = vpop.f32.mrf.mxu1  ;;  %v2128_v33 = vmax.f32 %v1516_v21, 0.0  ;;  %v2228_v34 = vmax.f32 %v1916_v22, 0.0 }
 0x173   : > { %4487 = vst [vmem:[%s5378_s10 + $0xe0] sm:$0xff] %v4103_v25   ;;  %4537 = vst [vmem:[%s5378_s10 + $0x270] sm:$0xff] %v4353_v26   ;;  %v1519_v31 = vadd.f32 %v4728_v29, %v5361_v42  ;;  %v1919_v32 = vadd.f32 %v4828_v30, %v5361_v42  ;;  %v2126_v41 = vmax.f32 %v1508_v27, 0.0 }
 0x174   : > { %v1510_v35 = vpop.f32.mrf.mxu0  ;;  %v1910_v36 = vpop.f32.mrf.mxu1  ;;  %v2226_v43 = vmax.f32 %v1908_v28, 0.0 }
 0x175   : > { %v2129_v37 = vmax.f32 %v1519_v31, 0.0  ;;  %v2229_v38 = vmax.f32 %v1919_v32, 0.0  ;;  %v1511_v39 = vadd.f32 %v5361_v42, %v1510_v35  ;;  %v1911_v40 = vadd.f32 %v5361_v42, %v1910_v36 }
 0x176   : > { %v4731_v44 = vpop.f32.mrf.mxu0  ;;  %v4831_v45 = vpop.f32.mrf.mxu1 }
 0x177   : > { %v4118_v46 = vpack.c.bf16 %v2129_v37, %v2128_v33  ;;  %v4368_v47 = vpack.c.bf16 %v2229_v38, %v2228_v34  ;;  %v2127_v48 = vmax.f32 %v1511_v39, 0.0  ;;  %v2227_v49 = vmax.f32 %v1911_v40, 0.0 }
 0x178   : > { %v1532_v51 = vadd.f32 %v5560_v50, %v4731_v44  ;;  %v1932_v52 = vadd.f32 %v5560_v50, %v4831_v45  ;;  %v1523_v53 = vpop.f32.mrf.mxu0  ;;  %v1923_v54 = vpop.f32.mrf.mxu1 }
 0x179   : > { %4490 = vst [vmem:[%s5378_s10 + $0xf8] sm:$0xff] %v4118_v46   ;;  %4540 = vst [vmem:[%s5378_s10 + $0x288] sm:$0xff] %v4368_v47   ;;  %v4113_v42 = vpack.c.bf16 %v2127_v48, %v2126_v41  ;;  %v4363_v55 = vpack.c.bf16 %v2227_v49, %v2226_v43  ;;  %v1524_v56 = vadd.f32 %v5560_v50, %v1523_v53 }
 0x17a   : > { %v1924_v57 = vadd.f32 %v5560_v50, %v1923_v54  ;;  %v4732_v58 = vpop.f32.mrf.mxu0  ;;  %v4832_v59 = vpop.f32.mrf.mxu1  ;;  %v2132_v62 = vmax.f32 %v1532_v51, 0.0  ;;  %v2232_v63 = vmax.f32 %v1932_v52, 0.0 }
 0x17b   : > { %4489 = vst [vmem:[%s5378_s10 + $0xf0] sm:$0xff] %v4113_v42   ;;  %4539 = vst [vmem:[%s5378_s10 + $0x280] sm:$0xff] %v4363_v55   ;;  %v1535_v60 = vadd.f32 %v5560_v50, %v4732_v58  ;;  %v1935_v61 = vadd.f32 %v5560_v50, %v4832_v59  ;;  %v2130_v6 = vmax.f32 %v1524_v56, 0.0 }
 0x17c   : > { %v1526_v0 = vpop.f32.mrf.mxu0  ;;  %v1926_v1 = vpop.f32.mrf.mxu1  ;;  %v2230_v7 = vmax.f32 %v1924_v57, 0.0 }
 0x17d   : > { %v2133_v2 = vmax.f32 %v1535_v60, 0.0  ;;  %v2233_v3 = vmax.f32 %v1935_v61, 0.0  ;;  %v1527_v4 = vadd.f32 %v5560_v50, %v1526_v0  ;;  %v1927_v5 = vadd.f32 %v5560_v50, %v1926_v1 }
 0x17e   : > { %v4735_v8 = vpop.f32.mrf.mxu0  ;;  %v4835_v9 = vpop.f32.mrf.mxu1 }
 0x17f   : > { %v4128_v10 = vpack.c.bf16 %v2133_v2, %v2132_v62  ;;  %v4378_v11 = vpack.c.bf16 %v2233_v3, %v2232_v63  ;;  %v2131_v12 = vmax.f32 %v1527_v4, 0.0  ;;  %v2231_v13 = vmax.f32 %v1927_v5, 0.0 }
 0x180   : > { %v1548_v14 = vadd.f32 %v5560_v50, %v4735_v8  ;;  %v1948_v15 = vadd.f32 %v5560_v50, %v4835_v9  ;;  %v1539_v16 = vpop.f32.mrf.mxu0  ;;  %v1939_v17 = vpop.f32.mrf.mxu1 }
 0x181   : > { %4492 = vst [vmem:[%s5378_s10 + $0x108] sm:$0xff] %v4128_v10   ;;  %4542 = vst [vmem:[%s5378_s10 + $0x298] sm:$0xff] %v4378_v11   ;;  %v4123_v18 = vpack.c.bf16 %v2131_v12, %v2130_v6  ;;  %v4373_v19 = vpack.c.bf16 %v2231_v13, %v2230_v7  ;;  %v1540_v20 = vadd.f32 %v5560_v50, %v1539_v16 }
 0x182   : > { %v1940_v21 = vadd.f32 %v5560_v50, %v1939_v17  ;;  %v4736_v22 = vpop.f32.mrf.mxu0  ;;  %v4836_v23 = vpop.f32.mrf.mxu1  ;;  %v2136_v26 = vmax.f32 %v1548_v14, 0.0  ;;  %v2236_v27 = vmax.f32 %v1948_v15, 0.0 }
 0x183   : > { %4491 = vst [vmem:[%s5378_s10 + $0x100] sm:$0xff] %v4123_v18   ;;  %4541 = vst [vmem:[%s5378_s10 + $0x290] sm:$0xff] %v4373_v19   ;;  %v1551_v24 = vadd.f32 %v5560_v50, %v4736_v22  ;;  %v1951_v25 = vadd.f32 %v5560_v50, %v4836_v23  ;;  %v2134_v34 = vmax.f32 %v1540_v20, 0.0 }
 0x184   : > { %v1542_v28 = vpop.f32.mrf.mxu0  ;;  %v1942_v29 = vpop.f32.mrf.mxu1  ;;  %v2234_v35 = vmax.f32 %v1940_v21, 0.0 }
 0x185   : > { %v2137_v30 = vmax.f32 %v1551_v24, 0.0  ;;  %v2237_v31 = vmax.f32 %v1951_v25, 0.0  ;;  %v1543_v32 = vadd.f32 %v5560_v50, %v1542_v28  ;;  %v1943_v33 = vadd.f32 %v5560_v50, %v1942_v29 }
 0x186   : > { %v4739_v36 = vpop.f32.mrf.mxu0  ;;  %v4839_v37 = vpop.f32.mrf.mxu1 }
 0x187   : > { %v4138_v38 = vpack.c.bf16 %v2137_v30, %v2136_v26  ;;  %v4388_v39 = vpack.c.bf16 %v2237_v31, %v2236_v27  ;;  %v2135_v40 = vmax.f32 %v1543_v32, 0.0  ;;  %v2235_v41 = vmax.f32 %v1943_v33, 0.0 }
 0x188   : > { %v1564_v43 = vadd.f32 %v5560_v50, %v4739_v36  ;;  %v1964_v44 = vadd.f32 %v5560_v50, %v4839_v37  ;;  %v1555_v45 = vpop.f32.mrf.mxu0  ;;  %v1955_v46 = vpop.f32.mrf.mxu1 }
 0x189   : > { %4494 = vst [vmem:[%s5378_s10 + $0x118] sm:$0xff] %v4138_v38   ;;  %4544 = vst [vmem:[%s5378_s10 + $0x2a8] sm:$0xff] %v4388_v39   ;;  %v4133_v47 = vpack.c.bf16 %v2135_v40, %v2134_v34  ;;  %v4383_v48 = vpack.c.bf16 %v2235_v41, %v2234_v35  ;;  %v1556_v49 = vadd.f32 %v5560_v50, %v1555_v45 }
 0x18a   : > { %v1956_v51 = vadd.f32 %v5560_v50, %v1955_v46  ;;  %v4740_v52 = vpop.f32.mrf.mxu0  ;;  %v4840_v53 = vpop.f32.mrf.mxu1  ;;  %v2140_v55 = vmax.f32 %v1564_v43, 0.0  ;;  %v2240_v56 = vmax.f32 %v1964_v44, 0.0 }
 0x18b   : > { %4493 = vst [vmem:[%s5378_s10 + $0x110] sm:$0xff] %v4133_v47   ;;  %4543 = vst [vmem:[%s5378_s10 + $0x2a0] sm:$0xff] %v4383_v48   ;;  %v1567_v54 = vadd.f32 %v5560_v50, %v4740_v52  ;;  %v1967_v42 = vadd.f32 %v5560_v50, %v4840_v53  ;;  %v2138_v63 = vmax.f32 %v1556_v49, 0.0 }
 0x18c   : > { %v1558_v57 = vpop.f32.mrf.mxu0  ;;  %v1958_v58 = vpop.f32.mrf.mxu1  ;;  %v2238_v0 = vmax.f32 %v1956_v51, 0.0 }
 0x18d   : > { %v2141_v59 = vmax.f32 %v1567_v54, 0.0  ;;  %v2241_v60 = vmax.f32 %v1967_v42, 0.0  ;;  %v1559_v61 = vadd.f32 %v5560_v50, %v1558_v57  ;;  %v1959_v62 = vadd.f32 %v5560_v50, %v1958_v58 }
 0x18e   : > { %v4743_v1 = vpop.f32.mrf.mxu0  ;;  %v4843_v2 = vpop.f32.mrf.mxu1 }
 0x18f   : > { %v4148_v3 = vpack.c.bf16 %v2141_v59, %v2140_v55  ;;  %v4398_v4 = vpack.c.bf16 %v2241_v60, %v2240_v56  ;;  %v2139_v5 = vmax.f32 %v1559_v61, 0.0  ;;  %v2239_v6 = vmax.f32 %v1959_v62, 0.0 }
 0x190   : > { %v1580_v7 = vadd.f32 %v5560_v50, %v4743_v1  ;;  %v1980_v8 = vadd.f32 %v5560_v50, %v4843_v2  ;;  %v1571_v9 = vpop.f32.mrf.mxu0  ;;  %v1971_v10 = vpop.f32.mrf.mxu1 }
 0x191   : > { %4496 = vst [vmem:[%s5378_s10 + $0x128] sm:$0xff] %v4148_v3   ;;  %4546 = vst [vmem:[%s5378_s10 + $0x2b8] sm:$0xff] %v4398_v4   ;;  %v4143_v11 = vpack.c.bf16 %v2139_v5, %v2138_v63  ;;  %v4393_v12 = vpack.c.bf16 %v2239_v6, %v2238_v0  ;;  %v1572_v13 = vadd.f32 %v5560_v50, %v1571_v9 }
 0x192   : > { %v1972_v14 = vadd.f32 %v5560_v50, %v1971_v10  ;;  %v4744_v15 = vpop.f32.mrf.mxu0  ;;  %v4844_v16 = vpop.f32.mrf.mxu1  ;;  %v2144_v19 = vmax.f32 %v1580_v7, 0.0  ;;  %v2244_v20 = vmax.f32 %v1980_v8, 0.0 }
 0x193   : > { %4495 = vst [vmem:[%s5378_s10 + $0x120] sm:$0xff] %v4143_v11   ;;  %4545 = vst [vmem:[%s5378_s10 + $0x2b0] sm:$0xff] %v4393_v12   ;;  %v1583_v17 = vadd.f32 %v5560_v50, %v4744_v15  ;;  %v1983_v18 = vadd.f32 %v5560_v50, %v4844_v16  ;;  %v2142_v27 = vmax.f32 %v1572_v13, 0.0 }
 0x194   : > { %v1574_v21 = vpop.f32.mrf.mxu0  ;;  %v1974_v22 = vpop.f32.mrf.mxu1  ;;  %v2242_v28 = vmax.f32 %v1972_v14, 0.0 }
 0x195   : > { %v2145_v23 = vmax.f32 %v1583_v17, 0.0  ;;  %v2245_v24 = vmax.f32 %v1983_v18, 0.0  ;;  %v1575_v25 = vadd.f32 %v5560_v50, %v1574_v21  ;;  %v1975_v26 = vadd.f32 %v5560_v50, %v1974_v22 }
 0x196   : > { %v4747_v29 = vpop.f32.mrf.mxu0  ;;  %v4847_v30 = vpop.f32.mrf.mxu1 }
 0x197   : > { %v4158_v31 = vpack.c.bf16 %v2145_v23, %v2144_v19  ;;  %v4408_v32 = vpack.c.bf16 %v2245_v24, %v2244_v20  ;;  %v2143_v33 = vmax.f32 %v1575_v25, 0.0  ;;  %v2243_v34 = vmax.f32 %v1975_v26, 0.0 }
 0x198   : > { %v1596_v35 = vadd.f32 %v5560_v50, %v4747_v29  ;;  %v1996_v36 = vadd.f32 %v5560_v50, %v4847_v30  ;;  %v1587_v37 = vpop.f32.mrf.mxu0  ;;  %v1987_v38 = vpop.f32.mrf.mxu1 }
 0x199   : > { %4498 = vst [vmem:[%s5378_s10 + $0x138] sm:$0xff] %v4158_v31   ;;  %4548 = vst [vmem:[%s5378_s10 + $0x2c8] sm:$0xff] %v4408_v32   ;;  %v4153_v39 = vpack.c.bf16 %v2143_v33, %v2142_v27  ;;  %v4403_v40 = vpack.c.bf16 %v2243_v34, %v2242_v28  ;;  %v1588_v41 = vadd.f32 %v5560_v50, %v1587_v37 }
 0x19a   : > { %v1988_v43 = vadd.f32 %v5560_v50, %v1987_v38  ;;  %v4748_v44 = vpop.f32.mrf.mxu0  ;;  %v4848_v45 = vpop.f32.mrf.mxu1  ;;  %v2148_v48 = vmax.f32 %v1596_v35, 0.0  ;;  %v2248_v49 = vmax.f32 %v1996_v36, 0.0 }
 0x19b   : > { %4497 = vst [vmem:[%s5378_s10 + $0x130] sm:$0xff] %v4153_v39   ;;  %4547 = vst [vmem:[%s5378_s10 + $0x2c0] sm:$0xff] %v4403_v40   ;;  %v1599_v46 = vadd.f32 %v5560_v50, %v4748_v44  ;;  %v1999_v47 = vadd.f32 %v5560_v50, %v4848_v45  ;;  %v2146_v56 = vmax.f32 %v1588_v41, 0.0 }
 0x19c   : > { %v1590_v51 = vpop.f32.mrf.mxu0  ;;  %v1990_v52 = vpop.f32.mrf.mxu1  ;;  %v2246_v57 = vmax.f32 %v1988_v43, 0.0 }
 0x19d   : > { %v2149_v53 = vmax.f32 %v1599_v46, 0.0  ;;  %v2249_v54 = vmax.f32 %v1999_v47, 0.0  ;;  %v1591_v42 = vadd.f32 %v5560_v50, %v1590_v51  ;;  %v1991_v55 = vadd.f32 %v5560_v50, %v1990_v52 }
 0x19e   : > { %v4751_v58 = vpop.f32.mrf.mxu0  ;;  %v4851_v59 = vpop.f32.mrf.mxu1 }
 0x19f   : > { %v4168_v60 = vpack.c.bf16 %v2149_v53, %v2148_v48  ;;  %v4418_v61 = vpack.c.bf16 %v2249_v54, %v2248_v49  ;;  %v2147_v62 = vmax.f32 %v1591_v42, 0.0  ;;  %v2247_v63 = vmax.f32 %v1991_v55, 0.0 }
 0x1a0   : > { %v1612_v0 = vadd.f32 %v5560_v50, %v4751_v58  ;;  %v2012_v1 = vadd.f32 %v5560_v50, %v4851_v59  ;;  %v1603_v2 = vpop.f32.mrf.mxu0  ;;  %v2003_v3 = vpop.f32.mrf.mxu1 }
 0x1a1   : > { %4500 = vst [vmem:[%s5378_s10 + $0x148] sm:$0xff] %v4168_v60   ;;  %4550 = vst [vmem:[%s5378_s10 + $0x2d8] sm:$0xff] %v4418_v61   ;;  %v4163_v4 = vpack.c.bf16 %v2147_v62, %v2146_v56  ;;  %v4413_v5 = vpack.c.bf16 %v2247_v63, %v2246_v57  ;;  %v1604_v6 = vadd.f32 %v5560_v50, %v1603_v2 }
 0x1a2   : > { %v2004_v7 = vadd.f32 %v5560_v50, %v2003_v3  ;;  %v4752_v8 = vpop.f32.mrf.mxu0  ;;  %v4852_v9 = vpop.f32.mrf.mxu1  ;;  %v2152_v12 = vmax.f32 %v1612_v0, 0.0  ;;  %v2252_v13 = vmax.f32 %v2012_v1, 0.0 }
 0x1a3   : > { %4499 = vst [vmem:[%s5378_s10 + $0x140] sm:$0xff] %v4163_v4   ;;  %4549 = vst [vmem:[%s5378_s10 + $0x2d0] sm:$0xff] %v4413_v5   ;;  %v1615_v10 = vadd.f32 %v5560_v50, %v4752_v8  ;;  %v2015_v11 = vadd.f32 %v5560_v50, %v4852_v9  ;;  %v2150_v20 = vmax.f32 %v1604_v6, 0.0 }
 0x1a4   : > { %v1606_v14 = vpop.f32.mrf.mxu0  ;;  %v2006_v15 = vpop.f32.mrf.mxu1  ;;  %v2250_v21 = vmax.f32 %v2004_v7, 0.0 }
 0x1a5   : > { %v2153_v16 = vmax.f32 %v1615_v10, 0.0  ;;  %v2253_v17 = vmax.f32 %v2015_v11, 0.0  ;;  %v1607_v18 = vadd.f32 %v5560_v50, %v1606_v14  ;;  %v2007_v19 = vadd.f32 %v5560_v50, %v2006_v15 }
 0x1a6   : > { %v4755_v22 = vpop.f32.mrf.mxu0  ;;  %v4855_v23 = vpop.f32.mrf.mxu1 }
 0x1a7   : > { %v4178_v24 = vpack.c.bf16 %v2153_v16, %v2152_v12  ;;  %v4428_v25 = vpack.c.bf16 %v2253_v17, %v2252_v13  ;;  %v2151_v26 = vmax.f32 %v1607_v18, 0.0  ;;  %v2251_v27 = vmax.f32 %v2007_v19, 0.0 }
 0x1a8   : > { %v1628_v28 = vadd.f32 %v5560_v50, %v4755_v22  ;;  %v2028_v29 = vadd.f32 %v5560_v50, %v4855_v23  ;;  %v1619_v30 = vpop.f32.mrf.mxu0  ;;  %v2019_v31 = vpop.f32.mrf.mxu1 }
 0x1a9   : > { %4502 = vst [vmem:[%s5378_s10 + $0x158] sm:$0xff] %v4178_v24   ;;  %4552 = vst [vmem:[%s5378_s10 + $0x2e8] sm:$0xff] %v4428_v25   ;;  %v4173_v32 = vpack.c.bf16 %v2151_v26, %v2150_v20  ;;  %v4423_v33 = vpack.c.bf16 %v2251_v27, %v2250_v21  ;;  %v1620_v34 = vadd.f32 %v5560_v50, %v1619_v30 }
 0x1aa   : > { %v2020_v35 = vadd.f32 %v5560_v50, %v2019_v31  ;;  %v4756_v36 = vpop.f32.mrf.mxu0  ;;  %v4856_v37 = vpop.f32.mrf.mxu1  ;;  %v2156_v40 = vmax.f32 %v1628_v28, 0.0  ;;  %v2256_v41 = vmax.f32 %v2028_v29, 0.0 }
 0x1ab   : > { %4501 = vst [vmem:[%s5378_s10 + $0x150] sm:$0xff] %v4173_v32   ;;  %4551 = vst [vmem:[%s5378_s10 + $0x2e0] sm:$0xff] %v4423_v33   ;;  %v1631_v38 = vadd.f32 %v5560_v50, %v4756_v36  ;;  %v2031_v39 = vadd.f32 %v5560_v50, %v4856_v37  ;;  %v2154_v49 = vmax.f32 %v1620_v34, 0.0 }
 0x1ac   : > { %v1622_v43 = vpop.f32.mrf.mxu0  ;;  %v2022_v44 = vpop.f32.mrf.mxu1  ;;  %v2254_v51 = vmax.f32 %v2020_v35, 0.0 }
 0x1ad   : > { %v2157_v45 = vmax.f32 %v1631_v38, 0.0  ;;  %v2257_v46 = vmax.f32 %v2031_v39, 0.0  ;;  %v1623_v47 = vadd.f32 %v5560_v50, %v1622_v43  ;;  %v2023_v48 = vadd.f32 %v5560_v50, %v2022_v44 }
 0x1ae   : > { %v4759_v52 = vpop.f32.mrf.mxu0  ;;  %v4859_v53 = vpop.f32.mrf.mxu1 }
 0x1af   : > { %v4188_v54 = vpack.c.bf16 %v2157_v45, %v2156_v40  ;;  %v4438_v42 = vpack.c.bf16 %v2257_v46, %v2256_v41  ;;  %v2155_v55 = vmax.f32 %v1623_v47, 0.0  ;;  %v2255_v56 = vmax.f32 %v2023_v48, 0.0 }
 0x1b0   : > { %v1644_v57 = vadd.f32 %v5560_v50, %v4759_v52  ;;  %v2044_v58 = vadd.f32 %v5560_v50, %v4859_v53  ;;  %v1635_v59 = vpop.f32.mrf.mxu0  ;;  %v2035_v60 = vpop.f32.mrf.mxu1 }
 0x1b1   : > { %4504 = vst [vmem:[%s5378_s10 + $0x168] sm:$0xff] %v4188_v54   ;;  %4554 = vst [vmem:[%s5378_s10 + $0x2f8] sm:$0xff] %v4438_v42   ;;  %v4183_v61 = vpack.c.bf16 %v2155_v55, %v2154_v49  ;;  %v4433_v62 = vpack.c.bf16 %v2255_v56, %v2254_v51  ;;  %v1636_v63 = vadd.f32 %v5560_v50, %v1635_v59 }
 0x1b2   : > { %v2036_v0 = vadd.f32 %v5560_v50, %v2035_v60  ;;  %v4760_v1 = vpop.f32.mrf.mxu0  ;;  %v4860_v2 = vpop.f32.mrf.mxu1  ;;  %v2160_v5 = vmax.f32 %v1644_v57, 0.0  ;;  %v2260_v6 = vmax.f32 %v2044_v58, 0.0 }
 0x1b3   : > { %4503 = vst [vmem:[%s5378_s10 + $0x160] sm:$0xff] %v4183_v61   ;;  %4553 = vst [vmem:[%s5378_s10 + $0x2f0] sm:$0xff] %v4433_v62   ;;  %v1647_v3 = vadd.f32 %v5560_v50, %v4760_v1  ;;  %v2047_v4 = vadd.f32 %v5560_v50, %v4860_v2  ;;  %v2158_v13 = vmax.f32 %v1636_v63, 0.0 }
 0x1b4   : > { %v1638_v7 = vpop.f32.mrf.mxu0  ;;  %v2038_v8 = vpop.f32.mrf.mxu1  ;;  %v2258_v14 = vmax.f32 %v2036_v0, 0.0 }
 0x1b5   : > { %v2161_v9 = vmax.f32 %v1647_v3, 0.0  ;;  %v2261_v10 = vmax.f32 %v2047_v4, 0.0  ;;  %v1639_v11 = vadd.f32 %v5560_v50, %v1638_v7  ;;  %v2039_v12 = vadd.f32 %v5560_v50, %v2038_v8 }
 0x1b6   : > { %v4763_v15 = vpop.f32.mrf.mxu0  ;;  %v4863_v16 = vpop.f32.mrf.mxu1 }
 0x1b7   : > { %v4198_v17 = vpack.c.bf16 %v2161_v9, %v2160_v5  ;;  %v4448_v18 = vpack.c.bf16 %v2261_v10, %v2260_v6  ;;  %v2159_v19 = vmax.f32 %v1639_v11, 0.0  ;;  %v2259_v20 = vmax.f32 %v2039_v12, 0.0 }
 0x1b8   : > { %v1660_v21 = vadd.f32 %v5560_v50, %v4763_v15  ;;  %v2060_v22 = vadd.f32 %v5560_v50, %v4863_v16  ;;  %v1651_v23 = vpop.f32.mrf.mxu0  ;;  %v2051_v24 = vpop.f32.mrf.mxu1 }
 0x1b9   : > { %4506 = vst [vmem:[%s5378_s10 + $0x178] sm:$0xff] %v4198_v17   ;;  %4556 = vst [vmem:[%s5378_s10 + $0x308] sm:$0xff] %v4448_v18   ;;  %v4193_v25 = vpack.c.bf16 %v2159_v19, %v2158_v13  ;;  %v4443_v26 = vpack.c.bf16 %v2259_v20, %v2258_v14  ;;  %v1652_v27 = vadd.f32 %v5560_v50, %v1651_v23 }
 0x1ba   : > { %v2052_v28 = vadd.f32 %v5560_v50, %v2051_v24  ;;  %v4764_v29 = vpop.f32.mrf.mxu0  ;;  %v4864_v30 = vpop.f32.mrf.mxu1  ;;  %v2164_v33 = vmax.f32 %v1660_v21, 0.0  ;;  %v2264_v34 = vmax.f32 %v2060_v22, 0.0 }
 0x1bb   : > { %4505 = vst [vmem:[%s5378_s10 + $0x170] sm:$0xff] %v4193_v25   ;;  %4555 = vst [vmem:[%s5378_s10 + $0x300] sm:$0xff] %v4443_v26   ;;  %v1663_v31 = vadd.f32 %v5560_v50, %v4764_v29  ;;  %v2063_v32 = vadd.f32 %v5560_v50, %v4864_v30  ;;  %v2162_v41 = vmax.f32 %v1652_v27, 0.0 }
 0x1bc   : > { %v1654_v35 = vpop.f32.mrf.mxu0  ;;  %v2054_v36 = vpop.f32.mrf.mxu1  ;;  %v2262_v43 = vmax.f32 %v2052_v28, 0.0 }
 0x1bd   : > { %v2165_v37 = vmax.f32 %v1663_v31, 0.0  ;;  %v2265_v38 = vmax.f32 %v2063_v32, 0.0  ;;  %v1655_v39 = vadd.f32 %v5560_v50, %v1654_v35  ;;  %v2055_v40 = vadd.f32 %v5560_v50, %v2054_v36 }
 0x1bf   : > { %v4208_v44 = vpack.c.bf16 %v2165_v37, %v2164_v33  ;;  %v4458_v45 = vpack.c.bf16 %v2265_v38, %v2264_v34  ;;  %v2163_v46 = vmax.f32 %v1655_v39, 0.0  ;;  %v2263_v47 = vmax.f32 %v2055_v40, 0.0 }
 0x1c1   : > { %4508 = vst [vmem:[%s5378_s10 + $0x188] sm:$0xff] %v4208_v44   ;;  %4558 = vst [vmem:[%s5378_s10 + $0x318] sm:$0xff] %v4458_v45   ;;  %v4203_v48 = vpack.c.bf16 %v2163_v46, %v2162_v41  ;;  %v4453_v49 = vpack.c.bf16 %v2263_v47, %v2262_v43 }
 0x1c3   : > { %4507 = vst [vmem:[%s5378_s10 + $0x180] sm:$0xff] %v4203_v48   ;;  %4557 = vst [vmem:[%s5378_s10 + $0x310] sm:$0xff] %v4453_v49  }
 0x1c4 PF: > { %s15_s12 = sadd.s32 1, %s5070_s12  }
 0x1c5   : > { %p12_p2 = scmp.ge.s32.totalorder %s15_s12, 11  }
 0x1c7   :  { %14 = sbr.rel (!%p12_p2) target bundleno = 2 (0x2), region = 71 }
 0x1cc   :  { %3288 = vsyncpa [#allocation3], 1 }
 0x1cd   :  { %3290 = vsyncpa [#allocation3 + $0x1], 1 }
 0x1ce   :  { %3291 = vsyncpa [#allocation5], 1 }

// kernel: dann_forward.4
= control target key start
LH: loop header
LB: loop body
LE: loop exit
PB: predicated region body
PF: predicated region fallthrough
CT: control target
= control target key end

     0   :  { %s6285_s12 = smov 0   ;;  %s7780_s0 = inlined_call_operand.vmem [shape: bf16[2816,800], index: 0, kind: input, shape index: {}]   ;;  %s7781_s1 = inlined_call_operand.vmem [shape: bf16[800,128], index: 1, kind: input, shape index: {}]   ;;  %s7782_s2 = inlined_call_operand.vmem [shape: f32[1,128], index: 2, kind: input, shape index: {}]   ;;  %s7783_s3 = inlined_call_operand.vmem [shape: bf16[2816,128], index: 3, kind: output, shape index: {}]  }
   0x1 LB: > { %s4734_s13 = sadd.s32 4294967295, %s6262_s12   ;;  %p4738_p0 = scmp.ge.s32.totalorder %s6262_s12, 1  ;;  %s6262_s12 = sphi %s6285_s12, %s13_s12  }
   0x2   : > { %p139_p1 = scmp.lt.s32.totalorder %s6262_s12, 5 }
   0x4   : > { %p140_p2 = pnand %p4738_p0, %p139_p1 }
   0x6   : > { %143 = sbr.rel (%p140_p2) target bundleno = 890 (0x37a), region = 32 }
   0xb   : > { %v5765_v0 = vld [vmem:[%s7781_s1 + $0x38] sm:$0xff]   ;;  %v6264_v1 = vmov 0   ;;  %s164_s16 = smul.u32 88, %s4734_s13  ;;  %v5766_v2 = vld [vmem:[%s7781_s1 + $0x30] sm:$0xff]   ;;  %v5767_v3 = vld [vmem:[%s7781_s1 + $0x28] sm:$0xff]   ;;  %vm2477_vm0 = vcmask 261120  }
   0xc   : > { %2610 = vmatprep.subr.bf16.mxu0 %v6264_v1  ;;  %5723 = vmatprep.subr.bf16.mxu1 %v6264_v1  ;;  %v5768_v4 = vld [vmem:[%s7781_s1 + $0x20] sm:$0xff]   ;;  %v5769_v5 = vld [vmem:[%s7781_s1 + $0x18] sm:$0xff]   ;;  %v5770_v7 = vld [vmem:[%s7781_s1 + $0x10] sm:$0xff]  }
   0xd   : > { %2611 = vmatpush1.bf16.msra.mxu0 %v5765_v0  ;;  %5739 = vmatpush1.bf16.msra.mxu1 %v5765_v0  ;;  %p165_p3 = scmp.lt.s32.totalorder %s164_s16, 351  ;;  %v5771_v9 = vld [vmem:[%s7781_s1 + $0x8] sm:$0xff]   ;;  %v5772_v10 = vld [vmem:[%s7781_s1] sm:$0xff]   ;;  %v5773_v11 = vld [vmem:[%s7781_s1 + $0x78] sm:$0xff]  }
   0xe   : > { %2612 = vmatprep.subr.bf16.mxu0 %v6264_v1  ;;  %5724 = vmatprep.subr.bf16.mxu1 %v6264_v1  ;;  %v5774_v12 = vld [vmem:[%s7781_s1 + $0x70] sm:$0xff]   ;;  %v5775_v13 = vld [vmem:[%s7781_s1 + $0x68] sm:$0xff]   ;;  %v5776_v14 = vld [vmem:[%s7781_s1 + $0x60] sm:$0xff]  }
   0xf   : > { %s7943_s16 = smov (!%p165_p3, %s164_s16), 351  ;;  %v5777_v15 = vld [vmem:[%s7781_s1 + $0x58] sm:$0xff]   ;;  %v5778_v16 = vld [vmem:[%s7781_s1 + $0x50] sm:$0xff]   ;;  %v5779_v17 = vld [vmem:[%s7781_s1 + $0x48] sm:$0xff]  }
  0x10   : > { %s5755_s23 = smul.u32 28, %s7943_s16  ;;  %v5780_v18 = vld [vmem:[%s7781_s1 + $0x40] sm:$0xff]   ;;  %v5787_v21 = vld [vmem:[%s7781_s1 + $0xb8] sm:$0xff]   ;;  %v5793_v25 = vld [vmem:[%s7781_s1 + $0xb0] sm:$0xff]  }
  0x11   : > { %2613 = vmatpush1.bf16.msra.mxu0 %v5766_v2  ;;  %5740 = vmatpush1.bf16.msra.mxu1 %v5766_v2  ;;  %v5788_v22 = vld [vmem:[%s7781_s1 + $0x138] sm:$0xff]   ;;  %v5804_v26 = vld [vmem:[%s7781_s1 + $0x130] sm:$0xff]   ;;  %v5796_v29 = vld [vmem:[%s7781_s1 + $0xa8] sm:$0xff]  }
  0x12   : > { %2614 = vmatprep.subr.bf16.mxu0 %v6264_v1  ;;  %5725 = vmatprep.subr.bf16.mxu1 %v6264_v1  ;;  %s6322_s28 = scalar_lea.vmem %s7780_s0, %s5755_s23  ;;  %v5820_v32 = vld [vmem:[%s7781_s1 + $0x128] sm:$0xff]   ;;  %v5803_v33 = vld [vmem:[%s7781_s1 + $0xa0] sm:$0xff]   ;;  %v5809_v39 = vld [vmem:[%s7781_s1 + $0x98] sm:$0xff]  }
  0x13   : > { %v5783_v6 = vld [vmem:[%s6322_s28 + $0x4] ss:$28 sps:$4 sm:$0xff]   ;;  %v5786_v8 = vld [vmem:[%s6322_s28 + $0x73c] ss:$28 sps:$4 sm:$0xff]   ;;  %v5791_v24 = vld [vmem:[%s6322_s28 + $0x774] ss:$28 sps:$4 sm:$0xff]  }
  0x14   : > { %2642 = vmatprep.mubr.bf16.mxu0 %v5783_v6  ;;  %2906 = vmatprep.mubr.bf16.mxu1 %v5786_v8  ;;  %v5781_v19 = vld [vmem:[%s6322_s28] ss:$28 sps:$4 sm:$0xff]   ;;  %v5784_v20 = vld [vmem:[%s6322_s28 + $0x738] ss:$28 sps:$4 sm:$0xff]   ;;  %v5795_v28 = vld [vmem:[%s6322_s28 + $0x770] ss:$28 sps:$4 sm:$0xff]  }
  0x15   : > { %2615 = vmatpush1.bf16.msra.mxu0 %v5767_v3  ;;  %5741 = vmatpush1.bf16.msra.mxu1 %v5767_v3  ;;  %v5789_v23 = vld [vmem:[%s6322_s28 + $0x3c] ss:$28 sps:$4 sm:$0xff]   ;;  %v5797_v30 = vld [vmem:[%s6322_s28 + $0x74] ss:$28 sps:$4 sm:$0xff]   ;;  %v5799_v31 = vld [vmem:[%s6322_s28 + $0x7ac] ss:$28 sps:$4 sm:$0xff]  }
  0x16   : > { %2616 = vmatprep.subr.bf16.mxu0 %v6264_v1  ;;  %5726 = vmatprep.subr.bf16.mxu1 %v6264_v1  ;;  %v5794_v27 = vld [vmem:[%s6322_s28 + $0x38] ss:$28 sps:$4 sm:$0xff]   ;;  %v5801_v34 = vld [vmem:[%s6322_s28 + $0x70] ss:$28 sps:$4 sm:$0xff]   ;;  %v5802_v35 = vld [vmem:[%s6322_s28 + $0x7a8] ss:$28 sps:$4 sm:$0xff]  }
  0x17   : > { %v5836_v36 = vld [vmem:[%s7781_s1 + $0x120] sm:$0xff]   ;;  %v5805_v37 = vld [vmem:[%s6322_s28 + $0xac] ss:$28 sps:$4 sm:$0xff]   ;;  %v5852_v40 = vld [vmem:[%s7781_s1 + $0x118] sm:$0xff]  }
  0x18   : > { %v5807_v38 = vld [vmem:[%s6322_s28 + $0x7e4] ss:$28 sps:$4 sm:$0xff]   ;;  %v5812_v42 = vld [vmem:[%s7781_s1 + $0x90] sm:$0xff]   ;;  %v5815_v46 = vld [vmem:[%s6322_s28 + $0x81c] ss:$28 sps:$4 sm:$0xff]  }
  0x19   : > { %2617 = vmatpush1.bf16.msra.mxu0 %v5768_v4  ;;  %5742 = vmatpush1.bf16.msra.mxu1 %v5768_v4  ;;  %v5810_v41 = vld [vmem:[%s6322_s28 + $0xa8] ss:$28 sps:$4 sm:$0xff]   ;;  %v5868_v43 = vld [vmem:[%s7781_s1 + $0x110] sm:$0xff]   ;;  %v5811_v44 = vld [vmem:[%s6322_s28 + $0x7e0] ss:$28 sps:$4 sm:$0xff]  }
  0x1a   : > { %2618 = vmatprep.subr.bf16.mxu0 %v6264_v1  ;;  %5727 = vmatprep.subr.bf16.mxu1 %v6264_v1  ;;  %v5813_v45 = vld [vmem:[%s6322_s28 + $0xe4] ss:$28 sps:$4 sm:$0xff]   ;;  %v5819_v47 = vld [vmem:[%s7781_s1 + $0x88] sm:$0xff]   ;;  %v5818_v51 = vld [vmem:[%s6322_s28 + $0x818] ss:$28 sps:$4 sm:$0xff]  }
  0x1b   : > { %v5882_v48 = vld [vmem:[%s7781_s1 + $0x108] sm:$0xff]   ;;  %v5817_v49 = vld [vmem:[%s6322_s28 + $0xe0] ss:$28 sps:$4 sm:$0xff]   ;;  %v5823_v54 = vld [vmem:[%s6322_s28 + $0x854] ss:$28 sps:$4 sm:$0xff]  }
  0x1c   : > { %v5827_v50 = vld [vmem:[%s7781_s1 + $0x80] sm:$0xff]   ;;  %v5821_v53 = vld [vmem:[%s6322_s28 + $0x11c] ss:$28 sps:$4 sm:$0xff]   ;;  %v5826_v58 = vld [vmem:[%s6322_s28 + $0x850] ss:$28 sps:$4 sm:$0xff]  }
  0x1d   : > { %2619 = vmatpush1.bf16.msra.mxu0 %v5769_v5  ;;  %5743 = vmatpush1.bf16.msra.mxu1 %v5769_v5  ;;  %v5895_v52 = vld [vmem:[%s7781_s1 + $0x100] sm:$0xff]   ;;  %v5828_v55 = vld [vmem:[%s7781_s1 + $0xf8] sm:$0xff]   ;;  %v5835_v59 = vld [vmem:[%s7781_s1 + $0xf0] sm:$0xff]  }
  0x1e   : > { %2620 = vmatprep.subr.bf16.mxu0 %v6264_v1  ;;  %5728 = vmatprep.subr.bf16.mxu1 %v6264_v1  ;;  %v5908_v56 = vld [vmem:[%s7781_s1 + $0x178] sm:$0xff]   ;;  %v5829_v60 = vld [vmem:[%s6322_s28 + $0x154] ss:$28 sps:$4 sm:$0xff]   ;;  %v5831_v62 = vld [vmem:[%s6322_s28 + $0x88c] ss:$28 sps:$4 sm:$0xff]  }
  0x1f   : > { %v5825_v57 = vld [vmem:[%s6322_s28 + $0x118] ss:$28 sps:$4 sm:$0xff]   ;;  %v5843_v63 = vld [vmem:[%s7781_s1 + $0xe8] sm:$0xff]   ;;  %v5844_v2 = vld [vmem:[%s7781_s1 + $0xe0] sm:$0xff]  }
  0x20   : > { %v5921_v61 = vld [vmem:[%s7781_s1 + $0x170] sm:$0xff]   ;;  %v5934_v0 = vld [vmem:[%s7781_s1 + $0x168] sm:$0xff]   ;;  %v5839_v6 = vld [vmem:[%s6322_s28 + $0x8c4] ss:$28 sps:$4 sm:$0xff]  }
  0x21   : > { %2621 = vmatpush1.bf16.msra.mxu0 %v5770_v7  ;;  %5744 = vmatpush1.bf16.msra.mxu1 %v5770_v7  ;;  %v5833_v3 = vld [vmem:[%s6322_s28 + $0x150] ss:$28 sps:$4 sm:$0xff]   ;;  %v5834_v4 = vld [vmem:[%s6322_s28 + $0x888] ss:$28 sps:$4 sm:$0xff]   ;;  %v5851_v7 = vld [vmem:[%s7781_s1 + $0xd8] sm:$0xff]  }
  0x22   : > { %2622 = vmatprep.subr.bf16.mxu0 %v6264_v1  ;;  %5729 = vmatprep.subr.bf16.mxu1 %v6264_v1  ;;  %v5837_v5 = vld [vmem:[%s6322_s28 + $0x18c] ss:$28 sps:$4 sm:$0xff]   ;;  %v5859_v8 = vld [vmem:[%s7781_s1 + $0xd0] sm:$0xff]  }
  0x25   : > { %2623 = vmatpush1.bf16.msra.mxu0 %v5771_v9  ;;  %5745 = vmatpush1.bf16.msra.mxu1 %v5771_v9  ;;  %v5951_v9 = vld [vmem:[%s7781_s1 + $0x160] sm:$0xff]  }
  0x26   : > { %2624 = vmatprep.subr.bf16.mxu0 %v6264_v1  ;;  %5730 = vmatprep.subr.bf16.mxu1 %v6264_v1 }
  0x29   : > { %2625 = vmatpush1.bf16.msra.mxu0 %v5772_v10  ;;  %5746 = vmatpush1.bf16.msra.mxu1 %v5772_v10  ;;  %v5841_v10 = vld [vmem:[%s6322_s28 + $0x188] ss:$28 sps:$4 sm:$0xff]  }
  0x2a   : > { %2626 = vmatprep.subr.bf16.mxu0 %v6264_v1  ;;  %5731 = vmatprep.subr.bf16.mxu1 %v6264_v1 }
  0x2d   : > { %2627 = vmatpush2.bf16.msra.mxu0 %v5773_v11  ;;  %5747 = vmatpush2.bf16.msra.mxu1 %v5773_v11  ;;  %v5842_v11 = vld [vmem:[%s6322_s28 + $0x8c0] ss:$28 sps:$4 sm:$0xff]  }
  0x2e   : > { %2628 = vmatprep.subr.bf16.mxu0 %v6264_v1  ;;  %5732 = vmatprep.subr.bf16.mxu1 %v6264_v1 }
  0x31   : > { %2629 = vmatpush2.bf16.msra.mxu0 %v5774_v12  ;;  %5748 = vmatpush2.bf16.msra.mxu1 %v5774_v12  ;;  %v5845_v12 = vld [vmem:[%s6322_s28 + $0x1c4] ss:$28 sps:$4 sm:$0xff]  }
  0x32   : > { %2630 = vmatprep.subr.bf16.mxu0 %v6264_v1  ;;  %5733 = vmatprep.subr.bf16.mxu1 %v6264_v1 }
  0x35   : > { %2631 = vmatpush2.bf16.msra.mxu0 %v5775_v13  ;;  %5749 = vmatpush2.bf16.msra.mxu1 %v5775_v13  ;;  %v5847_v13 = vld [vmem:[%s6322_s28 + $0x8fc] ss:$28 sps:$4 sm:$0xff]  }
  0x36   : > { %2632 = vmatprep.subr.bf16.mxu0 %v6264_v1  ;;  %5734 = vmatprep.subr.bf16.mxu1 %v6264_v1 }
  0x39   : > { %2633 = vmatpush2.bf16.msra.mxu0 %v5776_v14  ;;  %5750 = vmatpush2.bf16.msra.mxu1 %v5776_v14  ;;  %v5860_v14 = vld [vmem:[%s7781_s1 + $0xc8] sm:$0xff]  }
  0x3a   : > { %2634 = vmatprep.subr.bf16.mxu0 %v6264_v1  ;;  %5735 = vmatprep.subr.bf16.mxu1 %v6264_v1 }
  0x3d   : > { %2635 = vmatpush2.bf16.msra.mxu0 %v5777_v15  ;;  %5751 = vmatpush2.bf16.msra.mxu1 %v5777_v15  ;;  %v5867_v15 = vld [vmem:[%s7781_s1 + $0xc0] sm:$0xff]  }
  0x3e   : > { %2636 = vmatprep.subr.bf16.mxu0 %v6264_v1  ;;  %5736 = vmatprep.subr.bf16.mxu1 %v6264_v1 }
  0x41   : > { %2637 = vmatpush2.bf16.msra.mxu0 %v5778_v16  ;;  %5752 = vmatpush2.bf16.msra.mxu1 %v5778_v16  ;;  %v5875_v16 = vld [vmem:[%s7781_s1 + $0x188] sm:$0xff]  }
  0x42   : > { %2638 = vmatprep.subr.bf16.mxu0 %v6264_v1  ;;  %5737 = vmatprep.subr.bf16.mxu1 %v6264_v1 }
  0x45   : > { %2639 = vmatpush2.bf16.msra.mxu0 %v5779_v17  ;;  %5753 = vmatpush2.bf16.msra.mxu1 %v5779_v17  ;;  %v5849_v17 = vld [vmem:[%s6322_s28 + $0x1c0] ss:$28 sps:$4 sm:$0xff]  }
  0x46   : > { %2640 = vmatprep.subr.bf16.mxu0 %v6264_v1  ;;  %5738 = vmatprep.subr.bf16.mxu1 %v6264_v1 }
  0x49   : > { %2641 = vmatpush2.bf16.msra.mxu0 %v5780_v18  ;;  %5754 = vmatpush2.bf16.msra.mxu1 %v5780_v18  ;;  %v5850_v18 = vld [vmem:[%s6322_s28 + $0x8f8] ss:$28 sps:$4 sm:$0xff]  }
  0x4a   : > { %2995 = vmatprep.subr.bf16.mxu1 %v6264_v1  ;;  %3380 = vmatprep.subr.bf16.mxu0 %v6264_v1 }
  0x4c   : > { %2643 = vmatmul.mubr.bf16.vlgmr.msra.gmra.mxu0 %v5781_v19  ;;  %2907 = vmatmul.mubr.bf16.vlgmr.msra.gmra.mxu1 %v5784_v20  ;;  %v5853_v19 = vld [vmem:[%s6322_s28 + $0x1fc] ss:$28 sps:$4 sm:$0xff]   ;;  %v5855_v20 = vld [vmem:[%s6322_s28 + $0x934] ss:$28 sps:$4 sm:$0xff]  }
  0x4d   : > { %2996 = vmatpush1.bf16.msra.mxu1 %v5787_v21  ;;  %3381 = vmatpush1.bf16.msra.mxu0 %v5788_v22  ;;  %v5857_v21 = vld [vmem:[%s6322_s28 + $0x1f8] ss:$28 sps:$4 sm:$0xff]   ;;  %v5858_v22 = vld [vmem:[%s6322_s28 + $0x930] ss:$28 sps:$4 sm:$0xff]  }
  0x4e   : > { %2997 = vmatprep.subr.bf16.mxu1 %v6264_v1  ;;  %2650 = vmatprep.mubr.bf16.mxu0 %v5789_v23  ;;  %v5861_v23 = vld [vmem:[%s6322_s28 + $0x234] ss:$28 sps:$4 sm:$0xff]  }
  0x4f   : > { %2914 = vmatprep.mubr.bf16.mxu1 %v5791_v24  ;;  %3382 = vmatprep.subr.bf16.mxu0 %v6264_v1  ;;  %v5863_v24 = vld [vmem:[%s6322_s28 + $0x96c] ss:$28 sps:$4 sm:$0xff]  }
  0x51   : > { %2998 = vmatpush1.bf16.msra.mxu1 %v5793_v25  ;;  %3383 = vmatpush1.bf16.msra.mxu0 %v5804_v26  ;;  %v5964_v25 = vld [vmem:[%s7781_s1 + $0x158] sm:$0xff]   ;;  %v5865_v26 = vld [vmem:[%s6322_s28 + $0x230] ss:$28 sps:$4 sm:$0xff]  }
  0x52   : > { %2999 = vmatprep.subr.bf16.mxu1 %v6264_v1  ;;  %3384 = vmatprep.subr.bf16.mxu0 %v6264_v1 }
  0x54   : > { %2651 = vmatmul.mubr.bf16.gmra.mxu0 %v5794_v27  ;;  %2915 = vmatmul.mubr.bf16.gmra.mxu1 %v5795_v28  ;;  %v5866_v27 = vld [vmem:[%s6322_s28 + $0x968] ss:$28 sps:$4 sm:$0xff]  }
  0x55   : > { %3000 = vmatpush1.bf16.msra.mxu1 %v5796_v29  ;;  %2658 = vmatprep.mubr.bf16.mxu0 %v5797_v30  ;;  %v5869_v28 = vld [vmem:[%s6322_s28 + $0x26c] ss:$28 sps:$4 sm:$0xff]  }
  0x56   : > { %2922 = vmatprep.mubr.bf16.mxu1 %v5799_v31  ;;  %3001 = vmatprep.subr.bf16.mxu1 %v6264_v1  ;;  %v5873_v29 = vld [vmem:[%s6322_s28 + $0xc] ss:$28 sps:$4 sm:$0xff]  }
  0x57   : > { %3385 = vmatpush1.bf16.msra.mxu0 %v5820_v32  ;;  %v5871_v30 = vld [vmem:[%s6322_s28 + $0x8] ss:$28 sps:$4 sm:$0xff]  }
  0x58   : > { %3386 = vmatprep.subr.bf16.mxu0 %v6264_v1  ;;  %v5874_v31 = vld [vmem:[%s6322_s28 + $0x268] ss:$28 sps:$4 sm:$0xff]  }
  0x59   : > { %3002 = vmatpush1.bf16.msra.mxu1 %v5803_v33  ;;  %v5876_v32 = vld [vmem:[%s6322_s28 + $0x2a4] ss:$28 sps:$4 sm:$0xff]  }
  0x5a   : > { %3003 = vmatprep.subr.bf16.mxu1 %v6264_v1  ;;  %v5878_v33 = vld [vmem:[%s6322_s28 + $0x44] ss:$28 sps:$4 sm:$0xff]  }
  0x5b   : > { %3387 = vmatpush1.bf16.msra.mxu0 %v5836_v36  ;;  %v5881_v36 = vld [vmem:[%s6322_s28 + $0x40] ss:$28 sps:$4 sm:$0xff]  }
  0x5c   : > { %2659 = vmatmul.mubr.bf16.gmra.mxu0 %v5801_v34  ;;  %2923 = vmatmul.mubr.bf16.gmra.mxu1 %v5802_v35  ;;  %v5979_v34 = vld [vmem:[%s7781_s1 + $0x150] sm:$0xff]   ;;  %v5880_v35 = vld [vmem:[%s6322_s28 + $0x2a0] ss:$28 sps:$4 sm:$0xff]  }
  0x5d   : > { %2666 = vmatprep.mubr.bf16.mxu0 %v5805_v37  ;;  %2930 = vmatprep.mubr.bf16.mxu1 %v5807_v38  ;;  %v5883_v37 = vld [vmem:[%s6322_s28 + $0x2dc] ss:$28 sps:$4 sm:$0xff]  }
  0x5e   : > { %3004 = vmatpush1.bf16.msra.mxu1 %v5809_v39  ;;  %3388 = vmatprep.subr.bf16.mxu0 %v6264_v1  ;;  %v5885_v38 = vld [vmem:[%s6322_s28 + $0x7c] ss:$28 sps:$4 sm:$0xff]  }
  0x5f   : > { %3005 = vmatprep.subr.bf16.mxu1 %v6264_v1  ;;  %3389 = vmatpush1.bf16.msra.mxu0 %v5852_v40  ;;  %v5887_v39 = vld [vmem:[%s6322_s28 + $0x2d8] ss:$28 sps:$4 sm:$0xff]  }
  0x60   : > { %3390 = vmatprep.subr.bf16.mxu0 %v6264_v1  ;;  %v5888_v40 = vld [vmem:[%s6322_s28 + $0x78] ss:$28 sps:$4 sm:$0xff]  }
  0x62   : > { %3006 = vmatpush1.bf16.msra.mxu1 %v5812_v42  ;;  %v5891_v42 = vld [vmem:[%s6322_s28 + $0xb4] ss:$28 sps:$4 sm:$0xff]  }
  0x63   : > { %3007 = vmatprep.subr.bf16.mxu1 %v6264_v1  ;;  %3391 = vmatpush1.bf16.msra.mxu0 %v5868_v43  ;;  %v5992_v43 = vld [vmem:[%s7781_s1 + $0x148] sm:$0xff]  }
  0x64   : > { %2667 = vmatmul.mubr.bf16.gmra.mxu0 %v5810_v41  ;;  %2931 = vmatmul.mubr.bf16.gmra.mxu1 %v5811_v44  ;;  %v5889_v41 = vld [vmem:[%s6322_s28 + $0x314] ss:$28 sps:$4 sm:$0xff]  }
  0x65   : > { %2674 = vmatprep.mubr.bf16.mxu0 %v5813_v45  ;;  %2938 = vmatprep.mubr.bf16.mxu1 %v5815_v46  ;;  %v5893_v44 = vld [vmem:[%s6322_s28 + $0x310] ss:$28 sps:$4 sm:$0xff]  }
  0x66   : > { %3008 = vmatpush1.bf16.msra.mxu1 %v5819_v47  ;;  %3392 = vmatprep.subr.bf16.mxu0 %v6264_v1  ;;  %v5894_v45 = vld [vmem:[%s6322_s28 + $0xb0] ss:$28 sps:$4 sm:$0xff]  }
  0x67   : > { %3009 = vmatprep.subr.bf16.mxu1 %v6264_v1  ;;  %3393 = vmatpush1.bf16.msra.mxu0 %v5882_v48  ;;  %v5896_v46 = vld [vmem:[%s6322_s28 + $0x34c] ss:$28 sps:$4 sm:$0xff]  }
  0x68   : > { %3394 = vmatprep.subr.bf16.mxu0 %v6264_v1  ;;  %v5898_v47 = vld [vmem:[%s6322_s28 + $0xec] ss:$28 sps:$4 sm:$0xff]  }
  0x69   : > { %v5900_v48 = vld [vmem:[%s6322_s28 + $0x348] ss:$28 sps:$4 sm:$0xff]  }
  0x6a   : > { %3010 = vmatpush1.bf16.msra.mxu1 %v5827_v50  ;;  %v5902_v50 = vld [vmem:[%s6322_s28 + $0x384] ss:$28 sps:$4 sm:$0xff]  }
  0x6b   : > { %3011 = vmatprep.subr.bf16.mxu1 %v6264_v1  ;;  %3395 = vmatpush1.bf16.msra.mxu0 %v5895_v52  ;;  %v5906_v52 = vld [vmem:[%s6322_s28 + $0x380] ss:$28 sps:$4 sm:$0xff]  }
  0x6c   : > { %2675 = vmatmul.mubr.bf16.gmra.mxu0 %v5817_v49  ;;  %2939 = vmatmul.mubr.bf16.gmra.mxu1 %v5818_v51  ;;  %v5901_v49 = vld [vmem:[%s6322_s28 + $0xe8] ss:$28 sps:$4 sm:$0xff]  }
  0x6d   : > { %2682 = vmatprep.mubr.bf16.mxu0 %v5821_v53  ;;  %2946 = vmatprep.mubr.bf16.mxu1 %v5823_v54  ;;  %v5904_v51 = vld [vmem:[%s6322_s28 + $0x124] ss:$28 sps:$4 sm:$0xff]   ;;  %v5909_v54 = vld [vmem:[%s6322_s28 + $0x3bc] ss:$28 sps:$4 sm:$0xff]  }
  0x6e   : > { %3012 = vmatpush2.bf16.msra.mxu1 %v5828_v55  ;;  %3396 = vmatprep.subr.bf16.mxu0 %v6264_v1  ;;  %v5907_v53 = vld [vmem:[%s6322_s28 + $0x120] ss:$28 sps:$4 sm:$0xff]  }
  0x6f   : > { %3013 = vmatprep.subr.bf16.mxu1 %v6264_v1  ;;  %3397 = vmatpush2.bf16.msra.mxu0 %v5908_v56  ;;  %v5911_v55 = vld [vmem:[%s6322_s28 + $0x15c] ss:$28 sps:$4 sm:$0xff]  }
  0x70   : > { %3398 = vmatprep.subr.bf16.mxu0 %v6264_v1  ;;  %v5913_v56 = vld [vmem:[%s6322_s28 + $0x3b8] ss:$28 sps:$4 sm:$0xff]  }
  0x72   : > { %3014 = vmatpush2.bf16.msra.mxu1 %v5835_v59  ;;  %v5917_v59 = vld [vmem:[%s6322_s28 + $0x194] ss:$28 sps:$4 sm:$0xff]  }
  0x73   : > { %3015 = vmatprep.subr.bf16.mxu1 %v6264_v1  ;;  %3399 = vmatpush2.bf16.msra.mxu0 %v5921_v61  ;;  %v5919_v61 = vld [vmem:[%s6322_s28 + $0x3f0] ss:$28 sps:$4 sm:$0xff]  }
  0x74   : > { %2683 = vmatmul.mubr.bf16.gmra.mxu0 %v5825_v57  ;;  %2947 = vmatmul.mubr.bf16.gmra.mxu1 %v5826_v58  ;;  %v5914_v57 = vld [vmem:[%s6322_s28 + $0x158] ss:$28 sps:$4 sm:$0xff]  }
  0x75   : > { %2690 = vmatprep.mubr.bf16.mxu0 %v5829_v60  ;;  %2954 = vmatprep.mubr.bf16.mxu1 %v5831_v62  ;;  %v5915_v58 = vld [vmem:[%s6322_s28 + $0x3f4] ss:$28 sps:$4 sm:$0xff]   ;;  %v6018_v60 = vld [vmem:[%s7781_s1 + $0x180] sm:$0xff]  }
  0x76   : > { %3016 = vmatpush2.bf16.msra.mxu1 %v5843_v63  ;;  %3400 = vmatprep.subr.bf16.mxu0 %v6264_v1  ;;  %v5920_v62 = vld [vmem:[%s6322_s28 + $0x190] ss:$28 sps:$4 sm:$0xff]  }
  0x77   : > { %3017 = vmatprep.subr.bf16.mxu1 %v6264_v1  ;;  %3401 = vmatpush2.bf16.msra.mxu0 %v5934_v0  ;;  %v5922_v63 = vld [vmem:[%s6322_s28 + $0x42c] ss:$28 sps:$4 sm:$0xff]  }
  0x78   : > { %3402 = vmatprep.subr.bf16.mxu0 %v6264_v1  ;;  %v5924_v0 = vld [vmem:[%s6322_s28 + $0x1cc] ss:$28 sps:$4 sm:$0xff]  }
  0x7a   : > { %3018 = vmatpush2.bf16.msra.mxu1 %v5844_v2  ;;  %v5926_v2 = vld [vmem:[%s6322_s28 + $0x428] ss:$28 sps:$4 sm:$0xff]  }
  0x7b   : > { %3019 = vmatprep.subr.bf16.mxu1 %v6264_v1  ;;  %3403 = vmatpush2.bf16.msra.mxu0 %v5951_v9  ;;  %v5937_v9 = vld [vmem:[%s6322_s28 + $0x23c] ss:$28 sps:$4 sm:$0xff]  }
  0x7c   : > { %2691 = vmatmul.mubr.bf16.gmra.mxu0 %v5833_v3  ;;  %2955 = vmatmul.mubr.bf16.gmra.mxu1 %v5834_v4  ;;  %v5927_v3 = vld [vmem:[%s6322_s28 + $0x1c8] ss:$28 sps:$4 sm:$0xff]  }
  0x7d   : > { %2698 = vmatprep.mubr.bf16.mxu0 %v5837_v5  ;;  %2962 = vmatprep.mubr.bf16.mxu1 %v5839_v6  ;;  %v5928_v4 = vld [vmem:[%s6322_s28 + $0x464] ss:$28 sps:$4 sm:$0xff]  }
  0x7e   : > { %3020 = vmatpush2.bf16.msra.mxu1 %v5851_v7  ;;  %3404 = vmatprep.subr.bf16.mxu0 %v6264_v1  ;;  %v5930_v5 = vld [vmem:[%s6322_s28 + $0x204] ss:$28 sps:$4 sm:$0xff]  }
  0x7f   : > { %3021 = vmatprep.subr.bf16.mxu1 %v6264_v1  ;;  %3405 = vmatpush2.bf16.msra.mxu0 %v5964_v25  ;;  %v5932_v6 = vld [vmem:[%s6322_s28 + $0x460] ss:$28 sps:$4 sm:$0xff]  }
  0x80   : > { %3406 = vmatprep.subr.bf16.mxu0 %v6264_v1  ;;  %v5933_v7 = vld [vmem:[%s6322_s28 + $0x200] ss:$28 sps:$4 sm:$0xff]  }
  0x81   : > { %v5962_v25 = vld [vmem:[%s6322_s28 + $0x31c] ss:$28 sps:$4 sm:$0xff]  }
  0x82   : > { %3022 = vmatpush2.bf16.msra.mxu1 %v5859_v8  ;;  %v5935_v8 = vld [vmem:[%s6322_s28 + $0x49c] ss:$28 sps:$4 sm:$0xff]  }
  0x83   : > { %3023 = vmatprep.subr.bf16.mxu1 %v6264_v1  ;;  %3407 = vmatpush2.bf16.msra.mxu0 %v5979_v34  ;;  %v5967_v34 = vld [vmem:[%s6322_s28 + $0x5b4] ss:$28 sps:$4 sm:$0xff]  }
  0x84   : > { %2699 = vmatmul.mubr.bf16.gmra.mxu0 %v5841_v10  ;;  %2963 = vmatmul.mubr.bf16.gmra.mxu1 %v5842_v11  ;;  %v5939_v10 = vld [vmem:[%s6322_s28 + $0x498] ss:$28 sps:$4 sm:$0xff]  }
  0x85   : > { %2706 = vmatprep.mubr.bf16.mxu0 %v5845_v12  ;;  %2970 = vmatprep.mubr.bf16.mxu1 %v5847_v13  ;;  %v5940_v11 = vld [vmem:[%s6322_s28 + $0x238] ss:$28 sps:$4 sm:$0xff]  }
  0x86   : > { %3024 = vmatpush2.bf16.msra.mxu1 %v5860_v14  ;;  %3408 = vmatprep.subr.bf16.mxu0 %v6264_v1  ;;  %v5941_v12 = vld [vmem:[%s6322_s28 + $0x4d4] ss:$28 sps:$4 sm:$0xff]  }
  0x87   : > { %3025 = vmatprep.subr.bf16.mxu1 %v6264_v1  ;;  %3409 = vmatpush2.bf16.msra.mxu0 %v5992_v43  ;;  %v5943_v13 = vld [vmem:[%s6322_s28 + $0x274] ss:$28 sps:$4 sm:$0xff]  }
  0x88   : > { %3410 = vmatprep.subr.bf16.mxu0 %v6264_v1  ;;  %v6005_v1 = vld [vmem:[%s7781_s1 + $0x140] sm:$0xff]   ;;  %v5945_v14 = vld [vmem:[%s6322_s28 + $0x4d0] ss:$28 sps:$4 sm:$0xff]  }
  0x8a   : > { %3026 = vmatpush2.bf16.msra.mxu1 %v5867_v15  ;;  %v5946_v15 = vld [vmem:[%s6322_s28 + $0x270] ss:$28 sps:$4 sm:$0xff]  }
  0x8b   : > { %5631 = vmatprep.subr.bf16.mxu1 %v5875_v16  ;;  %3411 = vmatpush2.bf16.msra.mxu0 %v6005_v1 }
  0x8c   : > { %2707 = vmatmul.mubr.bf16.gmra.mxu0 %v5849_v17  ;;  %2971 = vmatmul.mubr.bf16.gmra.mxu1 %v5850_v18  ;;  %v5949_v17 = vld [vmem:[%s6322_s28 + $0x2ac] ss:$28 sps:$4 sm:$0xff]  }
  0x8d   : > { %2714 = vmatprep.mubr.bf16.mxu0 %v5853_v19  ;;  %2978 = vmatprep.mubr.bf16.mxu1 %v5855_v20  ;;  %v5952_v18 = vld [vmem:[%s6322_s28 + $0x508] ss:$28 sps:$4 sm:$0xff]  }
  0x8e   : > { %v5953_v19 = vld [vmem:[%s6322_s28 + $0x2a8] ss:$28 sps:$4 sm:$0xff]  }
  0x8f   : > { %v5954_v20 = vld [vmem:[%s6322_s28 + $0x544] ss:$28 sps:$4 sm:$0xff]  }
  0x94   : > { %2715 = vmatmul.mubr.bf16.gmra.mxu0 %v5857_v21  ;;  %2979 = vmatmul.mubr.bf16.gmra.mxu1 %v5858_v22  ;;  %v5956_v21 = vld [vmem:[%s6322_s28 + $0x2e4] ss:$28 sps:$4 sm:$0xff]  }
  0x95   : > { %2722 = vmatprep.mubr.bf16.mxu0 %v5861_v23  ;;  %2986 = vmatprep.mubr.bf16.mxu1 %v5863_v24  ;;  %v5958_v22 = vld [vmem:[%s6322_s28 + $0x540] ss:$28 sps:$4 sm:$0xff]  }
  0x96   : > { %v5959_v23 = vld [vmem:[%s6322_s28 + $0x2e0] ss:$28 sps:$4 sm:$0xff]  }
  0x97   : > { %v5960_v24 = vld [vmem:[%s6322_s28 + $0x57c] ss:$28 sps:$4 sm:$0xff]  }
  0x9c   : > { %2723 = vmatmul.mubr.bf16.gmra.mxu0 %v5865_v26  ;;  %2987 = vmatmul.mubr.bf16.gmra.mxu1 %v5866_v27 }
  0x9d   : > { %2730 = vmatprep.mubr.bf16.mxu0 %v5869_v28  ;;  %3027 = vmatprep.mubr.bf16.mxu1 %v5873_v29 }
  0xa4   : > { %2731 = vmatmul.mubr.bf16.gmra.mxu0 %v5874_v31  ;;  %3028 = vmatmul.mubr.bf16.vlgmr.msra.gmra.mxu1 %v5871_v30 }
  0xa5   : > { %5632 = vmatpush3.bf16.msra.mxu1 %v5875_v16  ;;  %2738 = vmatprep.mubr.bf16.mxu0 %v5876_v32  ;;  %v5947_v16 = vld [vmem:[%s6322_s28 + $0x50c] ss:$28 sps:$4 sm:$0xff]   ;;  %v5965_v32 = vld [vmem:[%s6322_s28 + $0x578] ss:$28 sps:$4 sm:$0xff]  }
  0xa6   : > { %3035 = vmatprep.mubr.bf16.mxu1 %v5878_v33  ;;  %5633 = vmatprep.subr.bf16.mxu1 %v6018_v60  ;;  %v5966_v33 = vld [vmem:[%s6322_s28 + $0x318] ss:$28 sps:$4 sm:$0xff]  }
  0xa9   : > { %5634 = vmatpush3.bf16.msra.mxu1 %v6018_v60 }
  0xac   : > { %2739 = vmatmul.mubr.bf16.gmra.mxu0 %v5880_v35  ;;  %3036 = vmatmul.mubr.bf16.gmra.mxu1 %v5881_v36  ;;  %v5969_v35 = vld [vmem:[%s6322_s28 + $0x354] ss:$28 sps:$4 sm:$0xff]  }
  0xad   : > { %2746 = vmatprep.mubr.bf16.mxu0 %v5883_v37  ;;  %3043 = vmatprep.mubr.bf16.mxu1 %v5885_v38 }
  0xb4   : > { %2747 = vmatmul.mubr.bf16.gmra.mxu0 %v5887_v39  ;;  %3044 = vmatmul.mubr.bf16.gmra.mxu1 %v5888_v40 }
  0xb5   : > { %2754 = vmatprep.mubr.bf16.mxu0 %v5889_v41  ;;  %3051 = vmatprep.mubr.bf16.mxu1 %v5891_v42 }
  0xbc   : > { %2755 = vmatmul.mubr.bf16.gmra.mxu0 %v5893_v44  ;;  %3052 = vmatmul.mubr.bf16.gmra.mxu1 %v5894_v45  ;;  %v5971_v44 = vld [vmem:[%s6322_s28 + $0x5b0] ss:$28 sps:$4 sm:$0xff]  }
  0xbd   : > { %2762 = vmatprep.mubr.bf16.mxu0 %v5896_v46  ;;  %3059 = vmatprep.mubr.bf16.mxu1 %v5898_v47  ;;  %v5972_v45 = vld [vmem:[%s6322_s28 + $0x350] ss:$28 sps:$4 sm:$0xff]  }
  0xbe   : > { %v5973_v46 = vld [vmem:[%s6322_s28 + $0x5ec] ss:$28 sps:$4 sm:$0xff]  }
  0xbf   : > { %v5975_v47 = vld [vmem:[%s6322_s28 + $0x38c] ss:$28 sps:$4 sm:$0xff]  }
  0xc4   : > { %2763 = vmatmul.mubr.bf16.gmra.mxu0 %v5900_v48  ;;  %3060 = vmatmul.mubr.bf16.gmra.mxu1 %v5901_v49 }
  0xc5   : > { %2770 = vmatprep.mubr.bf16.mxu0 %v5902_v50  ;;  %3067 = vmatprep.mubr.bf16.mxu1 %v5904_v51 }
  0xcc   : > { %2771 = vmatmul.mubr.bf16.gmra.mxu0 %v5906_v52  ;;  %3068 = vmatmul.mubr.bf16.gmra.mxu1 %v5907_v53 }
  0xcd   : > { %2778 = vmatprep.mubr.bf16.mxu0 %v5909_v54  ;;  %3075 = vmatprep.mubr.bf16.mxu1 %v5911_v55  ;;  %v5977_v55 = vld [vmem:[%s6322_s28 + $0x5e8] ss:$28 sps:$4 sm:$0xff]  }
  0xd4   : > { %2779 = vmatmul.mubr.bf16.gmra.mxu0 %v5913_v56  ;;  %3076 = vmatmul.mubr.bf16.gmra.mxu1 %v5914_v57  ;;  %v5978_v56 = vld [vmem:[%s6322_s28 + $0x388] ss:$28 sps:$4 sm:$0xff]  }
  0xd5   : > { %2786 = vmatprep.mubr.bf16.mxu0 %v5915_v58  ;;  %3083 = vmatprep.mubr.bf16.mxu1 %v5917_v59  ;;  %v5982_v57 = vld [vmem:[%s6322_s28 + $0x624] ss:$28 sps:$4 sm:$0xff]  }
  0xd6   : > { %v5985_v58 = vld [vmem:[%s6322_s28 + $0x3c4] ss:$28 sps:$4 sm:$0xff]  }
  0xdc   : > { %2787 = vmatmul.mubr.bf16.gmra.mxu0 %v5919_v61  ;;  %3084 = vmatmul.mubr.bf16.gmra.mxu1 %v5920_v62 }
  0xdd   : > { %2794 = vmatprep.mubr.bf16.mxu0 %v5922_v63  ;;  %3091 = vmatprep.mubr.bf16.mxu1 %v5924_v0 }
  0xe4   : > { %2795 = vmatmul.mubr.bf16.gmra.mxu0 %v5926_v2  ;;  %3092 = vmatmul.mubr.bf16.gmra.mxu1 %v5927_v3 }
  0xe5   : > { %2802 = vmatprep.mubr.bf16.mxu0 %v5928_v4  ;;  %3099 = vmatprep.mubr.bf16.mxu1 %v5930_v5  ;;  %v5980_v4 = vld [vmem:[%s6322_s28 + $0x620] ss:$28 sps:$4 sm:$0xff]  }
  0xe6   : > { %v5983_v5 = vld [vmem:[%s6322_s28 + $0x3c0] ss:$28 sps:$4 sm:$0xff]  }
  0xec   : > { %2803 = vmatmul.mubr.bf16.gmra.mxu0 %v5932_v6  ;;  %3100 = vmatmul.mubr.bf16.gmra.mxu1 %v5933_v7  ;;  %v5988_v6 = vld [vmem:[%s6322_s28 + $0x65c] ss:$28 sps:$4 sm:$0xff]  }
  0xed   : > { %2810 = vmatprep.mubr.bf16.mxu0 %v5935_v8  ;;  %3107 = vmatprep.mubr.bf16.mxu1 %v5937_v9  ;;  %v5991_v7 = vld [vmem:[%s6322_s28 + $0x3fc] ss:$28 sps:$4 sm:$0xff]  }
  0xf4   : > { %2811 = vmatmul.mubr.bf16.gmra.mxu0 %v5939_v10  ;;  %3108 = vmatmul.mubr.bf16.gmra.mxu1 %v5940_v11 }
  0xf5   : > { %2818 = vmatprep.mubr.bf16.mxu0 %v5941_v12  ;;  %3115 = vmatprep.mubr.bf16.mxu1 %v5943_v13 }
  0xfc   : > { %2819 = vmatmul.mubr.bf16.gmra.mxu0 %v5945_v14  ;;  %3116 = vmatmul.mubr.bf16.gmra.mxu1 %v5946_v15 }
  0xfd   : > { %2826 = vmatprep.mubr.bf16.mxu0 %v5947_v16  ;;  %3123 = vmatprep.mubr.bf16.mxu1 %v5949_v17  ;;  %v5986_v16 = vld [vmem:[%s6322_s28 + $0x658] ss:$28 sps:$4 sm:$0xff]  }
  0xfe   : > { %v5989_v17 = vld [vmem:[%s6322_s28 + $0x3f8] ss:$28 sps:$4 sm:$0xff]  }
 0x104   : > { %2827 = vmatmul.mubr.bf16.gmra.mxu0 %v5952_v18  ;;  %3124 = vmatmul.mubr.bf16.gmra.mxu1 %v5953_v19  ;;  %v5995_v18 = vld [vmem:[%s6322_s28 + $0x694] ss:$28 sps:$4 sm:$0xff]  }
 0x105   : > { %2834 = vmatprep.mubr.bf16.mxu0 %v5954_v20  ;;  %3131 = vmatprep.mubr.bf16.mxu1 %v5956_v21  ;;  %v5998_v19 = vld [vmem:[%s6322_s28 + $0x434] ss:$28 sps:$4 sm:$0xff]  }
 0x10c   : > { %v6617_v26 = vpop.f32.mrf.mxu0  ;;  %2835 = vmatmul.mubr.bf16.gmra.mxu0 %v5958_v22  ;;  %v6619_v27 = vpop.f32.mrf.mxu1  ;;  %3132 = vmatmul.mubr.bf16.gmra.mxu1 %v5959_v23 }
 0x10d   : > { %2842 = vmatprep.mubr.bf16.mxu0 %v5960_v24  ;;  %3139 = vmatprep.mubr.bf16.mxu1 %v5962_v25 }
 0x10e   : > { %v2646_v28 = vpop.f32.mrf.mxu0  ;;  %v2910_v29 = vpop.f32.mrf.mxu1 }
 0x110   : > { %v6621_v30 = vpop.f32.mrf.mxu0  ;;  %v6623_v31 = vpop.f32.mrf.mxu1 }
 0x111   : > { %7784 = vst [vmem:[#allocation2_spill] sm:$0xff] %v6623_v31  ;;  %v6114_v31 = vld [vmem:[%s6322_s28 + $0x394] ss:$28 sps:$4 sm:$0xff]  }
 0x112   : > { %v2649_v36 = vpop.f32.mrf.mxu0  ;;  %v2913_v37 = vpop.f32.mrf.mxu1 }
 0x114   : > { %v6629_v38 = vpop.f32.mrf.mxu0  ;;  %2843 = vmatmul.mubr.bf16.gmra.mxu0 %v5965_v32  ;;  %v6631_v39 = vpop.f32.mrf.mxu1  ;;  %3140 = vmatmul.mubr.bf16.gmra.mxu1 %v5966_v33  ;;  %v5993_v32 = vld [vmem:[%s6322_s28 + $0x690] ss:$28 sps:$4 sm:$0xff]  }
 0x115   : > { %7785 = vst [vmem:[#allocation3_spill] sm:$0xff] %v6631_v39  ;;  %2850 = vmatprep.mubr.bf16.mxu0 %v5967_v34  ;;  %3147 = vmatprep.mubr.bf16.mxu1 %v5969_v35  ;;  %v5996_v33 = vld [vmem:[%s6322_s28 + $0x430] ss:$28 sps:$4 sm:$0xff]   ;;  %v6108_v39 = vld [vmem:[%s6322_s28 + $0x35c] ss:$28 sps:$4 sm:$0xff]  }
 0x116   : > { %v2654_v40 = vpop.f32.mrf.mxu0  ;;  %v2918_v41 = vpop.f32.mrf.mxu1  ;;  %v6001_v34 = vld [vmem:[%s6322_s28 + $0x6cc] ss:$28 sps:$4 sm:$0xff]  }
 0x117   : > { %v6004_v35 = vld [vmem:[%s6322_s28 + $0x46c] ss:$28 sps:$4 sm:$0xff]  }
 0x118   : > { %v6633_v42 = vpop.f32.mrf.mxu0  ;;  %v6635_v43 = vpop.f32.mrf.mxu1 }
 0x119   : > { %7786 = vst [vmem:[#allocation4_spill] sm:$0xff] %v6635_v43  ;;  %v6105_v43 = vld [vmem:[%s6322_s28 + $0x824] ss:$28 sps:$4 sm:$0xff]  }
 0x11a   : > { %v2657_v48 = vpop.f32.mrf.mxu0  ;;  %v2921_v49 = vpop.f32.mrf.mxu1 }
 0x11b   : > { %v5999_v48 = vld [vmem:[%s6322_s28 + $0x6c8] ss:$28 sps:$4 sm:$0xff]  }
 0x11c   : > { %v6641_v50 = vpop.f32.mrf.mxu0  ;;  %2851 = vmatmul.mubr.bf16.gmra.mxu0 %v5971_v44  ;;  %v6643_v51 = vpop.f32.mrf.mxu1  ;;  %3148 = vmatmul.mubr.bf16.gmra.mxu1 %v5972_v45  ;;  %v6002_v49 = vld [vmem:[%s6322_s28 + $0x468] ss:$28 sps:$4 sm:$0xff]  }
 0x11d   : > { %7787 = vst [vmem:[#allocation5_spill] sm:$0xff] %v6643_v51  ;;  %2858 = vmatprep.mubr.bf16.mxu0 %v5973_v46  ;;  %3155 = vmatprep.mubr.bf16.mxu1 %v5975_v47  ;;  %v6102_v51 = vld [vmem:[%s6322_s28 + $0x324] ss:$28 sps:$4 sm:$0xff]  }
 0x11e   : > { %v2662_v1 = vpop.f32.mrf.mxu0  ;;  %v2926_v52 = vpop.f32.mrf.mxu1 }
 0x11f   : > { %v6008_v1 = vld [vmem:[%s6322_s28 + $0x704] ss:$28 sps:$4 sm:$0xff]  }
 0x120   : > { %v6645_v53 = vpop.f32.mrf.mxu0  ;;  %v6647_v54 = vpop.f32.mrf.mxu1  ;;  %v6011_v52 = vld [vmem:[%s6322_s28 + $0x4a4] ss:$28 sps:$4 sm:$0xff]  }
 0x121   : > { %7788 = vst [vmem:[#allocation6_spill] sm:$0xff] %v6647_v54  ;;  %v6099_v54 = vld [vmem:[%s6322_s28 + $0x7ec] ss:$28 sps:$4 sm:$0xff]  }
 0x122   : > { %v2665_v59 = vpop.f32.mrf.mxu0  ;;  %v2929_v60 = vpop.f32.mrf.mxu1 }
 0x124   : > { %v6653_v61 = vpop.f32.mrf.mxu0  ;;  %2859 = vmatmul.mubr.bf16.gmra.mxu0 %v5977_v55  ;;  %v6655_v62 = vpop.f32.mrf.mxu1  ;;  %3156 = vmatmul.mubr.bf16.gmra.mxu1 %v5978_v56 }
 0x125   : > { %7789 = vst [vmem:[#allocation7_spill] sm:$0xff] %v6655_v62  ;;  %2866 = vmatprep.mubr.bf16.mxu0 %v5982_v57  ;;  %3163 = vmatprep.mubr.bf16.mxu1 %v5985_v58  ;;  %v6096_v62 = vld [vmem:[%s6322_s28 + $0x2ec] ss:$28 sps:$4 sm:$0xff]  }
 0x126   : > { %v2670_v63 = vpop.f32.mrf.mxu0  ;;  %v2934_v0 = vpop.f32.mrf.mxu1 }
 0x128   : > { %v6657_v2 = vpop.f32.mrf.mxu0  ;;  %v6659_v3 = vpop.f32.mrf.mxu1 }
 0x129   : > { %7790 = vst [vmem:[#allocation8_spill] sm:$0xff] %v6659_v3  ;;  %v6093_v3 = vld [vmem:[%s6322_s28 + $0x7b4] ss:$28 sps:$4 sm:$0xff]  }
 0x12a   : > { %v2673_v8 = vpop.f32.mrf.mxu0  ;;  %v2937_v9 = vpop.f32.mrf.mxu1 }
 0x12c   : > { %v6665_v10 = vpop.f32.mrf.mxu0  ;;  %2867 = vmatmul.mubr.bf16.gmra.mxu0 %v5980_v4  ;;  %v6667_v11 = vpop.f32.mrf.mxu1  ;;  %3164 = vmatmul.mubr.bf16.gmra.mxu1 %v5983_v5  ;;  %v6006_v4 = vld [vmem:[%s6322_s28 + $0x700] ss:$28 sps:$4 sm:$0xff]  }
 0x12d   : > { %7791 = vst [vmem:[#allocation9_spill] sm:$0xff] %v6667_v11  ;;  %2874 = vmatprep.mubr.bf16.mxu0 %v5988_v6  ;;  %3171 = vmatprep.mubr.bf16.mxu1 %v5991_v7  ;;  %v6009_v5 = vld [vmem:[%s6322_s28 + $0x4a0] ss:$28 sps:$4 sm:$0xff]   ;;  %v6017_v7 = vld [vmem:[%s6322_s28 + $0x14] ss:$28 sps:$4 sm:$0xff]  }
 0x12e   : > { %v2678_v12 = vpop.f32.mrf.mxu0  ;;  %v2942_v13 = vpop.f32.mrf.mxu1  ;;  %v6014_v6 = vld [vmem:[%s6322_s28 + $0x4dc] ss:$28 sps:$4 sm:$0xff]   ;;  %v6090_v11 = vld [vmem:[%s6322_s28 + $0x2b4] ss:$28 sps:$4 sm:$0xff]  }
 0x130   : > { %v6669_v14 = vpop.f32.mrf.mxu0  ;;  %v6671_v15 = vpop.f32.mrf.mxu1 }
 0x131   : > { %7792 = vst [vmem:[#allocation10_spill] sm:$0xff] %v6671_v15  ;;  %v6087_v15 = vld [vmem:[%s6322_s28 + $0x77c] ss:$28 sps:$4 sm:$0xff]  }
 0x132   : > { %v2681_v20 = vpop.f32.mrf.mxu0  ;;  %v2945_v21 = vpop.f32.mrf.mxu1 }
 0x133   : > { %v6012_v20 = vld [vmem:[%s6322_s28 + $0x4d8] ss:$28 sps:$4 sm:$0xff]   ;;  %v6015_v21 = vld [vmem:[%s6322_s28 + $0x10] ss:$28 sps:$4 sm:$0xff]  }
 0x134   : > { %v6677_v22 = vpop.f32.mrf.mxu0  ;;  %2875 = vmatmul.mubr.bf16.gmra.mxu0 %v5986_v16  ;;  %v6679_v23 = vpop.f32.mrf.mxu1  ;;  %3172 = vmatmul.mubr.bf16.gmra.mxu1 %v5989_v17 }
 0x135   : > { %7793 = vst [vmem:[#allocation11_spill] sm:$0xff] %v6679_v23  ;;  %2882 = vmatprep.mubr.bf16.mxu0 %v5995_v18  ;;  %3179 = vmatprep.mubr.bf16.mxu1 %v5998_v19  ;;  %v6084_v23 = vld [vmem:[%s6322_s28 + $0x27c] ss:$28 sps:$4 sm:$0xff]  }
 0x136   : > { %v2686_v24 = vpop.f32.mrf.mxu0  ;;  %v2950_v25 = vpop.f32.mrf.mxu1 }
 0x137   : > { %v6021_v24 = vld [vmem:[%s6322_s28 + $0x514] ss:$28 sps:$4 sm:$0xff]   ;;  %v6024_v25 = vld [vmem:[%s6322_s28 + $0x4c] ss:$28 sps:$4 sm:$0xff]  }
 0x138   : > { %v6681_v28 = vpop.f32.mrf.mxu0  ;;  %v6683_v29 = vpop.f32.mrf.mxu1 }
 0x139   : > { %7794 = vst [vmem:[#allocation12_spill] sm:$0xff] %v6683_v29  ;;  %v6081_v29 = vld [vmem:[%s6322_s28 + $0x744] ss:$28 sps:$4 sm:$0xff]  }
 0x13a   : > { %v2689_v36 = vpop.f32.mrf.mxu0  ;;  %v2953_v37 = vpop.f32.mrf.mxu1 }
 0x13c   : > { %v6689_v40 = vpop.f32.mrf.mxu0  ;;  %2883 = vmatmul.mubr.bf16.gmra.mxu0 %v5993_v32  ;;  %v6691_v41 = vpop.f32.mrf.mxu1  ;;  %3180 = vmatmul.mubr.bf16.gmra.mxu1 %v5996_v33 }
 0x13d   : > { %7795 = vst [vmem:[#allocation13_spill] sm:$0xff] %v6691_v41  ;;  %2890 = vmatprep.mubr.bf16.mxu0 %v6001_v34  ;;  %3187 = vmatprep.mubr.bf16.mxu1 %v6004_v35  ;;  %v6078_v41 = vld [vmem:[%s6322_s28 + $0x244] ss:$28 sps:$4 sm:$0xff]  }
 0x13e   : > { %v2694_v44 = vpop.f32.mrf.mxu0  ;;  %v2958_v45 = vpop.f32.mrf.mxu1 }
 0x140   : > { %v6693_v46 = vpop.f32.mrf.mxu0  ;;  %v6695_v47 = vpop.f32.mrf.mxu1 }
 0x141   : > { %7796 = vst [vmem:[#allocation14_spill] sm:$0xff] %v6695_v47  ;;  %v6075_v47 = vld [vmem:[%s6322_s28 + $0x70c] ss:$28 sps:$4 sm:$0xff]  }
 0x142   : > { %v2697_v55 = vpop.f32.mrf.mxu0  ;;  %v2961_v56 = vpop.f32.mrf.mxu1 }
 0x144   : > { %v6701_v57 = vpop.f32.mrf.mxu0  ;;  %2891 = vmatmul.mubr.bf16.gmra.mxu0 %v5999_v48  ;;  %v6703_v58 = vpop.f32.mrf.mxu1  ;;  %3188 = vmatmul.mubr.bf16.gmra.mxu1 %v6002_v49  ;;  %v6019_v48 = vld [vmem:[%s6322_s28 + $0x510] ss:$28 sps:$4 sm:$0xff]   ;;  %v6022_v49 = vld [vmem:[%s6322_s28 + $0x48] ss:$28 sps:$4 sm:$0xff]  }
 0x145   : > { %7797 = vst [vmem:[#allocation15_spill] sm:$0xff] %v6703_v58  ;;  %2898 = vmatprep.mubr.bf16.mxu0 %v6008_v1  ;;  %3195 = vmatprep.mubr.bf16.mxu1 %v6011_v52  ;;  %v6027_v1 = vld [vmem:[%s6322_s28 + $0x54c] ss:$28 sps:$4 sm:$0xff]   ;;  %v6030_v52 = vld [vmem:[%s6322_s28 + $0x84] ss:$28 sps:$4 sm:$0xff]  }
 0x146   : > { %v2702_v59 = vpop.f32.mrf.mxu0  ;;  %v2966_v60 = vpop.f32.mrf.mxu1  ;;  %v6072_v58 = vld [vmem:[%s6322_s28 + $0x20c] ss:$28 sps:$4 sm:$0xff]  }
 0x148   : > { %v6705_v63 = vpop.f32.mrf.mxu0  ;;  %v6707_v0 = vpop.f32.mrf.mxu1 }
 0x149   : > { %7798 = vst [vmem:[#allocation16_spill] sm:$0xff] %v6707_v0  ;;  %v6069_v0 = vld [vmem:[%s6322_s28 + $0x6d4] ss:$28 sps:$4 sm:$0xff]  }
 0x14a   : > { %v2705_v8 = vpop.f32.mrf.mxu0  ;;  %v2969_v9 = vpop.f32.mrf.mxu1 }
 0x14b   : > { %v6025_v9 = vld [vmem:[%s6322_s28 + $0x548] ss:$28 sps:$4 sm:$0xff]  }
 0x14c   : > { %v6713_v12 = vpop.f32.mrf.mxu0  ;;  %2899 = vmatmul.mubr.bf16.gmra.mxu0 %v6006_v4  ;;  %v6715_v13 = vpop.f32.mrf.mxu1  ;;  %3196 = vmatmul.mubr.bf16.gmra.mxu1 %v6009_v5 }
 0x14d   : > { %7799 = vst [vmem:[#allocation17_spill] sm:$0xff] %v6715_v13  ;;  %3203 = vmatprep.mubr.bf16.mxu1 %v6014_v6  ;;  %3412 = vmatprep.mubr.bf16.mxu0 %v6017_v7  ;;  %v6744_v6 = vld [vmem:[%s7782_s2] ss:$0 sm:$0xff]  ;;  %v6066_v13 = vld [vmem:[%s6322_s28 + $0x1d4] ss:$28 sps:$4 sm:$0xff]  }
 0x14e   : > { %v2710_v16 = vpop.f32.mrf.mxu0  ;;  %v2974_v17 = vpop.f32.mrf.mxu1 }
 0x14f   : > { %v6028_v16 = vld [vmem:[%s6322_s28 + $0x80] ss:$28 sps:$4 sm:$0xff]  }
 0x150   : > { %v6717_v18 = vpop.f32.mrf.mxu0  ;;  %v6719_v19 = vpop.f32.mrf.mxu1  ;;  %v6033_v17 = vld [vmem:[%s6322_s28 + $0x584] ss:$28 sps:$4 sm:$0xff]  }
 0x151   : > { %7800 = vst [vmem:[#allocation18_spill] sm:$0xff] %v6719_v19  ;;  %v6063_v19 = vld [vmem:[%s6322_s28 + $0x69c] ss:$28 sps:$4 sm:$0xff]  }
 0x152   : > { %v2713_v32 = vpop.f32.mrf.mxu0  ;;  %v2977_v33 = vpop.f32.mrf.mxu1 }
 0x154   : > { %v6725_v34 = vpop.f32.mrf.mxu0  ;;  %v6727_v35 = vpop.f32.mrf.mxu1  ;;  %3204 = vmatmul.mubr.bf16.gmra.mxu1 %v6012_v20  ;;  %3413 = vmatmul.mubr.bf16.vlgmr.msra.gmra.mxu0 %v6015_v21  ;;  %v6036_v20 = vld [vmem:[%s6322_s28 + $0xbc] ss:$28 sps:$4 sm:$0xff]  }
 0x155   : > { %7801 = vst [vmem:[#allocation19_spill] sm:$0xff] %v6727_v35  ;;  %3211 = vmatprep.mubr.bf16.mxu1 %v6021_v24  ;;  %3420 = vmatprep.mubr.bf16.mxu0 %v6024_v25  ;;  %v2645_v25 = vadd.f32 %v6744_v6, %v6617_v26  ;;  %v6031_v26 = vld [vmem:[%s6322_s28 + $0x580] ss:$28 sps:$4 sm:$0xff]  }
 0x156   : > { %v2718_v36 = vpop.f32.mrf.mxu0  ;;  %v2982_v37 = vpop.f32.mrf.mxu1  ;;  %v6060_v35 = vld [vmem:[%s6322_s28 + $0x19c] ss:$28 sps:$4 sm:$0xff]  }
 0x158   : > { %v6729_v44 = vpop.f32.mrf.mxu0  ;;  %v6731_v45 = vpop.f32.mrf.mxu1 }
 0x159   : > { %7802 = vst [vmem:[#allocation20_spill] sm:$0xff] %v6731_v45  ;;  %v6057_v45 = vld [vmem:[%s6322_s28 + $0x664] ss:$28 sps:$4 sm:$0xff]  }
 0x15a   : > { %v2721_v55 = vpop.f32.mrf.mxu0  ;;  %v2985_v56 = vpop.f32.mrf.mxu1 }
 0x15b   : > { %v6034_v55 = vld [vmem:[%s6322_s28 + $0xb8] ss:$28 sps:$4 sm:$0xff]  }
 0x15c   : > { %v6737_v59 = vpop.f32.mrf.mxu0  ;;  %v6739_v60 = vpop.f32.mrf.mxu1  ;;  %3212 = vmatmul.mubr.bf16.gmra.mxu1 %v6019_v48  ;;  %3421 = vmatmul.mubr.bf16.gmra.mxu0 %v6022_v49  ;;  %v2648_v49 = vadd.f32 %v6744_v6, %v6621_v30 }
 0x15d   : > { %7803 = vst [vmem:[#allocation21_spill] sm:$0xff] %v6739_v60  ;;  %3219 = vmatprep.mubr.bf16.mxu1 %v6027_v1  ;;  %3428 = vmatprep.mubr.bf16.mxu0 %v6030_v52  ;;  %v6054_v60 = vld [vmem:[%s6322_s28 + $0x164] ss:$28 sps:$4 sm:$0xff]  }
 0x15e   : > { %v2726_v4 = vpop.f32.mrf.mxu0  ;;  %v2990_v5 = vpop.f32.mrf.mxu1 }
 0x15f   : > { %v6039_v4 = vld [vmem:[%s6322_s28 + $0x5bc] ss:$28 sps:$4 sm:$0xff]   ;;  %v6042_v5 = vld [vmem:[%s6322_s28 + $0xf4] ss:$28 sps:$4 sm:$0xff]  }
 0x160   : > { %v6746_v7 = vpop.f32.mrf.mxu0  ;;  %v6748_v8 = vpop.f32.mrf.mxu1 }
 0x161   : > { %7804 = vst [vmem:[#allocation22_spill] sm:$0xff] %v6748_v8  ;;  %v6051_v8 = vld [vmem:[%s6322_s28 + $0x62c] ss:$28 sps:$4 sm:$0xff]  }
 0x162   : > { %v2729_v21 = vpop.f32.mrf.mxu0  ;;  %v2993_v24 = vpop.f32.mrf.mxu1 }
 0x164   : > { %v6756_v32 = vpop.f32.mrf.mxu0  ;;  %v3029_v33 = vpop.f32.mrf.mxu1  ;;  %3220 = vmatmul.mubr.bf16.gmra.mxu1 %v6025_v9  ;;  %3429 = vmatmul.mubr.bf16.gmra.mxu0 %v6028_v16 }
 0x165   : > { %v6758_v36 = vadd.f32 %v3029_v33, %v2645_v25  ;;  %3227 = vmatprep.mubr.bf16.mxu1 %v6033_v17  ;;  %3436 = vmatprep.mubr.bf16.mxu0 %v6036_v20  ;;  %v2653_v17 = vadd.f32 %v6744_v6, %v6629_v38  ;;  %v2656_v33 = vadd.f32 %v6744_v6, %v6633_v42  ;;  %v6037_v38 = vld [vmem:[%s6322_s28 + $0x5b8] ss:$28 sps:$4 sm:$0xff]  }
 0x166   : > { %v2734_v37 = vpop.f32.mrf.mxu0  ;;  %v3031_v48 = vpop.f32.mrf.mxu1 }
 0x168   : > { %v6762_v1 = vpop.f32.mrf.mxu0  ;;  %v3032_v52 = vpop.f32.mrf.mxu1 }
 0x169   : > { %v6766_v56 = vadd.f32 %v3032_v52, %v2648_v49  ;;  %v6040_v49 = vld [vmem:[%s6322_s28 + $0xf0] ss:$28 sps:$4 sm:$0xff]  }
 0x16a   : > { %v2737_v9 = vpop.f32.mrf.mxu0  ;;  %v3034_v16 = vpop.f32.mrf.mxu1 }
 0x16b   : > { %v6045_v9 = vld [vmem:[%s6322_s28 + $0x5f4] ss:$28 sps:$4 sm:$0xff]   ;;  %v6048_v16 = vld [vmem:[%s6322_s28 + $0x12c] ss:$28 sps:$4 sm:$0xff]  }
 0x16c   : > { %v6772_v20 = vpop.f32.mrf.mxu0  ;;  %v3037_v30 = vpop.f32.mrf.mxu1  ;;  %3228 = vmatmul.mubr.bf16.gmra.mxu1 %v6031_v26  ;;  %3437 = vmatmul.mubr.bf16.gmra.mxu0 %v6034_v55 }
 0x16d   : > { %v6774_v21 = vadd.f32 %v3037_v30, %v2653_v17  ;;  %3235 = vmatprep.mubr.bf16.mxu1 %v6039_v4  ;;  %3444 = vmatprep.mubr.bf16.mxu0 %v6042_v5  ;;  %v2661_v4 = vadd.f32 %v6744_v6, %v6641_v50  ;;  %v6043_v50 = vld [vmem:[%s6322_s28 + $0x5f0] ss:$28 sps:$4 sm:$0xff]  }
 0x16e   : > { %v2742_v24 = vpop.f32.mrf.mxu0  ;;  %v3039_v25 = vpop.f32.mrf.mxu1 }
 0x16f   : > { %v2664_v25 = vadd.f32 %v6744_v6, %v6645_v53 }
 0x170   : > { %v6778_v37 = vpop.f32.mrf.mxu0  ;;  %v3040_v48 = vpop.f32.mrf.mxu1 }
 0x171   : > { %v6782_v52 = vadd.f32 %v3040_v48, %v2656_v33 }
 0x172   : > { %v2745_v26 = vpop.f32.mrf.mxu0  ;;  %v3042_v55 = vpop.f32.mrf.mxu1 }
 0x173   : > { %v6046_v26 = vld [vmem:[%s6322_s28 + $0x128] ss:$28 sps:$4 sm:$0xff]  }
 0x174   : > { %v6788_v5 = vpop.f32.mrf.mxu0  ;;  %v3045_v42 = vpop.f32.mrf.mxu1  ;;  %3236 = vmatmul.mubr.bf16.gmra.mxu1 %v6037_v38  ;;  %3445 = vmatmul.mubr.bf16.gmra.mxu0 %v6040_v49 }
 0x175   : > { %v6790_v17 = vadd.f32 %v3045_v42, %v2661_v4  ;;  %3243 = vmatprep.mubr.bf16.mxu1 %v6045_v9  ;;  %3452 = vmatprep.mubr.bf16.mxu0 %v6048_v16  ;;  %v2669_v9 = vadd.f32 %v6744_v6, %v6653_v61  ;;  %v6049_v61 = vld [vmem:[%s6322_s28 + $0x628] ss:$28 sps:$4 sm:$0xff]  }
 0x176   : > { %v2750_v30 = vpop.f32.mrf.mxu0  ;;  %v3047_v24 = vpop.f32.mrf.mxu1 }
 0x177   : > { %v2672_v24 = vadd.f32 %v6744_v6, %v6657_v2 }
 0x178   : > { %v6794_v33 = vpop.f32.mrf.mxu0  ;;  %v3048_v48 = vpop.f32.mrf.mxu1 }
 0x179   : > { %v6798_v55 = vadd.f32 %v3048_v48, %v2664_v25 }
 0x17a   : > { %v2753_v38 = vpop.f32.mrf.mxu0  ;;  %v3050_v49 = vpop.f32.mrf.mxu1 }
 0x17b   : > { %v6052_v38 = vld [vmem:[%s6322_s28 + $0x160] ss:$28 sps:$4 sm:$0xff]  }
 0x17c   : > { %v6804_v16 = vpop.f32.mrf.mxu0  ;;  %v3053_v53 = vpop.f32.mrf.mxu1  ;;  %3244 = vmatmul.mubr.bf16.gmra.mxu1 %v6043_v50  ;;  %3453 = vmatmul.mubr.bf16.gmra.mxu0 %v6046_v26 }
 0x17d   : > { %v6806_v4 = vadd.f32 %v3053_v53, %v2669_v9  ;;  %3251 = vmatprep.mubr.bf16.mxu1 %v6051_v8  ;;  %3460 = vmatprep.mubr.bf16.mxu0 %v6054_v60  ;;  %v2677_v60 = vadd.f32 %v6744_v6, %v6665_v10  ;;  %v6055_v10 = vld [vmem:[%s6322_s28 + $0x660] ss:$28 sps:$4 sm:$0xff]  }
 0x17e   : > { %v2758_v42 = vpop.f32.mrf.mxu0  ;;  %v3055_v30 = vpop.f32.mrf.mxu1 }
 0x17f   : > { %v2680_v30 = vadd.f32 %v6744_v6, %v6669_v14 }
 0x180   : > { %v6810_v25 = vpop.f32.mrf.mxu0  ;;  %v3056_v48 = vpop.f32.mrf.mxu1 }
 0x181   : > { %v6814_v49 = vadd.f32 %v3056_v48, %v2672_v24 }
 0x182   : > { %v2761_v50 = vpop.f32.mrf.mxu0  ;;  %v3058_v26 = vpop.f32.mrf.mxu1 }
 0x183   : > { %v6058_v50 = vld [vmem:[%s6322_s28 + $0x198] ss:$28 sps:$4 sm:$0xff]  }
 0x184   : > { %v6820_v8 = vpop.f32.mrf.mxu0  ;;  %v3061_v2 = vpop.f32.mrf.mxu1  ;;  %3252 = vmatmul.mubr.bf16.gmra.mxu1 %v6049_v61  ;;  %3461 = vmatmul.mubr.bf16.gmra.mxu0 %v6052_v38 }
 0x185   : > { %v6822_v9 = vadd.f32 %v3061_v2, %v2677_v60  ;;  %3259 = vmatprep.mubr.bf16.mxu1 %v6057_v45  ;;  %3468 = vmatprep.mubr.bf16.mxu0 %v6060_v35  ;;  %v2685_v35 = vadd.f32 %v6744_v6, %v6677_v22  ;;  %v6061_v22 = vld [vmem:[%s6322_s28 + $0x698] ss:$28 sps:$4 sm:$0xff]  }
 0x186   : > { %v2766_v53 = vpop.f32.mrf.mxu0  ;;  %v3063_v42 = vpop.f32.mrf.mxu1 }
 0x187   : > { %v2688_v42 = vadd.f32 %v6744_v6, %v6681_v28 }
 0x188   : > { %v6826_v24 = vpop.f32.mrf.mxu0  ;;  %v3064_v48 = vpop.f32.mrf.mxu1 }
 0x189   : > { %v6830_v26 = vadd.f32 %v3064_v48, %v2680_v30 }
 0x18a   : > { %v2769_v61 = vpop.f32.mrf.mxu0  ;;  %v3066_v38 = vpop.f32.mrf.mxu1 }
 0x18b   : > { %v6064_v61 = vld [vmem:[%s6322_s28 + $0x1d0] ss:$28 sps:$4 sm:$0xff]  }
 0x18c   : > { %v6836_v45 = vpop.f32.mrf.mxu0  ;;  %v3069_v14 = vpop.f32.mrf.mxu1  ;;  %3260 = vmatmul.mubr.bf16.gmra.mxu1 %v6055_v10  ;;  %3469 = vmatmul.mubr.bf16.gmra.mxu0 %v6058_v50 }
 0x18d   : > { %v6838_v60 = vadd.f32 %v3069_v14, %v2685_v35  ;;  %3267 = vmatprep.mubr.bf16.mxu1 %v6063_v19  ;;  %3476 = vmatprep.mubr.bf16.mxu0 %v6066_v13  ;;  %v2693_v13 = vadd.f32 %v6744_v6, %v6689_v40  ;;  %v6067_v40 = vld [vmem:[%s6322_s28 + $0x6d0] ss:$28 sps:$4 sm:$0xff]  }
 0x18e   : > { %v2774_v2 = vpop.f32.mrf.mxu0  ;;  %v3071_v53 = vpop.f32.mrf.mxu1 }
 0x18f   : > { %v2696_v53 = vadd.f32 %v6744_v6, %v6693_v46 }
 0x190   : > { %v6842_v30 = vpop.f32.mrf.mxu0  ;;  %v3072_v48 = vpop.f32.mrf.mxu1 }
 0x191   : > { %v6846_v38 = vadd.f32 %v3072_v48, %v2688_v42 }
 0x192   : > { %v2777_v10 = vpop.f32.mrf.mxu0  ;;  %v3074_v50 = vpop.f32.mrf.mxu1 }
 0x193   : > { %v6070_v10 = vld [vmem:[%s6322_s28 + $0x208] ss:$28 sps:$4 sm:$0xff]  }
 0x194   : > { %v6852_v19 = vpop.f32.mrf.mxu0  ;;  %v3077_v28 = vpop.f32.mrf.mxu1  ;;  %3268 = vmatmul.mubr.bf16.gmra.mxu1 %v6061_v22  ;;  %3477 = vmatmul.mubr.bf16.gmra.mxu0 %v6064_v61 }
 0x195   : > { %v6854_v35 = vadd.f32 %v3077_v28, %v2693_v13  ;;  %3275 = vmatprep.mubr.bf16.mxu1 %v6069_v0  ;;  %3484 = vmatprep.mubr.bf16.mxu0 %v6072_v58  ;;  %v2701_v58 = vadd.f32 %v6744_v6, %v6701_v57  ;;  %v6073_v57 = vld [vmem:[%s6322_s28 + $0x708] ss:$28 sps:$4 sm:$0xff]  }
 0x196   : > { %v2782_v14 = vpop.f32.mrf.mxu0  ;;  %v3079_v2 = vpop.f32.mrf.mxu1 }
 0x197   : > { %v2704_v2 = vadd.f32 %v6744_v6, %v6705_v63 }
 0x198   : > { %v6858_v42 = vpop.f32.mrf.mxu0  ;;  %v3080_v48 = vpop.f32.mrf.mxu1 }
 0x199   : > { %v6862_v50 = vadd.f32 %v3080_v48, %v2696_v53 }
 0x19a   : > { %v2785_v22 = vpop.f32.mrf.mxu0  ;;  %v3082_v61 = vpop.f32.mrf.mxu1 }
 0x19b   : > { %v6076_v22 = vld [vmem:[%s6322_s28 + $0x240] ss:$28 sps:$4 sm:$0xff]  }
 0x19c   : > { %v6868_v0 = vpop.f32.mrf.mxu0  ;;  %v3085_v46 = vpop.f32.mrf.mxu1  ;;  %3276 = vmatmul.mubr.bf16.gmra.mxu1 %v6067_v40  ;;  %3485 = vmatmul.mubr.bf16.gmra.mxu0 %v6070_v10 }
 0x19d   : > { %v6870_v13 = vadd.f32 %v3085_v46, %v2701_v58  ;;  %3283 = vmatprep.mubr.bf16.mxu1 %v6075_v47  ;;  %3492 = vmatprep.mubr.bf16.mxu0 %v6078_v41  ;;  %v2709_v41 = vadd.f32 %v6744_v6, %v6713_v12  ;;  %v6079_v12 = vld [vmem:[%s6322_s28 + $0x740] ss:$28 sps:$4 sm:$0xff]  }
 0x19e   : > { %v2790_v28 = vpop.f32.mrf.mxu0  ;;  %v3087_v14 = vpop.f32.mrf.mxu1 }
 0x19f   : > { %v2712_v14 = vadd.f32 %v6744_v6, %v6717_v18 }
 0x1a0   : > { %v6874_v53 = vpop.f32.mrf.mxu0  ;;  %v3088_v48 = vpop.f32.mrf.mxu1 }
 0x1a1   : > { %v6878_v61 = vadd.f32 %v3088_v48, %v2704_v2 }
 0x1a2   : > { %v2793_v40 = vpop.f32.mrf.mxu0  ;;  %v3090_v10 = vpop.f32.mrf.mxu1 }
 0x1a3   : > { %v6082_v40 = vld [vmem:[%s6322_s28 + $0x278] ss:$28 sps:$4 sm:$0xff]  }
 0x1a4   : > { %v6884_v47 = vpop.f32.mrf.mxu0  ;;  %v3093_v63 = vpop.f32.mrf.mxu1  ;;  %3284 = vmatmul.mubr.bf16.gmra.mxu1 %v6073_v57  ;;  %3493 = vmatmul.mubr.bf16.gmra.mxu0 %v6076_v22 }
 0x1a5   : > { %v6886_v58 = vadd.f32 %v3093_v63, %v2709_v41  ;;  %3291 = vmatprep.mubr.bf16.mxu1 %v6081_v29  ;;  %3500 = vmatprep.mubr.bf16.mxu0 %v6084_v23  ;;  %v2717_v23 = vadd.f32 %v6744_v6, %v6725_v34  ;;  %v6085_v34 = vld [vmem:[%s6322_s28 + $0x778] ss:$28 sps:$4 sm:$0xff]  }
 0x1a6   : > { %v2798_v46 = vpop.f32.mrf.mxu0  ;;  %v3095_v28 = vpop.f32.mrf.mxu1 }
 0x1a7   : > { %v2720_v28 = vadd.f32 %v6744_v6, %v6729_v44 }
 0x1a8   : > { %v6890_v2 = vpop.f32.mrf.mxu0  ;;  %v3096_v48 = vpop.f32.mrf.mxu1 }
 0x1a9   : > { %v6894_v10 = vadd.f32 %v3096_v48, %v2712_v14 }
 0x1aa   : > { %v2801_v57 = vpop.f32.mrf.mxu0  ;;  %v3098_v22 = vpop.f32.mrf.mxu1 }
 0x1ab   : > { %v6088_v57 = vld [vmem:[%s6322_s28 + $0x2b0] ss:$28 sps:$4 sm:$0xff]  }
 0x1ac   : > { %v6900_v29 = vpop.f32.mrf.mxu0  ;;  %v3101_v18 = vpop.f32.mrf.mxu1  ;;  %3292 = vmatmul.mubr.bf16.gmra.mxu1 %v6079_v12  ;;  %3501 = vmatmul.mubr.bf16.gmra.mxu0 %v6082_v40 }
 0x1ad   : > { %v6902_v41 = vadd.f32 %v3101_v18, %v2717_v23  ;;  %3299 = vmatprep.mubr.bf16.mxu1 %v6087_v15  ;;  %3508 = vmatprep.mubr.bf16.mxu0 %v6090_v11  ;;  %v2725_v11 = vadd.f32 %v6744_v6, %v6737_v59  ;;  %v6091_v59 = vld [vmem:[%s6322_s28 + $0x7b0] ss:$28 sps:$4 sm:$0xff]  }
 0x1ae   : > { %v2806_v63 = vpop.f32.mrf.mxu0  ;;  %v3103_v46 = vpop.f32.mrf.mxu1 }
 0x1af   : > { %v2728_v46 = vadd.f32 %v6744_v6, %v6746_v7 }
 0x1b0   : > { %v6906_v14 = vpop.f32.mrf.mxu0  ;;  %v3104_v48 = vpop.f32.mrf.mxu1 }
 0x1b1   : > { %v6910_v22 = vadd.f32 %v3104_v48, %v2720_v28 }
 0x1b2   : > { %v2809_v12 = vpop.f32.mrf.mxu0  ;;  %v3106_v40 = vpop.f32.mrf.mxu1 }
 0x1b3   : > { %v6094_v12 = vld [vmem:[%s6322_s28 + $0x2e8] ss:$28 sps:$4 sm:$0xff]  }
 0x1b4   : > { %v6916_v15 = vpop.f32.mrf.mxu0  ;;  %v3109_v44 = vpop.f32.mrf.mxu1  ;;  %3300 = vmatmul.mubr.bf16.gmra.mxu1 %v6085_v34  ;;  %3509 = vmatmul.mubr.bf16.gmra.mxu0 %v6088_v57 }
 0x1b5   : > { %v6918_v23 = vadd.f32 %v3109_v44, %v2725_v11  ;;  %3307 = vmatprep.mubr.bf16.mxu1 %v6093_v3  ;;  %3516 = vmatprep.mubr.bf16.mxu0 %v6096_v62  ;;  %v2733_v62 = vadd.f32 %v6744_v6, %v6756_v32  ;;  %v6097_v32 = vld [vmem:[%s6322_s28 + $0x7e8] ss:$28 sps:$4 sm:$0xff]  }
 0x1b6   : > { %v2814_v18 = vpop.f32.mrf.mxu0  ;;  %v3111_v63 = vpop.f32.mrf.mxu1 }
 0x1b7   : > { %v2736_v63 = vadd.f32 %v6744_v6, %v6762_v1 }
 0x1b8   : > { %v6922_v28 = vpop.f32.mrf.mxu0  ;;  %v3112_v48 = vpop.f32.mrf.mxu1 }
 0x1b9   : > { %v6926_v40 = vadd.f32 %v3112_v48, %v2728_v46 }
 0x1ba   : > { %v2817_v34 = vpop.f32.mrf.mxu0  ;;  %v3114_v57 = vpop.f32.mrf.mxu1 }
 0x1bb   : > { %v6100_v34 = vld [vmem:[%s6322_s28 + $0x320] ss:$28 sps:$4 sm:$0xff]  }
 0x1bc   : > { %v6932_v3 = vpop.f32.mrf.mxu0  ;;  %v3117_v7 = vpop.f32.mrf.mxu1  ;;  %3308 = vmatmul.mubr.bf16.gmra.mxu1 %v6091_v59  ;;  %3517 = vmatmul.mubr.bf16.gmra.mxu0 %v6094_v12 }
 0x1bd   : > { %v6934_v11 = vadd.f32 %v3117_v7, %v2733_v62  ;;  %3315 = vmatprep.mubr.bf16.mxu1 %v6099_v54  ;;  %3524 = vmatprep.mubr.bf16.mxu0 %v6102_v51  ;;  %v2741_v51 = vadd.f32 %v6744_v6, %v6772_v20  ;;  %v6103_v20 = vld [vmem:[%s6322_s28 + $0x820] ss:$28 sps:$4 sm:$0xff]  }
 0x1be   : > { %v2822_v44 = vpop.f32.mrf.mxu0  ;;  %v3119_v18 = vpop.f32.mrf.mxu1 }
 0x1bf   : > { %v2744_v18 = vadd.f32 %v6744_v6, %v6778_v37 }
 0x1c0   : > { %v6938_v46 = vpop.f32.mrf.mxu0  ;;  %v3120_v48 = vpop.f32.mrf.mxu1 }
 0x1c1   : > { %v6942_v57 = vadd.f32 %v3120_v48, %v2736_v63 }
 0x1c2   : > { %v2825_v59 = vpop.f32.mrf.mxu0  ;;  %v3122_v12 = vpop.f32.mrf.mxu1 }
 0x1c3   : > { %7805 = vst [vmem:[#allocation23_spill] sm:$0xff] %v6942_v57  ;;  %v6106_v59 = vld [vmem:[%s6322_s28 + $0x358] ss:$28 sps:$4 sm:$0xff]  }
 0x1c4   : > { %v6948_v54 = vpop.f32.mrf.mxu0  ;;  %v3125_v1 = vpop.f32.mrf.mxu1  ;;  %3316 = vmatmul.mubr.bf16.gmra.mxu1 %v6097_v32  ;;  %3525 = vmatmul.mubr.bf16.gmra.mxu0 %v6100_v34  ;;  %v6111_v57 = vld [vmem:[%s6322_s28 + $0x85c] ss:$28 sps:$4 sm:$0xff]  }
 0x1c5   : > { %v6950_v62 = vadd.f32 %v3125_v1, %v2741_v51  ;;  %3323 = vmatprep.mubr.bf16.mxu1 %v6105_v43  ;;  %3532 = vmatprep.mubr.bf16.mxu0 %v6108_v39  ;;  %v2749_v39 = vadd.f32 %v6744_v6, %v6788_v5  ;;  %v6109_v5 = vld [vmem:[%s6322_s28 + $0x858] ss:$28 sps:$4 sm:$0xff]  }
 0x1c6   : > { %v2830_v7 = vpop.f32.mrf.mxu0  ;;  %v3127_v44 = vpop.f32.mrf.mxu1 }
 0x1c7   : > { %7806 = vst [vmem:[#allocation24_spill] sm:$0xff] %v6950_v62  ;;  %v2752_v44 = vadd.f32 %v6744_v6, %v6794_v33  ;;  %v6120_v62 = vld [vmem:[%s6322_s28 + $0x3cc] ss:$28 sps:$4 sm:$0xff]  }
 0x1c8   : > { %v6954_v63 = vpop.f32.mrf.mxu0  ;;  %v3128_v48 = vpop.f32.mrf.mxu1 }
 0x1c9   : > { %v6958_v12 = vadd.f32 %v3128_v48, %v2744_v18 }
 0x1ca   : > { %v2833_v32 = vpop.f32.mrf.mxu0  ;;  %v3130_v34 = vpop.f32.mrf.mxu1 }
 0x1cb   : > { %7807 = vst [vmem:[#allocation25_spill] sm:$0xff] %v6958_v12  ;;  %v6112_v32 = vld [vmem:[%s6322_s28 + $0x390] ss:$28 sps:$4 sm:$0xff]  }
 0x1cc   : > { %v6964_v43 = vpop.f32.mrf.mxu0  ;;  %v3133_v37 = vpop.f32.mrf.mxu1  ;;  %3324 = vmatmul.mubr.bf16.gmra.mxu1 %v6103_v20  ;;  %3533 = vmatmul.mubr.bf16.gmra.mxu0 %v6106_v59  ;;  %v6117_v12 = vld [vmem:[%s6322_s28 + $0x894] ss:$28 sps:$4 sm:$0xff]  }
 0x1cd   : > { %v6966_v51 = vadd.f32 %v3133_v37, %v2749_v39  ;;  %3331 = vmatprep.mubr.bf16.mxu1 %v6111_v57  ;;  %3540 = vmatprep.mubr.bf16.mxu0 %v6114_v31  ;;  %v2757_v31 = vadd.f32 %v6744_v6, %v6804_v16  ;;  %v6115_v16 = vld [vmem:[%s6322_s28 + $0x890] ss:$28 sps:$4 sm:$0xff]  }
 0x1ce   : > { %v2838_v1 = vpop.f32.mrf.mxu0  ;;  %v3135_v7 = vpop.f32.mrf.mxu1 }
 0x1cf   : > { %7808 = vst [vmem:[#allocation26_spill] sm:$0xff] %v6966_v51  ;;  %v2760_v7 = vadd.f32 %v6744_v6, %v6810_v25  ;;  %v6126_v51 = vld [vmem:[%s6322_s28 + $0x404] ss:$28 sps:$4 sm:$0xff]  }
 0x1d0   : > { %v6970_v18 = vpop.f32.mrf.mxu0  ;;  %v3136_v48 = vpop.f32.mrf.mxu1 }
 0x1d1   : > { %v6974_v34 = vadd.f32 %v3136_v48, %v2752_v44 }
 0x1d2   : > { %v2841_v20 = vpop.f32.mrf.mxu0  ;;  %v3138_v59 = vpop.f32.mrf.mxu1 }
 0x1d3   : > { %7809 = vst [vmem:[#allocation27_spill] sm:$0xff] %v6974_v34  ;;  %v6118_v20 = vld [vmem:[%s6322_s28 + $0x3c8] ss:$28 sps:$4 sm:$0xff]  }
 0x1d4   : > { %v6980_v57 = vpop.f32.mrf.mxu0  ;;  %v3141_v33 = vpop.f32.mrf.mxu1  ;;  %3332 = vmatmul.mubr.bf16.gmra.mxu1 %v6109_v5  ;;  %3541 = vmatmul.mubr.bf16.gmra.mxu0 %v6112_v32  ;;  %v6123_v34 = vld [vmem:[%s6322_s28 + $0x8cc] ss:$28 sps:$4 sm:$0xff]  }
 0x1d5   : > { %v6982_v39 = vadd.f32 %v3141_v33, %v2757_v31  ;;  %3339 = vmatprep.mubr.bf16.mxu1 %v6117_v12  ;;  %3548 = vmatprep.mubr.bf16.mxu0 %v6120_v62  ;;  %v2765_v62 = vadd.f32 %v6744_v6, %v6820_v8  ;;  %v6121_v8 = vld [vmem:[%s6322_s28 + $0x8c8] ss:$28 sps:$4 sm:$0xff]  }
 0x1d6   : > { %v2846_v37 = vpop.f32.mrf.mxu0  ;;  %v3143_v1 = vpop.f32.mrf.mxu1 }
 0x1d7   : > { %7810 = vst [vmem:[#allocation28_spill] sm:$0xff] %v6982_v39  ;;  %v2768_v1 = vadd.f32 %v6744_v6, %v6826_v24  ;;  %v6132_v39 = vld [vmem:[%s6322_s28 + $0x43c] ss:$28 sps:$4 sm:$0xff]  }
 0x1d8   : > { %v6986_v44 = vpop.f32.mrf.mxu0  ;;  %v3144_v48 = vpop.f32.mrf.mxu1 }
 0x1d9   : > { %v6990_v59 = vadd.f32 %v3144_v48, %v2760_v7 }
 0x1da   : > { %v2849_v5 = vpop.f32.mrf.mxu0  ;;  %v3146_v32 = vpop.f32.mrf.mxu1 }
 0x1db   : > { %7811 = vst [vmem:[#allocation29_spill] sm:$0xff] %v6990_v59  ;;  %v6124_v5 = vld [vmem:[%s6322_s28 + $0x400] ss:$28 sps:$4 sm:$0xff]  }
 0x1dc   : > { %v6996_v12 = vpop.f32.mrf.mxu0  ;;  %v3149_v25 = vpop.f32.mrf.mxu1  ;;  %3340 = vmatmul.mubr.bf16.gmra.mxu1 %v6115_v16  ;;  %3549 = vmatmul.mubr.bf16.gmra.mxu0 %v6118_v20  ;;  %v6129_v59 = vld [vmem:[%s6322_s28 + $0x904] ss:$28 sps:$4 sm:$0xff]  }
 0x1dd   : > { %v6998_v31 = vadd.f32 %v3149_v25, %v2765_v62  ;;  %3347 = vmatprep.mubr.bf16.mxu1 %v6123_v34  ;;  %3556 = vmatprep.mubr.bf16.mxu0 %v6126_v51  ;;  %v2773_v51 = vadd.f32 %v6744_v6, %v6836_v45  ;;  %v6127_v45 = vld [vmem:[%s6322_s28 + $0x900] ss:$28 sps:$4 sm:$0xff]  }
 0x1de   : > { %v2854_v33 = vpop.f32.mrf.mxu0  ;;  %v3151_v37 = vpop.f32.mrf.mxu1 }
 0x1df   : > { %7812 = vst [vmem:[#allocation30_spill] sm:$0xff] %v6998_v31  ;;  %v2776_v37 = vadd.f32 %v6744_v6, %v6842_v30  ;;  %v6138_v31 = vld [vmem:[%s6322_s28 + $0x474] ss:$28 sps:$4 sm:$0xff]  }
 0x1e0   : > { %v7002_v7 = vpop.f32.mrf.mxu0  ;;  %v3152_v48 = vpop.f32.mrf.mxu1 }
 0x1e1   : > { %v7006_v32 = vadd.f32 %v3152_v48, %v2768_v1 }
 0x1e2   : > { %v2857_v16 = vpop.f32.mrf.mxu0  ;;  %v3154_v20 = vpop.f32.mrf.mxu1 }
 0x1e3   : > { %7813 = vst [vmem:[#allocation31_spill] sm:$0xff] %v7006_v32  ;;  %v6130_v16 = vld [vmem:[%s6322_s28 + $0x438] ss:$28 sps:$4 sm:$0xff]  }
 0x1e4   : > { %v7012_v34 = vpop.f32.mrf.mxu0  ;;  %v3157_v24 = vpop.f32.mrf.mxu1  ;;  %3348 = vmatmul.mubr.bf16.gmra.mxu1 %v6121_v8  ;;  %3557 = vmatmul.mubr.bf16.gmra.mxu0 %v6124_v5  ;;  %v6135_v32 = vld [vmem:[%s6322_s28 + $0x93c] ss:$28 sps:$4 sm:$0xff]  }
 0x1e5   : > { %v7014_v62 = vadd.f32 %v3157_v24, %v2773_v51  ;;  %3355 = vmatprep.mubr.bf16.mxu1 %v6129_v59  ;;  %3564 = vmatprep.mubr.bf16.mxu0 %v6132_v39  ;;  %v2781_v39 = vadd.f32 %v6744_v6, %v6852_v19  ;;  %v6133_v19 = vld [vmem:[%s6322_s28 + $0x938] ss:$28 sps:$4 sm:$0xff]  }
 0x1e6   : > { %v2862_v25 = vpop.f32.mrf.mxu0  ;;  %v3159_v33 = vpop.f32.mrf.mxu1 }
 0x1e7   : > { %7814 = vst [vmem:[#allocation32_spill] sm:$0xff] %v7014_v62  ;;  %v2784_v33 = vadd.f32 %v6744_v6, %v6858_v42  ;;  %v6144_v62 = vld [vmem:[%s6322_s28 + $0x4ac] ss:$28 sps:$4 sm:$0xff]  }
 0x1e8   : > { %v7018_v1 = vpop.f32.mrf.mxu0  ;;  %v3160_v48 = vpop.f32.mrf.mxu1 }
 0x1e9   : > { %v7022_v20 = vadd.f32 %v3160_v48, %v2776_v37 }
 0x1ea   : > { %v2865_v8 = vpop.f32.mrf.mxu0  ;;  %v3162_v5 = vpop.f32.mrf.mxu1 }
 0x1eb   : > { %7815 = vst [vmem:[#allocation33_spill] sm:$0xff] %v7022_v20  ;;  %v6136_v8 = vld [vmem:[%s6322_s28 + $0x470] ss:$28 sps:$4 sm:$0xff]  }
 0x1ec   : > { %v7028_v59 = vpop.f32.mrf.mxu0  ;;  %v3165_v30 = vpop.f32.mrf.mxu1  ;;  %3356 = vmatmul.mubr.bf16.gmra.mxu1 %v6127_v45  ;;  %3565 = vmatmul.mubr.bf16.gmra.mxu0 %v6130_v16  ;;  %v6141_v20 = vld [vmem:[%s6322_s28 + $0x974] ss:$28 sps:$4 sm:$0xff]  }
 0x1ed   : > { %v7030_v51 = vadd.f32 %v3165_v30, %v2781_v39  ;;  %3363 = vmatprep.mubr.bf16.mxu1 %v6135_v32  ;;  %3572 = vmatprep.mubr.bf16.mxu0 %v6138_v31  ;;  %v2789_v31 = vadd.f32 %v6744_v6, %v6868_v0  ;;  %v6139_v0 = vld [vmem:[%s6322_s28 + $0x970] ss:$28 sps:$4 sm:$0xff]  }
 0x1ee   : > { %v2870_v24 = vpop.f32.mrf.mxu0  ;;  %v3167_v25 = vpop.f32.mrf.mxu1 }
 0x1ef   : > { %7816 = vst [vmem:[#allocation34_spill] sm:$0xff] %v7030_v51  ;;  %v2792_v25 = vadd.f32 %v6744_v6, %v6874_v53  ;;  %v6148_v51 = vld [vmem:[%s6322_s28 + $0x18] ss:$28 sps:$4 sm:$0xff]  }
 0x1f0   : > { %v7034_v37 = vpop.f32.mrf.mxu0  ;;  %v3168_v48 = vpop.f32.mrf.mxu1 }
 0x1f1   : > { %v7038_v5 = vadd.f32 %v3168_v48, %v2784_v33 }
 0x1f2   : > { %v2873_v45 = vpop.f32.mrf.mxu0  ;;  %v3170_v16 = vpop.f32.mrf.mxu1 }
 0x1f3   : > { %7817 = vst [vmem:[#allocation35_spill] sm:$0xff] %v7038_v5  ;;  %v6142_v45 = vld [vmem:[%s6322_s28 + $0x4a8] ss:$28 sps:$4 sm:$0xff]  }
 0x1f4   : > { %v7044_v32 = vpop.f32.mrf.mxu0  ;;  %v3173_v42 = vpop.f32.mrf.mxu1  ;;  %3364 = vmatmul.mubr.bf16.gmra.mxu1 %v6133_v19  ;;  %3573 = vmatmul.mubr.bf16.gmra.mxu0 %v6136_v8  ;;  %v6147_v5 = vld [vmem:[%s6322_s28 + $0x4e4] ss:$28 sps:$4 sm:$0xff]  }
 0x1f5   : > { %v7046_v39 = vadd.f32 %v3173_v42, %v2789_v31  ;;  %3371 = vmatprep.mubr.bf16.mxu1 %v6141_v20  ;;  %3580 = vmatprep.mubr.bf16.mxu0 %v6144_v62  ;;  %v2797_v62 = vadd.f32 %v6744_v6, %v6884_v47 }
 0x1f6   : > { %v2878_v30 = vpop.f32.mrf.mxu0  ;;  %v3175_v24 = vpop.f32.mrf.mxu1 }
 0x1f7   : > { %v2800_v24 = vadd.f32 %v6744_v6, %v6890_v2 }
 0x1f8   : > { %v7050_v33 = vpop.f32.mrf.mxu0  ;;  %v3176_v48 = vpop.f32.mrf.mxu1 }
 0x1f9   : > { %v7054_v16 = vadd.f32 %v3176_v48, %v2792_v25  ;;  %v6145_v48 = vld [vmem:[%s6322_s28 + $0x4e0] ss:$28 sps:$4 sm:$0xff]  }
 0x1fa   : > { %v2881_v19 = vpop.f32.mrf.mxu0  ;;  %v3178_v8 = vpop.f32.mrf.mxu1 }
 0x1fb   : > { %7818 = vst [vmem:[#allocation36_spill] sm:$0xff] %v7054_v16  ;;  %v6149_v19 = vld [vmem:[%s6322_s28 + $0x50] ss:$28 sps:$4 sm:$0xff]   ;;  %v6152_v16 = vld [vmem:[%s6322_s28 + $0x51c] ss:$28 sps:$4 sm:$0xff]  }
 0x1fc   : > { %v7060_v20 = vpop.f32.mrf.mxu0  ;;  %v3181_v53 = vpop.f32.mrf.mxu1  ;;  %3372 = vmatmul.mubr.bf16.gmra.mxu1 %v6139_v0  ;;  %3581 = vmatmul.mubr.bf16.gmra.mxu0 %v6142_v45  ;;  %v6153_v0 = vld [vmem:[%s6322_s28 + $0x88] ss:$28 sps:$4 sm:$0xff]  }
 0x1fd   : > { %v7062_v31 = vadd.f32 %v3181_v53, %v2797_v62  ;;  %3588 = vmatprep.mubr.bf16.mxu0 %v6147_v5  ;;  %5635 = vmatprep.mubr.msk.bf16.mxu1 %vm2477_vm0, %v6148_v51  ;;  %v2805_v51 = vadd.f32 %v6744_v6, %v6900_v29 }
 0x1fe   : > { %v2886_v42 = vpop.f32.mrf.mxu0  ;;  %v3183_v30 = vpop.f32.mrf.mxu1 }
 0x1ff   : > { %7819 = vst [vmem:[#allocation37_spill] sm:$0xff] %v7062_v31  ;;  %v6158_v31 = vld [vmem:[%s6322_s28 + $0xf8] ss:$28 sps:$4 sm:$0xff]  }
 0x200   : > { %v7067_v25 = vpop.f32.mrf.mxu0  ;;  %v3184_v47 = vpop.f32.mrf.mxu1 }
 0x201   : > { %v7071_v8 = vadd.f32 %v3184_v47, %v2800_v24  ;;  %v2808_v24 = vadd.f32 %v6744_v6, %v6906_v14 }
 0x202   : > { %v2889_v45 = vpop.f32.mrf.mxu0  ;;  %v3186_v5 = vpop.f32.mrf.mxu1 }
 0x203   : > { %7820 = vst [vmem:[#allocation38_spill] sm:$0xff] %v7071_v8  ;;  %v6150_v45 = vld [vmem:[%s6322_s28 + $0x518] ss:$28 sps:$4 sm:$0xff]   ;;  %v6154_v5 = vld [vmem:[%s6322_s28 + $0xc0] ss:$28 sps:$4 sm:$0xff]  }
 0x204   : > { %v7077_v62 = vpop.f32.mrf.mxu0  ;;  %v3189_v2 = vpop.f32.mrf.mxu1  ;;  %3589 = vmatmul.mubr.bf16.gmra.mxu0 %v6145_v48  ;;  %5636 = vmatmul.mubr.msk.bf16.vlgmr.msra.gmra.mxu1 %vm2477_vm0, %v6149_v19  ;;  %v6157_v48 = vld [vmem:[%s6322_s28 + $0x554] ss:$28 sps:$4 sm:$0xff]  }
 0x205   : > { %v7080_v53 = vadd.f32 %v3189_v2, %v2805_v51  ;;  %3596 = vmatprep.mubr.bf16.mxu0 %v6152_v16  ;;  %5639 = vmatprep.mubr.msk.bf16.mxu1 %vm2477_vm0, %v6153_v0  ;;  %v2813_v0 = vadd.f32 %v6744_v6, %v6916_v15 }
 0x206   : > { %v2894_v42 = vpop.f32.mrf.mxu0  ;;  %v3191_v30 = vpop.f32.mrf.mxu1 }
 0x207   : > { %7821 = vst [vmem:[#allocation39_spill] sm:$0xff] %v7080_v53  ;;  %v6163_v53 = vld [vmem:[%s6322_s28 + $0x168] ss:$28 sps:$4 sm:$0xff]  }
 0x208   : > { %v7085_v47 = vpop.f32.mrf.mxu0  ;;  %v3192_v29 = vpop.f32.mrf.mxu1 }
 0x209   : > { %v7089_v8 = vadd.f32 %v3192_v29, %v2808_v24  ;;  %v2816_v24 = vadd.f32 %v6744_v6, %v6922_v28 }
 0x20a   : > { %v2897_v19 = vpop.f32.mrf.mxu0  ;;  %v3194_v16 = vpop.f32.mrf.mxu1 }
 0x20b   : > { %7822 = vst [vmem:[#allocation40_spill] sm:$0xff] %v7089_v8  ;;  %v6155_v19 = vld [vmem:[%s6322_s28 + $0x550] ss:$28 sps:$4 sm:$0xff]  }
 0x20c   : > { %v7095_v51 = vpop.f32.mrf.mxu0  ;;  %v3197_v14 = vpop.f32.mrf.mxu1  ;;  %3597 = vmatmul.mubr.bf16.gmra.mxu0 %v6150_v45  ;;  %5640 = vmatmul.mubr.msk.bf16.gmra.mxu1 %vm2477_vm0, %v6154_v5  ;;  %v6159_v16 = vld [vmem:[%s6322_s28 + $0x130] ss:$28 sps:$4 sm:$0xff]  }
 0x20d   : > { %v7098_v2 = vadd.f32 %v3197_v14, %v2813_v0  ;;  %3604 = vmatprep.mubr.bf16.mxu0 %v6157_v48  ;;  %5643 = vmatprep.mubr.msk.bf16.mxu1 %vm2477_vm0, %v6158_v31  ;;  %v6162_v45 = vld [vmem:[%s6322_s28 + $0x58c] ss:$28 sps:$4 sm:$0xff]   ;;  %v2821_v31 = vadd.f32 %v6744_v6, %v6932_v3  ;;  %v2824_v3 = vadd.f32 %v6744_v6, %v6938_v46 }
 0x20e   : > { %v2902_v42 = vpop.f32.mrf.mxu0  ;;  %v3199_v30 = vpop.f32.mrf.mxu1 }
 0x210   : > { %v7103_v29 = vpop.f32.mrf.mxu0  ;;  %v3200_v15 = vpop.f32.mrf.mxu1 }
 0x211   : > { %v7107_v8 = vadd.f32 %v3200_v15, %v2816_v24 }
 0x212   : > { %v2905_v5 = vpop.f32.mrf.mxu0  ;;  %v3202_v0 = vpop.f32.mrf.mxu1 }
 0x213   : > { %7823 = vst [vmem:[#allocation41_spill] sm:$0xff] %v7107_v8  ;;  %v6160_v0 = vld [vmem:[%s6322_s28 + $0x588] ss:$28 sps:$4 sm:$0xff]  }
 0x214   : > { %v3205_v48 = vpop.f32.mrf.mxu1  ;;  %v3414_v14 = vpop.f32.mrf.mxu0  ;;  %3605 = vmatmul.mubr.bf16.gmra.mxu0 %v6155_v19  ;;  %5644 = vmatmul.mubr.msk.bf16.gmra.mxu1 %vm2477_vm0, %v6159_v16  ;;  %v6164_v19 = vld [vmem:[%s6322_s28 + $0x1a0] ss:$28 sps:$4 sm:$0xff]  }
 0x215   : > { %v7114_v28 = vadd.f32 %v3205_v48, %v2821_v31  ;;  %v7117_v42 = vadd.f32 %v3414_v14, %v6758_v36  ;;  %3612 = vmatprep.mubr.bf16.mxu0 %v6162_v45  ;;  %5647 = vmatprep.mubr.msk.bf16.mxu1 %vm2477_vm0, %v6163_v53  ;;  %v6167_v31 = vld [vmem:[%s6322_s28 + $0x5c4] ss:$28 sps:$4 sm:$0xff]   ;;  %v6168_v36 = vld [vmem:[%s6322_s28 + $0x1d8] ss:$28 sps:$4 sm:$0xff]   ;;  %v2829_v53 = vadd.f32 %v6744_v6, %v6948_v54 }
 0x216   : > { %v3207_v30 = vpop.f32.mrf.mxu1  ;;  %v3416_v24 = vpop.f32.mrf.mxu0  ;;  %v2832_v54 = vadd.f32 %v6744_v6, %v6954_v63 }
 0x218   : > { %v3208_v15 = vpop.f32.mrf.mxu1  ;;  %v3417_v5 = vpop.f32.mrf.mxu0 }
 0x219   : > { %v7124_v8 = vadd.f32 %v3208_v15, %v2824_v3  ;;  %v7127_v16 = vadd.f32 %v3417_v5, %v6766_v56 }
 0x21a   : > { %v3210_v48 = vpop.f32.mrf.mxu1  ;;  %v3419_v45 = vpop.f32.mrf.mxu0 }
 0x21b   : > { %v6165_v48 = vld [vmem:[%s6322_s28 + $0x5c0] ss:$28 sps:$4 sm:$0xff]  }
 0x21c   : > { %v3213_v14 = vpop.f32.mrf.mxu1  ;;  %v3422_v46 = vpop.f32.mrf.mxu0  ;;  %3613 = vmatmul.mubr.bf16.gmra.mxu0 %v6160_v0  ;;  %5648 = vmatmul.mubr.msk.bf16.gmra.mxu1 %vm2477_vm0, %v6164_v19  ;;  %v6169_v0 = vld [vmem:[%s6322_s28 + $0x210] ss:$28 sps:$4 sm:$0xff]  }
 0x21d   : > { %v7134_v30 = vadd.f32 %v3213_v14, %v2829_v53  ;;  %v7137_v56 = vadd.f32 %v3422_v46, %v6774_v21  ;;  %3620 = vmatprep.mubr.bf16.mxu0 %v6167_v31  ;;  %5651 = vmatprep.mubr.msk.bf16.mxu1 %vm2477_vm0, %v6168_v36  ;;  %v6172_v53 = vld [vmem:[%s6322_s28 + $0x5fc] ss:$28 sps:$4 sm:$0xff]   ;;  %v6173_v21 = vld [vmem:[%s6322_s28 + $0x248] ss:$28 sps:$4 sm:$0xff]   ;;  %v2837_v36 = vadd.f32 %v6744_v6, %v6964_v43 }
 0x21e   : > { %v3215_v24 = vpop.f32.mrf.mxu1  ;;  %v3424_v3 = vpop.f32.mrf.mxu0  ;;  %v2840_v43 = vadd.f32 %v6744_v6, %v6970_v18 }
 0x220   : > { %v3216_v15 = vpop.f32.mrf.mxu1  ;;  %v3425_v5 = vpop.f32.mrf.mxu0 }
 0x221   : > { %v7144_v45 = vadd.f32 %v3216_v15, %v2832_v54  ;;  %v7147_v19 = vadd.f32 %v3425_v5, %v6782_v52 }
 0x222   : > { %v3218_v14 = vpop.f32.mrf.mxu1  ;;  %v3427_v31 = vpop.f32.mrf.mxu0 }
 0x223   : > { %v6170_v14 = vld [vmem:[%s6322_s28 + $0x5f8] ss:$28 sps:$4 sm:$0xff]  }
 0x224   : > { %v3221_v46 = vpop.f32.mrf.mxu1  ;;  %v3430_v63 = vpop.f32.mrf.mxu0  ;;  %3621 = vmatmul.mubr.bf16.gmra.mxu0 %v6165_v48  ;;  %5652 = vmatmul.mubr.msk.bf16.gmra.mxu1 %vm2477_vm0, %v6169_v0  ;;  %v6174_v48 = vld [vmem:[%s6322_s28 + $0x280] ss:$28 sps:$4 sm:$0xff]  }
 0x225   : > { %v7154_v24 = vadd.f32 %v3221_v46, %v2837_v36  ;;  %v7157_v52 = vadd.f32 %v3430_v63, %v6790_v17  ;;  %3628 = vmatprep.mubr.bf16.mxu0 %v6172_v53  ;;  %5655 = vmatprep.mubr.msk.bf16.mxu1 %vm2477_vm0, %v6173_v21  ;;  %v6177_v36 = vld [vmem:[%s6322_s28 + $0x634] ss:$28 sps:$4 sm:$0xff]   ;;  %v7174_v21 = vld [vmem:[%s7782_s2] ss:$0 sm:$0xff] }
 0x226   : > { %v3223_v3 = vpop.f32.mrf.mxu1  ;;  %v3432_v54 = vpop.f32.mrf.mxu0  ;;  %v6178_v17 = vld [vmem:[%s6322_s28 + $0x2b8] ss:$28 sps:$4 sm:$0xff]   ;;  %v2845_v6 = vadd.f32 %v7174_v21, %v6980_v57  ;;  %v2848_v57 = vadd.f32 %v7174_v21, %v6986_v44 }
 0x228   : > { %v3224_v15 = vpop.f32.mrf.mxu1  ;;  %v3433_v5 = vpop.f32.mrf.mxu0 }
 0x229   : > { %v7164_v31 = vadd.f32 %v3224_v15, %v2840_v43  ;;  %v7167_v0 = vadd.f32 %v3433_v5, %v6798_v55 }
 0x22a   : > { %v3226_v46 = vpop.f32.mrf.mxu1  ;;  %v3435_v53 = vpop.f32.mrf.mxu0 }
 0x22b   : > { %v6175_v46 = vld [vmem:[%s6322_s28 + $0x630] ss:$28 sps:$4 sm:$0xff]  }
 0x22c   : > { %v3229_v18 = vpop.f32.mrf.mxu1  ;;  %v3438_v63 = vpop.f32.mrf.mxu0  ;;  %3629 = vmatmul.mubr.bf16.gmra.mxu0 %v6170_v14  ;;  %5656 = vmatmul.mubr.msk.bf16.gmra.mxu1 %vm2477_vm0, %v6174_v48  ;;  %v6179_v14 = vld [vmem:[%s6322_s28 + $0x2f0] ss:$28 sps:$4 sm:$0xff]  }
 0x22d   : > { %v7179_v55 = vadd.f32 %v3229_v18, %v2845_v6  ;;  %v7182_v3 = vadd.f32 %v3438_v63, %v6806_v4  ;;  %3636 = vmatprep.mubr.bf16.mxu0 %v6177_v36  ;;  %5659 = vmatprep.mubr.msk.bf16.mxu1 %vm2477_vm0, %v6178_v17  ;;  %v6182_v6 = vld [vmem:[%s6322_s28 + $0x66c] ss:$28 sps:$4 sm:$0xff]   ;;  %v2853_v17 = vadd.f32 %v7174_v21, %v6996_v12 }
 0x22e   : > { %v3231_v54 = vpop.f32.mrf.mxu1  ;;  %v3440_v43 = vpop.f32.mrf.mxu0  ;;  %v6183_v4 = vld [vmem:[%s6322_s28 + $0x328] ss:$28 sps:$4 sm:$0xff]   ;;  %v2856_v12 = vadd.f32 %v7174_v21, %v7002_v7 }
 0x230   : > { %v3232_v15 = vpop.f32.mrf.mxu1  ;;  %v3441_v5 = vpop.f32.mrf.mxu0 }
 0x231   : > { %v7189_v53 = vadd.f32 %v3232_v15, %v2848_v57  ;;  %v7192_v48 = vadd.f32 %v3441_v5, %v6814_v49 }
 0x232   : > { %v3234_v18 = vpop.f32.mrf.mxu1  ;;  %v3443_v36 = vpop.f32.mrf.mxu0 }
 0x233   : > { %v6180_v18 = vld [vmem:[%s6322_s28 + $0x668] ss:$28 sps:$4 sm:$0xff]  }
 0x234   : > { %v3237_v63 = vpop.f32.mrf.mxu1  ;;  %v3446_v44 = vpop.f32.mrf.mxu0  ;;  %3637 = vmatmul.mubr.bf16.gmra.mxu0 %v6175_v46  ;;  %5660 = vmatmul.mubr.msk.bf16.gmra.mxu1 %vm2477_vm0, %v6179_v14  ;;  %v6184_v46 = vld [vmem:[%s6322_s28 + $0x360] ss:$28 sps:$4 sm:$0xff]  }
 0x235   : > { %v7199_v54 = vadd.f32 %v3237_v63, %v2853_v17  ;;  %v7202_v49 = vadd.f32 %v3446_v44, %v6822_v9  ;;  %3644 = vmatprep.mubr.bf16.mxu0 %v6182_v6  ;;  %5663 = vmatprep.mubr.msk.bf16.mxu1 %vm2477_vm0, %v6183_v4  ;;  %v6187_v17 = vld [vmem:[%s6322_s28 + $0x6a4] ss:$28 sps:$4 sm:$0xff]   ;;  %v6188_v9 = vld [vmem:[%s6322_s28 + $0x398] ss:$28 sps:$4 sm:$0xff]   ;;  %v2861_v4 = vadd.f32 %v7174_v21, %v7012_v34 }
 0x236   : > { %v3239_v43 = vpop.f32.mrf.mxu1  ;;  %v3448_v57 = vpop.f32.mrf.mxu0  ;;  %v2864_v34 = vadd.f32 %v7174_v21, %v7018_v1 }
 0x238   : > { %v3240_v15 = vpop.f32.mrf.mxu1  ;;  %v3449_v5 = vpop.f32.mrf.mxu0 }
 0x239   : > { %v7209_v36 = vadd.f32 %v3240_v15, %v2856_v12  ;;  %v7212_v14 = vadd.f32 %v3449_v5, %v6830_v26 }
 0x23a   : > { %v3242_v63 = vpop.f32.mrf.mxu1  ;;  %v3451_v6 = vpop.f32.mrf.mxu0 }
 0x23b   : > { %v6185_v63 = vld [vmem:[%s6322_s28 + $0x6a0] ss:$28 sps:$4 sm:$0xff]  }
 0x23c   : > { %v3245_v44 = vpop.f32.mrf.mxu1  ;;  %v3454_v7 = vpop.f32.mrf.mxu0  ;;  %3645 = vmatmul.mubr.bf16.gmra.mxu0 %v6180_v18  ;;  %5664 = vmatmul.mubr.msk.bf16.gmra.mxu1 %vm2477_vm0, %v6184_v46  ;;  %v6189_v18 = vld [vmem:[%s6322_s28 + $0x3d0] ss:$28 sps:$4 sm:$0xff]  }
 0x23d   : > { %v7219_v43 = vadd.f32 %v3245_v44, %v2861_v4  ;;  %v7222_v26 = vadd.f32 %v3454_v7, %v6838_v60  ;;  %3652 = vmatprep.mubr.bf16.mxu0 %v6187_v17  ;;  %5667 = vmatprep.mubr.msk.bf16.mxu1 %vm2477_vm0, %v6188_v9  ;;  %v6192_v4 = vld [vmem:[%s6322_s28 + $0x6dc] ss:$28 sps:$4 sm:$0xff]   ;;  %v6193_v60 = vld [vmem:[%s6322_s28 + $0x408] ss:$28 sps:$4 sm:$0xff]   ;;  %v2869_v9 = vadd.f32 %v7174_v21, %v7028_v59 }
 0x23e   : > { %v3247_v57 = vpop.f32.mrf.mxu1  ;;  %v3456_v12 = vpop.f32.mrf.mxu0  ;;  %v2872_v59 = vadd.f32 %v7174_v21, %v7034_v37 }
 0x240   : > { %v3248_v15 = vpop.f32.mrf.mxu1  ;;  %v3457_v5 = vpop.f32.mrf.mxu0 }
 0x241   : > { %v7229_v6 = vadd.f32 %v3248_v15, %v2864_v34  ;;  %v7232_v46 = vadd.f32 %v3457_v5, %v6846_v38 }
 0x242   : > { %v3250_v44 = vpop.f32.mrf.mxu1  ;;  %v3459_v17 = vpop.f32.mrf.mxu0 }
 0x243   : > { %7824 = vst [vmem:[#allocation42_spill] sm:$0xff] %v7229_v6  ;;  %v6190_v44 = vld [vmem:[%s6322_s28 + $0x6d8] ss:$28 sps:$4 sm:$0xff]  }
 0x244   : > { %v3253_v7 = vpop.f32.mrf.mxu1  ;;  %v3462_v1 = vpop.f32.mrf.mxu0  ;;  %3653 = vmatmul.mubr.bf16.gmra.mxu0 %v6185_v63  ;;  %5668 = vmatmul.mubr.msk.bf16.gmra.mxu1 %vm2477_vm0, %v6189_v18  ;;  %v6194_v63 = vld [vmem:[%s6322_s28 + $0x440] ss:$28 sps:$4 sm:$0xff]  }
 0x245   : > { %v7239_v57 = vadd.f32 %v3253_v7, %v2869_v9  ;;  %v7242_v38 = vadd.f32 %v3462_v1, %v6854_v35  ;;  %3660 = vmatprep.mubr.bf16.mxu0 %v6192_v4  ;;  %5671 = vmatprep.mubr.msk.bf16.mxu1 %vm2477_vm0, %v6193_v60  ;;  %v6197_v9 = vld [vmem:[%s6322_s28 + $0x714] ss:$28 sps:$4 sm:$0xff]   ;;  %v2877_v60 = vadd.f32 %v7174_v21, %v7044_v32 }
 0x246   : > { %v3255_v12 = vpop.f32.mrf.mxu1  ;;  %v3464_v34 = vpop.f32.mrf.mxu0  ;;  %v6198_v35 = vld [vmem:[%s6322_s28 + $0x478] ss:$28 sps:$4 sm:$0xff]   ;;  %v2880_v32 = vadd.f32 %v7174_v21, %v7050_v33 }
 0x248   : > { %v3256_v15 = vpop.f32.mrf.mxu1  ;;  %v3465_v5 = vpop.f32.mrf.mxu0 }
 0x249   : > { %v7249_v17 = vadd.f32 %v3256_v15, %v2872_v59  ;;  %v7252_v18 = vadd.f32 %v3465_v5, %v6862_v50 }
 0x24a   : > { %v3258_v7 = vpop.f32.mrf.mxu1  ;;  %v3467_v4 = vpop.f32.mrf.mxu0 }
 0x24b   : > { %v6195_v7 = vld [vmem:[%s6322_s28 + $0x710] ss:$28 sps:$4 sm:$0xff]  }
 0x24c   : > { %v3261_v1 = vpop.f32.mrf.mxu1  ;;  %v3470_v37 = vpop.f32.mrf.mxu0  ;;  %3661 = vmatmul.mubr.bf16.gmra.mxu0 %v6190_v44  ;;  %5672 = vmatmul.mubr.msk.bf16.gmra.mxu1 %vm2477_vm0, %v6194_v63  ;;  %v6199_v44 = vld [vmem:[%s6322_s28 + $0x4b0] ss:$28 sps:$4 sm:$0xff]  }
 0x24d   : > { %v7259_v12 = vadd.f32 %v3261_v1, %v2877_v60  ;;  %v7262_v50 = vadd.f32 %v3470_v37, %v6870_v13  ;;  %3668 = vmatprep.mubr.bf16.mxu0 %v6197_v9  ;;  %5675 = vmatprep.mubr.msk.bf16.mxu1 %vm2477_vm0, %v6198_v35  ;;  %v6202_v60 = vld [vmem:[%s6322_s28 + $0x74c] ss:$28 sps:$4 sm:$0xff]   ;;  %v2885_v35 = vadd.f32 %v7174_v21, %v7060_v20 }
 0x24e   : > { %v3263_v34 = vpop.f32.mrf.mxu1  ;;  %v3472_v59 = vpop.f32.mrf.mxu0  ;;  %v6203_v13 = vld [vmem:[%s6322_s28 + $0x4e8] ss:$28 sps:$4 sm:$0xff]   ;;  %v2888_v20 = vadd.f32 %v7174_v21, %v7067_v25 }
 0x24f   : > { %7825 = vst [vmem:[#allocation43_spill] sm:$0xff] %v7259_v12  ;;  %v6235_v12 = vld [vmem:[%s6322_s28 + $0x8d0] ss:$28 sps:$4 sm:$0xff]  }
 0x250   : > { %v3264_v15 = vpop.f32.mrf.mxu1  ;;  %v3473_v5 = vpop.f32.mrf.mxu0 }
 0x251   : > { %v7269_v4 = vadd.f32 %v3264_v15, %v2880_v32  ;;  %v7272_v63 = vadd.f32 %v3473_v5, %v6878_v61 }
 0x252   : > { %v3266_v1 = vpop.f32.mrf.mxu1  ;;  %v3475_v9 = vpop.f32.mrf.mxu0 }
 0x253   : > { %7826 = vst [vmem:[#allocation44_spill] sm:$0xff] %v7269_v4  ;;  %v6200_v1 = vld [vmem:[%s6322_s28 + $0x748] ss:$28 sps:$4 sm:$0xff]  }
 0x254   : > { %v3269_v37 = vpop.f32.mrf.mxu1  ;;  %v3478_v33 = vpop.f32.mrf.mxu0  ;;  %3669 = vmatmul.mubr.bf16.gmra.mxu0 %v6195_v7  ;;  %5676 = vmatmul.mubr.msk.bf16.gmra.mxu1 %vm2477_vm0, %v6199_v44  ;;  %v6204_v7 = vld [vmem:[%s6322_s28 + $0x520] ss:$28 sps:$4 sm:$0xff]  }
 0x255   : > { %v7279_v34 = vadd.f32 %v3269_v37, %v2885_v35  ;;  %v7282_v61 = vadd.f32 %v3478_v33, %v6886_v58  ;;  %3676 = vmatprep.mubr.bf16.mxu0 %v6202_v60  ;;  %5679 = vmatprep.mubr.msk.bf16.mxu1 %vm2477_vm0, %v6203_v13  ;;  %v6207_v35 = vld [vmem:[%s6322_s28 + $0x784] ss:$28 sps:$4 sm:$0xff]   ;;  %v6208_v58 = vld [vmem:[%s6322_s28 + $0x558] ss:$28 sps:$4 sm:$0xff]   ;;  %v2893_v13 = vadd.f32 %v7174_v21, %v7077_v62 }
 0x256   : > { %v3271_v59 = vpop.f32.mrf.mxu1  ;;  %v3480_v32 = vpop.f32.mrf.mxu0  ;;  %v2896_v62 = vadd.f32 %v7174_v21, %v7085_v47 }
 0x257   : > { %7827 = vst [vmem:[#allocation45_spill] sm:$0xff] %v7279_v34 }
 0x258   : > { %v3272_v15 = vpop.f32.mrf.mxu1  ;;  %v3481_v5 = vpop.f32.mrf.mxu0 }
 0x259   : > { %v7289_v9 = vadd.f32 %v3272_v15, %v2888_v20  ;;  %v7292_v44 = vadd.f32 %v3481_v5, %v6894_v10 }
 0x25a   : > { %v3274_v37 = vpop.f32.mrf.mxu1  ;;  %v3483_v60 = vpop.f32.mrf.mxu0 }
 0x25b   : > { %7828 = vst [vmem:[#allocation46_spill] sm:$0xff] %v7289_v9  ;;  %v6205_v37 = vld [vmem:[%s6322_s28 + $0x780] ss:$28 sps:$4 sm:$0xff]  }
 0x25c   : > { %v3277_v33 = vpop.f32.mrf.mxu1  ;;  %v3486_v25 = vpop.f32.mrf.mxu0  ;;  %3677 = vmatmul.mubr.bf16.gmra.mxu0 %v6200_v1  ;;  %5680 = vmatmul.mubr.msk.bf16.gmra.mxu1 %vm2477_vm0, %v6204_v7  ;;  %v6209_v1 = vld [vmem:[%s6322_s28 + $0x590] ss:$28 sps:$4 sm:$0xff]  }
 0x25d   : > { %v7299_v59 = vadd.f32 %v3277_v33, %v2893_v13  ;;  %v7302_v10 = vadd.f32 %v3486_v25, %v6902_v41  ;;  %3684 = vmatprep.mubr.bf16.mxu0 %v6207_v35  ;;  %5683 = vmatprep.mubr.msk.bf16.mxu1 %vm2477_vm0, %v6208_v58  ;;  %v6212_v13 = vld [vmem:[%s6322_s28 + $0x7bc] ss:$28 sps:$4 sm:$0xff]   ;;  %v6213_v41 = vld [vmem:[%s6322_s28 + $0x5c8] ss:$28 sps:$4 sm:$0xff]   ;;  %v2901_v58 = vadd.f32 %v7174_v21, %v7095_v51 }
 0x25e   : > { %v3279_v32 = vpop.f32.mrf.mxu1  ;;  %v3488_v20 = vpop.f32.mrf.mxu0  ;;  %v2904_v51 = vadd.f32 %v7174_v21, %v7103_v29 }
 0x25f   : > { %7829 = vst [vmem:[#allocation47_spill] sm:$0xff] %v7299_v59  ;;  %v6230_v59 = vld [vmem:[%s6322_s28 + $0x898] ss:$28 sps:$4 sm:$0xff]  }
 0x260   : > { %v3280_v15 = vpop.f32.mrf.mxu1  ;;  %v3489_v5 = vpop.f32.mrf.mxu0 }
 0x261   : > { %v7309_v60 = vadd.f32 %v3280_v15, %v2896_v62  ;;  %v7312_v7 = vadd.f32 %v3489_v5, %v6910_v22 }
 0x262   : > { %v3282_v33 = vpop.f32.mrf.mxu1  ;;  %v3491_v35 = vpop.f32.mrf.mxu0 }
 0x263   : > { %7830 = vst [vmem:[#allocation48_spill] sm:$0xff] %v7309_v60  ;;  %v6210_v33 = vld [vmem:[%s6322_s28 + $0x7b8] ss:$28 sps:$4 sm:$0xff]   ;;  %v6225_v60 = vld [vmem:[%s6322_s28 + $0x860] ss:$28 sps:$4 sm:$0xff]  }
 0x264   : > { %v3285_v25 = vpop.f32.mrf.mxu1  ;;  %v3494_v47 = vpop.f32.mrf.mxu0  ;;  %3685 = vmatmul.mubr.bf16.gmra.mxu0 %v6205_v37  ;;  %5684 = vmatmul.mubr.msk.bf16.gmra.mxu1 %vm2477_vm0, %v6209_v1  ;;  %v6214_v37 = vld [vmem:[%s6322_s28 + $0x600] ss:$28 sps:$4 sm:$0xff]  }
 0x265   : > { %v7319_v32 = vadd.f32 %v3285_v25, %v2901_v58  ;;  %v7322_v22 = vadd.f32 %v3494_v47, %v6918_v23  ;;  %3692 = vmatprep.mubr.bf16.mxu0 %v6212_v13  ;;  %5687 = vmatprep.mubr.msk.bf16.mxu1 %vm2477_vm0, %v6213_v41  ;;  %v6217_v58 = vld [vmem:[%s6322_s28 + $0x7f4] ss:$28 sps:$4 sm:$0xff]   ;;  %v2909_v41 = vadd.f32 %v7174_v21, %v6619_v27 }
 0x266   : > { %v3287_v20 = vpop.f32.mrf.mxu1  ;;  %v3496_v62 = vpop.f32.mrf.mxu0  ;;  %v6218_v23 = vld [vmem:[%s6322_s28 + $0x638] ss:$28 sps:$4 sm:$0xff]  }
 0x267   : > { %7831 = vst [vmem:[#allocation49_spill] sm:$0xff] %v7319_v32 }
 0x268   : > { %v3288_v15 = vpop.f32.mrf.mxu1  ;;  %v3497_v5 = vpop.f32.mrf.mxu0 }
 0x269   : > { %v7329_v35 = vadd.f32 %v3288_v15, %v2904_v51  ;;  %v7332_v1 = vadd.f32 %v3497_v5, %v6926_v40  ;;  %v7834_v15 = vld [vmem:[#allocation2_spill] sm:$0xff] }
 0x26a   : > { %v3290_v25 = vpop.f32.mrf.mxu1  ;;  %v3499_v13 = vpop.f32.mrf.mxu0  ;;  %v2912_v27 = vadd.f32 %v7174_v21, %v7834_v15 }
 0x26b   : > { %7832 = vst [vmem:[#allocation50_spill] sm:$0xff] %v7329_v35  ;;  %v6215_v13 = vld [vmem:[%s6322_s28 + $0x7f0] ss:$28 sps:$4 sm:$0xff]  }
 0x26c   : > { %v3293_v47 = vpop.f32.mrf.mxu1  ;;  %v3502_v29 = vpop.f32.mrf.mxu0  ;;  %3693 = vmatmul.mubr.bf16.gmra.mxu0 %v6210_v33  ;;  %5688 = vmatmul.mubr.msk.bf16.gmra.mxu1 %vm2477_vm0, %v6214_v37  ;;  %v6219_v33 = vld [vmem:[%s6322_s28 + $0x670] ss:$28 sps:$4 sm:$0xff]  }
 0x26d   : > { %v7339_v20 = vadd.f32 %v3293_v47, %v2909_v41  ;;  %v7342_v40 = vadd.f32 %v3502_v29, %v6934_v11  ;;  %3700 = vmatprep.mubr.bf16.mxu0 %v6217_v58  ;;  %5691 = vmatprep.mubr.msk.bf16.mxu1 %vm2477_vm0, %v6218_v23  ;;  %v7836_v37 = vld [vmem:[#allocation23_spill] sm:$0xff] }
 0x26e   : > { %v3295_v62 = vpop.f32.mrf.mxu1  ;;  %v3504_v51 = vpop.f32.mrf.mxu0  ;;  %v6222_v47 = vld [vmem:[%s6322_s28 + $0x82c] ss:$28 sps:$4 sm:$0xff]  }
 0x26f   : > { %7833 = vst [vmem:[#allocation51_spill] sm:$0xff] %v7339_v20  ;;  %v6223_v11 = vld [vmem:[%s6322_s28 + $0x6a8] ss:$28 sps:$4 sm:$0xff]  }
 0x270   : > { %v3296_v5 = vpop.f32.mrf.mxu1  ;;  %v3505_v25 = vpop.f32.mrf.mxu0  ;;  %v7837_v23 = vld [vmem:[#allocation3_spill] sm:$0xff] }
 0x271   : > { %v7349_v35 = vadd.f32 %v3296_v5, %v2912_v27  ;;  %v7352_v41 = vadd.f32 %v3505_v25, %v7836_v37  ;;  %v2917_v62 = vadd.f32 %v7174_v21, %v7837_v23  ;;  %v7839_v5 = vld [vmem:[#allocation24_spill] sm:$0xff]  ;;  %v6220_v20 = vld [vmem:[%s6322_s28 + $0x828] ss:$28 sps:$4 sm:$0xff]  }
 0x272   : > { %v3298_v29 = vpop.f32.mrf.mxu1  ;;  %v3507_v58 = vpop.f32.mrf.mxu0 }
 0x273   : > { %7835 = vst [vmem:[#allocation2_spill] sm:$0xff] %v7349_v35  ;;  %v7840_v58 = vld [vmem:[#allocation4_spill] sm:$0xff] }
 0x274   : > { %v3301_v51 = vpop.f32.mrf.mxu1  ;;  %v3510_v15 = vpop.f32.mrf.mxu0  ;;  %3701 = vmatmul.mubr.bf16.gmra.mxu0 %v6215_v13  ;;  %5692 = vmatmul.mubr.msk.bf16.gmra.mxu1 %vm2477_vm0, %v6219_v33  ;;  %v2920_v23 = vadd.f32 %v7174_v21, %v7840_v58  ;;  %v6224_v13 = vld [vmem:[%s6322_s28 + $0x6e0] ss:$28 sps:$4 sm:$0xff]  }
 0x275   : > { %v7359_v27 = vadd.f32 %v3301_v51, %v2917_v62  ;;  %v7362_v25 = vadd.f32 %v3510_v15, %v7839_v5  ;;  %3708 = vmatprep.mubr.bf16.mxu0 %v6222_v47  ;;  %5695 = vmatprep.mubr.msk.bf16.mxu1 %vm2477_vm0, %v6223_v11  ;;  %v7842_v33 = vld [vmem:[#allocation25_spill] sm:$0xff]  ;;  %v6227_v51 = vld [vmem:[%s6322_s28 + $0x864] ss:$28 sps:$4 sm:$0xff]  }
 0x276   : > { %v3303_v37 = vpop.f32.mrf.mxu1  ;;  %v3512_v29 = vpop.f32.mrf.mxu0  ;;  %v6228_v15 = vld [vmem:[%s6322_s28 + $0x718] ss:$28 sps:$4 sm:$0xff]  }
 0x277   : > { %7838 = vst [vmem:[#allocation23_spill] sm:$0xff] %v7359_v27  ;;  %v7843_v11 = vld [vmem:[#allocation5_spill] sm:$0xff] }
 0x278   : > { %v3304_v35 = vpop.f32.mrf.mxu1  ;;  %v3513_v32 = vpop.f32.mrf.mxu0  ;;  %v2925_v37 = vadd.f32 %v7174_v21, %v7843_v11 }
 0x279   : > { %v7369_v9 = vadd.f32 %v3304_v35, %v2920_v23  ;;  %v7372_v62 = vadd.f32 %v3513_v32, %v7842_v33  ;;  %v7845_v32 = vld [vmem:[#allocation26_spill] sm:$0xff] }
 0x27a   : > { %v3306_v5 = vpop.f32.mrf.mxu1  ;;  %v3515_v47 = vpop.f32.mrf.mxu0 }
 0x27b   : > { %7841 = vst [vmem:[#allocation3_spill] sm:$0xff] %v7369_v9  ;;  %v7846_v47 = vld [vmem:[#allocation6_spill] sm:$0xff] }
 0x27c   : > { %v3309_v29 = vpop.f32.mrf.mxu1  ;;  %v3518_v58 = vpop.f32.mrf.mxu0  ;;  %3709 = vmatmul.mubr.bf16.gmra.mxu0 %v6220_v20  ;;  %5696 = vmatmul.mubr.msk.bf16.gmra.mxu1 %vm2477_vm0, %v6224_v13  ;;  %v2928_v11 = vadd.f32 %v7174_v21, %v7846_v47  ;;  %v6229_v20 = vld [vmem:[%s6322_s28 + $0x750] ss:$28 sps:$4 sm:$0xff]  }
 0x27d   : > { %v7379_v35 = vadd.f32 %v3309_v29, %v2925_v37  ;;  %v7382_v23 = vadd.f32 %v3518_v58, %v7845_v32  ;;  %3716 = vmatprep.mubr.bf16.mxu0 %v6227_v51  ;;  %5699 = vmatprep.mubr.msk.bf16.mxu1 %vm2477_vm0, %v6228_v15  ;;  %v7848_v13 = vld [vmem:[#allocation27_spill] sm:$0xff]  ;;  %v6232_v29 = vld [vmem:[%s6322_s28 + $0x89c] ss:$28 sps:$4 sm:$0xff]  }
 0x27e   : > { %v3311_v33 = vpop.f32.mrf.mxu1  ;;  %v3520_v5 = vpop.f32.mrf.mxu0  ;;  %v6233_v58 = vld [vmem:[%s6322_s28 + $0x788] ss:$28 sps:$4 sm:$0xff]  }
 0x27f   : > { %7844 = vst [vmem:[#allocation24_spill] sm:$0xff] %v7379_v35  ;;  %v7849_v15 = vld [vmem:[#allocation7_spill] sm:$0xff] }
 0x280   : > { %v3312_v9 = vpop.f32.mrf.mxu1  ;;  %v3521_v27 = vpop.f32.mrf.mxu0  ;;  %v2933_v33 = vadd.f32 %v7174_v21, %v7849_v15 }
 0x281   : > { %v7389_v34 = vadd.f32 %v3312_v9, %v2928_v11  ;;  %v7392_v37 = vadd.f32 %v3521_v27, %v7848_v13  ;;  %v7851_v27 = vld [vmem:[#allocation28_spill] sm:$0xff] }
 0x282   : > { %v3314_v32 = vpop.f32.mrf.mxu1  ;;  %v3523_v51 = vpop.f32.mrf.mxu0 }
 0x283   : > { %7847 = vst [vmem:[#allocation4_spill] sm:$0xff] %v7389_v34  ;;  %v7852_v51 = vld [vmem:[#allocation8_spill] sm:$0xff] }
 0x284   : > { %v3317_v5 = vpop.f32.mrf.mxu1  ;;  %v3526_v47 = vpop.f32.mrf.mxu0  ;;  %3717 = vmatmul.mubr.bf16.gmra.mxu0 %v6225_v60  ;;  %5700 = vmatmul.mubr.msk.bf16.gmra.mxu1 %vm2477_vm0, %v6229_v20  ;;  %v2936_v15 = vadd.f32 %v7174_v21, %v7852_v51  ;;  %v6234_v60 = vld [vmem:[%s6322_s28 + $0x7c0] ss:$28 sps:$4 sm:$0xff]  }
 0x285   : > { %v7399_v9 = vadd.f32 %v3317_v5, %v2933_v33  ;;  %v7402_v11 = vadd.f32 %v3526_v47, %v7851_v27  ;;  %3724 = vmatprep.mubr.bf16.mxu0 %v6232_v29  ;;  %5703 = vmatprep.mubr.msk.bf16.mxu1 %vm2477_vm0, %v6233_v58  ;;  %v7854_v20 = vld [vmem:[#allocation29_spill] sm:$0xff]  ;;  %v6237_v5 = vld [vmem:[%s6322_s28 + $0x8d4] ss:$28 sps:$4 sm:$0xff]  }
 0x286   : > { %v3319_v13 = vpop.f32.mrf.mxu1  ;;  %v3528_v32 = vpop.f32.mrf.mxu0  ;;  %v6238_v47 = vld [vmem:[%s6322_s28 + $0x7f8] ss:$28 sps:$4 sm:$0xff]  }
 0x287   : > { %7850 = vst [vmem:[#allocation25_spill] sm:$0xff] %v7399_v9  ;;  %v7856_v58 = vld [vmem:[#allocation9_spill] sm:$0xff] }
 0x288   : > { %v3320_v34 = vpop.f32.mrf.mxu1  ;;  %v3529_v35 = vpop.f32.mrf.mxu0  ;;  %v2941_v13 = vadd.f32 %v7174_v21, %v7856_v58 }
 0x289   : > { %v7409_v4 = vadd.f32 %v3320_v34, %v2936_v15  ;;  %v7412_v33 = vadd.f32 %v3529_v35, %v7854_v20  ;;  %v7858_v35 = vld [vmem:[#allocation30_spill] sm:$0xff] }
 0x28a   : > { %v3322_v27 = vpop.f32.mrf.mxu1  ;;  %v3531_v29 = vpop.f32.mrf.mxu0 }
 0x28b   : > { %7853 = vst [vmem:[#allocation5_spill] sm:$0xff] %v7409_v4  ;;  %7855 = vst [vmem:[#allocation26_spill] sm:$0xff] %v7412_v33  ;;  %v7859_v29 = vld [vmem:[#allocation10_spill] sm:$0xff] }
 0x28c   : > { %v3325_v32 = vpop.f32.mrf.mxu1  ;;  %v3534_v51 = vpop.f32.mrf.mxu0  ;;  %3725 = vmatmul.mubr.bf16.gmra.mxu0 %v6230_v59  ;;  %5704 = vmatmul.mubr.msk.bf16.gmra.mxu1 %vm2477_vm0, %v6234_v60  ;;  %v2944_v58 = vadd.f32 %v7174_v21, %v7859_v29  ;;  %v6239_v59 = vld [vmem:[%s6322_s28 + $0x830] ss:$28 sps:$4 sm:$0xff]   ;;  %v6240_v33 = vld [vmem:[%s6322_s28 + $0x908] ss:$28 sps:$4 sm:$0xff]  }
 0x28d   : > { %v7419_v34 = vadd.f32 %v3325_v32, %v2941_v13  ;;  %v7422_v15 = vadd.f32 %v3534_v51, %v7858_v35  ;;  %3732 = vmatprep.mubr.bf16.mxu0 %v6237_v5  ;;  %5707 = vmatprep.mubr.msk.bf16.mxu1 %vm2477_vm0, %v6238_v47  ;;  %v7861_v60 = vld [vmem:[#allocation31_spill] sm:$0xff] }
 0x28e   : > { %v3327_v20 = vpop.f32.mrf.mxu1  ;;  %v3536_v27 = vpop.f32.mrf.mxu0  ;;  %v6242_v32 = vld [vmem:[%s6322_s28 + $0x90c] ss:$28 sps:$4 sm:$0xff]  }
 0x28f   : > { %7857 = vst [vmem:[#allocation6_spill] sm:$0xff] %v7419_v34  ;;  %v6243_v51 = vld [vmem:[%s6322_s28 + $0x868] ss:$28 sps:$4 sm:$0xff]  }
 0x290   : > { %v3328_v4 = vpop.f32.mrf.mxu1  ;;  %v3537_v9 = vpop.f32.mrf.mxu0  ;;  %v7863_v47 = vld [vmem:[#allocation11_spill] sm:$0xff] }
 0x291   : > { %v7429_v6 = vadd.f32 %v3328_v4, %v2944_v58  ;;  %v7432_v13 = vadd.f32 %v3537_v9, %v7861_v60  ;;  %v2949_v20 = vadd.f32 %v7174_v21, %v7863_v47  ;;  %v7865_v9 = vld [vmem:[#allocation32_spill] sm:$0xff] }
 0x292   : > { %v3330_v35 = vpop.f32.mrf.mxu1  ;;  %v3539_v5 = vpop.f32.mrf.mxu0 }
 0x293   : > { %7860 = vst [vmem:[#allocation27_spill] sm:$0xff] %v7429_v6  ;;  %7862 = vst [vmem:[#allocation7_spill] sm:$0xff] %v7432_v13  ;;  %v7867_v5 = vld [vmem:[#allocation12_spill] sm:$0xff] }
 0x294   : > { %v3333_v27 = vpop.f32.mrf.mxu1  ;;  %v3542_v29 = vpop.f32.mrf.mxu0  ;;  %3733 = vmatmul.mubr.bf16.gmra.mxu0 %v6235_v12  ;;  %5708 = vmatmul.mubr.msk.bf16.gmra.mxu1 %vm2477_vm0, %v6239_v59  ;;  %v2952_v47 = vadd.f32 %v7174_v21, %v7867_v5  ;;  %v6244_v12 = vld [vmem:[%s6322_s28 + $0x8a0] ss:$28 sps:$4 sm:$0xff]  }
 0x295   : > { %v7439_v4 = vadd.f32 %v3333_v27, %v2949_v20  ;;  %v7442_v58 = vadd.f32 %v3542_v29, %v7865_v9  ;;  %3740 = vmatprep.mubr.bf16.mxu0 %v6242_v32  ;;  %5711 = vmatprep.mubr.msk.bf16.mxu1 %vm2477_vm0, %v6243_v51  ;;  %v7869_v59 = vld [vmem:[#allocation33_spill] sm:$0xff]  ;;  %v6247_v27 = vld [vmem:[%s6322_s28 + $0x944] ss:$28 sps:$4 sm:$0xff]  }
 0x296   : > { %v3335_v60 = vpop.f32.mrf.mxu1  ;;  %v3544_v35 = vpop.f32.mrf.mxu0  ;;  %v6248_v29 = vld [vmem:[%s6322_s28 + $0x8d8] ss:$28 sps:$4 sm:$0xff]  }
 0x297   : > { %7864 = vst [vmem:[#allocation28_spill] sm:$0xff] %v7439_v4  ;;  %7866 = vst [vmem:[#allocation8_spill] sm:$0xff] %v7442_v58  ;;  %v7871_v51 = vld [vmem:[#allocation13_spill] sm:$0xff] }
 0x298   : > { %v3336_v6 = vpop.f32.mrf.mxu1  ;;  %v3545_v34 = vpop.f32.mrf.mxu0  ;;  %v2957_v60 = vadd.f32 %v7174_v21, %v7871_v51 }
 0x299   : > { %v7449_v13 = vadd.f32 %v3336_v6, %v2952_v47  ;;  %v7452_v20 = vadd.f32 %v3545_v34, %v7869_v59  ;;  %v7873_v34 = vld [vmem:[#allocation34_spill] sm:$0xff] }
 0x29a   : > { %v3338_v9 = vpop.f32.mrf.mxu1  ;;  %v3547_v32 = vpop.f32.mrf.mxu0 }
 0x29b   : > { %7868 = vst [vmem:[#allocation29_spill] sm:$0xff] %v7449_v13  ;;  %7870 = vst [vmem:[#allocation9_spill] sm:$0xff] %v7452_v20  ;;  %v7874_v32 = vld [vmem:[#allocation14_spill] sm:$0xff] }
 0x29c   : > { %v3341_v35 = vpop.f32.mrf.mxu1  ;;  %v3550_v5 = vpop.f32.mrf.mxu0  ;;  %3741 = vmatmul.mubr.bf16.gmra.mxu0 %v6240_v33  ;;  %5712 = vmatmul.mubr.msk.bf16.gmra.mxu1 %vm2477_vm0, %v6244_v12  ;;  %v2960_v51 = vadd.f32 %v7174_v21, %v7874_v32  ;;  %v6245_v20 = vld [vmem:[%s6322_s28 + $0x940] ss:$28 sps:$4 sm:$0xff]   ;;  %v6249_v33 = vld [vmem:[%s6322_s28 + $0x910] ss:$28 sps:$4 sm:$0xff]  }
 0x29d   : > { %v7459_v6 = vadd.f32 %v3341_v35, %v2957_v60  ;;  %v7462_v47 = vadd.f32 %v3550_v5, %v7873_v34  ;;  %3748 = vmatprep.mubr.bf16.mxu0 %v6247_v27  ;;  %5715 = vmatprep.mubr.msk.bf16.mxu1 %vm2477_vm0, %v6248_v29  ;;  %v7876_v12 = vld [vmem:[#allocation35_spill] sm:$0xff]  ;;  %v6252_v35 = vld [vmem:[%s6322_s28 + $0x97c] ss:$28 sps:$4 sm:$0xff]  }
 0x29e   : > { %v3343_v59 = vpop.f32.mrf.mxu1  ;;  %v3552_v9 = vpop.f32.mrf.mxu0  ;;  %v6253_v5 = vld [vmem:[%s6322_s28 + $0x948] ss:$28 sps:$4 sm:$0xff]  }
 0x29f   : > { %7872 = vst [vmem:[#allocation30_spill] sm:$0xff] %v7459_v6  ;;  %v7878_v29 = vld [vmem:[#allocation15_spill] sm:$0xff] }
 0x2a0   : > { %v3344_v13 = vpop.f32.mrf.mxu1  ;;  %v3553_v4 = vpop.f32.mrf.mxu0  ;;  %v2965_v59 = vadd.f32 %v7174_v21, %v7878_v29 }
 0x2a1   : > { %v7469_v58 = vadd.f32 %v3344_v13, %v2960_v51  ;;  %v7472_v60 = vadd.f32 %v3553_v4, %v7876_v12  ;;  %v7881_v12 = vld [vmem:[#allocation16_spill] sm:$0xff] }
 0x2a2   : > { %v3346_v34 = vpop.f32.mrf.mxu1  ;;  %v3555_v27 = vpop.f32.mrf.mxu0 }
 0x2a3   : > { %7875 = vst [vmem:[#allocation10_spill] sm:$0xff] %v7469_v58  ;;  %7877 = vst [vmem:[#allocation31_spill] sm:$0xff] %v7472_v60  ;;  %v2968_v34 = vadd.f32 %v7174_v21, %v7881_v12  ;;  %v6250_v58 = vld [vmem:[%s6322_s28 + $0x978] ss:$28 sps:$4 sm:$0xff]   ;;  %v6254_v60 = vld [vmem:[%s6322_s28 + $0x980] ss:$28 sps:$4 sm:$0xff]  }
 0x2a4   : > { %v3349_v9 = vpop.f32.mrf.mxu1  ;;  %v3558_v32 = vpop.f32.mrf.mxu0  ;;  %3749 = vmatmul.mubr.bf16.gmra.mxu0 %v6245_v20  ;;  %5716 = vmatmul.mubr.msk.bf16.gmra.mxu1 %vm2477_vm0, %v6249_v33  ;;  %v7883_v33 = vld [vmem:[#allocation36_spill] sm:$0xff]  ;;  %v7887_v12 = vld [vmem:[#allocation37_spill] sm:$0xff]  ;;  %s4740_s28 = sshll.u32 %s7943_s16, 2 }
 0x2a5   : > { %v7479_v6 = vadd.f32 %v3349_v9, %v2965_v59  ;;  %v7482_v13 = vadd.f32 %v3558_v32, %v7046_v39  ;;  %3756 = vmatprep.mubr.bf16.mxu0 %v6252_v35  ;;  %5719 = vmatprep.mubr.msk.bf16.mxu1 %vm2477_vm0, %v6253_v5  ;;  %v7885_v32 = vld [vmem:[#allocation17_spill] sm:$0xff]  ;;  %s7551_s29 = scalar_lea.vmem %s7783_s3, %s4740_s28 }
 0x2a6   : > { %v3351_v4 = vpop.f32.mrf.mxu1  ;;  %v3560_v51 = vpop.f32.mrf.mxu0  ;;  %v2973_v35 = vadd.f32 %v7174_v21, %v7885_v32  ;;  %v7891_v32 = vld [vmem:[#allocation38_spill] sm:$0xff] }
 0x2a7   : > { %7879 = vst [vmem:[#allocation11_spill] sm:$0xff] %v7479_v6  ;;  %7880 = vst [vmem:[#allocation32_spill] sm:$0xff] %v7482_v13 }
 0x2a8   : > { %v3352_v27 = vpop.f32.mrf.mxu1  ;;  %v3561_v29 = vpop.f32.mrf.mxu0 }
 0x2a9   : > { %v7489_v20 = vadd.f32 %v3352_v27, %v2968_v34  ;;  %v7492_v59 = vadd.f32 %v3561_v29, %v7883_v33 }
 0x2aa   : > { %v3354_v9 = vpop.f32.mrf.mxu1  ;;  %v3563_v39 = vpop.f32.mrf.mxu0 }
 0x2ab   : > { %7882 = vst [vmem:[#allocation12_spill] sm:$0xff] %v7489_v20  ;;  %7884 = vst [vmem:[#allocation33_spill] sm:$0xff] %v7492_v59  ;;  %v7889_v20 = vld [vmem:[#allocation18_spill] sm:$0xff] }
 0x2ac   : > { %v3357_v5 = vpop.f32.mrf.mxu1  ;;  %v3566_v4 = vpop.f32.mrf.mxu0  ;;  %3757 = vmatmul.mubr.bf16.gmra.mxu0 %v6250_v58  ;;  %5720 = vmatmul.mubr.msk.bf16.gmra.mxu1 %vm2477_vm0, %v6254_v60  ;;  %v2976_v29 = vadd.f32 %v7174_v21, %v7889_v20  ;;  %v7893_v60 = vld [vmem:[#allocation19_spill] sm:$0xff] }
 0x2ad   : > { %v7497_v51 = vadd.f32 %v3357_v5, %v2973_v35  ;;  %v7500_v6 = vadd.f32 %v3566_v4, %v7887_v12  ;;  %v2981_v35 = vadd.f32 %v7174_v21, %v7893_v60 }
 0x2ae   : > { %v3359_v34 = vpop.f32.mrf.mxu1  ;;  %v3568_v27 = vpop.f32.mrf.mxu0 }
 0x2af   : > { %7886 = vst [vmem:[#allocation13_spill] sm:$0xff] %v7497_v51  ;;  %7888 = vst [vmem:[#allocation34_spill] sm:$0xff] %v7500_v6  ;;  %v7895_v34 = vld [vmem:[#allocation39_spill] sm:$0xff]  ;;  %v7896_v6 = vld [vmem:[#allocation20_spill] sm:$0xff] }
 0x2b0   : > { %v3360_v33 = vpop.f32.mrf.mxu1  ;;  %v3569_v9 = vpop.f32.mrf.mxu0 }
 0x2b1   : > { %v7504_v39 = vadd.f32 %v3360_v33, %v2976_v29  ;;  %v7507_v59 = vadd.f32 %v3569_v9, %v7891_v32  ;;  %v2984_v29 = vadd.f32 %v7174_v21, %v7896_v6 }
 0x2b2   : > { %v3362_v58 = vpop.f32.mrf.mxu1  ;;  %v3571_v13 = vpop.f32.mrf.mxu0 }
 0x2b3   : > { %7890 = vst [vmem:[#allocation14_spill] sm:$0xff] %v7504_v39  ;;  %7892 = vst [vmem:[#allocation35_spill] sm:$0xff] %v7507_v59  ;;  %v7898_v13 = vld [vmem:[#allocation40_spill] sm:$0xff]  ;;  %v7899_v59 = vld [vmem:[#allocation21_spill] sm:$0xff] }
 0x2b4   : > { %v3365_v5 = vpop.f32.mrf.mxu1  ;;  %v3574_v4 = vpop.f32.mrf.mxu0 }
 0x2b5   : > { %v7511_v12 = vadd.f32 %v3365_v5, %v2981_v35  ;;  %v7514_v27 = vadd.f32 %v3574_v4, %v7895_v34  ;;  %v2989_v35 = vadd.f32 %v7174_v21, %v7899_v59 }
 0x2b6   : > { %v3367_v20 = vpop.f32.mrf.mxu1  ;;  %v3576_v51 = vpop.f32.mrf.mxu0 }
 0x2b7   : > { %7894 = vst [vmem:[#allocation15_spill] sm:$0xff] %v7511_v12  ;;  %v7901_v12 = vld [vmem:[#allocation22_spill] sm:$0xff] }
 0x2b8   : > { %v3368_v33 = vpop.f32.mrf.mxu1  ;;  %v3577_v9 = vpop.f32.mrf.mxu0 }
 0x2b9   : > { %v7518_v32 = vadd.f32 %v3368_v33, %v2984_v29  ;;  %v7521_v58 = vadd.f32 %v3577_v9, %v7898_v13  ;;  %v2992_v29 = vadd.f32 %v7174_v21, %v7901_v12 }
 0x2ba   : > { %v3370_v60 = vpop.f32.mrf.mxu1  ;;  %v3579_v39 = vpop.f32.mrf.mxu0 }
 0x2bb   : > { %7897 = vst [vmem:[#allocation16_spill] sm:$0xff] %v7518_v32  ;;  %v7902_v39 = vld [vmem:[#allocation41_spill] sm:$0xff] }
 0x2bc   : > { %v3373_v5 = vpop.f32.mrf.mxu1  ;;  %v3582_v4 = vpop.f32.mrf.mxu0 }
 0x2bd   : > { %v7525_v34 = vadd.f32 %v3373_v5, %v2989_v35  ;;  %v7528_v51 = vadd.f32 %v3582_v4, %v7098_v2 }
 0x2be   : > { %v3375_v6 = vpop.f32.mrf.mxu1  ;;  %v3584_v20 = vpop.f32.mrf.mxu0 }
 0x2bf   : > { %7900 = vst [vmem:[#allocation36_spill] sm:$0xff] %v7525_v34 }
 0x2c0   : > { %v3376_v33 = vpop.f32.mrf.mxu1  ;;  %v3585_v9 = vpop.f32.mrf.mxu0 }
 0x2c1   : > { %v7532_v13 = vadd.f32 %v3376_v33, %v2992_v29  ;;  %v7535_v60 = vadd.f32 %v3585_v9, %v7902_v39 }
 0x2c2   : > { %v3378_v59 = vpop.f32.mrf.mxu1  ;;  %v3587_v32 = vpop.f32.mrf.mxu0 }
 0x2c4   : > { %v3590_v35 = vpop.f32.mrf.mxu0  ;;  %v5637_v5 = vpop.f32.mrf.mxu1 }
 0x2c5   : > { %v7538_v2 = vadd.f32 %v3590_v35, %v7114_v28  ;;  %v3808_v20 = vadd.f32 %v5637_v5, %v7137_v56 }
 0x2c6   : > { %v3592_v4 = vpop.f32.mrf.mxu0  ;;  %v3799_v6 = vpop.f32.mrf.mxu1 }
 0x2c7   : > { %v3800_v34 = vadd.f32 %v3799_v6, %v7117_v42  ;;  %v4152_v39 = vmax.f32 %v3808_v20, 0.0 }
 0x2c8   : > { %v3593_v21 = vpop.f32.mrf.mxu0  ;;  %v5638_v12 = vpop.f32.mrf.mxu1 }
 0x2c9   : > { %v7543_v29 = vadd.f32 %v3593_v21, %v7124_v8  ;;  %v3811_v33 = vadd.f32 %v5638_v12, %v7147_v19  ;;  %v4150_v8 = vmax.f32 %v3800_v34, 0.0 }
 0x2ca   : > { %v3595_v32 = vpop.f32.mrf.mxu0  ;;  %v3802_v9 = vpop.f32.mrf.mxu1 }
 0x2cb   : > { %v4153_v59 = vmax.f32 %v3811_v33, 0.0  ;;  %v3803_v28 = vadd.f32 %v3802_v9, %v7127_v16 }
 0x2cc   : > { %v3598_v42 = vpop.f32.mrf.mxu0  ;;  %v5641_v56 = vpop.f32.mrf.mxu1 }
 0x2cd   : > { %v5330_v35 = vpack.c.bf16 %v4153_v59, %v4152_v39  ;;  %v4151_v5 = vmax.f32 %v3803_v28, 0.0  ;;  %v7554_v19 = vadd.f32 %v3598_v42, %v7134_v30  ;;  %v3824_v16 = vadd.f32 %v5641_v56, %v7182_v3 }
 0x2ce   : > { %v3600_v4 = vpop.f32.mrf.mxu0  ;;  %v3815_v6 = vpop.f32.mrf.mxu1 }
 0x2cf   : > { %5542 = vst [vmem:[%s7551_s29 + $0x8] sm:$0xff] %v5330_v35   ;;  %v5325_v20 = vpack.c.bf16 %v4151_v5, %v4150_v8  ;;  %v3816_v33 = vadd.f32 %v3815_v6, %v7157_v52  ;;  %v4156_v39 = vmax.f32 %v3824_v16, 0.0 }
 0x2d0   : > { %v3601_v21 = vpop.f32.mrf.mxu0  ;;  %v5642_v12 = vpop.f32.mrf.mxu1 }
 0x2d1   : > { %5326 = vst [vmem:[%s7551_s29] sm:$0xff] %v5325_v20   ;;  %v7561_v32 = vadd.f32 %v3601_v21, %v7144_v45  ;;  %v3827_v34 = vadd.f32 %v5642_v12, %v7192_v48  ;;  %v4154_v56 = vmax.f32 %v3816_v33, 0.0 }
 0x2d2   : > { %v3603_v9 = vpop.f32.mrf.mxu0  ;;  %v3818_v30 = vpop.f32.mrf.mxu1 }
 0x2d3   : > { %v4157_v59 = vmax.f32 %v3827_v34, 0.0  ;;  %v3819_v28 = vadd.f32 %v3818_v30, %v7167_v0 }
 0x2d4   : > { %v3606_v42 = vpop.f32.mrf.mxu0  ;;  %v5645_v3 = vpop.f32.mrf.mxu1 }
 0x2d5   : > { %v5340_v8 = vpack.c.bf16 %v4157_v59, %v4156_v39  ;;  %v4155_v35 = vmax.f32 %v3819_v28, 0.0  ;;  %v7566_v52 = vadd.f32 %v3606_v42, %v7154_v24  ;;  %v3840_v48 = vadd.f32 %v5645_v3, %v7222_v26 }
 0x2d6   : > { %v3608_v5 = vpop.f32.mrf.mxu0  ;;  %v3831_v45 = vpop.f32.mrf.mxu1 }
 0x2d7   : > { %5544 = vst [vmem:[%s7551_s29 + $0x18] sm:$0xff] %v5340_v8   ;;  %v5335_v4 = vpack.c.bf16 %v4155_v35, %v4154_v56  ;;  %v3832_v16 = vadd.f32 %v3831_v45, %v7202_v49  ;;  %v4160_v33 = vmax.f32 %v3840_v48, 0.0 }
 0x2d8   : > { %v3609_v6 = vpop.f32.mrf.mxu0  ;;  %v5646_v20 = vpop.f32.mrf.mxu1 }
 0x2d9   : > { %5543 = vst [vmem:[%s7551_s29 + $0x10] sm:$0xff] %v5335_v4   ;;  %v7573_v0 = vadd.f32 %v3609_v6, %v7164_v31  ;;  %v3843_v21 = vadd.f32 %v5646_v20, %v7232_v46  ;;  %v4158_v39 = vmax.f32 %v3832_v16, 0.0 }
 0x2da   : > { %v3611_v12 = vpop.f32.mrf.mxu0  ;;  %v3834_v24 = vpop.f32.mrf.mxu1 }
 0x2db   : > { %v4161_v34 = vmax.f32 %v3843_v21, 0.0  ;;  %v3835_v9 = vadd.f32 %v3834_v24, %v7212_v14 }
 0x2dc   : > { %v3614_v30 = vpop.f32.mrf.mxu0  ;;  %v5649_v26 = vpop.f32.mrf.mxu1 }
 0x2dd   : > { %v5350_v59 = vpack.c.bf16 %v4161_v34, %v4160_v33  ;;  %v4159_v28 = vmax.f32 %v3835_v9, 0.0  ;;  %v7578_v49 = vadd.f32 %v3614_v30, %v7179_v55  ;;  %v3856_v46 = vadd.f32 %v5649_v26, %v7262_v50 }
 0x2de   : > { %v3616_v42 = vpop.f32.mrf.mxu0  ;;  %v3847_v31 = vpop.f32.mrf.mxu1 }
 0x2df   : > { %5546 = vst [vmem:[%s7551_s29 + $0x28] sm:$0xff] %v5350_v59   ;;  %v5345_v3 = vpack.c.bf16 %v4159_v28, %v4158_v39  ;;  %v3848_v35 = vadd.f32 %v3847_v31, %v7242_v38  ;;  %v4164_v4 = vmax.f32 %v3856_v46, 0.0 }
 0x2e0   : > { %v3617_v56 = vpop.f32.mrf.mxu0  ;;  %v5650_v8 = vpop.f32.mrf.mxu1 }
 0x2e1   : > { %5545 = vst [vmem:[%s7551_s29 + $0x20] sm:$0xff] %v5345_v3   ;;  %v7585_v14 = vadd.f32 %v3617_v56, %v7189_v53  ;;  %v3859_v5 = vadd.f32 %v5650_v8, %v7272_v63  ;;  %v4162_v16 = vmax.f32 %v3848_v35, 0.0 }
 0x2e2   : > { %v3619_v45 = vpop.f32.mrf.mxu0  ;;  %v3850_v55 = vpop.f32.mrf.mxu1 }
 0x2e3   : > { %v4165_v48 = vmax.f32 %v3859_v5, 0.0  ;;  %v3851_v6 = vadd.f32 %v3850_v55, %v7252_v18 }
 0x2e4   : > { %v3622_v20 = vpop.f32.mrf.mxu0  ;;  %v5653_v50 = vpop.f32.mrf.mxu1 }
 0x2e5   : > { %v5360_v21 = vpack.c.bf16 %v4165_v48, %v4164_v4  ;;  %v4163_v12 = vmax.f32 %v3851_v6, 0.0  ;;  %v7590_v38 = vadd.f32 %v3622_v20, %v7199_v54  ;;  %v3872_v63 = vadd.f32 %v5653_v50, %v7302_v10 }
 0x2e6   : > { %v3624_v24 = vpop.f32.mrf.mxu0  ;;  %v3863_v53 = vpop.f32.mrf.mxu1 }
 0x2e7   : > { %5548 = vst [vmem:[%s7551_s29 + $0x38] sm:$0xff] %v5360_v21   ;;  %v5355_v33 = vpack.c.bf16 %v4163_v12, %v4162_v16  ;;  %v3864_v30 = vadd.f32 %v3863_v53, %v7282_v61  ;;  %v4168_v59 = vmax.f32 %v3872_v63, 0.0 }
 0x2e8   : > { %v3625_v34 = vpop.f32.mrf.mxu0  ;;  %v5654_v9 = vpop.f32.mrf.mxu1 }
 0x2e9   : > { %5547 = vst [vmem:[%s7551_s29 + $0x30] sm:$0xff] %v5355_v33   ;;  %v7597_v18 = vadd.f32 %v3625_v34, %v7209_v36  ;;  %v3875_v26 = vadd.f32 %v5654_v9, %v7312_v7  ;;  %v4166_v3 = vmax.f32 %v3864_v30, 0.0 }
 0x2ea   : > { %v3627_v39 = vpop.f32.mrf.mxu0  ;;  %v3866_v54 = vpop.f32.mrf.mxu1 }
 0x2eb   : > { %v4169_v28 = vmax.f32 %v3875_v26, 0.0  ;;  %v3867_v42 = vadd.f32 %v3866_v54, %v7292_v44 }
 0x2ec   : > { %v3630_v31 = vpop.f32.mrf.mxu0  ;;  %v5657_v10 = vpop.f32.mrf.mxu1 }
 0x2ed   : > { %v5370_v46 = vpack.c.bf16 %v4169_v28, %v4168_v59  ;;  %v4167_v56 = vmax.f32 %v3867_v42, 0.0  ;;  %v7602_v61 = vadd.f32 %v3630_v31, %v7219_v43  ;;  %v3888_v7 = vadd.f32 %v5657_v10, %v7342_v40 }
 0x2ee   : > { %v3632_v8 = vpop.f32.mrf.mxu0  ;;  %v3879_v36 = vpop.f32.mrf.mxu1 }
 0x2ef   : > { %5550 = vst [vmem:[%s7551_s29 + $0x48] sm:$0xff] %v5370_v46   ;;  %v5365_v35 = vpack.c.bf16 %v4167_v56, %v4166_v3  ;;  %v3880_v44 = vadd.f32 %v3879_v36, %v7322_v22  ;;  %v4172_v6 = vmax.f32 %v3888_v7, 0.0 }
 0x2f0   : > { %v7606_v5 = vpop.f32.mrf.mxu0  ;;  %v5658_v45 = vpop.f32.mrf.mxu1 }
 0x2f1   : > { %5549 = vst [vmem:[%s7551_s29 + $0x40] sm:$0xff] %v5365_v35   ;;  %v3891_v55 = vadd.f32 %v5658_v45, %v7352_v41  ;;  %v4170_v21 = vmax.f32 %v3880_v44, 0.0 }
 0x2f2   : > { %v3635_v4 = vpop.f32.mrf.mxu0  ;;  %v3882_v48 = vpop.f32.mrf.mxu1 }
 0x2f3   : > { %v4173_v43 = vmax.f32 %v3891_v55, 0.0  ;;  %v3883_v20 = vadd.f32 %v3882_v48, %v7332_v1  ;;  %v7904_v55 = vld [vmem:[#allocation26_spill] sm:$0xff] }
 0x2f4   : > { %v3638_v50 = vpop.f32.mrf.mxu0  ;;  %v5661_v16 = vpop.f32.mrf.mxu1 }
 0x2f5   : > { %v5380_v40 = vpack.c.bf16 %v4173_v43, %v4172_v6  ;;  %v4171_v12 = vmax.f32 %v3883_v20, 0.0  ;;  %v7613_v24 = vadd.f32 %v3638_v50, %v7239_v57  ;;  %v3904_v41 = vadd.f32 %v5661_v16, %v7382_v23 }
 0x2f6   : > { %v3640_v53 = vpop.f32.mrf.mxu0  ;;  %v3895_v33 = vpop.f32.mrf.mxu1 }
 0x2f7   : > { %5552 = vst [vmem:[%s7551_s29 + $0x58] sm:$0xff] %v5380_v40   ;;  %v5375_v22 = vpack.c.bf16 %v4171_v12, %v4170_v21  ;;  %v3896_v1 = vadd.f32 %v3895_v33, %v7362_v25  ;;  %v4176_v39 = vmax.f32 %v3904_v41, 0.0  ;;  %v7905_v53 = vld [vmem:[#allocation8_spill] sm:$0xff] }
 0x2f8   : > { %v3641_v63 = vpop.f32.mrf.mxu0  ;;  %v5662_v34 = vpop.f32.mrf.mxu1 }
 0x2f9   : > { %5551 = vst [vmem:[%s7551_s29 + $0x50] sm:$0xff] %v5375_v22   ;;  %v7620_v9 = vadd.f32 %v3641_v63, %v7249_v17  ;;  %v3907_v30 = vadd.f32 %v5662_v34, %v7392_v37  ;;  %v4174_v42 = vmax.f32 %v3896_v1, 0.0  ;;  %v7906_v22 = vld [vmem:[#allocation31_spill] sm:$0xff] }
 0x2fa   : > { %v3643_v26 = vpop.f32.mrf.mxu0  ;;  %v3898_v57 = vpop.f32.mrf.mxu1 }
 0x2fb   : > { %v4177_v54 = vmax.f32 %v3907_v30, 0.0  ;;  %v3899_v59 = vadd.f32 %v3898_v57, %v7372_v62  ;;  %v7903_v62 = vld [vmem:[#allocation7_spill] sm:$0xff]  ;;  %v7907_v26 = vld [vmem:[#allocation9_spill] sm:$0xff] }
 0x2fc   : > { %v7624_v28 = vpop.f32.mrf.mxu0  ;;  %v5665_v23 = vpop.f32.mrf.mxu1 }
 0x2fd   : > { %v5390_v31 = vpack.c.bf16 %v4177_v54, %v4176_v39  ;;  %v4175_v10 = vmax.f32 %v3899_v59, 0.0  ;;  %v3920_v46 = vadd.f32 %v5665_v23, %v7422_v15 }
 0x2fe   : > { %v3648_v3 = vpop.f32.mrf.mxu0  ;;  %v3911_v25 = vpop.f32.mrf.mxu1 }
 0x2ff   : > { %5554 = vst [vmem:[%s7551_s29 + $0x68] sm:$0xff] %v5390_v31   ;;  %v5385_v17 = vpack.c.bf16 %v4175_v10, %v4174_v42  ;;  %v3912_v8 = vadd.f32 %v3911_v25, %v7402_v11  ;;  %v4180_v45 = vmax.f32 %v3920_v46, 0.0  ;;  %v7908_v3 = vld [vmem:[#allocation34_spill] sm:$0xff] }
 0x300   : > { %v7628_v37 = vpop.f32.mrf.mxu0  ;;  %v5666_v56 = vpop.f32.mrf.mxu1 }
 0x301   : > { %5553 = vst [vmem:[%s7551_s29 + $0x60] sm:$0xff] %v5385_v17   ;;  %v3923_v36 = vadd.f32 %v5666_v56, %v7903_v62  ;;  %v4178_v15 = vmax.f32 %v3912_v8, 0.0  ;;  %v7909_v56 = vld [vmem:[#allocation32_spill] sm:$0xff]  ;;  %v7910_v62 = vld [vmem:[#allocation35_spill] sm:$0xff] }
 0x302   : > { %v3651_v35 = vpop.f32.mrf.mxu0  ;;  %v3914_v7 = vpop.f32.mrf.mxu1 }
 0x303   : > { %v4181_v44 = vmax.f32 %v3923_v36, 0.0  ;;  %v3915_v4 = vadd.f32 %v3914_v7, %v7904_v55  ;;  %v7911_v55 = vld [vmem:[#allocation33_spill] sm:$0xff] }
 0x304   : > { %v7634_v48 = vpop.f32.mrf.mxu0  ;;  %v5669_v6 = vpop.f32.mrf.mxu1 }
 0x305   : > { %v5400_v43 = vpack.c.bf16 %v4181_v44, %v4180_v45  ;;  %v4179_v20 = vmax.f32 %v3915_v4, 0.0  ;;  %v3936_v11 = vadd.f32 %v5669_v6, %v7462_v47 }
 0x306   : > { %v3656_v50 = vpop.f32.mrf.mxu0  ;;  %v3927_v16 = vpop.f32.mrf.mxu1 }
 0x307   : > { %5556 = vst [vmem:[%s7551_s29 + $0x78] sm:$0xff] %v5400_v43   ;;  %v5395_v21 = vpack.c.bf16 %v4179_v20, %v4178_v15  ;;  %v3928_v33 = vadd.f32 %v3927_v16, %v7905_v53  ;;  %v4184_v1 = vmax.f32 %v3936_v11, 0.0 }
 0x308   : > { %v7638_v40 = vpop.f32.mrf.mxu0  ;;  %v5670_v12 = vpop.f32.mrf.mxu1 }
 0x309   : > { %5555 = vst [vmem:[%s7551_s29 + $0x70] sm:$0xff] %v5395_v21   ;;  %v3939_v41 = vadd.f32 %v5670_v12, %v7906_v22  ;;  %v4182_v47 = vmax.f32 %v3928_v33, 0.0 }
 0x30a   : > { %v3659_v63 = vpop.f32.mrf.mxu0  ;;  %v3930_v34 = vpop.f32.mrf.mxu1 }
 0x30b   : > { %v4185_v30 = vmax.f32 %v3939_v41, 0.0  ;;  %v3931_v57 = vadd.f32 %v3930_v34, %v7907_v26 }
 0x30c   : > { %v7644_v39 = vpop.f32.mrf.mxu0  ;;  %v5673_v54 = vpop.f32.mrf.mxu1 }
 0x30d   : > { %v5410_v59 = vpack.c.bf16 %v4185_v30, %v4184_v1  ;;  %v4183_v23 = vmax.f32 %v3931_v57, 0.0  ;;  %v3952_v25 = vadd.f32 %v5673_v54, %v7908_v3 }
 0x30e   : > { %v3664_v42 = vpop.f32.mrf.mxu0  ;;  %v3943_v31 = vpop.f32.mrf.mxu1 }
 0x30f   : > { %5558 = vst [vmem:[%s7551_s29 + $0x88] sm:$0xff] %v5410_v59   ;;  %v5405_v10 = vpack.c.bf16 %v4183_v23, %v4182_v47  ;;  %v3944_v8 = vadd.f32 %v3943_v31, %v7909_v56  ;;  %v4188_v45 = vmax.f32 %v3952_v25, 0.0 }
 0x310   : > { %v7648_v17 = vpop.f32.mrf.mxu0  ;;  %v5674_v46 = vpop.f32.mrf.mxu1 }
 0x311   : > { %5557 = vst [vmem:[%s7551_s29 + $0x80] sm:$0xff] %v5405_v10   ;;  %v3955_v36 = vadd.f32 %v5674_v46, %v7910_v62  ;;  %v4186_v43 = vmax.f32 %v3944_v8, 0.0 }
 0x312   : > { %v3667_v35 = vpop.f32.mrf.mxu0  ;;  %v3946_v7 = vpop.f32.mrf.mxu1 }
 0x313   : > { %v4189_v44 = vmax.f32 %v3955_v36, 0.0  ;;  %v3947_v4 = vadd.f32 %v3946_v7, %v7911_v55 }
 0x314   : > { %v7654_v6 = vpop.f32.mrf.mxu0  ;;  %v5677_v15 = vpop.f32.mrf.mxu1 }
 0x315   : > { %v5420_v20 = vpack.c.bf16 %v4189_v44, %v4188_v45  ;;  %v4187_v50 = vmax.f32 %v3947_v4, 0.0  ;;  %v3968_v12 = vadd.f32 %v5677_v15, %v7528_v51 }
 0x316   : > { %v3672_v16 = vpop.f32.mrf.mxu0  ;;  %v3959_v21 = vpop.f32.mrf.mxu1 }
 0x317   : > { %5560 = vst [vmem:[%s7551_s29 + $0x98] sm:$0xff] %v5420_v20   ;;  %v5415_v11 = vpack.c.bf16 %v4187_v50, %v4186_v43  ;;  %v3960_v22 = vadd.f32 %v3959_v21, %v7514_v27  ;;  %v4192_v1 = vmax.f32 %v3968_v12, 0.0 }
 0x318   : > { %v7658_v53 = vpop.f32.mrf.mxu0  ;;  %v5678_v33 = vpop.f32.mrf.mxu1 }
 0x319   : > { %5559 = vst [vmem:[%s7551_s29 + $0x90] sm:$0xff] %v5415_v11   ;;  %v3971_v41 = vadd.f32 %v5678_v33, %v7535_v60  ;;  %v4190_v51 = vmax.f32 %v3960_v22, 0.0 }
 0x31a   : > { %v3675_v63 = vpop.f32.mrf.mxu0  ;;  %v3962_v34 = vpop.f32.mrf.mxu1 }
 0x31b   : > { %v4193_v30 = vmax.f32 %v3971_v41, 0.0  ;;  %v3963_v26 = vadd.f32 %v3962_v34, %v7521_v58 }
 0x31c   : > { %v7664_v57 = vpop.f32.mrf.mxu0  ;;  %v5681_v54 = vpop.f32.mrf.mxu1 }
 0x31d   : > { %v5430_v47 = vpack.c.bf16 %v4193_v30, %v4192_v1  ;;  %v4191_v59 = vmax.f32 %v3963_v26, 0.0  ;;  %v3984_v27 = vadd.f32 %v5681_v54, %v7554_v19  ;;  %v7912_v1 = vld [vmem:[#allocation42_spill] sm:$0xff] }
 0x31e   : > { %v3680_v23 = vpop.f32.mrf.mxu0  ;;  %v3975_v42 = vpop.f32.mrf.mxu1 }
 0x31f   : > { %5562 = vst [vmem:[%s7551_s29 + $0xa8] sm:$0xff] %v5430_v47   ;;  %v5425_v31 = vpack.c.bf16 %v4191_v59, %v4190_v51  ;;  %v3976_v3 = vadd.f32 %v3975_v42, %v7538_v2  ;;  %v4196_v56 = vmax.f32 %v3984_v27, 0.0 }
 0x320   : > { %v7668_v60 = vpop.f32.mrf.mxu0  ;;  %v5682_v10 = vpop.f32.mrf.mxu1 }
 0x321   : > { %5561 = vst [vmem:[%s7551_s29 + $0xa0] sm:$0xff] %v5425_v31   ;;  %v3987_v58 = vadd.f32 %v5682_v10, %v7561_v32  ;;  %v4194_v19 = vmax.f32 %v3976_v3, 0.0  ;;  %v7913_v10 = vld [vmem:[#allocation43_spill] sm:$0xff] }
 0x322   : > { %v3683_v25 = vpop.f32.mrf.mxu0  ;;  %v3978_v46 = vpop.f32.mrf.mxu1 }
 0x323   : > { %v4197_v8 = vmax.f32 %v3987_v58, 0.0  ;;  %v3979_v62 = vadd.f32 %v3978_v46, %v7543_v29 }
 0x324   : > { %v7674_v36 = vpop.f32.mrf.mxu0  ;;  %v5685_v35 = vpop.f32.mrf.mxu1 }
 0x325   : > { %v5440_v7 = vpack.c.bf16 %v4197_v8, %v4196_v56  ;;  %v4195_v45 = vmax.f32 %v3979_v62, 0.0  ;;  %v4000_v2 = vadd.f32 %v5685_v35, %v7578_v49  ;;  %v7914_v56 = vld [vmem:[#allocation44_spill] sm:$0xff] }
 0x326   : > { %v3688_v44 = vpop.f32.mrf.mxu0  ;;  %v3991_v55 = vpop.f32.mrf.mxu1  ;;  %v3650_v8 = vadd.f32 %v7628_v37, %v7914_v56 }
 0x327   : > { %5564 = vst [vmem:[%s7551_s29 + $0xb8] sm:$0xff] %v5440_v7   ;;  %v5435_v4 = vpack.c.bf16 %v4195_v45, %v4194_v19  ;;  %v3992_v43 = vadd.f32 %v3991_v55, %v7566_v52  ;;  %v4200_v16 = vmax.f32 %v4000_v2, 0.0  ;;  %v3634_v52 = vadd.f32 %v7606_v5, %v7912_v1  ;;  %v7918_v1 = vld [vmem:[#allocation46_spill] sm:$0xff] }
 0x328   : > { %v7678_v32 = vpop.f32.mrf.mxu0  ;;  %v5686_v15 = vpop.f32.mrf.mxu1 }
 0x329   : > { %5563 = vst [vmem:[%s7551_s29 + $0xb0] sm:$0xff] %v5435_v4   ;;  %v4003_v29 = vadd.f32 %v5686_v15, %v7585_v14  ;;  %v4198_v49 = vmax.f32 %v3992_v43, 0.0  ;;  %v7915_v43 = vld [vmem:[#allocation47_spill] sm:$0xff] }
 0x32a   : > { %v3691_v20 = vpop.f32.mrf.mxu0  ;;  %v3994_v50 = vpop.f32.mrf.mxu1 }
 0x32b   : > { %v4201_v21 = vmax.f32 %v4003_v29, 0.0  ;;  %v3995_v11 = vadd.f32 %v3994_v50, %v7573_v0  ;;  %v3663_v29 = vadd.f32 %v7644_v39, %v7915_v43  ;;  %v3658_v39 = vadd.f32 %v7638_v40, %v7918_v1 }
 0x32c   : > { %v7684_v12 = vpop.f32.mrf.mxu0  ;;  %v5689_v33 = vpop.f32.mrf.mxu1 }
 0x32d   : > { %v5450_v22 = vpack.c.bf16 %v4201_v21, %v4200_v16  ;;  %v4199_v41 = vmax.f32 %v3995_v11, 0.0  ;;  %v4016_v30 = vadd.f32 %v5689_v33, %v7602_v61  ;;  %v3647_v61 = vadd.f32 %v7624_v28, %v7913_v10  ;;  %v7916_v11 = vld [vmem:[#allocation45_spill] sm:$0xff] }
 0x32e   : > { %v3696_v63 = vpop.f32.mrf.mxu0  ;;  %v4007_v34 = vpop.f32.mrf.mxu1  ;;  %v3655_v33 = vadd.f32 %v7634_v48, %v7916_v11 }
 0x32f   : > { %5566 = vst [vmem:[%s7551_s29 + $0xc8] sm:$0xff] %v5450_v22   ;;  %v5445_v14 = vpack.c.bf16 %v4199_v41, %v4198_v49  ;;  %v4008_v0 = vadd.f32 %v4007_v34, %v7590_v38  ;;  %v4204_v23 = vmax.f32 %v4016_v30, 0.0  ;;  %v7917_v49 = vld [vmem:[#allocation48_spill] sm:$0xff] }
 0x330   : > { %v7690_v26 = vpop.f32.mrf.mxu0  ;;  %v5690_v54 = vpop.f32.mrf.mxu1  ;;  %v3666_v22 = vadd.f32 %v7648_v17, %v7917_v49 }
 0x331   : > { %5565 = vst [vmem:[%s7551_s29 + $0xc0] sm:$0xff] %v5445_v14   ;;  %v4019_v51 = vadd.f32 %v5690_v54, %v3634_v52  ;;  %v4202_v3 = vmax.f32 %v4008_v0, 0.0 }
 0x332   : > { %v3699_v47 = vpop.f32.mrf.mxu0  ;;  %v4010_v59 = vpop.f32.mrf.mxu1 }
 0x333   : > { %v4205_v42 = vmax.f32 %v4019_v51, 0.0  ;;  %v4011_v31 = vadd.f32 %v4010_v59, %v7597_v18  ;;  %v7919_v59 = vld [vmem:[#allocation51_spill] sm:$0xff] }
 0x334   : > { %v7695_v5 = vpop.f32.mrf.mxu0  ;;  %v5693_v27 = vpop.f32.mrf.mxu1 }
 0x335   : > { %v5460_v58 = vpack.c.bf16 %v4205_v42, %v4204_v23  ;;  %v4203_v25 = vmax.f32 %v4011_v31, 0.0  ;;  %v4032_v35 = vadd.f32 %v5693_v27, %v3647_v61  ;;  %v3679_v23 = vadd.f32 %v7664_v57, %v7919_v59  ;;  %v7920_v61 = vld [vmem:[#allocation49_spill] sm:$0xff] }
 0x336   : > { %v3704_v46 = vpop.f32.mrf.mxu0  ;;  %v4023_v38 = vpop.f32.mrf.mxu1 }
 0x337   : > { %5568 = vst [vmem:[%s7551_s29 + $0xd8] sm:$0xff] %v5460_v58   ;;  %v5455_v62 = vpack.c.bf16 %v4203_v25, %v4202_v3  ;;  %v4024_v7 = vadd.f32 %v4023_v38, %v7613_v24  ;;  %v4208_v55 = vmax.f32 %v4032_v35, 0.0  ;;  %v3671_v3 = vadd.f32 %v7654_v6, %v7920_v61  ;;  %v7921_v58 = vld [vmem:[#allocation2_spill] sm:$0xff] }
 0x338   : > { %v7702_v19 = vpop.f32.mrf.mxu0  ;;  %v5694_v18 = vpop.f32.mrf.mxu1  ;;  %v3682_v25 = vadd.f32 %v7668_v60, %v7921_v58  ;;  %v7930_v58 = vld [vmem:[#allocation5_spill] sm:$0xff] }
 0x339   : > { %5567 = vst [vmem:[%s7551_s29 + $0xd0] sm:$0xff] %v5455_v62   ;;  %v4035_v45 = vadd.f32 %v5694_v18, %v3650_v8  ;;  %v4206_v20 = vmax.f32 %v4024_v7, 0.0  ;;  %v7922_v62 = vld [vmem:[#allocation50_spill] sm:$0xff] }
 0x33a   : > { %v3707_v28 = vpop.f32.mrf.mxu0  ;;  %v4026_v44 = vpop.f32.mrf.mxu1  ;;  %v3674_v57 = vadd.f32 %v7658_v53, %v7922_v62 }
 0x33b   : > { %v4209_v4 = vmax.f32 %v4035_v45, 0.0  ;;  %v4027_v2 = vadd.f32 %v4026_v44, %v7620_v9 }
 0x33c   : > { %v7707_v15 = vpop.f32.mrf.mxu0  ;;  %v5697_v37 = vpop.f32.mrf.mxu1 }
 0x33d   : > { %v5470_v50 = vpack.c.bf16 %v4209_v4, %v4208_v55  ;;  %v4207_v16 = vmax.f32 %v4027_v2, 0.0  ;;  %v4048_v41 = vadd.f32 %v5697_v37, %v3663_v29  ;;  %v7923_v4 = vld [vmem:[#allocation24_spill] sm:$0xff] }
 0x33e   : > { %v3712_v21 = vpop.f32.mrf.mxu0  ;;  %v4039_v24 = vpop.f32.mrf.mxu1  ;;  %v3695_v2 = vadd.f32 %v7684_v12, %v7923_v4 }
 0x33f   : > { %5570 = vst [vmem:[%s7551_s29 + $0xe8] sm:$0xff] %v5470_v50   ;;  %v5465_v9 = vpack.c.bf16 %v4207_v16, %v4206_v20  ;;  %v4040_v52 = vadd.f32 %v4039_v24, %v3655_v33  ;;  %v4212_v0 = vmax.f32 %v4048_v41, 0.0  ;;  %v7924_v50 = vld [vmem:[#allocation23_spill] sm:$0xff]  ;;  %v7925_v21 = vld [vmem:[#allocation4_spill] sm:$0xff] }
 0x340   : > { %v7716_v63 = vpop.f32.mrf.mxu0  ;;  %v5698_v34 = vpop.f32.mrf.mxu1  ;;  %v3687_v16 = vadd.f32 %v7674_v36, %v7924_v50  ;;  %v3698_v24 = vadd.f32 %v7690_v26, %v7925_v21  ;;  %v7934_v50 = vld [vmem:[#allocation29_spill] sm:$0xff] }
 0x341   : > { %5569 = vst [vmem:[%s7551_s29 + $0xe0] sm:$0xff] %v5465_v9   ;;  %v4051_v14 = vadd.f32 %v5698_v34, %v3666_v22  ;;  %v4210_v42 = vmax.f32 %v4040_v52, 0.0  ;;  %v7926_v9 = vld [vmem:[#allocation3_spill] sm:$0xff] }
 0x342   : > { %v3715_v30 = vpop.f32.mrf.mxu0  ;;  %v4042_v54 = vpop.f32.mrf.mxu1  ;;  %v3690_v41 = vadd.f32 %v7678_v32, %v7926_v9 }
 0x343   : > { %v4213_v48 = vmax.f32 %v4051_v14, 0.0  ;;  %v4043_v51 = vadd.f32 %v4042_v54, %v3658_v39  ;;  %v7927_v54 = vld [vmem:[#allocation6_spill] sm:$0xff] }
 0x344   : > { %v7721_v47 = vpop.f32.mrf.mxu0  ;;  %v5701_v17 = vpop.f32.mrf.mxu1 }
 0x345   : > { %v5480_v31 = vpack.c.bf16 %v4213_v48, %v4212_v0  ;;  %v4211_v27 = vmax.f32 %v4043_v51, 0.0  ;;  %v4064_v38 = vadd.f32 %v5701_v17, %v3679_v23  ;;  %v3711_v0 = vadd.f32 %v7707_v15, %v7927_v54  ;;  %v7928_v23 = vld [vmem:[#allocation25_spill] sm:$0xff] }
 0x346   : > { %v3720_v40 = vpop.f32.mrf.mxu0  ;;  %v4055_v10 = vpop.f32.mrf.mxu1 }
 0x347   : > { %5572 = vst [vmem:[%s7551_s29 + $0xf8] sm:$0xff] %v5480_v31   ;;  %v5475_v46 = vpack.c.bf16 %v4211_v27, %v4210_v42  ;;  %v4056_v35 = vadd.f32 %v4055_v10, %v3671_v3  ;;  %v4216_v28 = vmax.f32 %v4064_v38, 0.0  ;;  %v3703_v42 = vadd.f32 %v7695_v5, %v7928_v23  ;;  %v7929_v31 = vld [vmem:[#allocation27_spill] sm:$0xff] }
 0x348   : > { %v7730_v56 = vpop.f32.mrf.mxu0  ;;  %v5702_v8 = vpop.f32.mrf.mxu1  ;;  %v3714_v27 = vadd.f32 %v7716_v63, %v7929_v31 }
 0x349   : > { %5571 = vst [vmem:[%s7551_s29 + $0xf0] sm:$0xff] %v5475_v46   ;;  %v4067_v18 = vadd.f32 %v5702_v8, %v3682_v25  ;;  %v4214_v37 = vmax.f32 %v4056_v35, 0.0  ;;  %v3706_v25 = vadd.f32 %v7702_v19, %v7930_v58  ;;  %v7932_v19 = vld [vmem:[#allocation28_spill] sm:$0xff] }
 0x34a   : > { %v3723_v7 = vpop.f32.mrf.mxu0  ;;  %v4058_v45 = vpop.f32.mrf.mxu1  ;;  %v3719_v4 = vadd.f32 %v7721_v47, %v7932_v19 }
 0x34b   : > { %v4217_v6 = vmax.f32 %v4067_v18, 0.0  ;;  %v4059_v44 = vadd.f32 %v4058_v45, %v3674_v57  ;;  %v7931_v18 = vld [vmem:[#allocation30_spill] sm:$0xff] }
 0x34c   : > { %v3726_v55 = vpop.f32.mrf.mxu0  ;;  %v5705_v60 = vpop.f32.mrf.mxu1 }
 0x34d   : > { %v5490_v43 = vpack.c.bf16 %v4217_v6, %v4216_v28  ;;  %v4215_v29 = vmax.f32 %v4059_v44, 0.0  ;;  %v4080_v33 = vadd.f32 %v5705_v60, %v3695_v2  ;;  %v3727_v7 = vadd.f32 %v3726_v55, %v7931_v18  ;;  %v7933_v2 = vld [vmem:[#allocation10_spill] sm:$0xff] }
 0x34e   : > { %v3728_v20 = vpop.f32.mrf.mxu0  ;;  %v4071_v53 = vpop.f32.mrf.mxu1 }
 0x34f   : > { %5574 = vst [vmem:[%s7551_s29 + $0x108] sm:$0xff] %v5490_v43   ;;  %v5485_v11 = vpack.c.bf16 %v4215_v29, %v4214_v37  ;;  %v4072_v12 = vadd.f32 %v4071_v53, %v3687_v16  ;;  %v4220_v52 = vmax.f32 %v4080_v33, 0.0  ;;  %v3722_v16 = vadd.f32 %v7730_v56, %v7934_v50  ;;  %v7936_v56 = vld [vmem:[#allocation11_spill] sm:$0xff] }
 0x350   : > { %v3729_v49 = vpop.f32.mrf.mxu0  ;;  %v5706_v22 = vpop.f32.mrf.mxu1 }
 0x351   : > { %5573 = vst [vmem:[%s7551_s29 + $0x100] sm:$0xff] %v5485_v11   ;;  %v4083_v34 = vadd.f32 %v5706_v22, %v3698_v24  ;;  %v4218_v48 = vmax.f32 %v4072_v12, 0.0  ;;  %v3730_v37 = vadd.f32 %v3729_v49, %v7933_v2 }
 0x352   : > { %v3731_v1 = vpop.f32.mrf.mxu0  ;;  %v4074_v39 = vpop.f32.mrf.mxu1 }
 0x353   : > { %v4221_v14 = vmax.f32 %v4083_v34, 0.0  ;;  %v4075_v36 = vadd.f32 %v4074_v39, %v3690_v41  ;;  %v7935_v41 = vld [vmem:[#allocation13_spill] sm:$0xff] }
 0x354   : > { %v3734_v30 = vpop.f32.mrf.mxu0  ;;  %v5709_v26 = vpop.f32.mrf.mxu1 }
 0x355   : > { %v5500_v51 = vpack.c.bf16 %v4221_v14, %v4220_v52  ;;  %v4219_v17 = vmax.f32 %v4075_v36, 0.0  ;;  %v4096_v10 = vadd.f32 %v5709_v26, %v3711_v0  ;;  %v3735_v36 = vadd.f32 %v3734_v30, %v7936_v56  ;;  %v7937_v26 = vld [vmem:[#allocation14_spill] sm:$0xff] }
 0x356   : > { %v3736_v59 = vpop.f32.mrf.mxu0  ;;  %v4087_v32 = vpop.f32.mrf.mxu1 }
 0x357   : > { %5576 = vst [vmem:[%s7551_s29 + $0x118] sm:$0xff] %v5500_v51   ;;  %v5495_v40 = vpack.c.bf16 %v4219_v17, %v4218_v48  ;;  %v4088_v15 = vadd.f32 %v4087_v32, %v3703_v42  ;;  %v4224_v62 = vmax.f32 %v4096_v10, 0.0  ;;  %v7938_v59 = vld [vmem:[#allocation12_spill] sm:$0xff] }
 0x358   : > { %v3737_v61 = vpop.f32.mrf.mxu0  ;;  %v5710_v3 = vpop.f32.mrf.mxu1 }
 0x359   : > { %5575 = vst [vmem:[%s7551_s29 + $0x110] sm:$0xff] %v5495_v40   ;;  %v4099_v46 = vadd.f32 %v5710_v3, %v3714_v27  ;;  %v4222_v45 = vmax.f32 %v4088_v15, 0.0  ;;  %v3738_v32 = vadd.f32 %v3737_v61, %v7938_v59  ;;  %v7940_v61 = vld [vmem:[#allocation15_spill] sm:$0xff] }
 0x35a   : > { %v3739_v38 = vpop.f32.mrf.mxu0  ;;  %v4090_v8 = vpop.f32.mrf.mxu1 }
 0x35b   : > { %v4225_v57 = vmax.f32 %v4099_v46, 0.0  ;;  %v4091_v5 = vadd.f32 %v4090_v8, %v3706_v25  ;;  %v7939_v38 = vld [vmem:[#allocation36_spill] sm:$0xff] }
 0x35c   : > { %v3742_v35 = vpop.f32.mrf.mxu0  ;;  %v5713_v63 = vpop.f32.mrf.mxu1 }
 0x35d   : > { %v5510_v28 = vpack.c.bf16 %v4225_v57, %v4224_v62  ;;  %v4223_v6 = vmax.f32 %v4091_v5, 0.0  ;;  %v4112_v29 = vadd.f32 %v5713_v63, %v3727_v7  ;;  %v3743_v12 = vadd.f32 %v3742_v35, %v7935_v41  ;;  %v7941_v7 = vld [vmem:[#allocation16_spill] sm:$0xff] }
 0x35e   : > { %v3744_v44 = vpop.f32.mrf.mxu0  ;;  %v4103_v60 = vpop.f32.mrf.mxu1 }
 0x35f   : > { %5578 = vst [vmem:[%s7551_s29 + $0x128] sm:$0xff] %v5510_v28   ;;  %v5505_v43 = vpack.c.bf16 %v4223_v6, %v4222_v45  ;;  %v4104_v55 = vadd.f32 %v4103_v60, %v3719_v4  ;;  %v4228_v33 = vmax.f32 %v4112_v29, 0.0 }
 0x360   : > { %v3745_v20 = vpop.f32.mrf.mxu0  ;;  %v5714_v53 = vpop.f32.mrf.mxu1 }
 0x361   : > { %5577 = vst [vmem:[%s7551_s29 + $0x120] sm:$0xff] %v5505_v43   ;;  %v4115_v21 = vadd.f32 %v5714_v53, %v3730_v37  ;;  %v4226_v34 = vmax.f32 %v4104_v55, 0.0  ;;  %v3746_v54 = vadd.f32 %v3745_v20, %v7937_v26 }
 0x362   : > { %v3747_v24 = vpop.f32.mrf.mxu0  ;;  %v4106_v11 = vpop.f32.mrf.mxu1 }
 0x363   : > { %v4229_v22 = vmax.f32 %v4115_v21, 0.0  ;;  %v4107_v9 = vadd.f32 %v4106_v11, %v3722_v16 }
 0x364   : > { %v3750_v47 = vpop.f32.mrf.mxu0  ;;  %v5717_v49 = vpop.f32.mrf.mxu1 }
 0x365   : > { %v5520_v1 = vpack.c.bf16 %v4229_v22, %v4228_v33  ;;  %v4227_v39 = vmax.f32 %v4107_v9, 0.0  ;;  %v4128_v48 = vadd.f32 %v5717_v49, %v3743_v12  ;;  %v3751_v5 = vadd.f32 %v3750_v47, %v7940_v61 }
 0x366   : > { %v3752_v52 = vpop.f32.mrf.mxu0  ;;  %v4119_v14 = vpop.f32.mrf.mxu1 }
 0x367   : > { %5580 = vst [vmem:[%s7551_s29 + $0x138] sm:$0xff] %v5520_v1   ;;  %v5515_v0 = vpack.c.bf16 %v4227_v39, %v4226_v34  ;;  %v4120_v23 = vadd.f32 %v4119_v14, %v3735_v36  ;;  %v4232_v40 = vmax.f32 %v4128_v48, 0.0 }
 0x368   : > { %v3753_v51 = vpop.f32.mrf.mxu0  ;;  %v5718_v17 = vpop.f32.mrf.mxu1 }
 0x369   : > { %5579 = vst [vmem:[%s7551_s29 + $0x130] sm:$0xff] %v5515_v0   ;;  %v4131_v42 = vadd.f32 %v5718_v17, %v3746_v54  ;;  %v4230_v25 = vmax.f32 %v4120_v23, 0.0  ;;  %v3754_v45 = vadd.f32 %v3753_v51, %v7941_v7 }
 0x36a   : > { %v3755_v31 = vpop.f32.mrf.mxu0  ;;  %v4122_v27 = vpop.f32.mrf.mxu1 }
 0x36b   : > { %v4233_v10 = vmax.f32 %v4131_v42, 0.0  ;;  %v4123_v3 = vadd.f32 %v4122_v27, %v3738_v32 }
 0x36c   : > { %v3758_v30 = vpop.f32.mrf.mxu0  ;;  %v5721_v58 = vpop.f32.mrf.mxu1 }
 0x36d   : > { %v5530_v15 = vpack.c.bf16 %v4233_v10, %v4232_v40  ;;  %v4231_v46 = vmax.f32 %v4123_v3, 0.0  ;;  %v3759_v8 = vadd.f32 %v3758_v30, %v7939_v38 }
 0x36e   : > { %v3760_v62 = vpop.f32.mrf.mxu0  ;;  %v4135_v57 = vpop.f32.mrf.mxu1 }
 0x36f   : > { %5582 = vst [vmem:[%s7551_s29 + $0x148] sm:$0xff] %v5530_v15   ;;  %v5525_v35 = vpack.c.bf16 %v4231_v46, %v4230_v25  ;;  %v4144_v28 = vadd.f32 %v5721_v58, %v3759_v8  ;;  %v4136_v6 = vadd.f32 %v4135_v57, %v3751_v5 }
 0x370   : > { %v3761_v63 = vpop.f32.mrf.mxu0  ;;  %v5722_v18 = vpop.f32.mrf.mxu1 }
 0x371   : > { %5581 = vst [vmem:[%s7551_s29 + $0x140] sm:$0xff] %v5525_v35   ;;  %v3762_v44 = vadd.f32 %v3761_v63, %v7532_v13  ;;  %v4236_v37 = vmax.f32 %v4144_v28, 0.0  ;;  %v4234_v43 = vmax.f32 %v4136_v6, 0.0 }
 0x372   : > { %v3763_v60 = vpop.f32.mrf.mxu0  ;;  %v4138_v19 = vpop.f32.mrf.mxu1 }
 0x373   : > { %v4147_v4 = vadd.f32 %v5722_v18, %v3762_v44  ;;  %v4139_v2 = vadd.f32 %v4138_v19, %v3754_v45 }
 0x375   : > { %v4237_v29 = vmax.f32 %v4147_v4, 0.0  ;;  %v4235_v20 = vmax.f32 %v4139_v2, 0.0 }
 0x377   : > { %v5540_v53 = vpack.c.bf16 %v4237_v29, %v4236_v37  ;;  %v5535_v50 = vpack.c.bf16 %v4235_v20, %v4234_v43 }
 0x379   : > { %5584 = vst [vmem:[%s7551_s29 + $0x158] sm:$0xff] %v5540_v53   ;;  %5583 = vst [vmem:[%s7551_s29 + $0x150] sm:$0xff] %v5535_v50  }
 0x37a PF: > { %s13_s12 = sadd.s32 1, %s6262_s12  }
 0x37b   : > { %p10_p4 = scmp.ge.s32.totalorder %s13_s12, 6  }
 0x37d   :  { %12 = sbr.rel (!%p10_p4) target bundleno = 1 (0x1), region = 62 }

// kernel: dann_forward.5
= control target key start
LH: loop header
LB: loop body
LE: loop exit
PB: predicated region body
PF: predicated region fallthrough
CT: control target
= control target key end

     0   :  { %s6117_s24 = smov 0   ;;  %s6119_s25 = smov 0   ;;  %s6639_s0 = inlined_call_operand.vmem [shape: bf16[4,11008], index: 0, kind: input, shape index: {}]   ;;  %s6640_s1 = inlined_call_operand.vmem [shape: bf16[4,11008,128], index: 1, kind: input, shape index: {}]   ;;  %s6641_s2 = inlined_call_operand.vmem [shape: f32[4,1,128], index: 2, kind: input, shape index: {}]   ;;  %s6642_s3 = inlined_call_operand.vmem [shape: bf16[4,128,128], index: 3, kind: input, shape index: {}]   ;;  %s6643_s4 = inlined_call_operand.vmem [shape: f32[4,1,128], index: 4, kind: input, shape index: {}]   ;;  %s6644_s5 = inlined_call_operand.vmem [shape: bf16[4,128,128], index: 5, kind: input, shape index: {}]   ;;  %s6645_s6 = inlined_call_operand.vmem [shape: f32[4,1,128], index: 6, kind: input, shape index: {}]   ;;  %s6646_s7 = inlined_call_operand.vmem [shape: f32[4,4,128], index: 7, kind: output, shape index: {}]  }
   0x1   :  { %6648 = sst [smem:[#allocation6_spill]] %s6639_s0  ;;  %s6121_s26 = smov 0  }
   0x2   :  { %6649 = sst [smem:[#allocation7_spill]] %s6642_s3  ;;  %s6123_s27 = smov 0  }
   0x3   :  { %s6125_s28 = smov 0  }
   0x4 LB: > { %6650 = sst [smem:[#allocation3_spill]] %s6065_s27  ;;  %s26_s29 = sadd.s32 1, %s6061_s26  ;;  %s6069_s28 = sphi %s6125_s28, %s17_s28   ;;  %s6065_s27 = sphi %s6123_s27, %s6658_s27   ;;  %s6061_s26 = sphi %s6121_s26, %s6660_s26   ;;  %s6057_s25 = sphi %s6119_s25, %s6656_s25   ;;  %s6053_s24 = sphi %s6117_s24, %s6659_s24  }
   0x5   : > { %s29_s30 = sadd.s32 1, %s6065_s27  ;;  %p27_p0 = scmp.ge.s32.totalorder %s26_s29, 2 }
   0x6   : > { %p4683_p1 = scmp.ge.s32.totalorder %s6069_s28, 1  ;;  %p311_p2 = scmp.lt.s32.totalorder %s6069_s28, 9 }
   0x7   : > { %s6662_s29 = smov (%p27_p0, %s26_s29), 0  ;;  %s6664_s30 = smov (!%p27_p0, %s29_s30), %s6065_s27 }
   0x8   : > { %6651 = sst [smem:[#allocation4_spill]] %s6662_s29  ;;  %p312_p3 = pnand %p4683_p1, %p311_p2 }
   0x9   : > { %p31_p4 = scmp.ge.s32.totalorder %s6664_s30, 4  ;;  %s370_s8 = smul.u32 (!%p312_p3), 43, %s6053_s24 }
   0xa   : > { %315 = sbr.rel (%p312_p3) target bundleno = 1049 (0x419), region = 48  ;;  %p377_p5 = scmp.lt.s32.totalorder (!%p312_p3), %s6057_s25, 3 }
   0xb   : > { %s6666_s30 = smov (%p31_p4, %s6664_s30), 0  ;;  %s376_s9 = smul.u32 (!%p312_p3), 688, %s6053_s24 }
   0xc   : > { %6652 = sst [smem:[#allocation5_spill]] %s6666_s30  ;;  %p371_p6 = scmp.lt.s32.totalorder (!%p312_p3), %s370_s8, 85 }
   0xd   : > { %p379_p7 = scmp.lt.s32.totalorder (!%p312_p3), %s376_s9, 1375  ;;  %s6653_s0 = sld [smem:[#allocation6_spill]] (!%p312_p3) }
   0xe   : > { %s6654_s3 = sld [smem:[#allocation7_spill]] (!%p312_p3)  ;;  %p4691_p8 = scmp.ne.s32.totalorder (!%p312_p3), %s6053_s24, 0 }
   0xf   : > { %s6668_s25 = smov (!%p377_p5, %s6057_s25), 3  ;;  %s6670_s8 = smov (!%p371_p6, %s370_s8), 85 }
  0x10   : > { %s5609_s10 = smul.u32 1376, %s6668_s25  ;;  %s4684_s11 = sshll.u32 %s6670_s8, 1 }
  0x11   : > { %s5058_s18 = sshll.u32 %s6668_s25, 6  ;;  %s6672_s9 = smov (!%p379_p7, %s376_s9), 1375 }
  0x12   : > { %s396_s8 = scalar_lea.vmem %s6643_s4, %s6668_s25  ;;  %s382_s30 = sadd.s32 %s5609_s10, %s6672_s9 }
  0x13   : > { %s6161_s17 = scalar_lea.vmem %s6653_s0, %s4684_s11  ;;  %s6176_s13 = scalar_lea.vmem %s6644_s5, %s5058_s18 }
  0x14   : > { %s6167_s21 = scalar_lea.vmem %s6654_s3, %s5058_s18  ;;  %s4685_s15 = sshll.u32 %s382_s30, 2 }
  0x15   : > { %s404_s14 = scalar_lea.vmem %s6645_s6, %s6668_s25  ;;  %s6185_s19 = scalar_lea.vmem %s6640_s1, %s4685_s15 }
  0x16   : > { %s4690_s20 = sshll.u32 %s6668_s25, 2  ;;  %413 = sbr.rel (%p4691_p8) target bundleno = 29 (0x1d), region = 52 }
  0x17   : > { %s6191_s9 = scalar_lea.vmem %s6646_s7, %s4690_s20 }
  0x1b   : > { %v6071_v0 = vmov 0.0  }
  0x1c   : > { %414 = vst [vmem:[#allocation2] sm:$0xf] %v6071_v0 }
  0x1d PF: > { %v5656_v1 = vld [vmem:[%s6185_s19 + $0x78] sm:$0xff]   ;;  %v5660_v5 = vld [vmem:[%s6185_s19 + $0x70] sm:$0xff]   ;;  %v5664_v9 = vld [vmem:[%s6185_s19 + $0x68] sm:$0xff]   ;;  %v1130_v29 = vlaneseq  ;;  %v6072_v37 = vmov 1983009808   ;;  %vm6074_vm0 = vmmov 0  }
  0x1e   : > { %v5657_v2 = vld [vmem:[%s6185_s19 + $0xf8] sm:$0xff]   ;;  %5060 = vmatprep.subr.bf16.mxu0 %v5656_v1  ;;  %v5661_v6 = vld [vmem:[%s6185_s19 + $0xf0] sm:$0xff]   ;;  %v5665_v10 = vld [vmem:[%s6185_s19 + $0xe8] sm:$0xff]   ;;  %v1128_v38 = vunpack.c.l.s4 %v6072_v37  ;;  %p5036_p9 = scmp.ne.s32.totalorder %s6053_s24, 1 }
  0x1f   : > { %v5658_v3 = vld [vmem:[%s6185_s19 + $0x38] sm:$0xff]   ;;  %5082 = vmatprep.subr.bf16.mxu1 %v5657_v2  ;;  %v5662_v7 = vld [vmem:[%s6185_s19 + $0x30] sm:$0xff]   ;;  %v5666_v11 = vld [vmem:[%s6185_s19 + $0x28] sm:$0xff]   ;;  %v1131_v34 = vshrl.u32 %v1130_v29, 7  ;;  %s6655_s24 = scalar_lea.vmem (!%p5036_p9), %s6641_s2, %s6668_s25 }
  0x20   : > { %v5659_v4 = vld [vmem:[%s6185_s19 + $0xb8] sm:$0xff]   ;;  %5061 = vmatpush3.bf16.msra.mxu0 %v5658_v3  ;;  %v5663_v8 = vld [vmem:[%s6185_s19 + $0xb0] sm:$0xff]   ;;  %v5667_v12 = vld [vmem:[%s6185_s19 + $0xa8] sm:$0xff]   ;;  %v1129_v40 = vunpack.c.0.s8 %v1128_v38 }
  0x21   : > { %5083 = vmatpush3.bf16.msra.mxu1 %v5659_v4  ;;  %5062 = vmatprep.subr.bf16.mxu0 %v5660_v5  ;;  %v5668_v13 = vld [vmem:[%s6185_s19 + $0x60] sm:$0xff]   ;;  %v5672_v17 = vld [vmem:[%s6185_s19 + $0x58] sm:$0xff]   ;;  %v5676_v21 = vld [vmem:[%s6185_s19 + $0x50] sm:$0xff]  }
  0x22   : > { %5084 = vmatprep.subr.bf16.mxu1 %v5661_v6  ;;  %v5669_v14 = vld [vmem:[%s6185_s19 + $0xe0] sm:$0xff]   ;;  %v5673_v18 = vld [vmem:[%s6185_s19 + $0xd8] sm:$0xff]   ;;  %v5677_v22 = vld [vmem:[%s6185_s19 + $0xd0] sm:$0xff]   ;;  %v6229_v42 = vsub.s32 %v1129_v40, %v1131_v34 }
  0x23   : > { %v5670_v15 = vld [vmem:[%s6185_s19 + $0x20] sm:$0xff]   ;;  %v5674_v19 = vld [vmem:[%s6185_s19 + $0x18] sm:$0xff]   ;;  %v5678_v23 = vld [vmem:[%s6185_s19 + $0x10] sm:$0xff]  }
  0x24   : > { %5063 = vmatpush3.bf16.msra.mxu0 %v5662_v7  ;;  %v5671_v16 = vld [vmem:[%s6185_s19 + $0xa0] sm:$0xff]   ;;  %v5675_v20 = vld [vmem:[%s6185_s19 + $0x98] sm:$0xff]   ;;  %v5679_v24 = vld [vmem:[%s6185_s19 + $0x90] sm:$0xff]  }
  0x25   : > { %5085 = vmatpush3.bf16.msra.mxu1 %v5663_v8  ;;  %5064 = vmatprep.subr.bf16.mxu0 %v5664_v9  ;;  %v5680_v25 = vld [vmem:[%s6185_s19 + $0x48] sm:$0xff]   ;;  %v5684_v30 = vld [vmem:[%s6185_s19 + $0x40] sm:$0xff]   ;;  %v5689_v36 = vld [vmem:[%s6185_s19 + $0x178] sm:$0xff]  }
  0x26   : > { %5086 = vmatprep.subr.bf16.mxu1 %v5665_v10  ;;  %v5681_v26 = vld [vmem:[%s6185_s19 + $0xc8] sm:$0xff]   ;;  %v5685_v31 = vld [vmem:[%s6185_s19 + $0xc0] sm:$0xff]   ;;  %v5690_v39 = vld [vmem:[%s6185_s19 + $0x1f8] sm:$0xff]  }
  0x27   : > { %v5682_v27 = vld [vmem:[%s6185_s19 + $0x8] sm:$0xff]   ;;  %v5686_v32 = vld [vmem:[%s6185_s19] sm:$0xff]   ;;  %v5691_v45 = vld [vmem:[%s6185_s19 + $0x138] sm:$0xff]  }
  0x28   : > { %5065 = vmatpush3.bf16.msra.mxu0 %v5666_v11  ;;  %v5683_v28 = vld [vmem:[%s6185_s19 + $0x88] sm:$0xff]   ;;  %v5687_v33 = vld [vmem:[%s6185_s19 + $0x80] sm:$0xff]   ;;  %v5692_v46 = vld [vmem:[%s6185_s19 + $0x1b8] sm:$0xff]  }
  0x29   : > { %5087 = vmatpush3.bf16.msra.mxu1 %v5667_v12  ;;  %5066 = vmatprep.subr.bf16.mxu0 %v5668_v13  ;;  %v416_v35 = vld [vmem:[%s6161_s17] sm:$0xff]  ;;  %v5693_v49 = vld [vmem:[%s6185_s19 + $0x170] sm:$0xff]   ;;  %v5697_v53 = vld [vmem:[%s6185_s19 + $0x168] sm:$0xff]  }
  0x2a   : > { %5088 = vmatprep.subr.bf16.mxu1 %v5669_v14  ;;  %v1126_v41 = vcombine.high %v416_v35, %v416_v35  ;;  %v1133_v43 = vrot.slane %v416_v35, %v6229_v42  ;;  %v5694_v50 = vld [vmem:[%s6185_s19 + $0x1f0] sm:$0xff]   ;;  %v5698_v54 = vld [vmem:[%s6185_s19 + $0x1e8] sm:$0xff]   ;;  %v5701_v57 = vld [vmem:[%s6185_s19 + $0x160] sm:$0xff]  }
  0x2b   : > { %v5695_v51 = vld [vmem:[%s6185_s19 + $0x130] sm:$0xff]   ;;  %v5699_v55 = vld [vmem:[%s6185_s19 + $0x128] sm:$0xff]   ;;  %v5702_v58 = vld [vmem:[%s6185_s19 + $0x1e0] sm:$0xff]  }
  0x2c   : > { %5067 = vmatpush3.bf16.msra.mxu0 %v5670_v15  ;;  %v1140_v44 = vrot.slane %v1126_v41, %v6229_v42  ;;  %v1141_v47 = vcombine.high %v1133_v43, %v1133_v43  ;;  %v5696_v52 = vld [vmem:[%s6185_s19 + $0x1b0] sm:$0xff]   ;;  %v5700_v56 = vld [vmem:[%s6185_s19 + $0x1a8] sm:$0xff]   ;;  %v5703_v59 = vld [vmem:[%s6185_s19 + $0x120] sm:$0xff]  }
  0x2d   : > { %5089 = vmatpush3.bf16.msra.mxu1 %v5671_v16  ;;  %5068 = vmatprep.subr.bf16.mxu0 %v5672_v17  ;;  %v5704_v60 = vld [vmem:[%s6185_s19 + $0x1a0] sm:$0xff]   ;;  %v5705_v61 = vld [vmem:[%s6185_s19 + $0x158] sm:$0xff]   ;;  %v5709_v1 = vld [vmem:[%s6185_s19 + $0x150] sm:$0xff]  }
  0x2e   : > { %5090 = vmatprep.subr.bf16.mxu1 %v5673_v18  ;;  %v1142_v48 = vcombine.high %v1140_v44, %v1140_v44  ;;  %3451 = vmatprep.mubr.bf16.mxu0 %v1141_v47  ;;  %v5706_v62 = vld [vmem:[%s6185_s19 + $0x1d8] sm:$0xff]   ;;  %v5710_v2 = vld [vmem:[%s6185_s19 + $0x1d0] sm:$0xff]   ;;  %v5713_v5 = vld [vmem:[%s6185_s19 + $0x148] sm:$0xff]  }
  0x2f   : > { %v5707_v63 = vld [vmem:[%s6185_s19 + $0x118] sm:$0xff]   ;;  %v5711_v3 = vld [vmem:[%s6185_s19 + $0x110] sm:$0xff]   ;;  %v5714_v6 = vld [vmem:[%s6185_s19 + $0x1c8] sm:$0xff]  }
  0x30   : > { %5069 = vmatpush3.bf16.msra.mxu0 %v5674_v19  ;;  %3491 = vmatprep.mubr.bf16.mxu1 %v1142_v48  ;;  %v5708_v0 = vld [vmem:[%s6185_s19 + $0x198] sm:$0xff]   ;;  %v5712_v4 = vld [vmem:[%s6185_s19 + $0x190] sm:$0xff]   ;;  %v5715_v7 = vld [vmem:[%s6185_s19 + $0x108] sm:$0xff]  }
  0x31   : > { %5091 = vmatpush3.bf16.msra.mxu1 %v5675_v20  ;;  %5070 = vmatprep.subr.bf16.mxu0 %v5676_v21  ;;  %v5716_v8 = vld [vmem:[%s6185_s19 + $0x188] sm:$0xff]   ;;  %v5717_v10 = vld [vmem:[%s6185_s19 + $0x140] sm:$0xff]   ;;  %v5722_v19 = vld [vmem:[%s6185_s19 + $0x278] sm:$0xff]  }
  0x32   : > { %5092 = vmatprep.subr.bf16.mxu1 %v5677_v22  ;;  %v417_v9 = vld [vmem:[%s6161_s17 + $0x8] sm:$0xff]  ;;  %v5718_v13 = vld [vmem:[%s6185_s19 + $0x1c0] sm:$0xff]   ;;  %v5723_v20 = vld [vmem:[%s6185_s19 + $0x2f8] sm:$0xff]  }
  0x33   : > { %v1150_v11 = vrot.slane %v417_v9, %v6229_v42  ;;  %v1143_v12 = vcombine.high %v417_v9, %v417_v9  ;;  %v5719_v14 = vld [vmem:[%s6185_s19 + $0x100] sm:$0xff]   ;;  %v5724_v21 = vld [vmem:[%s6185_s19 + $0x238] sm:$0xff]   ;;  %v5732_v29 = vld [vmem:[%s6185_s19 + $0x228] sm:$0xff]  }
  0x34   : > { %5071 = vmatpush3.bf16.msra.mxu0 %v5678_v23  ;;  %v5720_v17 = vld [vmem:[%s6185_s19 + $0x180] sm:$0xff]   ;;  %v5725_v22 = vld [vmem:[%s6185_s19 + $0x2b8] sm:$0xff]   ;;  %v5726_v23 = vld [vmem:[%s6185_s19 + $0x270] sm:$0xff]  }
  0x35   : > { %5093 = vmatpush3.bf16.msra.mxu1 %v5679_v24  ;;  %5072 = vmatprep.subr.bf16.mxu0 %v5680_v25  ;;  %v1158_v15 = vcombine.high %v1150_v11, %v1150_v11  ;;  %v1157_v16 = vrot.slane %v1143_v12, %v6229_v42  ;;  %v5727_v24 = vld [vmem:[%s6185_s19 + $0x2f0] sm:$0xff]   ;;  %v5737_v34 = vld [vmem:[%s6185_s19 + $0x2a0] sm:$0xff]   ;;  %v5738_v35 = vld [vmem:[%s6185_s19 + $0x258] sm:$0xff]  }
  0x36   : > { %5094 = vmatprep.subr.bf16.mxu1 %v5681_v26  ;;  %v5728_v25 = vld [vmem:[%s6185_s19 + $0x230] sm:$0xff]   ;;  %v5740_v37 = vld [vmem:[%s6185_s19 + $0x218] sm:$0xff]   ;;  %v5749_v47 = vld [vmem:[%s6185_s19 + $0x288] sm:$0xff]  }
  0x37   : > { %v1159_v18 = vcombine.high %v1157_v16, %v1157_v16  ;;  %v5729_v26 = vld [vmem:[%s6185_s19 + $0x2b0] sm:$0xff]   ;;  %v5741_v38 = vld [vmem:[%s6185_s19 + $0x298] sm:$0xff]   ;;  %v5770_v9 = vld [vmem:[%s6185_s19 + $0x3a0] sm:$0xff]  }
  0x38   : > { %5073 = vmatpush3.bf16.msra.mxu0 %v5682_v27  ;;  %v5730_v27 = vld [vmem:[%s6185_s19 + $0x268] sm:$0xff]   ;;  %v5743_v40 = vld [vmem:[%s6185_s19 + $0x2d0] sm:$0xff]   ;;  %v5773_v12 = vld [vmem:[%s6185_s19 + $0x318] sm:$0xff]  }
  0x39   : > { %5095 = vmatpush3.bf16.msra.mxu1 %v5683_v28  ;;  %5074 = vmatprep.subr.bf16.mxu0 %v5684_v30  ;;  %v5731_v28 = vld [vmem:[%s6185_s19 + $0x2e8] sm:$0xff]   ;;  %v5744_v41 = vld [vmem:[%s6185_s19 + $0x210] sm:$0xff]  }
  0x3a   : > { %5096 = vmatprep.subr.bf16.mxu1 %v5685_v31  ;;  %v5733_v30 = vld [vmem:[%s6185_s19 + $0x2a8] sm:$0xff]   ;;  %v5734_v31 = vld [vmem:[%s6185_s19 + $0x260] sm:$0xff]   ;;  %v418_v48 = vld [vmem:[%s6161_s17 + $0x10] sm:$0xff] }
  0x3c   : > { %5075 = vmatpush3.bf16.msra.mxu0 %v5686_v32  ;;  %v5735_v32 = vld [vmem:[%s6185_s19 + $0x2e0] sm:$0xff]  }
  0x3d   : > { %5097 = vmatpush3.bf16.msra.mxu1 %v5687_v33  ;;  %5104 = vmatprep.subr.bf16.mxu0 %v5689_v36  ;;  %v5736_v33 = vld [vmem:[%s6185_s19 + $0x220] sm:$0xff]   ;;  %v5739_v36 = vld [vmem:[%s6185_s19 + $0x2d8] sm:$0xff]  }
  0x3e   : > { %5126 = vmatprep.subr.bf16.mxu1 %v5690_v39  ;;  %v5742_v39 = vld [vmem:[%s6185_s19 + $0x250] sm:$0xff]  }
  0x3f   : > { %3452 = vmatmul.mubr.bf16.vlgmr.msra.gmra.mxu0 %v1133_v43  ;;  %v5745_v43 = vld [vmem:[%s6185_s19 + $0x290] sm:$0xff]  }
  0x40   : > { %3492 = vmatmul.mubr.bf16.vlgmr.msra.gmra.mxu1 %v1140_v44  ;;  %5105 = vmatpush3.bf16.msra.mxu0 %v5691_v45  ;;  %v5746_v44 = vld [vmem:[%s6185_s19 + $0x248] sm:$0xff]  }
  0x41   : > { %5127 = vmatpush3.bf16.msra.mxu1 %v5692_v46  ;;  %5106 = vmatprep.subr.bf16.mxu0 %v5693_v49  ;;  %v5747_v45 = vld [vmem:[%s6185_s19 + $0x2c8] sm:$0xff]   ;;  %v5750_v49 = vld [vmem:[%s6185_s19 + $0x240] sm:$0xff]  }
  0x42   : > { %5128 = vmatprep.subr.bf16.mxu1 %v5694_v50  ;;  %3531 = vmatprep.mubr.bf16.mxu0 %v1158_v15  ;;  %v5748_v46 = vld [vmem:[%s6185_s19 + $0x208] sm:$0xff]   ;;  %v1167_v50 = vrot.slane %v418_v48, %v6229_v42  ;;  %v5776_v15 = vld [vmem:[%s6185_s19 + $0x3d0] sm:$0xff]  }
  0x43   : > { %3571 = vmatprep.mubr.bf16.mxu1 %v1159_v18  ;;  %v5779_v18 = vld [vmem:[%s6185_s19 + $0x348] sm:$0xff]  }
  0x44   : > { %5107 = vmatpush3.bf16.msra.mxu0 %v5695_v51  ;;  %v1160_v51 = vcombine.high %v418_v48, %v418_v48  ;;  %v5803_v48 = vld [vmem:[%s6185_s19 + $0x4a0] sm:$0xff]  }
  0x45   : > { %5129 = vmatpush3.bf16.msra.mxu1 %v5696_v52  ;;  %5108 = vmatprep.subr.bf16.mxu0 %v5697_v53  ;;  %v5751_v52 = vld [vmem:[%s6185_s19 + $0x2c0] sm:$0xff]  }
  0x46   : > { %5130 = vmatprep.subr.bf16.mxu1 %v5698_v54  ;;  %v5752_v53 = vld [vmem:[%s6185_s19 + $0x200] sm:$0xff]   ;;  %v1175_v54 = vcombine.high %v1167_v50, %v1167_v50 }
  0x48   : > { %5109 = vmatpush3.bf16.msra.mxu0 %v5699_v55  ;;  %v1174_v55 = vrot.slane %v1160_v51, %v6229_v42  ;;  %v5806_v51 = vld [vmem:[%s6185_s19 + $0x418] sm:$0xff]  }
  0x49   : > { %5131 = vmatpush3.bf16.msra.mxu1 %v5700_v56  ;;  %5110 = vmatprep.subr.bf16.mxu0 %v5701_v57  ;;  %v5753_v56 = vld [vmem:[%s6185_s19 + $0x280] sm:$0xff]  }
  0x4a   : > { %5132 = vmatprep.subr.bf16.mxu1 %v5702_v58  ;;  %v1176_v57 = vcombine.high %v1174_v55, %v1174_v55  ;;  %v5755_v58 = vld [vmem:[%s6185_s19 + $0x378] sm:$0xff]  }
  0x4c   : > { %5111 = vmatpush3.bf16.msra.mxu0 %v5703_v59  ;;  %v5756_v59 = vld [vmem:[%s6185_s19 + $0x3f8] sm:$0xff]  }
  0x4d   : > { %5133 = vmatpush3.bf16.msra.mxu1 %v5704_v60  ;;  %5112 = vmatprep.subr.bf16.mxu0 %v5705_v61  ;;  %v5757_v60 = vld [vmem:[%s6185_s19 + $0x338] sm:$0xff]  }
  0x4e   : > { %5134 = vmatprep.subr.bf16.mxu1 %v5706_v62  ;;  %v5758_v61 = vld [vmem:[%s6185_s19 + $0x3b8] sm:$0xff]   ;;  %v5759_v62 = vld [vmem:[%s6185_s19 + $0x370] sm:$0xff]  }
  0x50   : > { %5113 = vmatpush3.bf16.msra.mxu0 %v5707_v63  ;;  %v5760_v63 = vld [vmem:[%s6185_s19 + $0x3f0] sm:$0xff]  }
  0x51   : > { %5135 = vmatpush3.bf16.msra.mxu1 %v5708_v0  ;;  %5114 = vmatprep.subr.bf16.mxu0 %v5709_v1  ;;  %v5761_v0 = vld [vmem:[%s6185_s19 + $0x330] sm:$0xff]  }
  0x52   : > { %5136 = vmatprep.subr.bf16.mxu1 %v5710_v2  ;;  %v5762_v1 = vld [vmem:[%s6185_s19 + $0x3b0] sm:$0xff]   ;;  %v5763_v2 = vld [vmem:[%s6185_s19 + $0x368] sm:$0xff]  }
  0x54   : > { %5115 = vmatpush3.bf16.msra.mxu0 %v5711_v3  ;;  %v5764_v3 = vld [vmem:[%s6185_s19 + $0x3e8] sm:$0xff]  }
  0x55   : > { %5137 = vmatpush3.bf16.msra.mxu1 %v5712_v4  ;;  %5116 = vmatprep.subr.bf16.mxu0 %v5713_v5  ;;  %v5765_v4 = vld [vmem:[%s6185_s19 + $0x328] sm:$0xff]  }
  0x56   : > { %5138 = vmatprep.subr.bf16.mxu1 %v5714_v6  ;;  %v5766_v5 = vld [vmem:[%s6185_s19 + $0x3a8] sm:$0xff]   ;;  %v5767_v6 = vld [vmem:[%s6185_s19 + $0x360] sm:$0xff]  }
  0x58   : > { %5117 = vmatpush3.bf16.msra.mxu0 %v5715_v7  ;;  %v5768_v7 = vld [vmem:[%s6185_s19 + $0x3e0] sm:$0xff]  }
  0x59   : > { %5139 = vmatpush3.bf16.msra.mxu1 %v5716_v8  ;;  %5118 = vmatprep.subr.bf16.mxu0 %v5717_v10  ;;  %v5769_v8 = vld [vmem:[%s6185_s19 + $0x320] sm:$0xff]   ;;  %v5771_v10 = vld [vmem:[%s6185_s19 + $0x358] sm:$0xff]  }
  0x5a   : > { %5140 = vmatprep.subr.bf16.mxu1 %v5718_v13  ;;  %v5774_v13 = vld [vmem:[%s6185_s19 + $0x398] sm:$0xff]  }
  0x5c   : > { %5119 = vmatpush3.bf16.msra.mxu0 %v5719_v14  ;;  %v5775_v14 = vld [vmem:[%s6185_s19 + $0x350] sm:$0xff]  }
  0x5d   : > { %5141 = vmatpush3.bf16.msra.mxu1 %v5720_v17  ;;  %5148 = vmatprep.subr.bf16.mxu0 %v5722_v19  ;;  %v5778_v17 = vld [vmem:[%s6185_s19 + $0x390] sm:$0xff]   ;;  %v5780_v19 = vld [vmem:[%s6185_s19 + $0x3c8] sm:$0xff]  }
  0x5e   : > { %5170 = vmatprep.subr.bf16.mxu1 %v5723_v20  ;;  %v5781_v20 = vld [vmem:[%s6185_s19 + $0x308] sm:$0xff]  }
  0x5f   : > { %3532 = vmatmul.mubr.bf16.vlgmr.msra.gmra.mxu0 %v1150_v11  ;;  %v5772_v11 = vld [vmem:[%s6185_s19 + $0x3d8] sm:$0xff]  }
  0x60   : > { %3572 = vmatmul.mubr.bf16.vlgmr.msra.gmra.mxu1 %v1157_v16  ;;  %5149 = vmatpush3.bf16.msra.mxu0 %v5724_v21  ;;  %v5777_v16 = vld [vmem:[%s6185_s19 + $0x310] sm:$0xff]   ;;  %v5782_v21 = vld [vmem:[%s6185_s19 + $0x388] sm:$0xff]  }
  0x61   : > { %5171 = vmatpush3.bf16.msra.mxu1 %v5725_v22  ;;  %5150 = vmatprep.subr.bf16.mxu0 %v5726_v23  ;;  %v5783_v22 = vld [vmem:[%s6185_s19 + $0x340] sm:$0xff]   ;;  %v419_v23 = vld [vmem:[%s6161_s17 + $0x18] sm:$0xff] }
  0x62   : > { %5172 = vmatprep.subr.bf16.mxu1 %v5727_v24  ;;  %3611 = vmatprep.mubr.bf16.mxu0 %v1175_v54  ;;  %v5784_v24 = vld [vmem:[%s6185_s19 + $0x3c0] sm:$0xff]   ;;  %v5809_v54 = vld [vmem:[%s6185_s19 + $0x4d0] sm:$0xff]  }
  0x63   : > { %3651 = vmatprep.mubr.bf16.mxu1 %v1176_v57  ;;  %v5812_v57 = vld [vmem:[%s6185_s19 + $0x448] sm:$0xff]  }
  0x64   : > { %5151 = vmatpush3.bf16.msra.mxu0 %v5728_v25  ;;  %v1184_v25 = vrot.slane %v419_v23, %v6229_v42 }
  0x65   : > { %5173 = vmatpush3.bf16.msra.mxu1 %v5729_v26  ;;  %5152 = vmatprep.subr.bf16.mxu0 %v5730_v27  ;;  %v1177_v26 = vcombine.high %v419_v23, %v419_v23  ;;  %v5785_v27 = vld [vmem:[%s6185_s19 + $0x300] sm:$0xff]   ;;  %v5837_v23 = vld [vmem:[%s6185_s19 + $0x558] sm:$0xff]  }
  0x66   : > { %5174 = vmatprep.subr.bf16.mxu1 %v5731_v28  ;;  %v5786_v28 = vld [vmem:[%s6185_s19 + $0x380] sm:$0xff]  }
  0x68   : > { %5153 = vmatpush3.bf16.msra.mxu0 %v5732_v29  ;;  %v1192_v29 = vcombine.high %v1184_v25, %v1184_v25 }
  0x69   : > { %5175 = vmatpush3.bf16.msra.mxu1 %v5733_v30  ;;  %5154 = vmatprep.subr.bf16.mxu0 %v5734_v31  ;;  %v1191_v30 = vrot.slane %v1177_v26, %v6229_v42  ;;  %v5788_v31 = vld [vmem:[%s6185_s19 + $0x478] sm:$0xff]  }
  0x6a   : > { %5176 = vmatprep.subr.bf16.mxu1 %v5735_v32  ;;  %v5840_v26 = vld [vmem:[%s6185_s19 + $0x598] sm:$0xff]  }
  0x6b   : > { %v1193_v32 = vcombine.high %v1191_v30, %v1191_v30 }
  0x6c   : > { %5155 = vmatpush3.bf16.msra.mxu0 %v5736_v33  ;;  %v5789_v33 = vld [vmem:[%s6185_s19 + $0x4f8] sm:$0xff]  }
  0x6d   : > { %5177 = vmatpush3.bf16.msra.mxu1 %v5737_v34  ;;  %5156 = vmatprep.subr.bf16.mxu0 %v5738_v35  ;;  %v5790_v34 = vld [vmem:[%s6185_s19 + $0x438] sm:$0xff]  }
  0x6e   : > { %5178 = vmatprep.subr.bf16.mxu1 %v5739_v36  ;;  %v5791_v35 = vld [vmem:[%s6185_s19 + $0x4b8] sm:$0xff]   ;;  %v5792_v36 = vld [vmem:[%s6185_s19 + $0x470] sm:$0xff]  }
  0x70   : > { %5157 = vmatpush3.bf16.msra.mxu0 %v5740_v37  ;;  %v5793_v37 = vld [vmem:[%s6185_s19 + $0x4f0] sm:$0xff]  }
  0x71   : > { %5179 = vmatpush3.bf16.msra.mxu1 %v5741_v38  ;;  %5158 = vmatprep.subr.bf16.mxu0 %v5742_v39  ;;  %v5794_v38 = vld [vmem:[%s6185_s19 + $0x430] sm:$0xff]  }
  0x72   : > { %5180 = vmatprep.subr.bf16.mxu1 %v5743_v40  ;;  %v5795_v39 = vld [vmem:[%s6185_s19 + $0x4b0] sm:$0xff]   ;;  %v5796_v40 = vld [vmem:[%s6185_s19 + $0x468] sm:$0xff]  }
  0x74   : > { %5159 = vmatpush3.bf16.msra.mxu0 %v5744_v41  ;;  %v5797_v41 = vld [vmem:[%s6185_s19 + $0x4e8] sm:$0xff]  }
  0x75   : > { %5181 = vmatpush3.bf16.msra.mxu1 %v5745_v43  ;;  %5160 = vmatprep.subr.bf16.mxu0 %v5746_v44  ;;  %v5798_v43 = vld [vmem:[%s6185_s19 + $0x428] sm:$0xff]  }
  0x76   : > { %5182 = vmatprep.subr.bf16.mxu1 %v5747_v45  ;;  %v5799_v44 = vld [vmem:[%s6185_s19 + $0x4a8] sm:$0xff]   ;;  %v5800_v45 = vld [vmem:[%s6185_s19 + $0x460] sm:$0xff]  }
  0x78   : > { %5161 = vmatpush3.bf16.msra.mxu0 %v5748_v46  ;;  %v5801_v46 = vld [vmem:[%s6185_s19 + $0x4e0] sm:$0xff]  }
  0x79   : > { %5183 = vmatpush3.bf16.msra.mxu1 %v5749_v47  ;;  %5162 = vmatprep.subr.bf16.mxu0 %v5750_v49  ;;  %v5802_v47 = vld [vmem:[%s6185_s19 + $0x420] sm:$0xff]   ;;  %v5804_v49 = vld [vmem:[%s6185_s19 + $0x458] sm:$0xff]  }
  0x7a   : > { %5184 = vmatprep.subr.bf16.mxu1 %v5751_v52  ;;  %v5807_v52 = vld [vmem:[%s6185_s19 + $0x498] sm:$0xff]  }
  0x7c   : > { %5163 = vmatpush3.bf16.msra.mxu0 %v5752_v53  ;;  %v5808_v53 = vld [vmem:[%s6185_s19 + $0x450] sm:$0xff]  }
  0x7d   : > { %5185 = vmatpush3.bf16.msra.mxu1 %v5753_v56  ;;  %5192 = vmatprep.subr.bf16.mxu0 %v5755_v58  ;;  %v5811_v56 = vld [vmem:[%s6185_s19 + $0x490] sm:$0xff]   ;;  %v5813_v58 = vld [vmem:[%s6185_s19 + $0x4c8] sm:$0xff]  }
  0x7e   : > { %5214 = vmatprep.subr.bf16.mxu1 %v5756_v59  ;;  %v5814_v59 = vld [vmem:[%s6185_s19 + $0x408] sm:$0xff]  }
  0x7f   : > { %3612 = vmatmul.mubr.bf16.vlgmr.msra.gmra.mxu0 %v1167_v50  ;;  %v5805_v50 = vld [vmem:[%s6185_s19 + $0x4d8] sm:$0xff]  }
  0x80   : > { %3652 = vmatmul.mubr.bf16.vlgmr.msra.gmra.mxu1 %v1174_v55  ;;  %5193 = vmatpush3.bf16.msra.mxu0 %v5757_v60  ;;  %v5810_v55 = vld [vmem:[%s6185_s19 + $0x410] sm:$0xff]   ;;  %v5815_v60 = vld [vmem:[%s6185_s19 + $0x488] sm:$0xff]  }
  0x81   : > { %5215 = vmatpush3.bf16.msra.mxu1 %v5758_v61  ;;  %5194 = vmatprep.subr.bf16.mxu0 %v5759_v62  ;;  %v5816_v61 = vld [vmem:[%s6185_s19 + $0x440] sm:$0xff]  }
  0x82   : > { %5216 = vmatprep.subr.bf16.mxu1 %v5760_v63  ;;  %3691 = vmatprep.mubr.bf16.mxu0 %v1192_v29  ;;  %v420_v62 = vld [vmem:[%s6161_s17 + $0x20] sm:$0xff]  ;;  %v5843_v29 = vld [vmem:[%s6185_s19 + $0x510] sm:$0xff]  }
  0x83   : > { %3731 = vmatprep.mubr.bf16.mxu1 %v1193_v32  ;;  %v5817_v63 = vld [vmem:[%s6185_s19 + $0x4c0] sm:$0xff]   ;;  %v5846_v32 = vld [vmem:[%s6185_s19 + $0x5c8] sm:$0xff]  }
  0x84   : > { %5195 = vmatpush3.bf16.msra.mxu0 %v5761_v0  ;;  %v1201_v0 = vrot.slane %v420_v62, %v6229_v42 }
  0x85   : > { %5217 = vmatpush3.bf16.msra.mxu1 %v5762_v1  ;;  %5196 = vmatprep.subr.bf16.mxu0 %v5763_v2  ;;  %v1194_v1 = vcombine.high %v420_v62, %v420_v62  ;;  %v5818_v2 = vld [vmem:[%s6185_s19 + $0x400] sm:$0xff]   ;;  %v5870_v62 = vld [vmem:[%s6185_s19 + $0x658] sm:$0xff]  }
  0x86   : > { %5218 = vmatprep.subr.bf16.mxu1 %v5764_v3  ;;  %v5819_v3 = vld [vmem:[%s6185_s19 + $0x480] sm:$0xff]  }
  0x88   : > { %5197 = vmatpush3.bf16.msra.mxu0 %v5765_v4  ;;  %v1209_v4 = vcombine.high %v1201_v0, %v1201_v0 }
  0x89   : > { %5219 = vmatpush3.bf16.msra.mxu1 %v5766_v5  ;;  %5198 = vmatprep.subr.bf16.mxu0 %v5767_v6  ;;  %v1208_v5 = vrot.slane %v1194_v1, %v6229_v42  ;;  %v5821_v6 = vld [vmem:[%s6185_s19 + $0x578] sm:$0xff]  }
  0x8a   : > { %5220 = vmatprep.subr.bf16.mxu1 %v5768_v7  ;;  %v5873_v1 = vld [vmem:[%s6185_s19 + $0x698] sm:$0xff]  }
  0x8b   : > { %v1210_v7 = vcombine.high %v1208_v5, %v1208_v5 }
  0x8c   : > { %5199 = vmatpush3.bf16.msra.mxu0 %v5769_v8  ;;  %v5822_v8 = vld [vmem:[%s6185_s19 + $0x5f8] sm:$0xff]  }
  0x8d   : > { %5221 = vmatpush3.bf16.msra.mxu1 %v5770_v9  ;;  %5200 = vmatprep.subr.bf16.mxu0 %v5771_v10  ;;  %v5823_v9 = vld [vmem:[%s6185_s19 + $0x538] sm:$0xff]  }
  0x8e   : > { %5222 = vmatprep.subr.bf16.mxu1 %v5772_v11  ;;  %v5824_v10 = vld [vmem:[%s6185_s19 + $0x5b8] sm:$0xff]   ;;  %v5825_v11 = vld [vmem:[%s6185_s19 + $0x570] sm:$0xff]  }
  0x90   : > { %5201 = vmatpush3.bf16.msra.mxu0 %v5773_v12  ;;  %v5826_v12 = vld [vmem:[%s6185_s19 + $0x5f0] sm:$0xff]  }
  0x91   : > { %5223 = vmatpush3.bf16.msra.mxu1 %v5774_v13  ;;  %5202 = vmatprep.subr.bf16.mxu0 %v5775_v14  ;;  %v5827_v13 = vld [vmem:[%s6185_s19 + $0x530] sm:$0xff]  }
  0x92   : > { %5224 = vmatprep.subr.bf16.mxu1 %v5776_v15  ;;  %v5828_v14 = vld [vmem:[%s6185_s19 + $0x5b0] sm:$0xff]   ;;  %v5829_v15 = vld [vmem:[%s6185_s19 + $0x568] sm:$0xff]  }
  0x94   : > { %5203 = vmatpush3.bf16.msra.mxu0 %v5777_v16  ;;  %v5830_v16 = vld [vmem:[%s6185_s19 + $0x5e8] sm:$0xff]  }
  0x95   : > { %5225 = vmatpush3.bf16.msra.mxu1 %v5778_v17  ;;  %5204 = vmatprep.subr.bf16.mxu0 %v5779_v18  ;;  %v5831_v17 = vld [vmem:[%s6185_s19 + $0x528] sm:$0xff]  }
  0x96   : > { %5226 = vmatprep.subr.bf16.mxu1 %v5780_v19  ;;  %v5832_v18 = vld [vmem:[%s6185_s19 + $0x5a8] sm:$0xff]   ;;  %v5833_v19 = vld [vmem:[%s6185_s19 + $0x560] sm:$0xff]  }
  0x98   : > { %5205 = vmatpush3.bf16.msra.mxu0 %v5781_v20  ;;  %v5834_v20 = vld [vmem:[%s6185_s19 + $0x5e0] sm:$0xff]  }
  0x99   : > { %5227 = vmatpush3.bf16.msra.mxu1 %v5782_v21  ;;  %5206 = vmatprep.subr.bf16.mxu0 %v5783_v22  ;;  %v5835_v21 = vld [vmem:[%s6185_s19 + $0x520] sm:$0xff]  }
  0x9a   : > { %5228 = vmatprep.subr.bf16.mxu1 %v5784_v24  ;;  %v5836_v22 = vld [vmem:[%s6185_s19 + $0x5a0] sm:$0xff]   ;;  %v5838_v24 = vld [vmem:[%s6185_s19 + $0x5d8] sm:$0xff]  }
  0x9c   : > { %5207 = vmatpush3.bf16.msra.mxu0 %v5785_v27  ;;  %v5841_v27 = vld [vmem:[%s6185_s19 + $0x550] sm:$0xff]  }
  0x9d   : > { %5229 = vmatpush3.bf16.msra.mxu1 %v5786_v28  ;;  %5236 = vmatprep.subr.bf16.mxu0 %v5788_v31  ;;  %v5842_v28 = vld [vmem:[%s6185_s19 + $0x5d0] sm:$0xff]   ;;  %v5845_v31 = vld [vmem:[%s6185_s19 + $0x548] sm:$0xff]  }
  0x9e   : > { %5258 = vmatprep.subr.bf16.mxu1 %v5789_v33  ;;  %v5847_v33 = vld [vmem:[%s6185_s19 + $0x508] sm:$0xff]  }
  0x9f   : > { %3692 = vmatmul.mubr.bf16.vlgmr.msra.gmra.mxu0 %v1184_v25  ;;  %v5839_v25 = vld [vmem:[%s6185_s19 + $0x518] sm:$0xff]  }
  0xa0   : > { %3732 = vmatmul.mubr.bf16.vlgmr.msra.gmra.mxu1 %v1191_v30  ;;  %5237 = vmatpush3.bf16.msra.mxu0 %v5790_v34  ;;  %v5844_v30 = vld [vmem:[%s6185_s19 + $0x590] sm:$0xff]   ;;  %v5848_v34 = vld [vmem:[%s6185_s19 + $0x588] sm:$0xff]  }
  0xa1   : > { %5259 = vmatpush3.bf16.msra.mxu1 %v5791_v35  ;;  %5238 = vmatprep.subr.bf16.mxu0 %v5792_v36  ;;  %v5849_v35 = vld [vmem:[%s6185_s19 + $0x540] sm:$0xff]   ;;  %v421_v36 = vld [vmem:[%s6161_s17 + $0x28] sm:$0xff] }
  0xa2   : > { %5260 = vmatprep.subr.bf16.mxu1 %v5793_v37  ;;  %3771 = vmatprep.mubr.bf16.mxu0 %v1209_v4  ;;  %v5850_v37 = vld [vmem:[%s6185_s19 + $0x5c0] sm:$0xff]   ;;  %v5876_v4 = vld [vmem:[%s6185_s19 + $0x610] sm:$0xff]  }
  0xa3   : > { %3811 = vmatprep.mubr.bf16.mxu1 %v1210_v7  ;;  %v5879_v7 = vld [vmem:[%s6185_s19 + $0x6c8] sm:$0xff]  }
  0xa4   : > { %5239 = vmatpush3.bf16.msra.mxu0 %v5794_v38  ;;  %v1218_v38 = vrot.slane %v421_v36, %v6229_v42 }
  0xa5   : > { %5261 = vmatpush3.bf16.msra.mxu1 %v5795_v39  ;;  %5240 = vmatprep.subr.bf16.mxu0 %v5796_v40  ;;  %v1211_v39 = vcombine.high %v421_v36, %v421_v36  ;;  %v5851_v40 = vld [vmem:[%s6185_s19 + $0x500] sm:$0xff]   ;;  %v5897_v36 = vld [vmem:[%s6185_s19 + $0x728] sm:$0xff]  }
  0xa6   : > { %5262 = vmatprep.subr.bf16.mxu1 %v5797_v41  ;;  %v5852_v41 = vld [vmem:[%s6185_s19 + $0x580] sm:$0xff]  }
  0xa8   : > { %5241 = vmatpush3.bf16.msra.mxu0 %v5798_v43  ;;  %v1226_v43 = vcombine.high %v1218_v38, %v1218_v38 }
  0xa9   : > { %5263 = vmatpush3.bf16.msra.mxu1 %v5799_v44  ;;  %5242 = vmatprep.subr.bf16.mxu0 %v5800_v45  ;;  %v1225_v44 = vrot.slane %v1211_v39, %v6229_v42  ;;  %v5854_v45 = vld [vmem:[%s6185_s19 + $0x678] sm:$0xff]   ;;  %v5898_v39 = vld [vmem:[%s6185_s19 + $0x7a8] sm:$0xff]  }
  0xaa   : > { %5264 = vmatprep.subr.bf16.mxu1 %v5801_v46 }
  0xab   : > { %v1227_v46 = vcombine.high %v1225_v44, %v1225_v44 }
  0xac   : > { %5243 = vmatpush3.bf16.msra.mxu0 %v5802_v47  ;;  %v5855_v47 = vld [vmem:[%s6185_s19 + $0x6f8] sm:$0xff]  }
  0xad   : > { %5265 = vmatpush3.bf16.msra.mxu1 %v5803_v48  ;;  %5244 = vmatprep.subr.bf16.mxu0 %v5804_v49  ;;  %v5856_v48 = vld [vmem:[%s6185_s19 + $0x638] sm:$0xff]  }
  0xae   : > { %5266 = vmatprep.subr.bf16.mxu1 %v5805_v50  ;;  %v5857_v49 = vld [vmem:[%s6185_s19 + $0x6b8] sm:$0xff]   ;;  %v5858_v50 = vld [vmem:[%s6185_s19 + $0x670] sm:$0xff]  }
  0xb0   : > { %5245 = vmatpush3.bf16.msra.mxu0 %v5806_v51  ;;  %v5859_v51 = vld [vmem:[%s6185_s19 + $0x6f0] sm:$0xff]  }
  0xb1   : > { %5267 = vmatpush3.bf16.msra.mxu1 %v5807_v52  ;;  %5246 = vmatprep.subr.bf16.mxu0 %v5808_v53  ;;  %v5860_v52 = vld [vmem:[%s6185_s19 + $0x630] sm:$0xff]  }
  0xb2   : > { %5268 = vmatprep.subr.bf16.mxu1 %v5809_v54  ;;  %v5861_v53 = vld [vmem:[%s6185_s19 + $0x6b0] sm:$0xff]   ;;  %v5862_v54 = vld [vmem:[%s6185_s19 + $0x668] sm:$0xff]  }
  0xb4   : > { %5247 = vmatpush3.bf16.msra.mxu0 %v5810_v55  ;;  %v5863_v55 = vld [vmem:[%s6185_s19 + $0x6e8] sm:$0xff]  }
  0xb5   : > { %5269 = vmatpush3.bf16.msra.mxu1 %v5811_v56  ;;  %5248 = vmatprep.subr.bf16.mxu0 %v5812_v57  ;;  %v5864_v56 = vld [vmem:[%s6185_s19 + $0x628] sm:$0xff]  }
  0xb6   : > { %5270 = vmatprep.subr.bf16.mxu1 %v5813_v58  ;;  %v5865_v57 = vld [vmem:[%s6185_s19 + $0x6a8] sm:$0xff]   ;;  %v5866_v58 = vld [vmem:[%s6185_s19 + $0x660] sm:$0xff]  }
  0xb8   : > { %5249 = vmatpush3.bf16.msra.mxu0 %v5814_v59  ;;  %v5867_v59 = vld [vmem:[%s6185_s19 + $0x6e0] sm:$0xff]  }
  0xb9   : > { %5271 = vmatpush3.bf16.msra.mxu1 %v5815_v60  ;;  %5250 = vmatprep.subr.bf16.mxu0 %v5816_v61  ;;  %v5868_v60 = vld [vmem:[%s6185_s19 + $0x620] sm:$0xff]  }
  0xba   : > { %5272 = vmatprep.subr.bf16.mxu1 %v5817_v63  ;;  %v5869_v61 = vld [vmem:[%s6185_s19 + $0x6a0] sm:$0xff]   ;;  %v5871_v63 = vld [vmem:[%s6185_s19 + $0x6d8] sm:$0xff]  }
  0xbc   : > { %5251 = vmatpush3.bf16.msra.mxu0 %v5818_v2  ;;  %v5874_v2 = vld [vmem:[%s6185_s19 + $0x650] sm:$0xff]  }
  0xbd   : > { %5273 = vmatpush3.bf16.msra.mxu1 %v5819_v3  ;;  %5280 = vmatprep.subr.bf16.mxu0 %v5821_v6  ;;  %v5875_v3 = vld [vmem:[%s6185_s19 + $0x6d0] sm:$0xff]   ;;  %v5878_v6 = vld [vmem:[%s6185_s19 + $0x648] sm:$0xff]  }
  0xbe   : > { %5302 = vmatprep.subr.bf16.mxu1 %v5822_v8  ;;  %v5880_v8 = vld [vmem:[%s6185_s19 + $0x608] sm:$0xff]  }
  0xbf   : > { %3772 = vmatmul.mubr.bf16.vlgmr.msra.gmra.mxu0 %v1201_v0  ;;  %v5872_v0 = vld [vmem:[%s6185_s19 + $0x618] sm:$0xff]  }
  0xc0   : > { %3812 = vmatmul.mubr.bf16.vlgmr.msra.gmra.mxu1 %v1208_v5  ;;  %5281 = vmatpush3.bf16.msra.mxu0 %v5823_v9  ;;  %v5877_v5 = vld [vmem:[%s6185_s19 + $0x690] sm:$0xff]   ;;  %v5881_v9 = vld [vmem:[%s6185_s19 + $0x688] sm:$0xff]  }
  0xc1   : > { %5303 = vmatpush3.bf16.msra.mxu1 %v5824_v10  ;;  %5282 = vmatprep.subr.bf16.mxu0 %v5825_v11  ;;  %v5882_v10 = vld [vmem:[%s6185_s19 + $0x640] sm:$0xff]  }
  0xc2   : > { %5304 = vmatprep.subr.bf16.mxu1 %v5826_v12  ;;  %3851 = vmatprep.mubr.bf16.mxu0 %v1226_v43  ;;  %v5883_v11 = vld [vmem:[%s6185_s19 + $0x6c0] sm:$0xff]   ;;  %v422_v12 = vld [vmem:[%s6161_s17 + $0x30] sm:$0xff] }
  0xc3   : > { %3891 = vmatprep.mubr.bf16.mxu1 %v1227_v46  ;;  %v5901_v46 = vld [vmem:[%s6185_s19 + $0x720] sm:$0xff]  }
  0xc4   : > { %5283 = vmatpush3.bf16.msra.mxu0 %v5827_v13  ;;  %v5884_v13 = vld [vmem:[%s6185_s19 + $0x600] sm:$0xff]  }
  0xc5   : > { %5305 = vmatpush3.bf16.msra.mxu1 %v5828_v14  ;;  %5284 = vmatprep.subr.bf16.mxu0 %v5829_v15  ;;  %v1235_v14 = vrot.slane %v422_v12, %v6229_v42  ;;  %v1228_v15 = vcombine.high %v422_v12, %v422_v12  ;;  %v5926_v12 = vld [vmem:[%s6185_s19 + $0x830] sm:$0xff]  }
  0xc6   : > { %5306 = vmatprep.subr.bf16.mxu1 %v5830_v16  ;;  %v5885_v16 = vld [vmem:[%s6185_s19 + $0x680] sm:$0xff]  }
  0xc8   : > { %5285 = vmatpush3.bf16.msra.mxu0 %v5831_v17  ;;  %v1243_v17 = vcombine.high %v1235_v14, %v1235_v14 }
  0xc9   : > { %5307 = vmatpush3.bf16.msra.mxu1 %v5832_v18  ;;  %5286 = vmatprep.subr.bf16.mxu0 %v5833_v19  ;;  %v1242_v18 = vrot.slane %v1228_v15, %v6229_v42  ;;  %v5887_v19 = vld [vmem:[%s6185_s19 + $0x778] sm:$0xff]   ;;  %v5927_v15 = vld [vmem:[%s6185_s19 + $0x8b0] sm:$0xff]  }
  0xca   : > { %5308 = vmatprep.subr.bf16.mxu1 %v5834_v20  ;;  %v5888_v20 = vld [vmem:[%s6185_s19 + $0x7f8] sm:$0xff]  }
  0xcc   : > { %5287 = vmatpush3.bf16.msra.mxu0 %v5835_v21  ;;  %v1244_v21 = vcombine.high %v1242_v18, %v1242_v18 }
  0xcd   : > { %5309 = vmatpush3.bf16.msra.mxu1 %v5836_v22  ;;  %5288 = vmatprep.subr.bf16.mxu0 %v5837_v23  ;;  %v5889_v22 = vld [vmem:[%s6185_s19 + $0x738] sm:$0xff]  }
  0xce   : > { %5310 = vmatprep.subr.bf16.mxu1 %v5838_v24  ;;  %v5890_v23 = vld [vmem:[%s6185_s19 + $0x7b8] sm:$0xff]   ;;  %v5891_v24 = vld [vmem:[%s6185_s19 + $0x770] sm:$0xff]  }
  0xd0   : > { %5289 = vmatpush3.bf16.msra.mxu0 %v5839_v25  ;;  %v5892_v25 = vld [vmem:[%s6185_s19 + $0x7f0] sm:$0xff]  }
  0xd1   : > { %5311 = vmatpush3.bf16.msra.mxu1 %v5840_v26  ;;  %5290 = vmatprep.subr.bf16.mxu0 %v5841_v27  ;;  %v5893_v26 = vld [vmem:[%s6185_s19 + $0x730] sm:$0xff]  }
  0xd2   : > { %5312 = vmatprep.subr.bf16.mxu1 %v5842_v28 }
  0xd4   : > { %5291 = vmatpush3.bf16.msra.mxu0 %v5843_v29  ;;  %v5894_v29 = vld [vmem:[%s6185_s19 + $0x7b0] sm:$0xff]  }
  0xd5   : > { %5313 = vmatpush3.bf16.msra.mxu1 %v5844_v30  ;;  %5292 = vmatprep.subr.bf16.mxu0 %v5845_v31  ;;  %v5895_v30 = vld [vmem:[%s6185_s19 + $0x768] sm:$0xff]  }
  0xd6   : > { %5314 = vmatprep.subr.bf16.mxu1 %v5846_v32 }
  0xd8   : > { %5293 = vmatpush3.bf16.msra.mxu0 %v5847_v33  ;;  %v5896_v33 = vld [vmem:[%s6185_s19 + $0x7e8] sm:$0xff]  }
  0xd9   : > { %5315 = vmatpush3.bf16.msra.mxu1 %v5848_v34  ;;  %5294 = vmatprep.subr.bf16.mxu0 %v5849_v35 }
  0xda   : > { %5316 = vmatprep.subr.bf16.mxu1 %v5850_v37 }
  0xdc   : > { %5295 = vmatpush3.bf16.msra.mxu0 %v5851_v40 }
  0xdd   : > { %5317 = vmatpush3.bf16.msra.mxu1 %v5852_v41  ;;  %5324 = vmatprep.subr.bf16.mxu0 %v5854_v45  ;;  %v5899_v41 = vld [vmem:[%s6185_s19 + $0x760] sm:$0xff]  }
  0xde   : > { %5346 = vmatprep.subr.bf16.mxu1 %v5855_v47  ;;  %v5900_v45 = vld [vmem:[%s6185_s19 + $0x7e0] sm:$0xff]  }
  0xdf   : > { %3852 = vmatmul.mubr.bf16.vlgmr.msra.gmra.mxu0 %v1218_v38  ;;  %v5902_v47 = vld [vmem:[%s6185_s19 + $0x7a0] sm:$0xff]  }
  0xe0   : > { %3892 = vmatmul.mubr.bf16.vlgmr.msra.gmra.mxu1 %v1225_v44  ;;  %5325 = vmatpush3.bf16.msra.mxu0 %v5856_v48  ;;  %v5903_v48 = vld [vmem:[%s6185_s19 + $0x758] sm:$0xff]  }
  0xe1   : > { %5347 = vmatpush3.bf16.msra.mxu1 %v5857_v49  ;;  %5326 = vmatprep.subr.bf16.mxu0 %v5858_v50  ;;  %v5904_v49 = vld [vmem:[%s6185_s19 + $0x7d8] sm:$0xff]  }
  0xe2   : > { %5348 = vmatprep.subr.bf16.mxu1 %v5859_v51  ;;  %3931 = vmatprep.mubr.bf16.mxu0 %v1243_v17  ;;  %v5905_v50 = vld [vmem:[%s6185_s19 + $0x718] sm:$0xff]  }
  0xe3   : > { %3971 = vmatprep.mubr.bf16.mxu1 %v1244_v21  ;;  %v5906_v51 = vld [vmem:[%s6185_s19 + $0x798] sm:$0xff]  }
  0xe4   : > { %5327 = vmatpush3.bf16.msra.mxu0 %v5860_v52  ;;  %v5907_v52 = vld [vmem:[%s6185_s19 + $0x750] sm:$0xff]  }
  0xe5   : > { %5349 = vmatpush3.bf16.msra.mxu1 %v5861_v53  ;;  %5328 = vmatprep.subr.bf16.mxu0 %v5862_v54  ;;  %v5908_v53 = vld [vmem:[%s6185_s19 + $0x7d0] sm:$0xff]  }
  0xe6   : > { %5350 = vmatprep.subr.bf16.mxu1 %v5863_v55  ;;  %v5909_v54 = vld [vmem:[%s6185_s19 + $0x710] sm:$0xff]  }
  0xe7   : > { %v5910_v55 = vld [vmem:[%s6185_s19 + $0x790] sm:$0xff]  }
  0xe8   : > { %5329 = vmatpush3.bf16.msra.mxu0 %v5864_v56  ;;  %v5911_v56 = vld [vmem:[%s6185_s19 + $0x748] sm:$0xff]  }
  0xe9   : > { %5351 = vmatpush3.bf16.msra.mxu1 %v5865_v57  ;;  %5330 = vmatprep.subr.bf16.mxu0 %v5866_v58  ;;  %v5912_v57 = vld [vmem:[%s6185_s19 + $0x7c8] sm:$0xff]  }
  0xea   : > { %5352 = vmatprep.subr.bf16.mxu1 %v5867_v59  ;;  %v5913_v58 = vld [vmem:[%s6185_s19 + $0x708] sm:$0xff]  }
  0xeb   : > { %v5914_v59 = vld [vmem:[%s6185_s19 + $0x788] sm:$0xff]  }
  0xec   : > { %5331 = vmatpush3.bf16.msra.mxu0 %v5868_v60  ;;  %v5915_v60 = vld [vmem:[%s6185_s19 + $0x740] sm:$0xff]  }
  0xed   : > { %5353 = vmatpush3.bf16.msra.mxu1 %v5869_v61  ;;  %5332 = vmatprep.subr.bf16.mxu0 %v5870_v62  ;;  %v5916_v61 = vld [vmem:[%s6185_s19 + $0x7c0] sm:$0xff]   ;;  %v423_v62 = vld [vmem:[%s6161_s17 + $0x38] sm:$0xff] }
  0xee   : > { %5354 = vmatprep.subr.bf16.mxu1 %v5871_v63  ;;  %v5917_v63 = vld [vmem:[%s6185_s19 + $0x700] sm:$0xff]  }
  0xf0   : > { %5333 = vmatpush3.bf16.msra.mxu0 %v5872_v0  ;;  %v1252_v0 = vrot.slane %v423_v62, %v6229_v42 }
  0xf1   : > { %5355 = vmatpush3.bf16.msra.mxu1 %v5873_v1  ;;  %5334 = vmatprep.subr.bf16.mxu0 %v5874_v2  ;;  %v1245_v1 = vcombine.high %v423_v62, %v423_v62  ;;  %v5918_v2 = vld [vmem:[%s6185_s19 + $0x780] sm:$0xff]   ;;  %v5958_v62 = vld [vmem:[%s6185_s19 + $0x9f0] sm:$0xff]  }
  0xf2   : > { %5356 = vmatprep.subr.bf16.mxu1 %v5875_v3  ;;  %v1260_v3 = vcombine.high %v1252_v0, %v1252_v0 }
  0xf4   : > { %5335 = vmatpush3.bf16.msra.mxu0 %v5876_v4  ;;  %v1259_v4 = vrot.slane %v1245_v1, %v6229_v42 }
  0xf5   : > { %5357 = vmatpush3.bf16.msra.mxu1 %v5877_v5  ;;  %5336 = vmatprep.subr.bf16.mxu0 %v5878_v6  ;;  %v5920_v5 = vld [vmem:[%s6185_s19 + $0x878] sm:$0xff]  }
  0xf6   : > { %5358 = vmatprep.subr.bf16.mxu1 %v5879_v7  ;;  %v5921_v6 = vld [vmem:[%s6185_s19 + $0x8f8] sm:$0xff]   ;;  %v1261_v7 = vcombine.high %v1259_v4, %v1259_v4 }
  0xf8   : > { %5337 = vmatpush3.bf16.msra.mxu0 %v5880_v8  ;;  %v5922_v8 = vld [vmem:[%s6185_s19 + $0x838] sm:$0xff]  }
  0xf9   : > { %5359 = vmatpush3.bf16.msra.mxu1 %v5881_v9  ;;  %5338 = vmatprep.subr.bf16.mxu0 %v5882_v10  ;;  %v5923_v9 = vld [vmem:[%s6185_s19 + $0x8b8] sm:$0xff]   ;;  %v5924_v10 = vld [vmem:[%s6185_s19 + $0x870] sm:$0xff]  }
  0xfa   : > { %5360 = vmatprep.subr.bf16.mxu1 %v5883_v11  ;;  %v5925_v11 = vld [vmem:[%s6185_s19 + $0x8f0] sm:$0xff]  }
  0xfc   : > { %5339 = vmatpush3.bf16.msra.mxu0 %v5884_v13 }
  0xfd   : > { %5361 = vmatpush3.bf16.msra.mxu1 %v5885_v16  ;;  %5368 = vmatprep.subr.bf16.mxu0 %v5887_v19  ;;  %v5928_v16 = vld [vmem:[%s6185_s19 + $0x868] sm:$0xff]  }
  0xfe   : > { %5390 = vmatprep.subr.bf16.mxu1 %v5888_v20  ;;  %v5929_v19 = vld [vmem:[%s6185_s19 + $0x8e8] sm:$0xff]  }
  0xff   : > { %v5076_v27 = vpop.f32.mrf.mxu0  ;;  %3932 = vmatmul.mubr.bf16.vlgmr.msra.gmra.mxu0 %v1235_v14 }
 0x100   : > { %v5098_v28 = vpop.f32.mrf.mxu1  ;;  %3972 = vmatmul.mubr.bf16.vlgmr.msra.gmra.mxu1 %v1242_v18  ;;  %5369 = vmatpush3.bf16.msra.mxu0 %v5889_v22  ;;  %v5930_v22 = vld [vmem:[%s6185_s19 + $0x828] sm:$0xff]  }
 0x101   : > { %5391 = vmatpush3.bf16.msra.mxu1 %v5890_v23  ;;  %v5077_v31 = vpop.f32.mrf.mxu0  ;;  %5370 = vmatprep.subr.bf16.mxu0 %v5891_v24 }
 0x102   : > { %v5099_v32 = vpop.f32.mrf.mxu1  ;;  %5392 = vmatprep.subr.bf16.mxu1 %v5892_v25  ;;  %v5078_v34 = vadd.f32 %v5077_v31, %v5076_v27  ;;  %4011 = vmatprep.mubr.bf16.mxu0 %v1260_v3  ;;  %v5931_v25 = vld [vmem:[%s6185_s19 + $0x8a8] sm:$0xff]   ;;  %v5932_v27 = vld [vmem:[%s6185_s19 + $0x860] sm:$0xff]  }
 0x103   : > { %v5100_v35 = vadd.f32 %v5099_v32, %v5098_v28  ;;  %v5079_v37 = vpop.f32.mrf.mxu0  ;;  %4051 = vmatprep.mubr.bf16.mxu1 %v1261_v7  ;;  %v5934_v32 = vld [vmem:[%s6185_s19 + $0x820] sm:$0xff]   ;;  %v5961_v3 = vld [vmem:[%s6185_s19 + $0x968] sm:$0xff]  }
 0x104   : > { %v5101_v38 = vpop.f32.mrf.mxu1  ;;  %5371 = vmatpush3.bf16.msra.mxu0 %v5893_v26  ;;  %v5939_v37 = vld [vmem:[%s6185_s19 + $0x898] sm:$0xff]  }
 0x105   : > { %v6453_v40 = vadd.f32 %v5100_v35, %v5078_v34  ;;  %5393 = vmatpush3.bf16.msra.mxu1 %v5894_v29  ;;  %v5080_v43 = vpop.f32.mrf.mxu0  ;;  %5372 = vmatprep.subr.bf16.mxu0 %v5895_v30  ;;  %v5933_v30 = vld [vmem:[%s6185_s19 + $0x8e0] sm:$0xff]   ;;  %v5936_v34 = vld [vmem:[%s6185_s19 + $0x858] sm:$0xff]   ;;  %v5940_v38 = vld [vmem:[%s6185_s19 + $0x850] sm:$0xff]  }
 0x106   : > { %v5102_v44 = vpop.f32.mrf.mxu1  ;;  %5394 = vmatprep.subr.bf16.mxu1 %v5896_v33  ;;  %v5935_v33 = vld [vmem:[%s6185_s19 + $0x8a0] sm:$0xff]   ;;  %v5937_v35 = vld [vmem:[%s6185_s19 + $0x8d8] sm:$0xff]   ;;  %v5944_v43 = vld [vmem:[%s6185_s19 + $0x848] sm:$0xff]  }
 0x107   : > { %v5945_v44 = vld [vmem:[%s6185_s19 + $0x8c8] sm:$0xff]  }
 0x108   : > { %5373 = vmatpush3.bf16.msra.mxu0 %v5897_v36  ;;  %v5938_v36 = vld [vmem:[%s6185_s19 + $0x818] sm:$0xff]  }
 0x109   : > { %5395 = vmatpush3.bf16.msra.mxu1 %v5898_v39  ;;  %5374 = vmatprep.subr.bf16.mxu0 %v5899_v41  ;;  %v5941_v39 = vld [vmem:[%s6185_s19 + $0x8d0] sm:$0xff]  }
 0x10a   : > { %5396 = vmatprep.subr.bf16.mxu1 %v5900_v45  ;;  %v5943_v41 = vld [vmem:[%s6185_s19 + $0x890] sm:$0xff]   ;;  %v5946_v45 = vld [vmem:[%s6185_s19 + $0x808] sm:$0xff]  }
 0x10c   : > { %5375 = vmatpush3.bf16.msra.mxu0 %v5901_v46  ;;  %v5947_v46 = vld [vmem:[%s6185_s19 + $0x888] sm:$0xff]  }
 0x10d   : > { %5397 = vmatpush3.bf16.msra.mxu1 %v5902_v47  ;;  %5376 = vmatprep.subr.bf16.mxu0 %v5903_v48  ;;  %v5948_v47 = vld [vmem:[%s6185_s19 + $0x840] sm:$0xff]  }
 0x10e   : > { %5398 = vmatprep.subr.bf16.mxu1 %v5904_v49  ;;  %v5949_v48 = vld [vmem:[%s6185_s19 + $0x8c0] sm:$0xff]  }
 0x10f   : > { %v424_v49 = vld [vmem:[%s6161_s17 + $0x40] sm:$0xff] }
 0x110   : > { %5377 = vmatpush3.bf16.msra.mxu0 %v5905_v50  ;;  %v5950_v50 = vld [vmem:[%s6185_s19 + $0x800] sm:$0xff]  }
 0x111   : > { %5399 = vmatpush3.bf16.msra.mxu1 %v5906_v51  ;;  %5378 = vmatprep.subr.bf16.mxu0 %v5907_v52  ;;  %v1269_v51 = vrot.slane %v424_v49, %v6229_v42  ;;  %v1262_v52 = vcombine.high %v424_v49, %v424_v49 }
 0x112   : > { %5400 = vmatprep.subr.bf16.mxu1 %v5908_v53  ;;  %v5951_v53 = vld [vmem:[%s6185_s19 + $0x880] sm:$0xff]  }
 0x114   : > { %5379 = vmatpush3.bf16.msra.mxu0 %v5909_v54  ;;  %v1277_v54 = vcombine.high %v1269_v51, %v1269_v51 }
 0x115   : > { %5401 = vmatpush3.bf16.msra.mxu1 %v5910_v55  ;;  %5380 = vmatprep.subr.bf16.mxu0 %v5911_v56  ;;  %v1276_v55 = vrot.slane %v1262_v52, %v6229_v42  ;;  %v5953_v56 = vld [vmem:[%s6185_s19 + $0x978] sm:$0xff]   ;;  %v5991_v52 = vld [vmem:[%s6185_s19 + $0xab0] sm:$0xff]  }
 0x116   : > { %5402 = vmatprep.subr.bf16.mxu1 %v5912_v57  ;;  %v5954_v57 = vld [vmem:[%s6185_s19 + $0x9f8] sm:$0xff]  }
 0x118   : > { %5381 = vmatpush3.bf16.msra.mxu0 %v5913_v58  ;;  %v1278_v58 = vcombine.high %v1276_v55, %v1276_v55 }
 0x119   : > { %5403 = vmatpush3.bf16.msra.mxu1 %v5914_v59  ;;  %5382 = vmatprep.subr.bf16.mxu0 %v5915_v60  ;;  %v5955_v59 = vld [vmem:[%s6185_s19 + $0x938] sm:$0xff]  }
 0x11a   : > { %5404 = vmatprep.subr.bf16.mxu1 %v5916_v61  ;;  %v5956_v60 = vld [vmem:[%s6185_s19 + $0x9b8] sm:$0xff]   ;;  %v5957_v61 = vld [vmem:[%s6185_s19 + $0x970] sm:$0xff]  }
 0x11c   : > { %5383 = vmatpush3.bf16.msra.mxu0 %v5917_v63  ;;  %v5959_v63 = vld [vmem:[%s6185_s19 + $0x930] sm:$0xff]  }
 0x11d   : > { %5405 = vmatpush3.bf16.msra.mxu1 %v5918_v2  ;;  %5412 = vmatprep.subr.bf16.mxu0 %v5920_v5  ;;  %v5960_v2 = vld [vmem:[%s6185_s19 + $0x9b0] sm:$0xff]  }
 0x11e   : > { %5434 = vmatprep.subr.bf16.mxu1 %v5921_v6  ;;  %v5962_v6 = vld [vmem:[%s6185_s19 + $0x9e8] sm:$0xff]  }
 0x11f   : > { %v5120_v13 = vpop.f32.mrf.mxu0  ;;  %4012 = vmatmul.mubr.bf16.vlgmr.msra.gmra.mxu0 %v1252_v0 }
 0x120   : > { %v5142_v14 = vpop.f32.mrf.mxu1  ;;  %4052 = vmatmul.mubr.bf16.vlgmr.msra.gmra.mxu1 %v1259_v4  ;;  %5413 = vmatpush3.bf16.msra.mxu0 %v5922_v8 }
 0x121   : > { %5435 = vmatpush3.bf16.msra.mxu1 %v5923_v9  ;;  %v5121_v17 = vpop.f32.mrf.mxu0  ;;  %5414 = vmatprep.subr.bf16.mxu0 %v5924_v10  ;;  %v5963_v9 = vld [vmem:[%s6185_s19 + $0x928] sm:$0xff]  }
 0x122   : > { %v5143_v18 = vpop.f32.mrf.mxu1  ;;  %5436 = vmatprep.subr.bf16.mxu1 %v5925_v11  ;;  %v5122_v20 = vadd.f32 %v5121_v17, %v5120_v13  ;;  %4091 = vmatprep.mubr.bf16.mxu0 %v1277_v54  ;;  %v5966_v17 = vld [vmem:[%s6185_s19 + $0x9e0] sm:$0xff]  }
 0x123   : > { %v5144_v21 = vadd.f32 %v5143_v18, %v5142_v14  ;;  %v5123_v23 = vpop.f32.mrf.mxu0  ;;  %4131 = vmatprep.mubr.bf16.mxu1 %v1278_v58  ;;  %v5965_v14 = vld [vmem:[%s6185_s19 + $0x960] sm:$0xff]  }
 0x124   : > { %v5145_v24 = vpop.f32.mrf.mxu1  ;;  %v3534_v26 = vadd.f32 %v5122_v20, %v6453_v40  ;;  %5415 = vmatpush3.bf16.msra.mxu0 %v5926_v12  ;;  %v5942_v40 = vld [vmem:[%s6185_s19 + $0x810] sm:$0xff]   ;;  %v5964_v12 = vld [vmem:[%s6185_s19 + $0x9a8] sm:$0xff]   ;;  %v5968_v20 = vld [vmem:[%s6185_s19 + $0x9a0] sm:$0xff]  }
 0x125   : > { %5437 = vmatpush3.bf16.msra.mxu1 %v5927_v15  ;;  %v5124_v28 = vpop.f32.mrf.mxu0  ;;  %5416 = vmatprep.subr.bf16.mxu0 %v5928_v16  ;;  %v5971_v23 = vld [vmem:[%s6185_s19 + $0x918] sm:$0xff]  }
 0x126   : > { %v5146_v29 = vpop.f32.mrf.mxu1  ;;  %5438 = vmatprep.subr.bf16.mxu1 %v5929_v19  ;;  %v6493_v31 = vadd.f32 %v5144_v21, %v3534_v26  ;;  %v5967_v19 = vld [vmem:[%s6185_s19 + $0x920] sm:$0xff]   ;;  %v5969_v21 = vld [vmem:[%s6185_s19 + $0x958] sm:$0xff]   ;;  %v5974_v26 = vld [vmem:[%s6185_s19 + $0x9d0] sm:$0xff]  }
 0x127   : > { %v5972_v24 = vld [vmem:[%s6185_s19 + $0x998] sm:$0xff]   ;;  %v5976_v28 = vld [vmem:[%s6185_s19 + $0x990] sm:$0xff]   ;;  %v5977_v29 = vld [vmem:[%s6185_s19 + $0x948] sm:$0xff]  }
 0x128   : > { %5417 = vmatpush3.bf16.msra.mxu0 %v5930_v22  ;;  %v5970_v22 = vld [vmem:[%s6185_s19 + $0x9d8] sm:$0xff]  }
 0x129   : > { %5439 = vmatpush3.bf16.msra.mxu1 %v5931_v25  ;;  %5418 = vmatprep.subr.bf16.mxu0 %v5932_v27  ;;  %v5973_v25 = vld [vmem:[%s6185_s19 + $0x950] sm:$0xff]  }
 0x12a   : > { %5440 = vmatprep.subr.bf16.mxu1 %v5933_v30  ;;  %v5975_v27 = vld [vmem:[%s6185_s19 + $0x910] sm:$0xff]   ;;  %v5978_v30 = vld [vmem:[%s6185_s19 + $0x9c8] sm:$0xff]  }
 0x12c   : > { %5419 = vmatpush3.bf16.msra.mxu0 %v5934_v32  ;;  %v5980_v32 = vld [vmem:[%s6185_s19 + $0x988] sm:$0xff]  }
 0x12d   : > { %5441 = vmatpush3.bf16.msra.mxu1 %v5935_v33  ;;  %5420 = vmatprep.subr.bf16.mxu0 %v5936_v34  ;;  %v5981_v33 = vld [vmem:[%s6185_s19 + $0x940] sm:$0xff]  }
 0x12e   : > { %5442 = vmatprep.subr.bf16.mxu1 %v5937_v35  ;;  %v5982_v34 = vld [vmem:[%s6185_s19 + $0x9c0] sm:$0xff]   ;;  %v425_v35 = vld [vmem:[%s6161_s17 + $0x48] sm:$0xff] }
 0x130   : > { %5421 = vmatpush3.bf16.msra.mxu0 %v5938_v36  ;;  %v5983_v36 = vld [vmem:[%s6185_s19 + $0x900] sm:$0xff]  }
 0x131   : > { %5443 = vmatpush3.bf16.msra.mxu1 %v5939_v37  ;;  %5422 = vmatprep.subr.bf16.mxu0 %v5940_v38  ;;  %v1286_v37 = vrot.slane %v425_v35, %v6229_v42  ;;  %v1279_v38 = vcombine.high %v425_v35, %v425_v35 }
 0x132   : > { %5444 = vmatprep.subr.bf16.mxu1 %v5941_v39  ;;  %v5984_v39 = vld [vmem:[%s6185_s19 + $0x980] sm:$0xff]  }
 0x134   : > { %5423 = vmatpush3.bf16.msra.mxu0 %v5942_v40  ;;  %v1294_v40 = vcombine.high %v1286_v37, %v1286_v37 }
 0x135   : > { %5445 = vmatpush3.bf16.msra.mxu1 %v5943_v41  ;;  %5424 = vmatprep.subr.bf16.mxu0 %v5944_v43  ;;  %v1293_v41 = vrot.slane %v1279_v38, %v6229_v42  ;;  %v5986_v43 = vld [vmem:[%s6185_s19 + $0xa78] sm:$0xff]  }
 0x136   : > { %5446 = vmatprep.subr.bf16.mxu1 %v5945_v44 }
 0x137   : > { %v1295_v44 = vcombine.high %v1293_v41, %v1293_v41 }
 0x138   : > { %5425 = vmatpush3.bf16.msra.mxu0 %v5946_v45  ;;  %v5987_v45 = vld [vmem:[%s6185_s19 + $0xa38] sm:$0xff]  }
 0x139   : > { %5447 = vmatpush3.bf16.msra.mxu1 %v5947_v46  ;;  %5426 = vmatprep.subr.bf16.mxu0 %v5948_v47  ;;  %v5988_v46 = vld [vmem:[%s6185_s19 + $0xab8] sm:$0xff]   ;;  %v5989_v47 = vld [vmem:[%s6185_s19 + $0xa70] sm:$0xff]  }
 0x13a   : > { %5448 = vmatprep.subr.bf16.mxu1 %v5949_v48  ;;  %v6073_v48 = vmov 0.0  }
 0x13c   : > { %5427 = vmatpush3.bf16.msra.mxu0 %v5950_v50 }
 0x13d   : > { %5449 = vmatpush3.bf16.msra.mxu1 %v5951_v53  ;;  %5456 = vmatprep.subr.bf16.mxu0 %v5953_v56 }
 0x13e   : > { %5478 = vmatprep.subr.bf16.mxu1 %v5954_v57 }
 0x13f   : > { %v5164_v0 = vpop.f32.mrf.mxu0  ;;  %4092 = vmatmul.mubr.bf16.vlgmr.msra.gmra.mxu0 %v1269_v51  ;;  %v5990_v51 = vld [vmem:[%s6185_s19 + $0xa30] sm:$0xff]  }
 0x140   : > { %v5186_v1 = vpop.f32.mrf.mxu1  ;;  %4132 = vmatmul.mubr.bf16.vlgmr.msra.gmra.mxu1 %v1276_v55  ;;  %5457 = vmatpush3.bf16.msra.mxu0 %v5955_v59  ;;  %v5992_v55 = vld [vmem:[%s6185_s19 + $0xa68] sm:$0xff]  }
 0x141   : > { %5479 = vmatpush3.bf16.msra.mxu1 %v5956_v60  ;;  %v5165_v4 = vpop.f32.mrf.mxu0  ;;  %5458 = vmatprep.subr.bf16.mxu0 %v5957_v61  ;;  %v5993_v60 = vld [vmem:[%s6185_s19 + $0xa28] sm:$0xff]  }
 0x142   : > { %v5187_v5 = vpop.f32.mrf.mxu1  ;;  %5480 = vmatprep.subr.bf16.mxu1 %v5958_v62  ;;  %v5166_v7 = vadd.f32 %v5165_v4, %v5164_v0  ;;  %4171 = vmatprep.mubr.bf16.mxu0 %v1294_v40  ;;  %v5994_v62 = vld [vmem:[%s6185_s19 + $0xaa8] sm:$0xff]   ;;  %v5997_v4 = vld [vmem:[%s6185_s19 + $0xaa0] sm:$0xff]  }
 0x143   : > { %v5188_v8 = vadd.f32 %v5187_v5, %v5186_v1  ;;  %v5167_v10 = vpop.f32.mrf.mxu0  ;;  %4211 = vmatprep.mubr.bf16.mxu1 %v1295_v44  ;;  %v5995_v1 = vld [vmem:[%s6185_s19 + $0xa60] sm:$0xff]   ;;  %v5998_v5 = vld [vmem:[%s6185_s19 + $0xa58] sm:$0xff]  }
 0x144   : > { %v5189_v11 = vpop.f32.mrf.mxu1  ;;  %v3614_v13 = vadd.f32 %v5166_v7, %v6493_v31  ;;  %5459 = vmatpush3.bf16.msra.mxu0 %v5959_v63  ;;  %v5979_v31 = vld [vmem:[%s6185_s19 + $0x908] sm:$0xff]   ;;  %v6000_v7 = vld [vmem:[%s6185_s19 + $0xa98] sm:$0xff]  }
 0x145   : > { %5481 = vmatpush3.bf16.msra.mxu1 %v5960_v2  ;;  %v5168_v15 = vpop.f32.mrf.mxu0  ;;  %5460 = vmatprep.subr.bf16.mxu0 %v5961_v3  ;;  %v5996_v3 = vld [vmem:[%s6185_s19 + $0xa20] sm:$0xff]   ;;  %v6002_v11 = vld [vmem:[%s6185_s19 + $0xa10] sm:$0xff]  }
 0x146   : > { %v5190_v16 = vpop.f32.mrf.mxu1  ;;  %5482 = vmatprep.subr.bf16.mxu1 %v5962_v6  ;;  %v6531_v18 = vadd.f32 %v5188_v8, %v3614_v13  ;;  %v5999_v6 = vld [vmem:[%s6185_s19 + $0xa18] sm:$0xff]   ;;  %v6001_v8 = vld [vmem:[%s6185_s19 + $0xa50] sm:$0xff]   ;;  %v6004_v13 = vld [vmem:[%s6185_s19 + $0xa48] sm:$0xff]  }
 0x147   : > { %v6005_v15 = vld [vmem:[%s6185_s19 + $0xa08] sm:$0xff]  }
 0x148   : > { %5461 = vmatpush3.bf16.msra.mxu0 %v5963_v9  ;;  %v426_v9 = vld [vmem:[%s6161_s17 + $0x50] sm:$0x3f]  ;;  %v6006_v16 = vld [vmem:[%s6185_s19 + $0xa88] sm:$0xff]  }
 0x149   : > { %5483 = vmatpush3.bf16.msra.mxu1 %v5964_v12  ;;  %5462 = vmatprep.subr.bf16.mxu0 %v5965_v14  ;;  %v1303_v10 = vrot.slane %v426_v9, %v6229_v42  ;;  %v6003_v12 = vld [vmem:[%s6185_s19 + $0xa90] sm:$0xff]  }
 0x14a   : > { %5484 = vmatprep.subr.bf16.mxu1 %v5966_v17  ;;  %v6007_v17 = vld [vmem:[%s6185_s19 + $0xa40] sm:$0xff]  }
 0x14b   : > { %v1311_v14 = vcombine.high %v1303_v10, %v1303_v10 }
 0x14c   : > { %5463 = vmatpush3.bf16.msra.mxu0 %v5967_v19  ;;  %v6008_v19 = vld [vmem:[%s6185_s19 + $0xa00] sm:$0xff]  }
 0x14d   : > { %5485 = vmatpush3.bf16.msra.mxu1 %v5968_v20  ;;  %5464 = vmatprep.subr.bf16.mxu0 %v5969_v21  ;;  %v6009_v20 = vld [vmem:[%s6185_s19 + $0xa80] sm:$0xff]  }
 0x14e   : > { %5486 = vmatprep.subr.bf16.mxu1 %v5970_v22 }
 0x150   : > { %5465 = vmatpush3.bf16.msra.mxu0 %v5971_v23 }
 0x151   : > { %5487 = vmatpush3.bf16.msra.mxu1 %v5972_v24  ;;  %5466 = vmatprep.subr.bf16.mxu0 %v5973_v25 }
 0x152   : > { %5488 = vmatprep.subr.bf16.mxu1 %v5974_v26 }
 0x154   : > { %5467 = vmatpush3.bf16.msra.mxu0 %v5975_v27 }
 0x155   : > { %5489 = vmatpush3.bf16.msra.mxu1 %v5976_v28  ;;  %5468 = vmatprep.subr.bf16.mxu0 %v5977_v29 }
 0x156   : > { %5490 = vmatprep.subr.bf16.mxu1 %v5978_v30 }
 0x158   : > { %5469 = vmatpush3.bf16.msra.mxu0 %v5979_v31 }
 0x159   : > { %5491 = vmatpush3.bf16.msra.mxu1 %v5980_v32  ;;  %5470 = vmatprep.subr.bf16.mxu0 %v5981_v33 }
 0x15a   : > { %5492 = vmatprep.subr.bf16.mxu1 %v5982_v34 }
 0x15c   : > { %5471 = vmatpush3.bf16.msra.mxu0 %v5983_v36 }
 0x15d   : > { %5493 = vmatpush3.bf16.msra.mxu1 %v5984_v39  ;;  %5500 = vmatprep.subr.bf16.mxu0 %v5986_v43 }
 0x15e   : > { %5549 = vmatprep.subr.bf16.mxu1 %v6073_v48 }
 0x15f   : > { %v5208_v49 = vpop.f32.mrf.mxu0  ;;  %4172 = vmatmul.mubr.bf16.vlgmr.msra.gmra.mxu0 %v1286_v37 }
 0x160   : > { %v5230_v50 = vpop.f32.mrf.mxu1  ;;  %4212 = vmatmul.mubr.bf16.vlgmr.msra.gmra.mxu1 %v1293_v41  ;;  %5501 = vmatpush3.bf16.msra.mxu0 %v5987_v45 }
 0x161   : > { %5550 = vmatpush3.bf16.msra.mxu1 %v5988_v46  ;;  %v5209_v53 = vpop.f32.mrf.mxu0  ;;  %5502 = vmatprep.subr.bf16.mxu0 %v5989_v47 }
 0x162   : > { %v5231_v54 = vpop.f32.mrf.mxu1  ;;  %5551 = vmatprep.subr.bf16.mxu1 %v6073_v48  ;;  %v5210_v56 = vadd.f32 %v5209_v53, %v5208_v49  ;;  %5565 = vmatprep.mubr.msk.bf16.mxu1 %vm6074_vm0, %v6073_v48 }
 0x163   : > { %v5232_v57 = vadd.f32 %v5231_v54, %v5230_v50  ;;  %v5211_v58 = vpop.f32.mrf.mxu0  ;;  %4251 = vmatprep.mubr.bf16.mxu0 %v1311_v14 }
 0x164   : > { %v5233_v59 = vpop.f32.mrf.mxu1  ;;  %v3694_v61 = vadd.f32 %v5210_v56, %v6531_v18  ;;  %5503 = vmatpush3.bf16.msra.mxu0 %v5990_v51  ;;  %v1296_v18 = vcombine.high %v426_v9, %v426_v9 }
 0x165   : > { %5552 = vmatpush3.bf16.msra.mxu1 %v5991_v52  ;;  %v5212_v63 = vpop.f32.mrf.mxu0  ;;  %5504 = vmatprep.subr.bf16.mxu0 %v5992_v55 }
 0x166   : > { %v5234_v0 = vpop.f32.mrf.mxu1  ;;  %5553 = vmatprep.subr.bf16.mxu1 %v6073_v48  ;;  %v3734_v2 = vadd.f32 %v5232_v57, %v3694_v61  ;;  %v1310_v21 = vrot.slane %v1296_v18, %v6229_v42 }
 0x168   : > { %5505 = vmatpush3.bf16.msra.mxu0 %v5993_v60 }
 0x169   : > { %5554 = vmatpush3.bf16.msra.mxu1 %v5994_v62  ;;  %5506 = vmatprep.subr.bf16.mxu0 %v5995_v1 }
 0x16a   : > { %5555 = vmatprep.subr.bf16.mxu1 %v6073_v48 }
 0x16c   : > { %5507 = vmatpush3.bf16.msra.mxu0 %v5996_v3 }
 0x16d   : > { %5556 = vmatpush3.bf16.msra.mxu1 %v5997_v4  ;;  %5508 = vmatprep.subr.bf16.mxu0 %v5998_v5 }
 0x16e   : > { %5557 = vmatprep.subr.bf16.mxu1 %v6073_v48 }
 0x170   : > { %5509 = vmatpush3.bf16.msra.mxu0 %v5999_v6 }
 0x171   : > { %5558 = vmatpush3.bf16.msra.mxu1 %v6000_v7  ;;  %5510 = vmatprep.subr.bf16.mxu0 %v6001_v8 }
 0x172   : > { %5559 = vmatprep.subr.bf16.mxu1 %v6073_v48 }
 0x174   : > { %5511 = vmatpush3.bf16.msra.mxu0 %v6002_v11 }
 0x175   : > { %5560 = vmatpush3.bf16.msra.mxu1 %v6003_v12  ;;  %5512 = vmatprep.subr.bf16.mxu0 %v6004_v13 }
 0x176   : > { %5561 = vmatprep.subr.bf16.mxu1 %v6073_v48 }
 0x178   : > { %5513 = vmatpush3.bf16.msra.mxu0 %v6005_v15 }
 0x179   : > { %5562 = vmatpush3.bf16.msra.mxu1 %v6006_v16  ;;  %5514 = vmatprep.subr.bf16.mxu0 %v6007_v17 }
 0x17a   : > { %5563 = vmatprep.subr.bf16.mxu1 %v6073_v48 }
 0x17c   : > { %5515 = vmatpush3.bf16.msra.mxu0 %v6008_v19 }
 0x17d   : > { %5564 = vmatpush3.bf16.msra.mxu1 %v6009_v20 }
 0x17f   : > { %v5252_v22 = vpop.f32.mrf.mxu0  ;;  %4252 = vmatmul.mubr.bf16.vlgmr.msra.gmra.mxu0 %v1303_v10 }
 0x180   : > { %v5274_v23 = vpop.f32.mrf.mxu1  ;;  %5566 = vmatmul.mubr.bf16.vlgmr.msra.gmra.mxu1 %v1310_v21 }
 0x181   : > { %v5253_v24 = vpop.f32.mrf.mxu0 }
 0x182   : > { %v5275_v25 = vpop.f32.mrf.mxu1  ;;  %v5254_v26 = vadd.f32 %v5253_v24, %v5252_v22 }
 0x183   : > { %v5276_v27 = vadd.f32 %v5275_v25, %v5274_v23  ;;  %v5255_v28 = vpop.f32.mrf.mxu0 }
 0x184   : > { %v5277_v29 = vpop.f32.mrf.mxu1  ;;  %v3774_v30 = vadd.f32 %v5254_v26, %v3734_v2 }
 0x185   : > { %v5256_v31 = vpop.f32.mrf.mxu0 }
 0x186   : > { %v5278_v32 = vpop.f32.mrf.mxu1  ;;  %v3814_v33 = vadd.f32 %v5276_v27, %v3774_v30 }
 0x19f   : > { %v5296_v34 = vpop.f32.mrf.mxu0 }
 0x1a0   : > { %v5318_v35 = vpop.f32.mrf.mxu1 }
 0x1a1   : > { %v5297_v36 = vpop.f32.mrf.mxu0 }
 0x1a2   : > { %v5319_v42 = vpop.f32.mrf.mxu1  ;;  %v5298_v37 = vadd.f32 %v5297_v36, %v5296_v34 }
 0x1a3   : > { %v5320_v38 = vadd.f32 %v5319_v42, %v5318_v35  ;;  %v5299_v39 = vpop.f32.mrf.mxu0 }
 0x1a4   : > { %v5321_v40 = vpop.f32.mrf.mxu1  ;;  %v3854_v41 = vadd.f32 %v5298_v37, %v3814_v33  ;;  %v415_v37 = vld [vmem:[#allocation2] sm:$0xf] }
 0x1a5   : > { %v5300_v43 = vpop.f32.mrf.mxu0 }
 0x1a6   : > { %v5322_v44 = vpop.f32.mrf.mxu1  ;;  %v3894_v45 = vadd.f32 %v5320_v38, %v3854_v41 }
 0x1bf   : > { %v5340_v46 = vpop.f32.mrf.mxu0 }
 0x1c0   : > { %v5362_v47 = vpop.f32.mrf.mxu1 }
 0x1c1   : > { %v5341_v48 = vpop.f32.mrf.mxu0 }
 0x1c2   : > { %v5363_v49 = vpop.f32.mrf.mxu1  ;;  %v5342_v50 = vadd.f32 %v5341_v48, %v5340_v46 }
 0x1c3   : > { %v5364_v51 = vadd.f32 %v5363_v49, %v5362_v47  ;;  %v5343_v52 = vpop.f32.mrf.mxu0 }
 0x1c4   : > { %v5365_v53 = vpop.f32.mrf.mxu1  ;;  %v3934_v54 = vadd.f32 %v5342_v50, %v3894_v45 }
 0x1c5   : > { %v5344_v55 = vpop.f32.mrf.mxu0 }
 0x1c6   : > { %v5366_v56 = vpop.f32.mrf.mxu1  ;;  %v3974_v57 = vadd.f32 %v5364_v51, %v3934_v54 }
 0x1df   : > { %v5384_v58 = vpop.f32.mrf.mxu0 }
 0x1e0   : > { %v5406_v59 = vpop.f32.mrf.mxu1 }
 0x1e1   : > { %v5385_v60 = vpop.f32.mrf.mxu0 }
 0x1e2   : > { %v5407_v61 = vpop.f32.mrf.mxu1  ;;  %v5386_v62 = vadd.f32 %v5385_v60, %v5384_v58 }
 0x1e3   : > { %v5408_v63 = vadd.f32 %v5407_v61, %v5406_v59  ;;  %v5387_v0 = vpop.f32.mrf.mxu0 }
 0x1e4   : > { %v5409_v1 = vpop.f32.mrf.mxu1  ;;  %v4014_v2 = vadd.f32 %v5386_v62, %v3974_v57 }
 0x1e5   : > { %v5388_v3 = vpop.f32.mrf.mxu0 }
 0x1e6   : > { %v5410_v4 = vpop.f32.mrf.mxu1  ;;  %v4054_v5 = vadd.f32 %v5408_v63, %v4014_v2 }
 0x1ff   : > { %v5428_v6 = vpop.f32.mrf.mxu0 }
 0x200   : > { %v5450_v7 = vpop.f32.mrf.mxu1 }
 0x201   : > { %v5429_v8 = vpop.f32.mrf.mxu0 }
 0x202   : > { %v5451_v9 = vpop.f32.mrf.mxu1  ;;  %v5430_v22 = vadd.f32 %v5429_v8, %v5428_v6 }
 0x203   : > { %v5431_v10 = vpop.f32.mrf.mxu0  ;;  %v5452_v24 = vadd.f32 %v5451_v9, %v5450_v7 }
 0x204   : > { %v5453_v11 = vpop.f32.mrf.mxu1  ;;  %v4094_v23 = vadd.f32 %v5430_v22, %v4054_v5 }
 0x205   : > { %v5432_v12 = vpop.f32.mrf.mxu0 }
 0x206   : > { %v5454_v13 = vpop.f32.mrf.mxu1  ;;  %v4134_v26 = vadd.f32 %v5452_v24, %v4094_v23 }
 0x21f   : > { %v5472_v14 = vpop.f32.mrf.mxu0 }
 0x220   : > { %v5494_v15 = vpop.f32.mrf.mxu1 }
 0x221   : > { %v5473_v16 = vpop.f32.mrf.mxu0 }
 0x222   : > { %v5495_v17 = vpop.f32.mrf.mxu1  ;;  %v5474_v25 = vadd.f32 %v5473_v16, %v5472_v14 }
 0x223   : > { %v5475_v18 = vpop.f32.mrf.mxu0  ;;  %v5496_v28 = vadd.f32 %v5495_v17, %v5494_v15 }
 0x224   : > { %v5497_v19 = vpop.f32.mrf.mxu1  ;;  %v4174_v27 = vadd.f32 %v5474_v25, %v4134_v26 }
 0x225   : > { %v5476_v20 = vpop.f32.mrf.mxu0 }
 0x226   : > { %v5498_v21 = vpop.f32.mrf.mxu1  ;;  %v4214_v33 = vadd.f32 %v5496_v28, %v4174_v27 }
 0x23f   : > { %v5516_v29 = vpop.f32.mrf.mxu0 }
 0x240   : > { %v4293_v30 = vpop.f32.mrf.mxu1 }
 0x241   : > { %v5517_v31 = vpop.f32.mrf.mxu0 }
 0x242   : > { %v5567_v32 = vpop.f32.mrf.mxu1  ;;  %v5518_v34 = vadd.f32 %v5517_v31, %v5516_v29 }
 0x243   : > { %v5519_v35 = vpop.f32.mrf.mxu0 }
 0x244   : > { %v4296_v36 = vpop.f32.mrf.mxu1  ;;  %v4254_v42 = vadd.f32 %v5518_v34, %v4214_v33 }
 0x245   : > { %v5520_v38 = vpop.f32.mrf.mxu0 }
 0x246   : > { %v5568_v39 = vpop.f32.mrf.mxu1  ;;  %v4294_v40 = vadd.f32 %v4293_v30, %v4254_v42  ;;  %4304 = sbr.rel (%p5036_p9) target bundleno = 1049 (0x419), region = 56 }
 0x248   : > { %v4299_v41 = vadd.f32 %v4294_v40, %v415_v37 }
 0x24a   : > { %4300 = vst [vmem:[#allocation2] sm:$0xf] %v4299_v41 }
 0x24b   : > { %v6011_v43 = vld [vmem:[%s6167_s21 + $0x38] sm:$0xff]   ;;  %v6075_v44 = vmov 0.0   ;;  %v6012_v45 = vld [vmem:[%s6167_s21 + $0x30] sm:$0xff]   ;;  %vm6076_vm1 = vmmov 0   ;;  %v6013_v46 = vld [vmem:[%s6167_s21 + $0x28] sm:$0xff]  }
 0x24c   : > { %5569 = vmatprep.subr.bf16.mxu0 %v6075_v44  ;;  %5589 = vmatprep.subr.bf16.mxu1 %v6075_v44  ;;  %v6019_v47 = vld [vmem:[%s6176_s13 + $0x38] sm:$0xff]   ;;  %v6014_v48 = vld [vmem:[%s6167_s21 + $0x20] sm:$0xff]   ;;  %v6020_v49 = vld [vmem:[%s6176_s13 + $0x30] sm:$0xff]  }
 0x24d   : > { %5570 = vmatpush3.bf16.msra.mxu0 %v6011_v43  ;;  %5585 = vmatprep.mubr.msk.bf16.mxu0 %vm6076_vm1, %v6075_v44  ;;  %v6015_v50 = vld [vmem:[%s6167_s21 + $0x18] sm:$0xff]   ;;  %v6021_v51 = vld [vmem:[%s6176_s13 + $0x28] sm:$0xff]   ;;  %v6016_v52 = vld [vmem:[%s6167_s21 + $0x10] sm:$0xff]  }
 0x24e   : > { %5571 = vmatprep.subr.bf16.mxu0 %v6075_v44  ;;  %5605 = vmatprep.mubr.msk.bf16.mxu1 %vm6076_vm1, %v6075_v44  ;;  %v5037_v54 = vld [vmem:[%s6655_s24] ss:$0 sm:$0xff]  ;;  %v6017_v57 = vld [vmem:[%s6167_s21 + $0x8] sm:$0xff]   ;;  %v6023_v58 = vld [vmem:[%s6176_s13 + $0x18] sm:$0xff]  }
 0x24f   : > { %5590 = vmatpush3.bf16.msra.mxu1 %v6019_v47  ;;  %v6022_v55 = vld [vmem:[%s6176_s13 + $0x20] sm:$0xff]   ;;  %v6024_v61 = vld [vmem:[%s6176_s13 + $0x10] sm:$0xff]   ;;  %v6025_v63 = vld [vmem:[%s6176_s13 + $0x8] sm:$0xff]  }
 0x250   : > { %5591 = vmatprep.subr.bf16.mxu1 %v6075_v44  ;;  %v6018_v60 = vld [vmem:[%s6167_s21] sm:$0xff]  }
 0x251   : > { %5572 = vmatpush3.bf16.msra.mxu0 %v6012_v45  ;;  %v4305_v53 = vld [vmem:[#allocation2] sm:$0xf] }
 0x252   : > { %5573 = vmatprep.subr.bf16.mxu0 %v6075_v44  ;;  %v4313_v56 = vadd.f32 %v5037_v54, %v4305_v53  ;;  %v6026_v0 = vld [vmem:[%s6176_s13] sm:$0xff]  }
 0x253   : > { %5592 = vmatpush3.bf16.msra.mxu1 %v6020_v49  ;;  %v5038_v1 = vld [vmem:[%s396_s8] ss:$0 sm:$0xff] }
 0x254   : > { %5593 = vmatprep.subr.bf16.mxu1 %v6075_v44  ;;  %v4314_v59 = vmax.f32 %v4313_v56, 0.0  ;;  %v5047_v9 = vld [vmem:[%s404_s14] ss:$0 sm:$0xff] }
 0x255   : > { %5574 = vmatpush3.bf16.msra.mxu0 %v6013_v46 }
 0x256   : > { %5575 = vmatprep.subr.bf16.mxu0 %v6075_v44  ;;  %v4315_v62 = vpack.c.bf16 %v4314_v59, %v4314_v59 }
 0x257   : > { %5594 = vmatpush3.bf16.msra.mxu1 %v6021_v51 }
 0x258   : > { %5595 = vmatprep.subr.bf16.mxu1 %v6075_v44 }
 0x259   : > { %5576 = vmatpush3.bf16.msra.mxu0 %v6014_v48 }
 0x25a   : > { %5577 = vmatprep.subr.bf16.mxu0 %v6075_v44 }
 0x25b   : > { %5596 = vmatpush3.bf16.msra.mxu1 %v6022_v55 }
 0x25c   : > { %5597 = vmatprep.subr.bf16.mxu1 %v6075_v44 }
 0x25d   : > { %5578 = vmatpush3.bf16.msra.mxu0 %v6015_v50 }
 0x25e   : > { %5579 = vmatprep.subr.bf16.mxu0 %v6075_v44 }
 0x25f   : > { %5598 = vmatpush3.bf16.msra.mxu1 %v6023_v58 }
 0x260   : > { %5599 = vmatprep.subr.bf16.mxu1 %v6075_v44 }
 0x261   : > { %5580 = vmatpush3.bf16.msra.mxu0 %v6016_v52 }
 0x262   : > { %5581 = vmatprep.subr.bf16.mxu0 %v6075_v44 }
 0x263   : > { %5600 = vmatpush3.bf16.msra.mxu1 %v6024_v61 }
 0x264   : > { %5601 = vmatprep.subr.bf16.mxu1 %v6075_v44 }
 0x265   : > { %5582 = vmatpush3.bf16.msra.mxu0 %v6017_v57 }
 0x266   : > { %5583 = vmatprep.subr.bf16.mxu0 %v6075_v44 }
 0x267   : > { %5602 = vmatpush3.bf16.msra.mxu1 %v6025_v63 }
 0x268   : > { %5603 = vmatprep.subr.bf16.mxu1 %v6075_v44 }
 0x269   : > { %5584 = vmatpush3.bf16.msra.mxu0 %v6018_v60 }
 0x26b   : > { %5604 = vmatpush3.bf16.msra.mxu1 %v6026_v0 }
 0x26c   : > { %5586 = vmatmul.mubr.bf16.vlgmr.msra.gmra.mxu0 %v4315_v62 }
 0x32c   : > { %v4421_v2 = vpop.f32.mrf.mxu0 }
 0x32d   : > { %v4422_v3 = vadd.f32 %v5038_v1, %v4421_v2 }
 0x32e   : > { %v5587_v4 = vpop.f32.mrf.mxu0 }
 0x32f   : > { %v4427_v5 = vmax.f32 %v4422_v3, 0.0 }
 0x330   : > { %v4424_v6 = vpop.f32.mrf.mxu0 }
 0x331   : > { %v4428_v7 = vpack.c.bf16 %v4427_v5, %v4427_v5 }
 0x332   : > { %v5588_v8 = vpop.f32.mrf.mxu0 }
 0x333   : > { %5606 = vmatmul.mubr.bf16.vlgmr.msra.gmra.mxu1 %v4428_v7 }
 0x3f3   : > { %v4534_v10 = vpop.f32.mrf.mxu1 }
 0x3f4   : > { %v4535_v11 = vadd.f32 %v5047_v9, %v4534_v10 }
 0x3f5   : > { %v5607_v12 = vpop.f32.mrf.mxu1 }
 0x3f6   : > { %v4540_v13 = vsub.f32 0.0, %v4535_v11 }
 0x3f7   : > { %v4537_v14 = vpop.f32.mrf.mxu1 }
 0x3f8   : > { %v4541_v15 = vmul.f32 1.442695, %v4540_v13 }
 0x3f9   : > { %v5608_v16 = vpop.f32.mrf.mxu1 }
 0x3fa   : > { %6027 = vpow2.f32 %v4541_v15 }
 0x407   : > { %v6028_v17 = vpop.eup %6027 }
 0x408   : > { %v4543_v18 = vadd.f32 1.0, %v6028_v17 }
 0x40a   : > { %6029 = vrcp.f32 %v4543_v18 }
 0x417   : > { %v6030_v19 = vpop.eup %6029 }
 0x418   : > { %4545 = vst [vmem:[%s6191_s9] sm:$0xf] %v6030_v19 }
 0x419 PF: > { %s17_s28 = sadd.s32 1, %s6069_s28   ;;  %s6656_s25 = sld [smem:[#allocation3_spill]] }
 0x41a   : > { %p14_p10 = scmp.ge.s32.totalorder %s17_s28, 10   ;;  %s6657_s14 = sld [smem:[#allocation4_spill]] }
 0x41b   : > { %s6658_s27 = sld [smem:[#allocation5_spill]]  ;;  %s6659_s24 = smov %s6061_s26 }
 0x41c   :  { %16 = sbr.rel (!%p14_p10) target bundleno = 4 (0x4), region = 104 }
 0x420   : > { %s6660_s26 = smov %s6657_s14 }

</bundles_post_ra>
